<compile_context>
chip_gen: v6e
topology: v6e:2x2x1
jax: 0.10.0
libtpu: 0.0.40
codegen_flags: <defaults>
</compile_context>

<pallas_src>
import functools

import jax
import jax.numpy as jnp
from jax import lax
from jax.experimental import pallas as pl
from jax.experimental.pallas import tpu as pltpu

LANE = 128
SUBLANE = 8


def _round_up(n, m):
    return ((n + m - 1) // m) * m


# ----------------------------------------------------------------------------
# Fused two-layer GRU encoder kernel (single invocation, no grid)
# ----------------------------------------------------------------------------
def _encoder_kernel(x_ref,                 # (T*BP, F)        time-major rows
                    w1i_ref, b1i_ref,      # (F, 3H1p), (1, 3H1p)
                    wA_ref, bA_ref,        # (H1p+H2p, 3H1p+H2p), (1, 3H1p+H2p)
                    wB_ref, bB_ref,        # (H1p+H2p, 3H2p), (1, 3H2p)
                    y_ref,                 # (T*BP, H2p)      out (dense slab)
                    hn_ref):               # (BP, H2p)        out
    BP, H2P = hn_ref.shape
    T = y_ref.shape[0] // BP
    H1P = (wA_ref.shape[1] - H2P) // 3

    # --- hoisted layer-1 input projection (one matmul for all time steps) ---
    gi1_all = (jnp.dot(x_ref[...], w1i_ref[...],
                       preferred_element_type=jnp.float32)
               + b1i_ref[...])                            # (T*BP, 3H1p)

    # load weights once; hoist bias broadcasts out of the unrolled loop
    wA = wA_ref[...]
    wB = wB_ref[...]
    bA = jnp.broadcast_to(bA_ref[...], (BP, wA.shape[1]))
    bB = jnp.broadcast_to(bB_ref[...], (BP, wB.shape[1]))

    h1 = jnp.zeros((BP, H1P), jnp.float32)
    h2 = jnp.zeros((BP, H2P), jnp.float32)

    # T is small and static -> fully unrolled recurrence (static slices/stores)
    for t in range(T):
        # Fused matmul A: gh1 (layer-1, all gates) + gh2_n (layer-2 n gate)
        ghA = jnp.dot(jnp.concatenate([h1, h2], axis=1), wA,
                      preferred_element_type=jnp.float32) + bA
        gh1 = ghA[:, :3 * H1P]                            # (BP, 3H1p)
        gh2n = ghA[:, 3 * H1P:]                           # (BP, H2p)  = W_hn2 h2 + b_hn2

        # --- layer-1 cell ---------------------------------------------------
        gi1 = gi1_all[t * BP:(t + 1) * BP, :]             # (BP, 3H1p), biases folded
        r1 = jax.nn.sigmoid(gi1[:, :H1P] + gh1[:, :H1P])
        z1 = jax.nn.sigmoid(gi1[:, H1P:2 * H1P] + gh1[:, H1P:2 * H1P])
        n1 = jnp.tanh(gi1[:, 2 * H1P:] + r1 * gh1[:, 2 * H1P:])
        h1 = n1 + z1 * (h1 - n1)

        # Fused matmul B: gi2 (all gates, from h1_new) with gh2 (r,z from h2)
        # accumulated in the same contraction; n-gate hidden term kept apart.
        gB = jnp.dot(jnp.concatenate([h1, h2], axis=1), wB,
                     preferred_element_type=jnp.float32) + bB
        r2 = jax.nn.sigmoid(gB[:, :H2P])
        z2 = jax.nn.sigmoid(gB[:, H2P:2 * H2P])
        n2 = jnp.tanh(gB[:, 2 * H2P:] + r2 * gh2n)
        h2 = n2 + z2 * (h2 - n2)

        # full (8,128) unmasked, lane/sublane-dense store
        y_ref[t * BP:(t + 1) * BP, :] = h2.astype(y_ref.dtype)

    hn_ref[...] = h2.astype(hn_ref.dtype)                 # final hidden, once


def _encoder_pallas(x_rows, w1i, b1i, wA, bA, wB, bB, T, BP):
    H2P = wB.shape[1] // 3
    vmem = pl.BlockSpec(memory_space=pltpu.MemorySpace.VMEM)
    return pl.pallas_call(
        _encoder_kernel,
        out_shape=(
            jax.ShapeDtypeStruct((T * BP, H2P), jnp.float32),
            jax.ShapeDtypeStruct((BP, H2P), jnp.float32),
        ),
        in_specs=[vmem] * 7,
        out_specs=(vmem, vmem),
    )(x_rows, w1i, b1i, wA, bA, wB, bB)


# ----------------------------------------------------------------------------
# Parameter construction / packing
# ----------------------------------------------------------------------------
def init_gru_params(key, input_size, hidden_size):
    """PyTorch-style uniform(-1/sqrt(H), 1/sqrt(H)) init, torch layout."""
    k = 1.0 / (hidden_size ** 0.5)
    ks = jax.random.split(key, 4)
    return dict(
        w_ih=jax.random.uniform(ks[0], (3 * hidden_size, input_size),
                                jnp.float32, -k, k),
        w_hh=jax.random.uniform(ks[1], (3 * hidden_size, hidden_size),
                                jnp.float32, -k, k),
        b_ih=jax.random.uniform(ks[2], (3 * hidden_size,), jnp.float32, -k, k),
        b_hh=jax.random.uniform(ks[3], (3 * hidden_size,), jnp.float32, -k, k),
    )


def _gate_split_pad_cols(w_t, H, Hp):
    """(rows, 3H) -> (rows, 3Hp): each gate block padded to Hp lanes."""
    gs = [jnp.pad(w_t[:, g * H:(g + 1) * H], ((0, 0), (0, Hp - H)))
          for g in range(3)]
    return jnp.concatenate(gs, axis=1)


def _gate_split_pad_vec(v, H, Hp):
    return [jnp.pad(v[g * H:(g + 1) * H], (0, Hp - H)) for g in range(3)]


def pack_encoder_params(p1, p2):
    """torch-layout GRU params -> fused, lane-aligned kernel operands.

    Returns (w1i, b1i, wA, bA, wB, bB):
      w1i (F, 3H1p), b1i (1, 3H1p)        : hoisted layer-1 input projection
                                            (b_ih + b_hh folded for r,z).
      wA  (H1p+H2p, 3H1p+H2p), bA         : block-diag [w1h, w2h_n]; result is
                                            [gh1 | gh2_n] for [h1 | h2] LHS.
      wB  (H1p+H2p, 3H2p), bB             : vstack(w2i, w2h with n-block zeroed);
                                            result is gi2+gh2 (r,z), gi2 (n).
    Zero padding keeps padded hidden lanes exactly zero through the recurrence.
    """
    f32 = jnp.float32
    w_ih1, w_hh1 = p1["w_ih"].astype(f32), p1["w_hh"].astype(f32)
    b_ih1, b_hh1 = p1["b_ih"].astype(f32), p1["b_hh"].astype(f32)
    w_ih2, w_hh2 = p2["w_ih"].astype(f32), p2["w_hh"].astype(f32)
    b_ih2, b_hh2 = p2["b_ih"].astype(f32), p2["b_hh"].astype(f32)

    H1 = w_hh1.shape[1]
    H2 = w_hh2.shape[1]
    H1P = _round_up(H1, LANE)
    H2P = _round_up(H2, LANE)

    # ---- layer-1 input projection ------------------------------------------
    w1i = _gate_split_pad_cols(w_ih1.T, H1, H1P)                  # (F, 3H1p)
    bi1r, bi1z, bi1n = _gate_split_pad_vec(b_ih1, H1, H1P)
    bh1r, bh1z, bh1n = _gate_split_pad_vec(b_hh1, H1, H1P)
    b1i = jnp.concatenate([bi1r + bh1r, bi1z + bh1z, bi1n]).reshape(1, 3 * H1P)

    # ---- fused matmul A: [h1 | h2] -> [gh1 (3 gates) | gh2_n] ---------------
    w1h = _gate_split_pad_cols(w_hh1.T, H1, H1P)                  # (H1, 3H1p)
    w1h = jnp.pad(w1h, ((0, H1P - H1), (0, 0)))                   # (H1p, 3H1p)
    w2h_t = w_hh2.T                                               # (H2, 3H2)
    w2h_n = jnp.pad(w2h_t[:, 2 * H2:],
                    ((0, H2P - H2), (0, H2P - H2)))               # (H2p, H2p)
    wA = jnp.block([[w1h, jnp.zeros((H1P, H2P), f32)],
                    [jnp.zeros((H2P, 3 * H1P), f32), w2h_n]])     # (256, 3H1p+H2p)
    bh2r, bh2z, bh2n = _gate_split_pad_vec(b_hh2, H2, H2P)
    bA = jnp.concatenate([jnp.zeros((H1P,), f32), jnp.zeros((H1P,), f32),
                          bh1n, bh2n]).reshape(1, 3 * H1P + H2P)

    # ---- fused matmul B: [h1_new | h2] -> gi2+gh2 (r,z), gi2 (n) ------------
    w2i = _gate_split_pad_cols(w_ih2.T, H2, H2P)                  # (H1, 3H2p)
    w2i = jnp.pad(w2i, ((0, H1P - H1), (0, 0)))                   # (H1p, 3H2p)
    w2h_rz = _gate_split_pad_cols(w2h_t, H2, H2P)                 # (H2, 3H2p)
    w2h_rz = w2h_rz.at[:, 2 * H2P:].set(0.0)                      # drop n block
    w2h_rz = jnp.pad(w2h_rz, ((0, H2P - H2), (0, 0)))             # (H2p, 3H2p)
    wB = jnp.concatenate([w2i, w2h_rz], axis=0)                   # (256, 3H2p)
    bi2r, bi2z, bi2n = _gate_split_pad_vec(b_ih2, H2, H2P)
    bB = jnp.concatenate([bi2r + bh2r, bi2z + bh2z, bi2n]).reshape(1, 3 * H2P)

    return w1i, b1i, wA, bA, wB, bB


# ----------------------------------------------------------------------------
# Encoder forward (matches the PyTorch module's forward)
# ----------------------------------------------------------------------------
@functools.partial(jax.jit, static_argnames=("embedding_dim",))
def encoder_forward(x, packed, *, embedding_dim):
    """x: (B, T, num_features). Returns (y (B, T, E), hidden_n (B, E))."""
    w1i, b1i, wA, bA, wB, bB = packed
    B, T, F = x.shape
    BP = _round_up(B, SUBLANE)                      # pad batch to full sublanes
    x_tm = jnp.transpose(x, (1, 0, 2)).astype(jnp.float32)       # (T, B, F)
    x_tm = jnp.pad(x_tm, ((0, 0), (0, BP - B), (0, 0)))          # (T, BP, F)
    y_pad, hn_pad = _encoder_pallas(x_tm.reshape(T * BP, F),
                                    w1i, b1i, wA, bA, wB, bB, T, BP)
    H2P = wB.shape[1] // 3
    y = y_pad.reshape(T, BP, H2P)[:, :B, :embedding_dim]         # (T, B, E)
    y = jnp.transpose(y, (1, 0, 2))                              # (B, T, E)
    hidden_n = hn_pad[:B, :embedding_dim]                        # (B, E)
    return y, hidden_n


# ----------------------------------------------------------------------------
# Pure-JAX reference (lax.scan over the unpadded torch-layout params)
# ----------------------------------------------------------------------------
def gru_layer_ref(x_tm, p):
    H = p["w_hh"].shape[1]
    wi, wh = p["w_ih"].T, p["w_hh"].T
    bi, bh = p["b_ih"], p["b_hh"]

    def step(h, x_t):
        gi = x_t @ wi + bi
        gh = h @ wh + bh
        r = jax.nn.sigmoid(gi[:, :H] + gh[:, :H])
        z = jax.nn.sigmoid(gi[:, H:2 * H] + gh[:, H:2 * H])
        n = jnp.tanh(gi[:, 2 * H:] + r * gh[:, 2 * H:])
        h_new = (1.0 - z) * n + z * h
        return h_new, h_new

    B = x_tm.shape[1]
    h0 = jnp.zeros((B, H), jnp.float32)
    h_n, ys = lax.scan(step, h0, x_tm)
    return ys, h_n


def encoder_ref(x, p1, p2):
    x_tm = jnp.transpose(x, (1, 0, 2))
    y1, _ = gru_layer_ref(x_tm, p1)
    y2, h2 = gru_layer_ref(y1, p2)
    return jnp.transpose(y2, (1, 0, 2)), h2.reshape(-1, h2.shape[-1])


# ----------------------------------------------------------------------------
if __name__ == "__main__":
    B, T, num_features = 2, 8, 4
    embedding_dim = 32
    hidden_dim = 2 * embedding_dim  # 64

    root = jax.random.PRNGKey(0)
    kx, k1, k2 = jax.random.split(root, 3)

    x = jax.random.normal(kx, (B, T, num_features), jnp.float32)
    p1 = init_gru_params(k1, num_features, hidden_dim)      # rnn1
    p2 = init_gru_params(k2, hidden_dim, embedding_dim)     # rnn2

    packed = pack_encoder_params(p1, p2)

    y, hidden_n = encoder_forward(x, packed, embedding_dim=embedding_dim)
    jax.block_until_ready((y, hidden_n))

    y_ref, h_ref = encoder_ref(x, p1, p2)
    assert y.shape == (B, T, embedding_dim)
    assert hidden_n.shape == (B, embedding_dim)
    assert jnp.allclose(y, y_ref, atol=1e-5, rtol=1e-5)
    assert jnp.allclose(hidden_n, h_ref, atol=1e-5, rtol=1e-5)

    print("KERNEL_OK")
</pallas_src>

<mosaic_0001>
module attributes {stable_mosaic.version = 11 : i64} {
  func.func @_encoder_kernel(%arg0: memref<64x4xf32, #tpu.memory_space<vmem>>, %arg1: memref<4x384xf32, #tpu.memory_space<vmem>>, %arg2: memref<1x384xf32, #tpu.memory_space<vmem>>, %arg3: memref<256x512xf32, #tpu.memory_space<vmem>>, %arg4: memref<1x512xf32, #tpu.memory_space<vmem>>, %arg5: memref<256x384xf32, #tpu.memory_space<vmem>>, %arg6: memref<1x384xf32, #tpu.memory_space<vmem>>, %arg7: memref<64x128xf32, #tpu.memory_space<vmem>>, %arg8: memref<8x128xf32, #tpu.memory_space<vmem>>) attributes {dimension_semantics = [], scalar_prefetch = 0 : i64, scratch_operands = 0 : i64, tpu.core_type = #tpu.core_type<tc>} {
    %c0 = arith.constant 0 : index
    %c0_0 = arith.constant 0 : index
    %0 = vector.load %arg0[%c0, %c0_0] : memref<64x4xf32, #tpu.memory_space<vmem>>, vector<64x4xf32>
    %c0_1 = arith.constant 0 : index
    %c0_2 = arith.constant 0 : index
    %1 = vector.load %arg1[%c0_1, %c0_2] : memref<4x384xf32, #tpu.memory_space<vmem>>, vector<4x384xf32>
    %cst = arith.constant dense<0.000000e+00> : vector<64x384xf32>
    %2 = tpu.matmul %0, %1, %cst {dimension_numbers = #tpu.dot_dimension_numbers<[1], [0], [0], [1], [0, 0, 1, 1], [], []>} : vector<64x4xf32>, vector<4x384xf32>, vector<64x384xf32> -> vector<64x384xf32>
    %c0_3 = arith.constant 0 : index
    %c0_4 = arith.constant 0 : index
    %3 = vector.load %arg2[%c0_3, %c0_4] : memref<1x384xf32, #tpu.memory_space<vmem>>, vector<1x384xf32>
    %4 = vector.broadcast %3 : vector<1x384xf32> to vector<64x384xf32>
    %5 = arith.addf %2, %4 : vector<64x384xf32>
    %c0_5 = arith.constant 0 : index
    %c0_6 = arith.constant 0 : index
    %6 = vector.load %arg3[%c0_5, %c0_6] : memref<256x512xf32, #tpu.memory_space<vmem>>, vector<256x512xf32>
    %c0_7 = arith.constant 0 : index
    %c0_8 = arith.constant 0 : index
    %7 = vector.load %arg5[%c0_7, %c0_8] : memref<256x384xf32, #tpu.memory_space<vmem>>, vector<256x384xf32>
    %c0_9 = arith.constant 0 : index
    %c0_10 = arith.constant 0 : index
    %8 = vector.load %arg4[%c0_9, %c0_10] : memref<1x512xf32, #tpu.memory_space<vmem>>, vector<1x512xf32>
    %9 = vector.shape_cast %8 : vector<1x512xf32> to vector<1x512xf32>
    %10 = vector.broadcast %9 : vector<1x512xf32> to vector<8x512xf32>
    %c0_11 = arith.constant 0 : index
    %c0_12 = arith.constant 0 : index
    %11 = vector.load %arg6[%c0_11, %c0_12] : memref<1x384xf32, #tpu.memory_space<vmem>>, vector<1x384xf32>
    %12 = vector.shape_cast %11 : vector<1x384xf32> to vector<1x384xf32>
    %13 = vector.broadcast %12 : vector<1x384xf32> to vector<8x384xf32>
    %cst_13 = arith.constant 0.000000e+00 : f32
    %14 = vector.broadcast %cst_13 : f32 to vector<8x128xf32>
    %cst_14 = arith.constant 0.000000e+00 : f32
    %15 = vector.broadcast %cst_14 : f32 to vector<8x128xf32>
    %16 = tpu.concatenate %14, %15 in 1 : vector<8x128xf32>, vector<8x128xf32> -> vector<8x256xf32>
    %cst_15 = arith.constant dense<0.000000e+00> : vector<8x512xf32>
    %17 = tpu.matmul %16, %6, %cst_15 {dimension_numbers = #tpu.dot_dimension_numbers<[1], [0], [0], [1], [0, 0, 1, 1], [], []>} : vector<8x256xf32>, vector<256x512xf32>, vector<8x512xf32> -> vector<8x512xf32>
    %18 = arith.addf %17, %10 : vector<8x512xf32>
    %19 = vector.extract_strided_slice %18 {offsets = [0, 0], sizes = [8, 384], strides = [1, 1]} : vector<8x512xf32> to vector<8x384xf32>
    %20 = vector.extract_strided_slice %18 {offsets = [0, 384], sizes = [8, 128], strides = [1, 1]} : vector<8x512xf32> to vector<8x128xf32>
    %21 = vector.extract_strided_slice %5 {offsets = [0, 0], sizes = [8, 384], strides = [1, 1]} : vector<64x384xf32> to vector<8x384xf32>
    %22 = vector.extract_strided_slice %21 {offsets = [0, 0], sizes = [8, 128], strides = [1, 1]} : vector<8x384xf32> to vector<8x128xf32>
    %23 = vector.extract_strided_slice %19 {offsets = [0, 0], sizes = [8, 128], strides = [1, 1]} : vector<8x384xf32> to vector<8x128xf32>
    %24 = arith.addf %22, %23 : vector<8x128xf32>
    %25 = arith.negf %24 : vector<8x128xf32>
    %26 = math.exp %25 : vector<8x128xf32>
    %cst_16 = arith.constant 1.000000e+00 : f32
    %27 = vector.broadcast %cst_16 : f32 to vector<8x128xf32>
    %28 = arith.addf %27, %26 : vector<8x128xf32>
    %29 = arith.divf %27, %28 : vector<8x128xf32>
    %30 = vector.extract_strided_slice %21 {offsets = [0, 128], sizes = [8, 128], strides = [1, 1]} : vector<8x384xf32> to vector<8x128xf32>
    %31 = vector.extract_strided_slice %19 {offsets = [0, 128], sizes = [8, 128], strides = [1, 1]} : vector<8x384xf32> to vector<8x128xf32>
    %32 = arith.addf %30, %31 : vector<8x128xf32>
    %33 = arith.negf %32 : vector<8x128xf32>
    %34 = math.exp %33 : vector<8x128xf32>
    %cst_17 = arith.constant 1.000000e+00 : f32
    %35 = vector.broadcast %cst_17 : f32 to vector<8x128xf32>
    %36 = arith.addf %35, %34 : vector<8x128xf32>
    %37 = arith.divf %35, %36 : vector<8x128xf32>
    %38 = vector.extract_strided_slice %21 {offsets = [0, 256], sizes = [8, 128], strides = [1, 1]} : vector<8x384xf32> to vector<8x128xf32>
    %39 = vector.extract_strided_slice %19 {offsets = [0, 256], sizes = [8, 128], strides = [1, 1]} : vector<8x384xf32> to vector<8x128xf32>
    %40 = arith.mulf %29, %39 : vector<8x128xf32>
    %41 = arith.addf %38, %40 : vector<8x128xf32>
    %42 = math.tanh %41 : vector<8x128xf32>
    %43 = arith.subf %14, %42 : vector<8x128xf32>
    %44 = arith.mulf %37, %43 : vector<8x128xf32>
    %45 = arith.addf %42, %44 : vector<8x128xf32>
    %46 = tpu.concatenate %45, %15 in 1 : vector<8x128xf32>, vector<8x128xf32> -> vector<8x256xf32>
    %cst_18 = arith.constant dense<0.000000e+00> : vector<8x384xf32>
    %47 = tpu.matmul %46, %7, %cst_18 {dimension_numbers = #tpu.dot_dimension_numbers<[1], [0], [0], [1], [0, 0, 1, 1], [], []>} : vector<8x256xf32>, vector<256x384xf32>, vector<8x384xf32> -> vector<8x384xf32>
    %48 = arith.addf %47, %13 : vector<8x384xf32>
    %49 = vector.extract_strided_slice %48 {offsets = [0, 0], sizes = [8, 128], strides = [1, 1]} : vector<8x384xf32> to vector<8x128xf32>
    %50 = arith.negf %49 : vector<8x128xf32>
    %51 = math.exp %50 : vector<8x128xf32>
    %cst_19 = arith.constant 1.000000e+00 : f32
    %52 = vector.broadcast %cst_19 : f32 to vector<8x128xf32>
    %53 = arith.addf %52, %51 : vector<8x128xf32>
    %54 = arith.divf %52, %53 : vector<8x128xf32>
    %55 = vector.extract_strided_slice %48 {offsets = [0, 128], sizes = [8, 128], strides = [1, 1]} : vector<8x384xf32> to vector<8x128xf32>
    %56 = arith.negf %55 : vector<8x128xf32>
    %57 = math.exp %56 : vector<8x128xf32>
    %cst_20 = arith.constant 1.000000e+00 : f32
    %58 = vector.broadcast %cst_20 : f32 to vector<8x128xf32>
    %59 = arith.addf %58, %57 : vector<8x128xf32>
    %60 = arith.divf %58, %59 : vector<8x128xf32>
    %61 = vector.extract_strided_slice %48 {offsets = [0, 256], sizes = [8, 128], strides = [1, 1]} : vector<8x384xf32> to vector<8x128xf32>
    %62 = arith.mulf %54, %20 : vector<8x128xf32>
    %63 = arith.addf %61, %62 : vector<8x128xf32>
    %64 = math.tanh %63 : vector<8x128xf32>
    %65 = arith.subf %15, %64 : vector<8x128xf32>
    %66 = arith.mulf %60, %65 : vector<8x128xf32>
    %67 = arith.addf %64, %66 : vector<8x128xf32>
    %c0_21 = arith.constant 0 : index
    %c0_22 = arith.constant 0 : index
    %68 = vector.load %arg7[%c0_21, %c0_22] : memref<64x128xf32, #tpu.memory_space<vmem>>, vector<8x128xf32>
    tpu.vector_store %arg7[%c0_21, %c0_22], %67 {strides = array<i32>} : memref<64x128xf32, #tpu.memory_space<vmem>>, vector<8x128xf32>,
    %69 = tpu.concatenate %45, %67 in 1 : vector<8x128xf32>, vector<8x128xf32> -> vector<8x256xf32>
    %cst_23 = arith.constant dense<0.000000e+00> : vector<8x512xf32>
    %70 = tpu.matmul %69, %6, %cst_23 {dimension_numbers = #tpu.dot_dimension_numbers<[1], [0], [0], [1], [0, 0, 1, 1], [], []>} : vector<8x256xf32>, vector<256x512xf32>, vector<8x512xf32> -> vector<8x512xf32>
    %71 = arith.addf %70, %10 : vector<8x512xf32>
    %72 = vector.extract_strided_slice %71 {offsets = [0, 0], sizes = [8, 384], strides = [1, 1]} : vector<8x512xf32> to vector<8x384xf32>
    %73 = vector.extract_strided_slice %71 {offsets = [0, 384], sizes = [8, 128], strides = [1, 1]} : vector<8x512xf32> to vector<8x128xf32>
    %74 = vector.extract_strided_slice %5 {offsets = [8, 0], sizes = [8, 384], strides = [1, 1]} : vector<64x384xf32> to vector<8x384xf32>
    %75 = vector.extract_strided_slice %74 {offsets = [0, 0], sizes = [8, 128], strides = [1, 1]} : vector<8x384xf32> to vector<8x128xf32>
    %76 = vector.extract_strided_slice %72 {offsets = [0, 0], sizes = [8, 128], strides = [1, 1]} : vector<8x384xf32> to vector<8x128xf32>
    %77 = arith.addf %75, %76 : vector<8x128xf32>
    %78 = arith.negf %77 : vector<8x128xf32>
    %79 = math.exp %78 : vector<8x128xf32>
    %cst_24 = arith.constant 1.000000e+00 : f32
    %80 = vector.broadcast %cst_24 : f32 to vector<8x128xf32>
    %81 = arith.addf %80, %79 : vector<8x128xf32>
    %82 = arith.divf %80, %81 : vector<8x128xf32>
    %83 = vector.extract_strided_slice %74 {offsets = [0, 128], sizes = [8, 128], strides = [1, 1]} : vector<8x384xf32> to vector<8x128xf32>
    %84 = vector.extract_strided_slice %72 {offsets = [0, 128], sizes = [8, 128], strides = [1, 1]} : vector<8x384xf32> to vector<8x128xf32>
    %85 = arith.addf %83, %84 : vector<8x128xf32>
    %86 = arith.negf %85 : vector<8x128xf32>
    %87 = math.exp %86 : vector<8x128xf32>
    %cst_25 = arith.constant 1.000000e+00 : f32
    %88 = vector.broadcast %cst_25 : f32 to vector<8x128xf32>
    %89 = arith.addf %88, %87 : vector<8x128xf32>
    %90 = arith.divf %88, %89 : vector<8x128xf32>
    %91 = vector.extract_strided_slice %74 {offsets = [0, 256], sizes = [8, 128], strides = [1, 1]} : vector<8x384xf32> to vector<8x128xf32>
    %92 = vector.extract_strided_slice %72 {offsets = [0, 256], sizes = [8, 128], strides = [1, 1]} : vector<8x384xf32> to vector<8x128xf32>
    %93 = arith.mulf %82, %92 : vector<8x128xf32>
    %94 = arith.addf %91, %93 : vector<8x128xf32>
    %95 = math.tanh %94 : vector<8x128xf32>
    %96 = arith.subf %45, %95 : vector<8x128xf32>
    %97 = arith.mulf %90, %96 : vector<8x128xf32>
    %98 = arith.addf %95, %97 : vector<8x128xf32>
    %99 = tpu.concatenate %98, %67 in 1 : vector<8x128xf32>, vector<8x128xf32> -> vector<8x256xf32>
    %cst_26 = arith.constant dense<0.000000e+00> : vector<8x384xf32>
    %100 = tpu.matmul %99, %7, %cst_26 {dimension_numbers = #tpu.dot_dimension_numbers<[1], [0], [0], [1], [0, 0, 1, 1], [], []>} : vector<8x256xf32>, vector<256x384xf32>, vector<8x384xf32> -> vector<8x384xf32>
    %101 = arith.addf %100, %13 : vector<8x384xf32>
    %102 = vector.extract_strided_slice %101 {offsets = [0, 0], sizes = [8, 128], strides = [1, 1]} : vector<8x384xf32> to vector<8x128xf32>
    %103 = arith.negf %102 : vector<8x128xf32>
    %104 = math.exp %103 : vector<8x128xf32>
    %cst_27 = arith.constant 1.000000e+00 : f32
    %105 = vector.broadcast %cst_27 : f32 to vector<8x128xf32>
    %106 = arith.addf %105, %104 : vector<8x128xf32>
    %107 = arith.divf %105, %106 : vector<8x128xf32>
    %108 = vector.extract_strided_slice %101 {offsets = [0, 128], sizes = [8, 128], strides = [1, 1]} : vector<8x384xf32> to vector<8x128xf32>
    %109 = arith.negf %108 : vector<8x128xf32>
    %110 = math.exp %109 : vector<8x128xf32>
    %cst_28 = arith.constant 1.000000e+00 : f32
    %111 = vector.broadcast %cst_28 : f32 to vector<8x128xf32>
    %112 = arith.addf %111, %110 : vector<8x128xf32>
    %113 = arith.divf %111, %112 : vector<8x128xf32>
    %114 = vector.extract_strided_slice %101 {offsets = [0, 256], sizes = [8, 128], strides = [1, 1]} : vector<8x384xf32> to vector<8x128xf32>
    %115 = arith.mulf %107, %73 : vector<8x128xf32>
    %116 = arith.addf %114, %115 : vector<8x128xf32>
    %117 = math.tanh %116 : vector<8x128xf32>
    %118 = arith.subf %67, %117 : vector<8x128xf32>
    %119 = arith.mulf %113, %118 : vector<8x128xf32>
    %120 = arith.addf %117, %119 : vector<8x128xf32>
    %c8 = arith.constant 8 : index
    %c0_29 = arith.constant 0 : index
    %121 = vector.load %arg7[%c8, %c0_29] : memref<64x128xf32, #tpu.memory_space<vmem>>, vector<8x128xf32>
    tpu.vector_store %arg7[%c8, %c0_29], %120 {strides = array<i32>} : memref<64x128xf32, #tpu.memory_space<vmem>>, vector<8x128xf32>,
    %122 = tpu.concatenate %98, %120 in 1 : vector<8x128xf32>, vector<8x128xf32> -> vector<8x256xf32>
    %cst_30 = arith.constant dense<0.000000e+00> : vector<8x512xf32>
    %123 = tpu.matmul %122, %6, %cst_30 {dimension_numbers = #tpu.dot_dimension_numbers<[1], [0], [0], [1], [0, 0, 1, 1], [], []>} : vector<8x256xf32>, vector<256x512xf32>, vector<8x512xf32> -> vector<8x512xf32>
    %124 = arith.addf %123, %10 : vector<8x512xf32>
    %125 = vector.extract_strided_slice %124 {offsets = [0, 0], sizes = [8, 384], strides = [1, 1]} : vector<8x512xf32> to vector<8x384xf32>
    %126 = vector.extract_strided_slice %124 {offsets = [0, 384], sizes = [8, 128], strides = [1, 1]} : vector<8x512xf32> to vector<8x128xf32>
    %127 = vector.extract_strided_slice %5 {offsets = [16, 0], sizes = [8, 384], strides = [1, 1]} : vector<64x384xf32> to vector<8x384xf32>
    %128 = vector.extract_strided_slice %127 {offsets = [0, 0], sizes = [8, 128], strides = [1, 1]} : vector<8x384xf32> to vector<8x128xf32>
    %129 = vector.extract_strided_slice %125 {offsets = [0, 0], sizes = [8, 128], strides = [1, 1]} : vector<8x384xf32> to vector<8x128xf32>
    %130 = arith.addf %128, %129 : vector<8x128xf32>
    %131 = arith.negf %130 : vector<8x128xf32>
    %132 = math.exp %131 : vector<8x128xf32>
    %cst_31 = arith.constant 1.000000e+00 : f32
    %133 = vector.broadcast %cst_31 : f32 to vector<8x128xf32>
    %134 = arith.addf %133, %132 : vector<8x128xf32>
    %135 = arith.divf %133, %134 : vector<8x128xf32>
    %136 = vector.extract_strided_slice %127 {offsets = [0, 128], sizes = [8, 128], strides = [1, 1]} : vector<8x384xf32> to vector<8x128xf32>
    %137 = vector.extract_strided_slice %125 {offsets = [0, 128], sizes = [8, 128], strides = [1, 1]} : vector<8x384xf32> to vector<8x128xf32>
    %138 = arith.addf %136, %137 : vector<8x128xf32>
    %139 = arith.negf %138 : vector<8x128xf32>
    %140 = math.exp %139 : vector<8x128xf32>
    %cst_32 = arith.constant 1.000000e+00 : f32
    %141 = vector.broadcast %cst_32 : f32 to vector<8x128xf32>
    %142 = arith.addf %141, %140 : vector<8x128xf32>
    %143 = arith.divf %141, %142 : vector<8x128xf32>
    %144 = vector.extract_strided_slice %127 {offsets = [0, 256], sizes = [8, 128], strides = [1, 1]} : vector<8x384xf32> to vector<8x128xf32>
    %145 = vector.extract_strided_slice %125 {offsets = [0, 256], sizes = [8, 128], strides = [1, 1]} : vector<8x384xf32> to vector<8x128xf32>
    %146 = arith.mulf %135, %145 : vector<8x128xf32>
    %147 = arith.addf %144, %146 : vector<8x128xf32>
    %148 = math.tanh %147 : vector<8x128xf32>
    %149 = arith.subf %98, %148 : vector<8x128xf32>
    %150 = arith.mulf %143, %149 : vector<8x128xf32>
    %151 = arith.addf %148, %150 : vector<8x128xf32>
    %152 = tpu.concatenate %151, %120 in 1 : vector<8x128xf32>, vector<8x128xf32> -> vector<8x256xf32>
    %cst_33 = arith.constant dense<0.000000e+00> : vector<8x384xf32>
    %153 = tpu.matmul %152, %7, %cst_33 {dimension_numbers = #tpu.dot_dimension_numbers<[1], [0], [0], [1], [0, 0, 1, 1], [], []>} : vector<8x256xf32>, vector<256x384xf32>, vector<8x384xf32> -> vector<8x384xf32>
    %154 = arith.addf %153, %13 : vector<8x384xf32>
    %155 = vector.extract_strided_slice %154 {offsets = [0, 0], sizes = [8, 128], strides = [1, 1]} : vector<8x384xf32> to vector<8x128xf32>
    %156 = arith.negf %155 : vector<8x128xf32>
    %157 = math.exp %156 : vector<8x128xf32>
    %cst_34 = arith.constant 1.000000e+00 : f32
    %158 = vector.broadcast %cst_34 : f32 to vector<8x128xf32>
    %159 = arith.addf %158, %157 : vector<8x128xf32>
    %160 = arith.divf %158, %159 : vector<8x128xf32>
    %161 = vector.extract_strided_slice %154 {offsets = [0, 128], sizes = [8, 128], strides = [1, 1]} : vector<8x384xf32> to vector<8x128xf32>
    %162 = arith.negf %161 : vector<8x128xf32>
    %163 = math.exp %162 : vector<8x128xf32>
    %cst_35 = arith.constant 1.000000e+00 : f32
    %164 = vector.broadcast %cst_35 : f32 to vector<8x128xf32>
    %165 = arith.addf %164, %163 : vector<8x128xf32>
    %166 = arith.divf %164, %165 : vector<8x128xf32>
    %167 = vector.extract_strided_slice %154 {offsets = [0, 256], sizes = [8, 128], strides = [1, 1]} : vector<8x384xf32> to vector<8x128xf32>
    %168 = arith.mulf %160, %126 : vector<8x128xf32>
    %169 = arith.addf %167, %168 : vector<8x128xf32>
    %170 = math.tanh %169 : vector<8x128xf32>
    %171 = arith.subf %120, %170 : vector<8x128xf32>
    %172 = arith.mulf %166, %171 : vector<8x128xf32>
    %173 = arith.addf %170, %172 : vector<8x128xf32>
    %c16 = arith.constant 16 : index
    %c0_36 = arith.constant 0 : index
    %174 = vector.load %arg7[%c16, %c0_36] : memref<64x128xf32, #tpu.memory_space<vmem>>, vector<8x128xf32>
    tpu.vector_store %arg7[%c16, %c0_36], %173 {strides = array<i32>} : memref<64x128xf32, #tpu.memory_space<vmem>>, vector<8x128xf32>,
    %175 = tpu.concatenate %151, %173 in 1 : vector<8x128xf32>, vector<8x128xf32> -> vector<8x256xf32>
    %cst_37 = arith.constant dense<0.000000e+00> : vector<8x512xf32>
    %176 = tpu.matmul %175, %6, %cst_37 {dimension_numbers = #tpu.dot_dimension_numbers<[1], [0], [0], [1], [0, 0, 1, 1], [], []>} : vector<8x256xf32>, vector<256x512xf32>, vector<8x512xf32> -> vector<8x512xf32>
    %177 = arith.addf %176, %10 : vector<8x512xf32>
    %178 = vector.extract_strided_slice %177 {offsets = [0, 0], sizes = [8, 384], strides = [1, 1]} : vector<8x512xf32> to vector<8x384xf32>
    %179 = vector.extract_strided_slice %177 {offsets = [0, 384], sizes = [8, 128], strides = [1, 1]} : vector<8x512xf32> to vector<8x128xf32>
    %180 = vector.extract_strided_slice %5 {offsets = [24, 0], sizes = [8, 384], strides = [1, 1]} : vector<64x384xf32> to vector<8x384xf32>
    %181 = vector.extract_strided_slice %180 {offsets = [0, 0], sizes = [8, 128], strides = [1, 1]} : vector<8x384xf32> to vector<8x128xf32>
    %182 = vector.extract_strided_slice %178 {offsets = [0, 0], sizes = [8, 128], strides = [1, 1]} : vector<8x384xf32> to vector<8x128xf32>
    %183 = arith.addf %181, %182 : vector<8x128xf32>
    %184 = arith.negf %183 : vector<8x128xf32>
    %185 = math.exp %184 : vector<8x128xf32>
    %cst_38 = arith.constant 1.000000e+00 : f32
    %186 = vector.broadcast %cst_38 : f32 to vector<8x128xf32>
    %187 = arith.addf %186, %185 : vector<8x128xf32>
    %188 = arith.divf %186, %187 : vector<8x128xf32>
    %189 = vector.extract_strided_slice %180 {offsets = [0, 128], sizes = [8, 128], strides = [1, 1]} : vector<8x384xf32> to vector<8x128xf32>
    %190 = vector.extract_strided_slice %178 {offsets = [0, 128], sizes = [8, 128], strides = [1, 1]} : vector<8x384xf32> to vector<8x128xf32>
    %191 = arith.addf %189, %190 : vector<8x128xf32>
    %192 = arith.negf %191 : vector<8x128xf32>
    %193 = math.exp %192 : vector<8x128xf32>
    %cst_39 = arith.constant 1.000000e+00 : f32
    %194 = vector.broadcast %cst_39 : f32 to vector<8x128xf32>
    %195 = arith.addf %194, %193 : vector<8x128xf32>
    %196 = arith.divf %194, %195 : vector<8x128xf32>
    %197 = vector.extract_strided_slice %180 {offsets = [0, 256], sizes = [8, 128], strides = [1, 1]} : vector<8x384xf32> to vector<8x128xf32>
    %198 = vector.extract_strided_slice %178 {offsets = [0, 256], sizes = [8, 128], strides = [1, 1]} : vector<8x384xf32> to vector<8x128xf32>
    %199 = arith.mulf %188, %198 : vector<8x128xf32>
    %200 = arith.addf %197, %199 : vector<8x128xf32>
    %201 = math.tanh %200 : vector<8x128xf32>
    %202 = arith.subf %151, %201 : vector<8x128xf32>
    %203 = arith.mulf %196, %202 : vector<8x128xf32>
    %204 = arith.addf %201, %203 : vector<8x128xf32>
    %205 = tpu.concatenate %204, %173 in 1 : vector<8x128xf32>, vector<8x128xf32> -> vector<8x256xf32>
    %cst_40 = arith.constant dense<0.000000e+00> : vector<8x384xf32>
    %206 = tpu.matmul %205, %7, %cst_40 {dimension_numbers = #tpu.dot_dimension_numbers<[1], [0], [0], [1], [0, 0, 1, 1], [], []>} : vector<8x256xf32>, vector<256x384xf32>, vector<8x384xf32> -> vector<8x384xf32>
    %207 = arith.addf %206, %13 : vector<8x384xf32>
    %208 = vector.extract_strided_slice %207 {offsets = [0, 0], sizes = [8, 128], strides = [1, 1]} : vector<8x384xf32> to vector<8x128xf32>
    %209 = arith.negf %208 : vector<8x128xf32>
    %210 = math.exp %209 : vector<8x128xf32>
    %cst_41 = arith.constant 1.000000e+00 : f32
    %211 = vector.broadcast %cst_41 : f32 to vector<8x128xf32>
    %212 = arith.addf %211, %210 : vector<8x128xf32>
    %213 = arith.divf %211, %212 : vector<8x128xf32>
    %214 = vector.extract_strided_slice %207 {offsets = [0, 128], sizes = [8, 128], strides = [1, 1]} : vector<8x384xf32> to vector<8x128xf32>
    %215 = arith.negf %214 : vector<8x128xf32>
    %216 = math.exp %215 : vector<8x128xf32>
    %cst_42 = arith.constant 1.000000e+00 : f32
    %217 = vector.broadcast %cst_42 : f32 to vector<8x128xf32>
    %218 = arith.addf %217, %216 : vector<8x128xf32>
    %219 = arith.divf %217, %218 : vector<8x128xf32>
    %220 = vector.extract_strided_slice %207 {offsets = [0, 256], sizes = [8, 128], strides = [1, 1]} : vector<8x384xf32> to vector<8x128xf32>
    %221 = arith.mulf %213, %179 : vector<8x128xf32>
    %222 = arith.addf %220, %221 : vector<8x128xf32>
    %223 = math.tanh %222 : vector<8x128xf32>
    %224 = arith.subf %173, %223 : vector<8x128xf32>
    %225 = arith.mulf %219, %224 : vector<8x128xf32>
    %226 = arith.addf %223, %225 : vector<8x128xf32>
    %c24 = arith.constant 24 : index
    %c0_43 = arith.constant 0 : index
    %227 = vector.load %arg7[%c24, %c0_43] : memref<64x128xf32, #tpu.memory_space<vmem>>, vector<8x128xf32>
    tpu.vector_store %arg7[%c24, %c0_43], %226 {strides = array<i32>} : memref<64x128xf32, #tpu.memory_space<vmem>>, vector<8x128xf32>,
    %228 = tpu.concatenate %204, %226 in 1 : vector<8x128xf32>, vector<8x128xf32> -> vector<8x256xf32>
    %cst_44 = arith.constant dense<0.000000e+00> : vector<8x512xf32>
    %229 = tpu.matmul %228, %6, %cst_44 {dimension_numbers = #tpu.dot_dimension_numbers<[1], [0], [0], [1], [0, 0, 1, 1], [], []>} : vector<8x256xf32>, vector<256x512xf32>, vector<8x512xf32> -> vector<8x512xf32>
    %230 = arith.addf %229, %10 : vector<8x512xf32>
    %231 = vector.extract_strided_slice %230 {offsets = [0, 0], sizes = [8, 384], strides = [1, 1]} : vector<8x512xf32> to vector<8x384xf32>
    %232 = vector.extract_strided_slice %230 {offsets = [0, 384], sizes = [8, 128], strides = [1, 1]} : vector<8x512xf32> to vector<8x128xf32>
    %233 = vector.extract_strided_slice %5 {offsets = [32, 0], sizes = [8, 384], strides = [1, 1]} : vector<64x384xf32> to vector<8x384xf32>
    %234 = vector.extract_strided_slice %233 {offsets = [0, 0], sizes = [8, 128], strides = [1, 1]} : vector<8x384xf32> to vector<8x128xf32>
    %235 = vector.extract_strided_slice %231 {offsets = [0, 0], sizes = [8, 128], strides = [1, 1]} : vector<8x384xf32> to vector<8x128xf32>
    %236 = arith.addf %234, %235 : vector<8x128xf32>
    %237 = arith.negf %236 : vector<8x128xf32>
    %238 = math.exp %237 : vector<8x128xf32>
    %cst_45 = arith.constant 1.000000e+00 : f32
    %239 = vector.broadcast %cst_45 : f32 to vector<8x128xf32>
    %240 = arith.addf %239, %238 : vector<8x128xf32>
    %241 = arith.divf %239, %240 : vector<8x128xf32>
    %242 = vector.extract_strided_slice %233 {offsets = [0, 128], sizes = [8, 128], strides = [1, 1]} : vector<8x384xf32> to vector<8x128xf32>
    %243 = vector.extract_strided_slice %231 {offsets = [0, 128], sizes = [8, 128], strides = [1, 1]} : vector<8x384xf32> to vector<8x128xf32>
    %244 = arith.addf %242, %243 : vector<8x128xf32>
    %245 = arith.negf %244 : vector<8x128xf32>
    %246 = math.exp %245 : vector<8x128xf32>
    %cst_46 = arith.constant 1.000000e+00 : f32
    %247 = vector.broadcast %cst_46 : f32 to vector<8x128xf32>
    %248 = arith.addf %247, %246 : vector<8x128xf32>
    %249 = arith.divf %247, %248 : vector<8x128xf32>
    %250 = vector.extract_strided_slice %233 {offsets = [0, 256], sizes = [8, 128], strides = [1, 1]} : vector<8x384xf32> to vector<8x128xf32>
    %251 = vector.extract_strided_slice %231 {offsets = [0, 256], sizes = [8, 128], strides = [1, 1]} : vector<8x384xf32> to vector<8x128xf32>
    %252 = arith.mulf %241, %251 : vector<8x128xf32>
    %253 = arith.addf %250, %252 : vector<8x128xf32>
    %254 = math.tanh %253 : vector<8x128xf32>
    %255 = arith.subf %204, %254 : vector<8x128xf32>
    %256 = arith.mulf %249, %255 : vector<8x128xf32>
    %257 = arith.addf %254, %256 : vector<8x128xf32>
    %258 = tpu.concatenate %257, %226 in 1 : vector<8x128xf32>, vector<8x128xf32> -> vector<8x256xf32>
    %cst_47 = arith.constant dense<0.000000e+00> : vector<8x384xf32>
    %259 = tpu.matmul %258, %7, %cst_47 {dimension_numbers = #tpu.dot_dimension_numbers<[1], [0], [0], [1], [0, 0, 1, 1], [], []>} : vector<8x256xf32>, vector<256x384xf32>, vector<8x384xf32> -> vector<8x384xf32>
    %260 = arith.addf %259, %13 : vector<8x384xf32>
    %261 = vector.extract_strided_slice %260 {offsets = [0, 0], sizes = [8, 128], strides = [1, 1]} : vector<8x384xf32> to vector<8x128xf32>
    %262 = arith.negf %261 : vector<8x128xf32>
    %263 = math.exp %262 : vector<8x128xf32>
    %cst_48 = arith.constant 1.000000e+00 : f32
    %264 = vector.broadcast %cst_48 : f32 to vector<8x128xf32>
    %265 = arith.addf %264, %263 : vector<8x128xf32>
    %266 = arith.divf %264, %265 : vector<8x128xf32>
    %267 = vector.extract_strided_slice %260 {offsets = [0, 128], sizes = [8, 128], strides = [1, 1]} : vector<8x384xf32> to vector<8x128xf32>
    %268 = arith.negf %267 : vector<8x128xf32>
    %269 = math.exp %268 : vector<8x128xf32>
    %cst_49 = arith.constant 1.000000e+00 : f32
    %270 = vector.broadcast %cst_49 : f32 to vector<8x128xf32>
    %271 = arith.addf %270, %269 : vector<8x128xf32>
    %272 = arith.divf %270, %271 : vector<8x128xf32>
    %273 = vector.extract_strided_slice %260 {offsets = [0, 256], sizes = [8, 128], strides = [1, 1]} : vector<8x384xf32> to vector<8x128xf32>
    %274 = arith.mulf %266, %232 : vector<8x128xf32>
    %275 = arith.addf %273, %274 : vector<8x128xf32>
    %276 = math.tanh %275 : vector<8x128xf32>
    %277 = arith.subf %226, %276 : vector<8x128xf32>
    %278 = arith.mulf %272, %277 : vector<8x128xf32>
    %279 = arith.addf %276, %278 : vector<8x128xf32>
    %c32 = arith.constant 32 : index
    %c0_50 = arith.constant 0 : index
    %280 = vector.load %arg7[%c32, %c0_50] : memref<64x128xf32, #tpu.memory_space<vmem>>, vector<8x128xf32>
    tpu.vector_store %arg7[%c32, %c0_50], %279 {strides = array<i32>} : memref<64x128xf32, #tpu.memory_space<vmem>>, vector<8x128xf32>,
    %281 = tpu.concatenate %257, %279 in 1 : vector<8x128xf32>, vector<8x128xf32> -> vector<8x256xf32>
    %cst_51 = arith.constant dense<0.000000e+00> : vector<8x512xf32>
    %282 = tpu.matmul %281, %6, %cst_51 {dimension_numbers = #tpu.dot_dimension_numbers<[1], [0], [0], [1], [0, 0, 1, 1], [], []>} : vector<8x256xf32>, vector<256x512xf32>, vector<8x512xf32> -> vector<8x512xf32>
    %283 = arith.addf %282, %10 : vector<8x512xf32>
    %284 = vector.extract_strided_slice %283 {offsets = [0, 0], sizes = [8, 384], strides = [1, 1]} : vector<8x512xf32> to vector<8x384xf32>
    %285 = vector.extract_strided_slice %283 {offsets = [0, 384], sizes = [8, 128], strides = [1, 1]} : vector<8x512xf32> to vector<8x128xf32>
    %286 = vector.extract_strided_slice %5 {offsets = [40, 0], sizes = [8, 384], strides = [1, 1]} : vector<64x384xf32> to vector<8x384xf32>
    %287 = vector.extract_strided_slice %286 {offsets = [0, 0], sizes = [8, 128], strides = [1, 1]} : vector<8x384xf32> to vector<8x128xf32>
    %288 = vector.extract_strided_slice %284 {offsets = [0, 0], sizes = [8, 128], strides = [1, 1]} : vector<8x384xf32> to vector<8x128xf32>
    %289 = arith.addf %287, %288 : vector<8x128xf32>
    %290 = arith.negf %289 : vector<8x128xf32>
    %291 = math.exp %290 : vector<8x128xf32>
    %cst_52 = arith.constant 1.000000e+00 : f32
    %292 = vector.broadcast %cst_52 : f32 to vector<8x128xf32>
    %293 = arith.addf %292, %291 : vector<8x128xf32>
    %294 = arith.divf %292, %293 : vector<8x128xf32>
    %295 = vector.extract_strided_slice %286 {offsets = [0, 128], sizes = [8, 128], strides = [1, 1]} : vector<8x384xf32> to vector<8x128xf32>
    %296 = vector.extract_strided_slice %284 {offsets = [0, 128], sizes = [8, 128], strides = [1, 1]} : vector<8x384xf32> to vector<8x128xf32>
    %297 = arith.addf %295, %296 : vector<8x128xf32>
    %298 = arith.negf %297 : vector<8x128xf32>
    %299 = math.exp %298 : vector<8x128xf32>
    %cst_53 = arith.constant 1.000000e+00 : f32
    %300 = vector.broadcast %cst_53 : f32 to vector<8x128xf32>
    %301 = arith.addf %300, %299 : vector<8x128xf32>
    %302 = arith.divf %300, %301 : vector<8x128xf32>
    %303 = vector.extract_strided_slice %286 {offsets = [0, 256], sizes = [8, 128], strides = [1, 1]} : vector<8x384xf32> to vector<8x128xf32>
    %304 = vector.extract_strided_slice %284 {offsets = [0, 256], sizes = [8, 128], strides = [1, 1]} : vector<8x384xf32> to vector<8x128xf32>
    %305 = arith.mulf %294, %304 : vector<8x128xf32>
    %306 = arith.addf %303, %305 : vector<8x128xf32>
    %307 = math.tanh %306 : vector<8x128xf32>
    %308 = arith.subf %257, %307 : vector<8x128xf32>
    %309 = arith.mulf %302, %308 : vector<8x128xf32>
    %310 = arith.addf %307, %309 : vector<8x128xf32>
    %311 = tpu.concatenate %310, %279 in 1 : vector<8x128xf32>, vector<8x128xf32> -> vector<8x256xf32>
    %cst_54 = arith.constant dense<0.000000e+00> : vector<8x384xf32>
    %312 = tpu.matmul %311, %7, %cst_54 {dimension_numbers = #tpu.dot_dimension_numbers<[1], [0], [0], [1], [0, 0, 1, 1], [], []>} : vector<8x256xf32>, vector<256x384xf32>, vector<8x384xf32> -> vector<8x384xf32>
    %313 = arith.addf %312, %13 : vector<8x384xf32>
    %314 = vector.extract_strided_slice %313 {offsets = [0, 0], sizes = [8, 128], strides = [1, 1]} : vector<8x384xf32> to vector<8x128xf32>
    %315 = arith.negf %314 : vector<8x128xf32>
    %316 = math.exp %315 : vector<8x128xf32>
    %cst_55 = arith.constant 1.000000e+00 : f32
    %317 = vector.broadcast %cst_55 : f32 to vector<8x128xf32>
    %318 = arith.addf %317, %316 : vector<8x128xf32>
    %319 = arith.divf %317, %318 : vector<8x128xf32>
    %320 = vector.extract_strided_slice %313 {offsets = [0, 128], sizes = [8, 128], strides = [1, 1]} : vector<8x384xf32> to vector<8x128xf32>
    %321 = arith.negf %320 : vector<8x128xf32>
    %322 = math.exp %321 : vector<8x128xf32>
    %cst_56 = arith.constant 1.000000e+00 : f32
    %323 = vector.broadcast %cst_56 : f32 to vector<8x128xf32>
    %324 = arith.addf %323, %322 : vector<8x128xf32>
    %325 = arith.divf %323, %324 : vector<8x128xf32>
    %326 = vector.extract_strided_slice %313 {offsets = [0, 256], sizes = [8, 128], strides = [1, 1]} : vector<8x384xf32> to vector<8x128xf32>
    %327 = arith.mulf %319, %285 : vector<8x128xf32>
    %328 = arith.addf %326, %327 : vector<8x128xf32>
    %329 = math.tanh %328 : vector<8x128xf32>
    %330 = arith.subf %279, %329 : vector<8x128xf32>
    %331 = arith.mulf %325, %330 : vector<8x128xf32>
    %332 = arith.addf %329, %331 : vector<8x128xf32>
    %c40 = arith.constant 40 : index
    %c0_57 = arith.constant 0 : index
    %333 = vector.load %arg7[%c40, %c0_57] : memref<64x128xf32, #tpu.memory_space<vmem>>, vector<8x128xf32>
    tpu.vector_store %arg7[%c40, %c0_57], %332 {strides = array<i32>} : memref<64x128xf32, #tpu.memory_space<vmem>>, vector<8x128xf32>,
    %334 = tpu.concatenate %310, %332 in 1 : vector<8x128xf32>, vector<8x128xf32> -> vector<8x256xf32>
    %cst_58 = arith.constant dense<0.000000e+00> : vector<8x512xf32>
    %335 = tpu.matmul %334, %6, %cst_58 {dimension_numbers = #tpu.dot_dimension_numbers<[1], [0], [0], [1], [0, 0, 1, 1], [], []>} : vector<8x256xf32>, vector<256x512xf32>, vector<8x512xf32> -> vector<8x512xf32>
    %336 = arith.addf %335, %10 : vector<8x512xf32>
    %337 = vector.extract_strided_slice %336 {offsets = [0, 0], sizes = [8, 384], strides = [1, 1]} : vector<8x512xf32> to vector<8x384xf32>
    %338 = vector.extract_strided_slice %336 {offsets = [0, 384], sizes = [8, 128], strides = [1, 1]} : vector<8x512xf32> to vector<8x128xf32>
    %339 = vector.extract_strided_slice %5 {offsets = [48, 0], sizes = [8, 384], strides = [1, 1]} : vector<64x384xf32> to vector<8x384xf32>
    %340 = vector.extract_strided_slice %339 {offsets = [0, 0], sizes = [8, 128], strides = [1, 1]} : vector<8x384xf32> to vector<8x128xf32>
    %341 = vector.extract_strided_slice %337 {offsets = [0, 0], sizes = [8, 128], strides = [1, 1]} : vector<8x384xf32> to vector<8x128xf32>
    %342 = arith.addf %340, %341 : vector<8x128xf32>
    %343 = arith.negf %342 : vector<8x128xf32>
    %344 = math.exp %343 : vector<8x128xf32>
    %cst_59 = arith.constant 1.000000e+00 : f32
    %345 = vector.broadcast %cst_59 : f32 to vector<8x128xf32>
    %346 = arith.addf %345, %344 : vector<8x128xf32>
    %347 = arith.divf %345, %346 : vector<8x128xf32>
    %348 = vector.extract_strided_slice %339 {offsets = [0, 128], sizes = [8, 128], strides = [1, 1]} : vector<8x384xf32> to vector<8x128xf32>
    %349 = vector.extract_strided_slice %337 {offsets = [0, 128], sizes = [8, 128], strides = [1, 1]} : vector<8x384xf32> to vector<8x128xf32>
    %350 = arith.addf %348, %349 : vector<8x128xf32>
    %351 = arith.negf %350 : vector<8x128xf32>
    %352 = math.exp %351 : vector<8x128xf32>
    %cst_60 = arith.constant 1.000000e+00 : f32
    %353 = vector.broadcast %cst_60 : f32 to vector<8x128xf32>
    %354 = arith.addf %353, %352 : vector<8x128xf32>
    %355 = arith.divf %353, %354 : vector<8x128xf32>
    %356 = vector.extract_strided_slice %339 {offsets = [0, 256], sizes = [8, 128], strides = [1, 1]} : vector<8x384xf32> to vector<8x128xf32>
    %357 = vector.extract_strided_slice %337 {offsets = [0, 256], sizes = [8, 128], strides = [1, 1]} : vector<8x384xf32> to vector<8x128xf32>
    %358 = arith.mulf %347, %357 : vector<8x128xf32>
    %359 = arith.addf %356, %358 : vector<8x128xf32>
    %360 = math.tanh %359 : vector<8x128xf32>
    %361 = arith.subf %310, %360 : vector<8x128xf32>
    %362 = arith.mulf %355, %361 : vector<8x128xf32>
    %363 = arith.addf %360, %362 : vector<8x128xf32>
    %364 = tpu.concatenate %363, %332 in 1 : vector<8x128xf32>, vector<8x128xf32> -> vector<8x256xf32>
    %cst_61 = arith.constant dense<0.000000e+00> : vector<8x384xf32>
    %365 = tpu.matmul %364, %7, %cst_61 {dimension_numbers = #tpu.dot_dimension_numbers<[1], [0], [0], [1], [0, 0, 1, 1], [], []>} : vector<8x256xf32>, vector<256x384xf32>, vector<8x384xf32> -> vector<8x384xf32>
    %366 = arith.addf %365, %13 : vector<8x384xf32>
    %367 = vector.extract_strided_slice %366 {offsets = [0, 0], sizes = [8, 128], strides = [1, 1]} : vector<8x384xf32> to vector<8x128xf32>
    %368 = arith.negf %367 : vector<8x128xf32>
    %369 = math.exp %368 : vector<8x128xf32>
    %cst_62 = arith.constant 1.000000e+00 : f32
    %370 = vector.broadcast %cst_62 : f32 to vector<8x128xf32>
    %371 = arith.addf %370, %369 : vector<8x128xf32>
    %372 = arith.divf %370, %371 : vector<8x128xf32>
    %373 = vector.extract_strided_slice %366 {offsets = [0, 128], sizes = [8, 128], strides = [1, 1]} : vector<8x384xf32> to vector<8x128xf32>
    %374 = arith.negf %373 : vector<8x128xf32>
    %375 = math.exp %374 : vector<8x128xf32>
    %cst_63 = arith.constant 1.000000e+00 : f32
    %376 = vector.broadcast %cst_63 : f32 to vector<8x128xf32>
    %377 = arith.addf %376, %375 : vector<8x128xf32>
    %378 = arith.divf %376, %377 : vector<8x128xf32>
    %379 = vector.extract_strided_slice %366 {offsets = [0, 256], sizes = [8, 128], strides = [1, 1]} : vector<8x384xf32> to vector<8x128xf32>
    %380 = arith.mulf %372, %338 : vector<8x128xf32>
    %381 = arith.addf %379, %380 : vector<8x128xf32>
    %382 = math.tanh %381 : vector<8x128xf32>
    %383 = arith.subf %332, %382 : vector<8x128xf32>
    %384 = arith.mulf %378, %383 : vector<8x128xf32>
    %385 = arith.addf %382, %384 : vector<8x128xf32>
    %c48 = arith.constant 48 : index
    %c0_64 = arith.constant 0 : index
    %386 = vector.load %arg7[%c48, %c0_64] : memref<64x128xf32, #tpu.memory_space<vmem>>, vector<8x128xf32>
    tpu.vector_store %arg7[%c48, %c0_64], %385 {strides = array<i32>} : memref<64x128xf32, #tpu.memory_space<vmem>>, vector<8x128xf32>,
    %387 = tpu.concatenate %363, %385 in 1 : vector<8x128xf32>, vector<8x128xf32> -> vector<8x256xf32>
    %cst_65 = arith.constant dense<0.000000e+00> : vector<8x512xf32>
    %388 = tpu.matmul %387, %6, %cst_65 {dimension_numbers = #tpu.dot_dimension_numbers<[1], [0], [0], [1], [0, 0, 1, 1], [], []>} : vector<8x256xf32>, vector<256x512xf32>, vector<8x512xf32> -> vector<8x512xf32>
    %389 = arith.addf %388, %10 : vector<8x512xf32>
    %390 = vector.extract_strided_slice %389 {offsets = [0, 0], sizes = [8, 384], strides = [1, 1]} : vector<8x512xf32> to vector<8x384xf32>
    %391 = vector.extract_strided_slice %389 {offsets = [0, 384], sizes = [8, 128], strides = [1, 1]} : vector<8x512xf32> to vector<8x128xf32>
    %392 = vector.extract_strided_slice %5 {offsets = [56, 0], sizes = [8, 384], strides = [1, 1]} : vector<64x384xf32> to vector<8x384xf32>
    %393 = vector.extract_strided_slice %392 {offsets = [0, 0], sizes = [8, 128], strides = [1, 1]} : vector<8x384xf32> to vector<8x128xf32>
    %394 = vector.extract_strided_slice %390 {offsets = [0, 0], sizes = [8, 128], strides = [1, 1]} : vector<8x384xf32> to vector<8x128xf32>
    %395 = arith.addf %393, %394 : vector<8x128xf32>
    %396 = arith.negf %395 : vector<8x128xf32>
    %397 = math.exp %396 : vector<8x128xf32>
    %cst_66 = arith.constant 1.000000e+00 : f32
    %398 = vector.broadcast %cst_66 : f32 to vector<8x128xf32>
    %399 = arith.addf %398, %397 : vector<8x128xf32>
    %400 = arith.divf %398, %399 : vector<8x128xf32>
    %401 = vector.extract_strided_slice %392 {offsets = [0, 128], sizes = [8, 128], strides = [1, 1]} : vector<8x384xf32> to vector<8x128xf32>
    %402 = vector.extract_strided_slice %390 {offsets = [0, 128], sizes = [8, 128], strides = [1, 1]} : vector<8x384xf32> to vector<8x128xf32>
    %403 = arith.addf %401, %402 : vector<8x128xf32>
    %404 = arith.negf %403 : vector<8x128xf32>
    %405 = math.exp %404 : vector<8x128xf32>
    %cst_67 = arith.constant 1.000000e+00 : f32
    %406 = vector.broadcast %cst_67 : f32 to vector<8x128xf32>
    %407 = arith.addf %406, %405 : vector<8x128xf32>
    %408 = arith.divf %406, %407 : vector<8x128xf32>
    %409 = vector.extract_strided_slice %392 {offsets = [0, 256], sizes = [8, 128], strides = [1, 1]} : vector<8x384xf32> to vector<8x128xf32>
    %410 = vector.extract_strided_slice %390 {offsets = [0, 256], sizes = [8, 128], strides = [1, 1]} : vector<8x384xf32> to vector<8x128xf32>
    %411 = arith.mulf %400, %410 : vector<8x128xf32>
    %412 = arith.addf %409, %411 : vector<8x128xf32>
    %413 = math.tanh %412 : vector<8x128xf32>
    %414 = arith.subf %363, %413 : vector<8x128xf32>
    %415 = arith.mulf %408, %414 : vector<8x128xf32>
    %416 = arith.addf %413, %415 : vector<8x128xf32>
    %417 = tpu.concatenate %416, %385 in 1 : vector<8x128xf32>, vector<8x128xf32> -> vector<8x256xf32>
    %cst_68 = arith.constant dense<0.000000e+00> : vector<8x384xf32>
    %418 = tpu.matmul %417, %7, %cst_68 {dimension_numbers = #tpu.dot_dimension_numbers<[1], [0], [0], [1], [0, 0, 1, 1], [], []>} : vector<8x256xf32>, vector<256x384xf32>, vector<8x384xf32> -> vector<8x384xf32>
    %419 = arith.addf %418, %13 : vector<8x384xf32>
    %420 = vector.extract_strided_slice %419 {offsets = [0, 0], sizes = [8, 128], strides = [1, 1]} : vector<8x384xf32> to vector<8x128xf32>
    %421 = arith.negf %420 : vector<8x128xf32>
    %422 = math.exp %421 : vector<8x128xf32>
    %cst_69 = arith.constant 1.000000e+00 : f32
    %423 = vector.broadcast %cst_69 : f32 to vector<8x128xf32>
    %424 = arith.addf %423, %422 : vector<8x128xf32>
    %425 = arith.divf %423, %424 : vector<8x128xf32>
    %426 = vector.extract_strided_slice %419 {offsets = [0, 128], sizes = [8, 128], strides = [1, 1]} : vector<8x384xf32> to vector<8x128xf32>
    %427 = arith.negf %426 : vector<8x128xf32>
    %428 = math.exp %427 : vector<8x128xf32>
    %cst_70 = arith.constant 1.000000e+00 : f32
    %429 = vector.broadcast %cst_70 : f32 to vector<8x128xf32>
    %430 = arith.addf %429, %428 : vector<8x128xf32>
    %431 = arith.divf %429, %430 : vector<8x128xf32>
    %432 = vector.extract_strided_slice %419 {offsets = [0, 256], sizes = [8, 128], strides = [1, 1]} : vector<8x384xf32> to vector<8x128xf32>
    %433 = arith.mulf %425, %391 : vector<8x128xf32>
    %434 = arith.addf %432, %433 : vector<8x128xf32>
    %435 = math.tanh %434 : vector<8x128xf32>
    %436 = arith.subf %385, %435 : vector<8x128xf32>
    %437 = arith.mulf %431, %436 : vector<8x128xf32>
    %438 = arith.addf %435, %437 : vector<8x128xf32>
    %c56 = arith.constant 56 : index
    %c0_71 = arith.constant 0 : index
    %439 = vector.load %arg7[%c56, %c0_71] : memref<64x128xf32, #tpu.memory_space<vmem>>, vector<8x128xf32>
    tpu.vector_store %arg7[%c56, %c0_71], %438 {strides = array<i32>} : memref<64x128xf32, #tpu.memory_space<vmem>>, vector<8x128xf32>,
    %c0_72 = arith.constant 0 : index
    %c0_73 = arith.constant 0 : index
    %440 = vector.load %arg8[%c0_72, %c0_73] : memref<8x128xf32, #tpu.memory_space<vmem>>, vector<8x128xf32>
    tpu.vector_store %arg8[%c0_72, %c0_73], %438 {strides = array<i32>} : memref<8x128xf32, #tpu.memory_space<vmem>>, vector<8x128xf32>,
    return
  }
}

</mosaic_0001>

<bundles_post_ra>
// kernel: encoder_forward.1
= control target key start
LH: loop header
LB: loop body
LE: loop exit
PB: predicated region body
PF: predicated region fallthrough
CT: control target
= control target key end

     0   :  { %14 = vsyncpa [#allocation3], 0  ;;  %s8318_s0 = inlined_call_operand.vmem [shape: f32[64,4], index: 0, kind: input, shape index: {}]   ;;  %s8319_s1 = inlined_call_operand.vmem [shape: f32[4,384], index: 1, kind: input, shape index: {}]   ;;  %s8320_s2 = inlined_call_operand.vmem [shape: f32[1,384], index: 2, kind: input, shape index: {}]   ;;  %s8321_s3 = inlined_call_operand.hbm [shape: f32[256,512], index: 3, kind: input, shape index: {}]   ;;  %s8322_s4 = inlined_call_operand.vmem [shape: f32[1,512], index: 4, kind: input, shape index: {}]   ;;  %s8323_s5 = inlined_call_operand.hbm [shape: f32[256,384], index: 5, kind: input, shape index: {}]   ;;  %s8324_s6 = inlined_call_operand.vmem [shape: f32[1,384], index: 6, kind: input, shape index: {}]   ;;  %s8325_s7 = inlined_call_operand.vmem [shape: f32[64,128], index: 7, kind: output, shape index: {0}]   ;;  %s8326_s8 = inlined_call_operand.vmem [shape: f32[8,128], index: 8, kind: output, shape index: {1}]  }
   0x1   :  { %15 = vsyncpa [#allocation5], 0  ;;  %s4473_s27 = smov [#allocation2]  }
   0x2   :  { %s27_s28 = sshll.u32 %s4473_s27, 4  ;;  %s28_s28 = int_to_ptr.vmem [resolvable:$true] %s27_s28 }
   0x3   :  { %s4437_s29 = scalar_lea.vmem %s28_s28, 16384  ;;  %p4442_p1 = scmp.lt.s32.totalorder %s28_s28, %s28_s28 }
   0x4   :  { %p4438_p0 = scmp.ne.s32.totalorder %s28_s28, %s4437_s29  ;;  %p4443_p2 = scmp.lt.s32.totalorder %s4437_s29, %s4437_s29 }
   0x6   :  { %p4444_p3 = por %p4443_p2, %p4442_p1 }
   0x8   :  { %p4445_p4 = pnand %p4444_p3, %p4438_p0 }
   0xa   :  { %4448 = shalt.err (!%p4445_p4)
}
   0xb   :  { %s4474_s30 = smov 512   ;;  %s4475_s9 = smov 32  }
   0xc   :  { %33 = dma.hbm_to_vmem [thread:$0]  %s8321_s3, 16384, %s28_s28, [#allocation3], %s4474_s30, %s4474_s30, %s4475_s9  }
   0xd   :  { %s4476_s12 = smov [#allocation4]  }
   0xe   :  { %s41_s13 = sshll.u32 %s4476_s12, 4  ;;  %s42_s13 = int_to_ptr.vmem [resolvable:$true] %s41_s13 }
   0xf   :  { %s4457_s14 = scalar_lea.vmem %s42_s13, 12288  ;;  %p4462_p6 = scmp.lt.s32.totalorder %s42_s13, %s42_s13 }
  0x10   :  { %p4458_p5 = scmp.ne.s32.totalorder %s42_s13, %s4457_s14  ;;  %p4463_p7 = scmp.lt.s32.totalorder %s4457_s14, %s4457_s14 }
  0x12   :  { %p4464_p8 = por %p4463_p7, %p4462_p6 }
  0x14   :  { %p4465_p9 = pnand %p4464_p8, %p4458_p5 }
  0x16   :  { %4468 = shalt.err (!%p4465_p9)
}
  0x17   :  { %s4477_s15 = smov 384   ;;  %s4478_s16 = smov 24  }
  0x18   :  { %47 = dma.hbm_to_vmem [thread:$0]  %s8323_s5, 12288, %s42_s13, [#allocation5], %s4477_s15, %s4477_s15, %s4478_s16  }
  0x19   :  { %4469 = dma.done.wait [#allocation3], 16384  }
  0x1a   :  { %4470 = vsyncadd [#allocation3], 4294950912 }
  0x1b   :  { %4471 = dma.done.wait [#allocation5], 12288  }
  0x1c   :  { %4472 = vsyncadd [#allocation5], 4294955008  ;;  %v8327_v0 = vmov 0.0   ;;  %v64_v1 = vld [vmem:[%s8319_s1] sm:$0xff]  ;;  %vm111_vm0 = vcmask 1043456   ;;  %vm86_vm1 = vcmask 31744  }
  0x1d   :  { %182 = vmatprep.mubr.f32.mxu0 %v8327_v0  ;;  %v56_v2 = vld [vmem:[%s8318_s0] sm:$0xff]  ;;  %v85_v3 = vcombine.high %v64_v1, %v64_v1  ;;  %v4539_v4 = vld [vmem:[#allocation2 + $0x1e8] sm:$0xff]  ;;  %v4551_v16 = vld [vmem:[#allocation2 + $0x1f8] sm:$0xff] }
  0x1e   :  { %3528 = vmatprep.mubr.msk.f32.mxu1 %vm86_vm1, %v56_v2  ;;  %v396_v5 = vld [vmem:[#allocation2 + $0x1e0] sm:$0xff]  ;;  %v393_v6 = vld [vmem:[#allocation2 + $0x1c8] sm:$0xff]  ;;  %v398_v19 = vld [vmem:[#allocation2 + $0x1f0] sm:$0xff] }
  0x1f   :  { %3186 = vmatprep.subr.msk.mxu0 %vm111_vm0, %v85_v3  ;;  %v392_v7 = vld [vmem:[#allocation2 + $0x1c0] sm:$0xff]  ;;  %v389_v8 = vld [vmem:[#allocation2 + $0x1a8] sm:$0xff]  ;;  %v395_v20 = vld [vmem:[#allocation2 + $0x1d8] sm:$0xff] }
  0x20   :  { %3187 = vmatpush1.msk.msra.mxu0 %vm111_vm0, %v64_v1  ;;  %v388_v9 = vld [vmem:[#allocation2 + $0x1a0] sm:$0xff]  ;;  %v385_v10 = vld [vmem:[#allocation2 + $0x188] sm:$0xff]  ;;  %v394_v23 = vld [vmem:[#allocation2 + $0x1d0] sm:$0xff] }
  0x21   :  { %3188 = vmatmul.mubr.msk.f32.vlgmr.msra.gmra.mxu0 %vm86_vm1, %v56_v2  ;;  %599 = vmatprep.subr.mxu0 %v4539_v4  ;;  %v384_v11 = vld [vmem:[#allocation2 + $0x180] sm:$0xff]  ;;  %v381_v12 = vld [vmem:[#allocation2 + $0x168] sm:$0xff]  ;;  %v391_v25 = vld [vmem:[#allocation2 + $0x1b8] sm:$0xff] }
  0x22   :  { %600 = vmatpush1.msra.mxu0 %v396_v5  ;;  %188 = vmatprep.mubr.f32.mxu0 %v8327_v0  ;;  %v65_v13 = vld [vmem:[%s8319_s1 + $0x8] sm:$0xf]  ;;  %v380_v14 = vld [vmem:[#allocation2 + $0x160] sm:$0xff]  ;;  %v390_v28 = vld [vmem:[#allocation2 + $0x1b0] sm:$0xff] }
  0x23   :  { %601 = vmatprep.subr.mxu0 %v393_v6  ;;  %3526 = vmatprep.subr.msk.mxu1 %vm111_vm0, %v65_v13  ;;  %v377_v15 = vld [vmem:[#allocation2 + $0x148] sm:$0xff]  ;;  %v376_v18 = vld [vmem:[#allocation2 + $0x140] sm:$0xff]  ;;  %v387_v30 = vld [vmem:[#allocation2 + $0x198] sm:$0xff] }
  0x24   :  { %602 = vmatpush1.msra.mxu0 %v392_v7  ;;  %3527 = vmatpush3.msk.msra.mxu1 %vm111_vm0, %v65_v13  ;;  %v57_v17 = vld [vmem:[%s8318_s0 + $0x8] sm:$0xff]  ;;  %v372_v22 = vld [vmem:[#allocation2 + $0x120] sm:$0xff]  ;;  %v4563_v32 = vld [vmem:[%s8318_s0 + $0x10] sm:$0xff] }
  0x25   :  { %603 = vmatprep.subr.mxu0 %v389_v8  ;;  %670 = vmatprep.subr.mxu1 %v4551_v16  ;;  %v373_v21 = vld [vmem:[#allocation2 + $0x128] sm:$0xff]  ;;  %v368_v26 = vld [vmem:[#allocation2 + $0x100] sm:$0xff]  ;;  %v386_v34 = vld [vmem:[#allocation2 + $0x190] sm:$0xff] }
  0x26   :  { %604 = vmatpush1.msra.mxu0 %v388_v9  ;;  %3529 = vmatmul.mubr.msk.f32.vlgmr.msra.gmra.mxu1 %vm86_vm1, %v57_v17  ;;  %v369_v24 = vld [vmem:[#allocation2 + $0x108] sm:$0xff]  ;;  %v364_v29 = vld [vmem:[#allocation2 + $0xe0] sm:$0xff]  ;;  %v383_v36 = vld [vmem:[#allocation2 + $0x178] sm:$0xff] }
  0x27   :  { %605 = vmatprep.subr.mxu0 %v385_v10  ;;  %671 = vmatpush1.msra.mxu1 %v398_v19  ;;  %v365_v27 = vld [vmem:[#allocation2 + $0xe8] sm:$0xff]  ;;  %v360_v33 = vld [vmem:[#allocation2 + $0xc0] sm:$0xff]  ;;  %v382_v39 = vld [vmem:[#allocation2 + $0x170] sm:$0xff] }
  0x28   :  { %606 = vmatpush1.msra.mxu0 %v384_v11  ;;  %672 = vmatprep.subr.mxu1 %v395_v20  ;;  %v361_v31 = vld [vmem:[#allocation2 + $0xc8] sm:$0xff]  ;;  %v356_v37 = vld [vmem:[#allocation2 + $0xa0] sm:$0xff]  ;;  %v379_v41 = vld [vmem:[#allocation2 + $0x158] sm:$0xff] }
  0x29   :  { %607 = vmatprep.subr.mxu0 %v381_v12  ;;  %3189 = vmatmul.mubr.msk.f32.gmra.mxu0 %vm86_vm1, %v57_v17  ;;  %v357_v35 = vld [vmem:[#allocation2 + $0xa8] sm:$0xff]  ;;  %v352_v40 = vld [vmem:[#allocation2 + $0x80] sm:$0xff]  ;;  %v4571_v43 = vld [vmem:[%s8318_s0 + $0x18] sm:$0xff] }
  0x2a   :  { %608 = vmatpush1.msra.mxu0 %v380_v14  ;;  %673 = vmatpush1.msra.mxu1 %v394_v23  ;;  %v353_v38 = vld [vmem:[#allocation2 + $0x88] sm:$0xff]  ;;  %v348_v44 = vld [vmem:[#allocation2 + $0x60] sm:$0xff]  ;;  %v4573_v45 = vld [vmem:[#allocation2 + $0x150] sm:$0xff] }
  0x2b   :  { %609 = vmatprep.subr.mxu0 %v377_v15  ;;  %674 = vmatprep.subr.mxu1 %v391_v25  ;;  %v349_v42 = vld [vmem:[#allocation2 + $0x68] sm:$0xff]  ;;  %v4575_v47 = vld [vmem:[#allocation2 + $0x138] sm:$0xff]  ;;  %v344_v48 = vld [vmem:[#allocation2 + $0x40] sm:$0xff] }
  0x2c   :  { %610 = vmatpush1.msra.mxu0 %v376_v18  ;;  %194 = vmatprep.mubr.f32.mxu0 %v8327_v0  ;;  %v345_v46 = vld [vmem:[#allocation2 + $0x48] sm:$0xff]  ;;  %v4580_v50 = vld [vmem:[#allocation2 + $0x130] sm:$0xff]  ;;  %v340_v51 = vld [vmem:[#allocation2 + $0x20] sm:$0xff] }
  0x2d   :  { %611 = vmatprep.subr.mxu0 %v373_v21  ;;  %675 = vmatpush1.msra.mxu1 %v390_v28  ;;  %v341_v49 = vld [vmem:[#allocation2 + $0x28] sm:$0xff]  ;;  %v4583_v52 = vld [vmem:[#allocation2 + $0x118] sm:$0xff]  ;;  %v4589_v54 = vld [vmem:[%s8318_s0 + $0x20] sm:$0xff] }
  0x2e   :  { %612 = vmatpush1.msra.mxu0 %v372_v22  ;;  %676 = vmatprep.subr.mxu1 %v387_v30  ;;  %v337_v53 = vld [vmem:[#allocation2 + $0x8] sm:$0xff]  ;;  %v336_v55 = vld [vmem:[#allocation2] sm:$0xff]  ;;  %v4592_v56 = vld [vmem:[#allocation2 + $0x110] sm:$0xff] }
  0x2f   :  { %613 = vmatprep.subr.mxu0 %v369_v24  ;;  %3190 = vmatmul.mubr.msk.f32.gmra.mxu0 %vm86_vm1, %v4563_v32  ;;  %v461_v57 = vld [vmem:[#allocation2 + $0x3e8] sm:$0xff]  ;;  %v4595_v58 = vld [vmem:[#allocation2 + $0xf8] sm:$0xff]  ;;  %v460_v59 = vld [vmem:[#allocation2 + $0x3e0] sm:$0xff] }
  0x30   :  { %614 = vmatpush1.msra.mxu0 %v368_v26  ;;  %677 = vmatpush1.msra.mxu1 %v386_v34  ;;  %v457_v60 = vld [vmem:[#allocation2 + $0x3c8] sm:$0xff]  ;;  %v4600_v61 = vld [vmem:[#allocation2 + $0xf0] sm:$0xff]  ;;  %v456_v62 = vld [vmem:[#allocation2 + $0x3c0] sm:$0xff] }
  0x31   :  { %615 = vmatprep.subr.mxu0 %v365_v27  ;;  %678 = vmatprep.subr.mxu1 %v383_v36  ;;  %v4603_v63 = vld [vmem:[#allocation2 + $0xd8] sm:$0xff]  ;;  %v453_v1 = vld [vmem:[#allocation2 + $0x3a8] sm:$0xff]  ;;  %v452_v3 = vld [vmem:[#allocation2 + $0x3a0] sm:$0xff] }
  0x32   :  { %616 = vmatpush1.msra.mxu0 %v364_v29  ;;  %200 = vmatprep.mubr.f32.mxu0 %v8327_v0  ;;  %v4609_v2 = vld [vmem:[%s8318_s0 + $0x28] sm:$0xff]  ;;  %v4612_v5 = vld [vmem:[#allocation2 + $0xd0] sm:$0xff]  ;;  %v4615_v7 = vld [vmem:[#allocation2 + $0xb8] sm:$0xff] }
  0x33   :  { %617 = vmatprep.subr.mxu0 %v361_v31  ;;  %679 = vmatpush1.msra.mxu1 %v382_v39  ;;  %v449_v6 = vld [vmem:[#allocation2 + $0x388] sm:$0xff]  ;;  %v448_v8 = vld [vmem:[#allocation2 + $0x380] sm:$0xff]  ;;  %v4622_v10 = vld [vmem:[#allocation2 + $0xb0] sm:$0xff] }
  0x34   :  { %618 = vmatpush1.msra.mxu0 %v360_v33  ;;  %680 = vmatprep.subr.mxu1 %v379_v41  ;;  %v4619_v9 = vld [vmem:[#allocation2 + $0x368] sm:$0xff]  ;;  %v4624_v11 = vld [vmem:[#allocation2 + $0x360] sm:$0xff]  ;;  %v4627_v12 = vld [vmem:[#allocation2 + $0x98] sm:$0xff] }
  0x35   :  { %619 = vmatprep.subr.mxu0 %v357_v35  ;;  %3191 = vmatmul.mubr.msk.f32.gmra.mxu0 %vm86_vm1, %v4571_v43  ;;  %v4629_v13 = vld [vmem:[#allocation2 + $0x348] sm:$0xff]  ;;  %v4635_v14 = vld [vmem:[%s8318_s0 + $0x30] sm:$0xff]  ;;  %v4638_v15 = vld [vmem:[#allocation2 + $0x340] sm:$0xff] }
  0x36   :  { %620 = vmatpush1.msra.mxu0 %v356_v37  ;;  %681 = vmatpush1.msra.mxu1 %v4573_v45  ;;  %v4641_v17 = vld [vmem:[#allocation2 + $0x90] sm:$0xff]  ;;  %v4644_v18 = vld [vmem:[#allocation2 + $0x328] sm:$0xff]  ;;  %v4647_v19 = vld [vmem:[#allocation2 + $0x78] sm:$0xff] }
  0x37   :  { %621 = vmatprep.subr.mxu0 %v353_v38  ;;  %682 = vmatprep.subr.mxu1 %v4575_v47  ;;  %v4650_v20 = vld [vmem:[#allocation2 + $0x320] sm:$0xff]  ;;  %v4655_v21 = vld [vmem:[#allocation2 + $0x308] sm:$0xff]  ;;  %v4658_v22 = vld [vmem:[#allocation2 + $0x70] sm:$0xff] }
  0x38   :  { %622 = vmatpush1.msra.mxu0 %v352_v40  ;;  %206 = vmatprep.mubr.f32.mxu0 %v8327_v0  ;;  %v4661_v23 = vld [vmem:[#allocation2 + $0x300] sm:$0xff]  ;;  %v4664_v24 = vld [vmem:[#allocation2 + $0x58] sm:$0xff]  ;;  %v4667_v25 = vld [vmem:[#allocation2 + $0x2e8] sm:$0xff] }
  0x39   :  { %623 = vmatprep.subr.mxu0 %v349_v42  ;;  %683 = vmatpush1.msra.mxu1 %v4580_v50  ;;  %8904 = vst [vmem:[#allocation8_spill] sm:$0xff] %v4661_v23  ;;  %8905 = vst [vmem:[#allocation9_spill] sm:$0xff] %v4667_v25  ;;  %v4673_v26 = vld [vmem:[%s8318_s0 + $0x38] sm:$0xff]  ;;  %v4676_v27 = vld [vmem:[#allocation2 + $0x2e0] sm:$0xff] }
  0x3a   :  { %624 = vmatpush1.msra.mxu0 %v348_v44  ;;  %684 = vmatprep.subr.mxu1 %v4583_v52  ;;  %8906 = vst [vmem:[#allocation10_spill] sm:$0xff] %v4676_v27  ;;  %v4679_v28 = vld [vmem:[#allocation2 + $0x50] sm:$0xff]  ;;  %v4682_v29 = vld [vmem:[#allocation2 + $0x2c8] sm:$0xff]  ;;  %v4685_v30 = vld [vmem:[#allocation2 + $0x38] sm:$0xff] }
  0x3b   :  { %625 = vmatprep.subr.mxu0 %v345_v46  ;;  %3192 = vmatmul.mubr.msk.f32.gmra.mxu0 %vm86_vm1, %v4589_v54  ;;  %8907 = vst [vmem:[#allocation11_spill] sm:$0xff] %v4682_v29  ;;  %v4688_v31 = vld [vmem:[#allocation2 + $0x2c0] sm:$0xff]  ;;  %v4692_v33 = vld [vmem:[#allocation2 + $0x30] sm:$0xff]  ;;  %v4695_v34 = vld [vmem:[#allocation2 + $0x2a8] sm:$0xff] }
  0x3c   :  { %626 = vmatpush1.msra.mxu0 %v344_v48  ;;  %685 = vmatpush1.msra.mxu1 %v4592_v56  ;;  %8908 = vst [vmem:[#allocation12_spill] sm:$0xff] %v4688_v31  ;;  %8909 = vst [vmem:[#allocation13_spill] sm:$0xff] %v4695_v34  ;;  %v4698_v35 = vld [vmem:[#allocation2 + $0x18] sm:$0xff]  ;;  %v4701_v36 = vld [vmem:[#allocation2 + $0x2a0] sm:$0xff] }
  0x3d   :  { %627 = vmatprep.subr.mxu0 %v341_v49  ;;  %686 = vmatprep.subr.mxu1 %v4595_v58  ;;  %8910 = vst [vmem:[#allocation14_spill] sm:$0xff] %v4701_v36  ;;  %v4705_v37 = vld [vmem:[#allocation2 + $0x288] sm:$0xff]  ;;  %v4708_v38 = vld [vmem:[#allocation2 + $0x10] sm:$0xff]  ;;  %v4711_v39 = vld [vmem:[#allocation2 + $0x280] sm:$0xff] }
  0x3e   :  { %628 = vmatpush1.msra.mxu0 %v340_v51  ;;  %212 = vmatprep.mubr.f32.mxu0 %v8327_v0  ;;  %8911 = vst [vmem:[#allocation15_spill] sm:$0xff] %v4705_v37  ;;  %8912 = vst [vmem:[#allocation16_spill] sm:$0xff] %v4711_v39  ;;  %v4714_v40 = vld [vmem:[#allocation2 + $0x3f8] sm:$0xff]  ;;  %v4717_v41 = vld [vmem:[#allocation2 + $0x268] sm:$0xff] }
  0x3f   :  { %629 = vmatprep.subr.mxu0 %v337_v53  ;;  %687 = vmatpush1.msra.mxu1 %v4600_v61  ;;  %8913 = vst [vmem:[#allocation17_spill] sm:$0xff] %v4717_v41  ;;  %v4720_v42 = vld [vmem:[#allocation2 + $0x3f0] sm:$0xff]  ;;  %v4723_v44 = vld [vmem:[#allocation2 + $0x260] sm:$0xff]  ;;  %v4726_v46 = vld [vmem:[#allocation2 + $0x3d8] sm:$0xff] }
  0x40   :  { %630 = vmatpush1.msra.mxu0 %v336_v55  ;;  %688 = vmatprep.subr.mxu1 %v4603_v63  ;;  %8914 = vst [vmem:[#allocation18_spill] sm:$0xff] %v4723_v44  ;;  %v4729_v48 = vld [vmem:[#allocation2 + $0x248] sm:$0xff]  ;;  %v4732_v49 = vld [vmem:[#allocation2 + $0x3d0] sm:$0xff]  ;;  %v4735_v51 = vld [vmem:[#allocation2 + $0x240] sm:$0xff] }
  0x41   :  { %631 = vmatprep.subr.mxu0 %v461_v57  ;;  %3193 = vmatmul.mubr.msk.f32.gmra.mxu0 %vm86_vm1, %v4609_v2  ;;  %8915 = vst [vmem:[#allocation19_spill] sm:$0xff] %v4729_v48  ;;  %8916 = vst [vmem:[#allocation20_spill] sm:$0xff] %v4735_v51  ;;  %v4738_v53 = vld [vmem:[#allocation2 + $0x3b8] sm:$0xff]  ;;  %v4741_v55 = vld [vmem:[#allocation2 + $0x228] sm:$0xff] }
  0x42   :  { %632 = vmatpush2.msra.mxu0 %v460_v59  ;;  %689 = vmatpush1.msra.mxu1 %v4612_v5  ;;  %8917 = vst [vmem:[#allocation21_spill] sm:$0xff] %v4741_v55  ;;  %v4744_v57 = vld [vmem:[#allocation2 + $0x3b0] sm:$0xff]  ;;  %v4747_v59 = vld [vmem:[#allocation2 + $0x220] sm:$0xff] }
  0x43   :  { %633 = vmatprep.subr.mxu0 %v457_v60  ;;  %690 = vmatprep.subr.mxu1 %v4615_v7  ;;  %8918 = vst [vmem:[#allocation22_spill] sm:$0xff] %v4747_v59  ;;  %v4750_v60 = vld [vmem:[#allocation2 + $0x398] sm:$0xff] }
  0x44   :  { %634 = vmatpush2.msra.mxu0 %v456_v62  ;;  %218 = vmatprep.mubr.f32.mxu0 %v8327_v0  ;;  %v4753_v62 = vld [vmem:[#allocation2 + $0x208] sm:$0xff] }
  0x45   :  { %635 = vmatprep.subr.mxu0 %v453_v1  ;;  %691 = vmatpush1.msra.mxu1 %v4622_v10  ;;  %8919 = vst [vmem:[#allocation23_spill] sm:$0xff] %v4753_v62  ;;  %v4756_v1 = vld [vmem:[#allocation2 + $0x390] sm:$0xff] }
  0x46   :  { %636 = vmatpush2.msra.mxu0 %v452_v3  ;;  %692 = vmatprep.subr.mxu1 %v4627_v12  ;;  %v4759_v3 = vld [vmem:[#allocation2 + $0x200] sm:$0xff] }
  0x47   :  { %637 = vmatprep.subr.mxu0 %v449_v6  ;;  %3194 = vmatmul.mubr.msk.f32.gmra.mxu0 %vm86_vm1, %v4635_v14  ;;  %8920 = vst [vmem:[#allocation24_spill] sm:$0xff] %v4759_v3  ;;  %v4762_v6 = vld [vmem:[#allocation2 + $0x378] sm:$0xff] }
  0x48   :  { %638 = vmatpush2.msra.mxu0 %v448_v8  ;;  %693 = vmatpush1.msra.mxu1 %v4641_v17  ;;  %v4766_v8 = vld [vmem:[#allocation2 + $0x370] sm:$0xff] }
  0x49   :  { %639 = vmatprep.subr.mxu0 %v4619_v9  ;;  %694 = vmatprep.subr.mxu1 %v4647_v19 }
  0x4a   :  { %640 = vmatpush2.msra.mxu0 %v4624_v11  ;;  %224 = vmatprep.mubr.f32.mxu0 %v8327_v0 }
  0x4b   :  { %641 = vmatprep.subr.mxu0 %v4629_v13  ;;  %695 = vmatpush1.msra.mxu1 %v4658_v22 }
  0x4c   :  { %642 = vmatpush2.msra.mxu0 %v4638_v15  ;;  %696 = vmatprep.subr.mxu1 %v4664_v24 }
  0x4d   :  { %643 = vmatprep.subr.mxu0 %v4644_v18  ;;  %3195 = vmatmul.mubr.msk.f32.gmra.mxu0 %vm86_vm1, %v4673_v26 }
  0x4e   :  { %644 = vmatpush2.msra.mxu0 %v4650_v20  ;;  %697 = vmatpush1.msra.mxu1 %v4679_v28 }
  0x4f   :  { %645 = vmatprep.subr.mxu0 %v4655_v21  ;;  %698 = vmatprep.subr.mxu1 %v4685_v30 }
  0x50   :  { %646 = vmatpush2.msra.mxu0 %v4661_v23  ;;  %699 = vmatpush1.msra.mxu1 %v4692_v33 }
  0x51   :  { %647 = vmatprep.subr.mxu0 %v4667_v25  ;;  %700 = vmatprep.subr.mxu1 %v4698_v35 }
  0x52   :  { %648 = vmatpush2.msra.mxu0 %v4676_v27  ;;  %663 = vmatprep.mubr.f32.mxu0 %v8327_v0  ;;  %v4770_v0 = vld [vmem:[#allocation2 + $0x358] sm:$0xff] }
  0x53   :  { %649 = vmatprep.subr.mxu0 %v4682_v29  ;;  %701 = vmatpush1.msra.mxu1 %v4708_v38 }
  0x54   :  { %650 = vmatpush2.msra.mxu0 %v4688_v31  ;;  %702 = vmatprep.subr.mxu1 %v4714_v40  ;;  %v5074_v31 = vld [vmem:[#allocation4 + $0x1f8] sm:$0xff] }
  0x55   :  { %651 = vmatprep.subr.mxu0 %v4695_v34  ;;  %703 = vmatpush2.msra.mxu1 %v4720_v42  ;;  %v4834_v34 = vld [vmem:[#allocation2 + $0x258] sm:$0xff]  ;;  %9014 = vst [vmem:[#allocation117_spill] sm:$0xff] %v5074_v31 }
  0x56   :  { %652 = vmatpush2.msra.mxu0 %v4701_v36  ;;  %704 = vmatprep.subr.mxu1 %v4726_v46  ;;  %v4822_v36 = vld [vmem:[#allocation2 + $0x290] sm:$0xff]  ;;  %8934 = vst [vmem:[#allocation37_spill] sm:$0xff] %v4834_v34 }
  0x57   :  { %653 = vmatprep.subr.mxu0 %v4705_v37  ;;  %705 = vmatpush2.msra.mxu1 %v4732_v49  ;;  %v4819_v37 = vld [vmem:[#allocation2 + $0x298] sm:$0xff]  ;;  %8931 = vst [vmem:[#allocation34_spill] sm:$0xff] %v4822_v36 }
  0x58   :  { %654 = vmatpush2.msra.mxu0 %v4711_v39  ;;  %706 = vmatprep.subr.mxu1 %v4738_v53  ;;  %v4806_v39 = vld [vmem:[#allocation2 + $0x2d0] sm:$0xff]  ;;  %8930 = vst [vmem:[#allocation33_spill] sm:$0xff] %v4819_v37 }
  0x59   :  { %655 = vmatprep.subr.mxu0 %v4717_v41  ;;  %707 = vmatpush2.msra.mxu1 %v4744_v57  ;;  %v4803_v41 = vld [vmem:[#allocation2 + $0x2d8] sm:$0xff]  ;;  %8927 = vst [vmem:[#allocation30_spill] sm:$0xff] %v4806_v39 }
  0x5a   :  { %656 = vmatpush2.msra.mxu0 %v4723_v44  ;;  %708 = vmatprep.subr.mxu1 %v4750_v60  ;;  %v4795_v44 = vld [vmem:[#allocation2 + $0x2f8] sm:$0xff]  ;;  %8926 = vst [vmem:[#allocation29_spill] sm:$0xff] %v4803_v41 }
  0x5b   :  { %657 = vmatprep.subr.mxu0 %v4729_v48  ;;  %709 = vmatpush2.msra.mxu1 %v4756_v1  ;;  %v4781_v48 = vld [vmem:[#allocation2 + $0x330] sm:$0xff]  ;;  %8924 = vst [vmem:[#allocation27_spill] sm:$0xff] %v4795_v44 }
  0x5c   :  { %658 = vmatpush2.msra.mxu0 %v4735_v51  ;;  %710 = vmatprep.subr.mxu1 %v4762_v6  ;;  %v8921_v51 = vmov 0.0  }
  0x5d   :  { %659 = vmatprep.subr.mxu0 %v4741_v55  ;;  %v4774_v55 = vld [vmem:[#allocation2 + $0x350] sm:$0xff]  ;;  %711 = vmatpush2.msra.mxu1 %v4766_v8 }
  0x5e   :  { %660 = vmatpush2.msra.mxu0 %v4747_v59  ;;  %v4778_v59 = vld [vmem:[#allocation2 + $0x338] sm:$0xff]  ;;  %712 = vmatprep.subr.mxu1 %v4770_v0 }
  0x5f   :  { %661 = vmatprep.subr.mxu0 %v4753_v62  ;;  %3531 = vmatprep.mubr.msk.f32.mxu1 %vm86_vm1, %v4563_v32  ;;  %v4790_v62 = vld [vmem:[#allocation2 + $0x310] sm:$0xff] }
  0x60   :  { %662 = vmatpush2.msra.mxu0 %v4759_v3  ;;  %713 = vmatpush2.msra.mxu1 %v4774_v55  ;;  %v4786_v3 = vld [vmem:[#allocation2 + $0x318] sm:$0xff]  ;;  %8923 = vst [vmem:[#allocation26_spill] sm:$0xff] %v4790_v62  ;;  %v4800_v32 = vld [vmem:[#allocation2 + $0x2f0] sm:$0xff] }
  0x61   :  { %664 = vmatmul.mubr.f32.vlgmr.msra.gmra.mxu0 %v8921_v51  ;;  %8922 = vst [vmem:[#allocation25_spill] sm:$0xff] %v4786_v3  ;;  %714 = vmatprep.subr.mxu1 %v4778_v59  ;;  %8925 = vst [vmem:[#allocation28_spill] sm:$0xff] %v4800_v32 }
  0x62   :  { %825 = vmatprep.mubr.f32.mxu0 %v8921_v51  ;;  %3532 = vmatmul.mubr.msk.f32.gmra.mxu1 %vm86_vm1, %v4571_v43  ;;  %v4811_v43 = vld [vmem:[#allocation2 + $0x2b8] sm:$0xff] }
  0x63   :  { %715 = vmatpush2.msra.mxu1 %v4781_v48  ;;  %3534 = vmatprep.mubr.msk.f32.mxu1 %vm86_vm1, %v4589_v54  ;;  %8928 = vst [vmem:[#allocation31_spill] sm:$0xff] %v4811_v43  ;;  %v4816_v54 = vld [vmem:[#allocation2 + $0x2b0] sm:$0xff] }
  0x64   :  { %716 = vmatprep.subr.mxu1 %v4786_v3  ;;  %8929 = vst [vmem:[#allocation32_spill] sm:$0xff] %v4816_v54 }
  0x65   :  { %717 = vmatpush2.msra.mxu1 %v4790_v62 }
  0x66   :  { %718 = vmatprep.subr.mxu1 %v4795_v44  ;;  %3535 = vmatmul.mubr.msk.f32.gmra.mxu1 %vm86_vm1, %v4609_v2  ;;  %v4827_v2 = vld [vmem:[#allocation2 + $0x278] sm:$0xff] }
  0x67   :  { %719 = vmatpush2.msra.mxu1 %v4800_v32  ;;  %3537 = vmatprep.mubr.msk.f32.mxu1 %vm86_vm1, %v4635_v14  ;;  %8932 = vst [vmem:[#allocation35_spill] sm:$0xff] %v4827_v2  ;;  %v4831_v14 = vld [vmem:[#allocation2 + $0x270] sm:$0xff] }
  0x68   :  { %720 = vmatprep.subr.mxu1 %v4803_v41  ;;  %8933 = vst [vmem:[#allocation36_spill] sm:$0xff] %v4831_v14 }
  0x69   :  { %721 = vmatpush2.msra.mxu1 %v4806_v39  ;;  %v5058_v39 = vld [vmem:[#allocation4 + $0x220] sm:$0xff] }
  0x6a   :  { %722 = vmatprep.subr.mxu1 %v4811_v43  ;;  %3538 = vmatmul.mubr.msk.f32.gmra.mxu1 %vm86_vm1, %v4673_v26  ;;  %v4837_v43 = vld [vmem:[#allocation2 + $0x250] sm:$0xff]  ;;  %v4840_v26 = vld [vmem:[#allocation2 + $0x238] sm:$0xff]  ;;  %9009 = vst [vmem:[#allocation112_spill] sm:$0xff] %v5058_v39 }
  0x6b   :  { %723 = vmatpush2.msra.mxu1 %v4816_v54  ;;  %734 = vmatprep.mubr.f32.mxu1 %v8921_v51  ;;  %8935 = vst [vmem:[#allocation38_spill] sm:$0xff] %v4837_v43  ;;  %8936 = vst [vmem:[#allocation39_spill] sm:$0xff] %v4840_v26  ;;  %v4843_v54 = vld [vmem:[#allocation2 + $0x230] sm:$0xff] }
  0x6c   :  { %724 = vmatprep.subr.mxu1 %v4819_v37  ;;  %8937 = vst [vmem:[#allocation40_spill] sm:$0xff] %v4843_v54  ;;  %v4846_v37 = vld [vmem:[#allocation2 + $0x218] sm:$0xff] }
  0x6d   :  { %725 = vmatpush2.msra.mxu1 %v4822_v36  ;;  %8938 = vst [vmem:[#allocation41_spill] sm:$0xff] %v4846_v37  ;;  %v4849_v36 = vld [vmem:[#allocation2 + $0x210] sm:$0xff] }
  0x6e   :  { %726 = vmatprep.subr.mxu1 %v4827_v2  ;;  %8939 = vst [vmem:[#allocation42_spill] sm:$0xff] %v4849_v36  ;;  %v4964_v2 = vld [vmem:[#allocation4 + $0x2d8] sm:$0xff] }
  0x6f   :  { %727 = vmatpush2.msra.mxu1 %v4831_v14  ;;  %v4858_v14 = vld [vmem:[#allocation4 + $0x168] sm:$0xff]  ;;  %8977 = vst [vmem:[#allocation80_spill] sm:$0xff] %v4964_v2 }
  0x70   :  { %728 = vmatprep.subr.mxu1 %v4834_v34  ;;  %v4856_v34 = vld [vmem:[#allocation4 + $0x170] sm:$0xff]  ;;  %8941 = vst [vmem:[#allocation44_spill] sm:$0xff] %v4858_v14 }
  0x71   :  { %729 = vmatpush2.msra.mxu1 %v4837_v43  ;;  %8940 = vst [vmem:[#allocation43_spill] sm:$0xff] %v4856_v34  ;;  %v4860_v43 = vld [vmem:[#allocation4 + $0x158] sm:$0xff]  ;;  %761 = vmatprep.subr.mxu0 %v4856_v34  ;;  %v4877_v34 = vld [vmem:[#allocation4 + $0x120] sm:$0xff] }
  0x72   :  { %730 = vmatprep.subr.mxu1 %v4840_v26  ;;  %8942 = vst [vmem:[#allocation45_spill] sm:$0xff] %v4860_v43  ;;  %762 = vmatpush1.msra.mxu0 %v4858_v14  ;;  %8947 = vst [vmem:[#allocation50_spill] sm:$0xff] %v4877_v34  ;;  %v4945_v14 = vld [vmem:[#allocation4 + $0x8] sm:$0xff]  ;;  %v4952_v26 = vld [vmem:[#allocation4 + $0x2f8] sm:$0xff] }
  0x73   :  { %731 = vmatpush2.msra.mxu1 %v4843_v54  ;;  %763 = vmatprep.subr.mxu0 %v4860_v43  ;;  %v4865_v54 = vld [vmem:[#allocation4 + $0x150] sm:$0xff]  ;;  %8970 = vst [vmem:[#allocation73_spill] sm:$0xff] %v4945_v14  ;;  %8973 = vst [vmem:[#allocation76_spill] sm:$0xff] %v4952_v26 }
  0x74   :  { %732 = vmatprep.subr.mxu1 %v4846_v37  ;;  %8943 = vst [vmem:[#allocation46_spill] sm:$0xff] %v4865_v54  ;;  %764 = vmatpush1.msra.mxu0 %v4865_v54  ;;  %v4874_v37 = vld [vmem:[#allocation4 + $0x128] sm:$0xff]  ;;  %v4880_v43 = vld [vmem:[#allocation4 + $0x110] sm:$0xff] }
  0x75   :  { %733 = vmatpush2.msra.mxu1 %v4849_v36  ;;  %v4868_v36 = vld [vmem:[#allocation4 + $0x140] sm:$0xff]  ;;  %8946 = vst [vmem:[#allocation49_spill] sm:$0xff] %v4874_v37  ;;  %8948 = vst [vmem:[#allocation51_spill] sm:$0xff] %v4880_v43  ;;  %v4883_v54 = vld [vmem:[#allocation4 + $0x108] sm:$0xff] }
  0x76   :  { %735 = vmatmul.mubr.f32.vlgmr.msra.gmra.mxu1 %v8921_v51  ;;  %8944 = vst [vmem:[#allocation47_spill] sm:$0xff] %v4868_v36  ;;  %765 = vmatprep.subr.mxu0 %v4868_v36  ;;  %8949 = vst [vmem:[#allocation52_spill] sm:$0xff] %v4883_v54  ;;  %v4886_v36 = vld [vmem:[#allocation4 + $0xf8] sm:$0xff] }
  0x77   :  { %896 = vmatprep.mubr.f32.mxu1 %v8921_v51  ;;  %v4871_v51 = vld [vmem:[#allocation4 + $0x138] sm:$0xff]  ;;  %8950 = vst [vmem:[#allocation53_spill] sm:$0xff] %v4886_v36  ;;  %3246 = vmatprep.subr.mxu1 %v4952_v26  ;;  %v5050_v26 = vld [vmem:[#allocation4 + $0x228] sm:$0xff] }
  0x78   :  { %8945 = vst [vmem:[#allocation48_spill] sm:$0xff] %v4871_v51  ;;  %766 = vmatpush1.msra.mxu0 %v4871_v51  ;;  %v4889_v51 = vld [vmem:[#allocation4 + $0xf0] sm:$0xff]  ;;  %9006 = vst [vmem:[#allocation109_spill] sm:$0xff] %v5050_v26 }
  0x79   :  { %767 = vmatprep.subr.mxu0 %v4874_v37  ;;  %8951 = vst [vmem:[#allocation54_spill] sm:$0xff] %v4889_v51  ;;  %v4892_v37 = vld [vmem:[#allocation4 + $0xe0] sm:$0xff] }
  0x7a   :  { %768 = vmatpush1.msra.mxu0 %v4877_v34  ;;  %8952 = vst [vmem:[#allocation55_spill] sm:$0xff] %v4892_v37  ;;  %v4895_v34 = vld [vmem:[#allocation4 + $0xd8] sm:$0xff] }
  0x7b   :  { %769 = vmatprep.subr.mxu0 %v4880_v43  ;;  %8953 = vst [vmem:[#allocation56_spill] sm:$0xff] %v4895_v34  ;;  %v4898_v43 = vld [vmem:[#allocation4 + $0xc8] sm:$0xff] }
  0x7c   :  { %770 = vmatpush1.msra.mxu0 %v4883_v54  ;;  %8954 = vst [vmem:[#allocation57_spill] sm:$0xff] %v4898_v43  ;;  %v4901_v54 = vld [vmem:[#allocation4 + $0xc0] sm:$0xff] }
  0x7d   :  { %771 = vmatprep.subr.mxu0 %v4886_v36  ;;  %8955 = vst [vmem:[#allocation58_spill] sm:$0xff] %v4901_v54  ;;  %v4904_v36 = vld [vmem:[#allocation4 + $0xb0] sm:$0xff] }
  0x7e   :  { %772 = vmatpush1.msra.mxu0 %v4889_v51  ;;  %8956 = vst [vmem:[#allocation59_spill] sm:$0xff] %v4904_v36  ;;  %v4907_v51 = vld [vmem:[#allocation4 + $0xa8] sm:$0xff] }
  0x7f   :  { %773 = vmatprep.subr.mxu0 %v4892_v37  ;;  %8957 = vst [vmem:[#allocation60_spill] sm:$0xff] %v4907_v51  ;;  %v4910_v37 = vld [vmem:[#allocation4 + $0x98] sm:$0xff] }
  0x80   :  { %774 = vmatpush1.msra.mxu0 %v4895_v34  ;;  %8958 = vst [vmem:[#allocation61_spill] sm:$0xff] %v4910_v37  ;;  %v4913_v34 = vld [vmem:[#allocation4 + $0x90] sm:$0xff] }
  0x81   :  { %775 = vmatprep.subr.mxu0 %v4898_v43  ;;  %8959 = vst [vmem:[#allocation62_spill] sm:$0xff] %v4913_v34  ;;  %v4916_v43 = vld [vmem:[#allocation4 + $0x80] sm:$0xff] }
  0x82   :  { %776 = vmatpush1.msra.mxu0 %v4901_v54  ;;  %8960 = vst [vmem:[#allocation63_spill] sm:$0xff] %v4916_v43  ;;  %v4919_v54 = vld [vmem:[#allocation4 + $0x78] sm:$0xff] }
  0x83   :  { %777 = vmatprep.subr.mxu0 %v4904_v36  ;;  %8961 = vst [vmem:[#allocation64_spill] sm:$0xff] %v4919_v54  ;;  %v4922_v36 = vld [vmem:[#allocation4 + $0x68] sm:$0xff] }
  0x84   :  { %778 = vmatpush1.msra.mxu0 %v4907_v51  ;;  %8962 = vst [vmem:[#allocation65_spill] sm:$0xff] %v4922_v36  ;;  %v4925_v51 = vld [vmem:[#allocation4 + $0x60] sm:$0xff] }
  0x85   :  { %779 = vmatprep.subr.mxu0 %v4910_v37  ;;  %8963 = vst [vmem:[#allocation66_spill] sm:$0xff] %v4925_v51  ;;  %v4928_v37 = vld [vmem:[#allocation4 + $0x50] sm:$0xff] }
  0x86   :  { %780 = vmatpush1.msra.mxu0 %v4913_v34  ;;  %8964 = vst [vmem:[#allocation67_spill] sm:$0xff] %v4928_v37  ;;  %v4931_v34 = vld [vmem:[#allocation4 + $0x48] sm:$0xff] }
  0x87   :  { %781 = vmatprep.subr.mxu0 %v4916_v43  ;;  %8965 = vst [vmem:[#allocation68_spill] sm:$0xff] %v4931_v34  ;;  %v4934_v43 = vld [vmem:[#allocation4 + $0x38] sm:$0xff] }
  0x88   :  { %782 = vmatpush1.msra.mxu0 %v4919_v54  ;;  %8966 = vst [vmem:[#allocation69_spill] sm:$0xff] %v4934_v43  ;;  %v4937_v54 = vld [vmem:[#allocation4 + $0x30] sm:$0xff] }
  0x89   :  { %783 = vmatprep.subr.mxu0 %v4922_v36  ;;  %8967 = vst [vmem:[#allocation70_spill] sm:$0xff] %v4937_v54  ;;  %v4940_v36 = vld [vmem:[#allocation4 + $0x20] sm:$0xff] }
  0x8a   :  { %784 = vmatpush1.msra.mxu0 %v4925_v51  ;;  %8968 = vst [vmem:[#allocation71_spill] sm:$0xff] %v4940_v36  ;;  %v4943_v51 = vld [vmem:[#allocation4 + $0x18] sm:$0xff] }
  0x8b   :  { %785 = vmatprep.subr.mxu0 %v4928_v37  ;;  %8969 = vst [vmem:[#allocation72_spill] sm:$0xff] %v4943_v51  ;;  %v4947_v37 = vld [vmem:[#allocation4] sm:$0xff] }
  0x8c   :  { %786 = vmatpush1.msra.mxu0 %v4931_v34  ;;  %8971 = vst [vmem:[#allocation74_spill] sm:$0xff] %v4947_v37  ;;  %v4950_v34 = vld [vmem:[#allocation4 + $0x2f0] sm:$0xff] }
  0x8d   :  { %787 = vmatprep.subr.mxu0 %v4934_v43  ;;  %8972 = vst [vmem:[#allocation75_spill] sm:$0xff] %v4950_v34  ;;  %v4958_v43 = vld [vmem:[#allocation4 + $0x178] sm:$0xff] }
  0x8e   :  { %788 = vmatpush1.msra.mxu0 %v4937_v54  ;;  %v4956_v54 = vld [vmem:[#allocation4 + $0x2e8] sm:$0xff]  ;;  %8975 = vst [vmem:[#allocation78_spill] sm:$0xff] %v4958_v43  ;;  %3247 = vmatpush3.msra.mxu1 %v4958_v43 }
  0x8f   :  { %789 = vmatprep.subr.mxu0 %v4940_v36  ;;  %8974 = vst [vmem:[#allocation77_spill] sm:$0xff] %v4956_v54  ;;  %v4960_v36 = vld [vmem:[#allocation4 + $0x2e0] sm:$0xff]  ;;  %v4978_v43 = vld [vmem:[#allocation4 + $0x2c8] sm:$0xff] }
  0x90   :  { %790 = vmatpush1.msra.mxu0 %v4943_v51  ;;  %8976 = vst [vmem:[#allocation79_spill] sm:$0xff] %v4960_v36  ;;  %3248 = vmatprep.subr.mxu1 %v4960_v36  ;;  %v4972_v51 = vld [vmem:[#allocation4 + $0x160] sm:$0xff]  ;;  %8981 = vst [vmem:[#allocation84_spill] sm:$0xff] %v4978_v43  ;;  %v5042_v36 = vld [vmem:[#allocation4 + $0xd0] sm:$0xff] }
  0x91   :  { %791 = vmatprep.subr.mxu0 %v4945_v14  ;;  %v4970_v14 = vld [vmem:[#allocation4 + $0x2d0] sm:$0xff]  ;;  %8979 = vst [vmem:[#allocation82_spill] sm:$0xff] %v4972_v51  ;;  %3249 = vmatpush3.msra.mxu1 %v4972_v51  ;;  %v4994_v51 = vld [vmem:[#allocation4 + $0x2a0] sm:$0xff]  ;;  %9003 = vst [vmem:[#allocation106_spill] sm:$0xff] %v5042_v36 }
  0x92   :  { %792 = vmatpush1.msra.mxu0 %v4947_v37  ;;  %8978 = vst [vmem:[#allocation81_spill] sm:$0xff] %v4970_v14  ;;  %v4976_v37 = vld [vmem:[#allocation4 + $0x2c0] sm:$0xff]  ;;  %3250 = vmatprep.subr.mxu1 %v4978_v43  ;;  %8986 = vst [vmem:[#allocation89_spill] sm:$0xff] %v4994_v51  ;;  %v5000_v43 = vld [vmem:[#allocation4 + $0x290] sm:$0xff] }
  0x93   :  { %793 = vmatprep.subr.mxu0 %v4950_v34  ;;  %8980 = vst [vmem:[#allocation83_spill] sm:$0xff] %v4976_v37  ;;  %v4982_v34 = vld [vmem:[#allocation4 + $0x2b8] sm:$0xff]  ;;  %8988 = vst [vmem:[#allocation91_spill] sm:$0xff] %v5000_v43 }
  0x94   :  { %794 = vmatpush2.msra.mxu0 %v4956_v54  ;;  %8982 = vst [vmem:[#allocation85_spill] sm:$0xff] %v4982_v34  ;;  %v4984_v54 = vld [vmem:[#allocation4 + $0x148] sm:$0xff] }
  0x95   :  { %795 = vmatprep.subr.mxu0 %v4964_v2  ;;  %8983 = vst [vmem:[#allocation86_spill] sm:$0xff] %v4984_v54  ;;  %3251 = vmatpush3.msra.mxu1 %v4984_v54  ;;  %v4988_v2 = vld [vmem:[#allocation4 + $0x2a8] sm:$0xff] }
  0x96   :  { %796 = vmatpush2.msra.mxu0 %v4970_v14  ;;  %8984 = vst [vmem:[#allocation87_spill] sm:$0xff] %v4988_v2  ;;  %v4990_v14 = vld [vmem:[#allocation4 + $0x2b0] sm:$0xff]  ;;  %v5006_v54 = vld [vmem:[#allocation4 + $0x288] sm:$0xff] }
  0x97   :  { %797 = vmatprep.subr.mxu0 %v4976_v37  ;;  %8985 = vst [vmem:[#allocation88_spill] sm:$0xff] %v4990_v14  ;;  %3252 = vmatprep.subr.mxu1 %v4990_v14  ;;  %v4996_v37 = vld [vmem:[#allocation4 + $0x130] sm:$0xff]  ;;  %8990 = vst [vmem:[#allocation93_spill] sm:$0xff] %v5006_v54  ;;  %v5012_v14 = vld [vmem:[#allocation4 + $0x278] sm:$0xff] }
  0x98   :  { %798 = vmatpush2.msra.mxu0 %v4982_v34  ;;  %8987 = vst [vmem:[#allocation90_spill] sm:$0xff] %v4996_v37  ;;  %3253 = vmatpush3.msra.mxu1 %v4996_v37  ;;  %v5002_v34 = vld [vmem:[#allocation4 + $0x298] sm:$0xff]  ;;  %8992 = vst [vmem:[#allocation95_spill] sm:$0xff] %v5012_v14  ;;  %v5018_v37 = vld [vmem:[#allocation4 + $0x270] sm:$0xff] }
  0x99   :  { %799 = vmatprep.subr.mxu0 %v4988_v2  ;;  %8989 = vst [vmem:[#allocation92_spill] sm:$0xff] %v5002_v34  ;;  %3254 = vmatprep.subr.mxu1 %v5002_v34  ;;  %v5008_v2 = vld [vmem:[#allocation4 + $0x118] sm:$0xff]  ;;  %8994 = vst [vmem:[#allocation97_spill] sm:$0xff] %v5018_v37  ;;  %v5024_v34 = vld [vmem:[#allocation4 + $0x260] sm:$0xff] }
  0x9a   :  { %800 = vmatpush2.msra.mxu0 %v4994_v51  ;;  %8991 = vst [vmem:[#allocation94_spill] sm:$0xff] %v5008_v2  ;;  %3255 = vmatpush3.msra.mxu1 %v5008_v2  ;;  %v5014_v51 = vld [vmem:[#allocation4 + $0x280] sm:$0xff]  ;;  %8996 = vst [vmem:[#allocation99_spill] sm:$0xff] %v5024_v34  ;;  %v5030_v2 = vld [vmem:[#allocation4 + $0x258] sm:$0xff] }
  0x9b   :  { %801 = vmatprep.subr.mxu0 %v5000_v43  ;;  %8993 = vst [vmem:[#allocation96_spill] sm:$0xff] %v5014_v51  ;;  %3256 = vmatprep.subr.mxu1 %v5014_v51  ;;  %v5020_v43 = vld [vmem:[#allocation4 + $0x100] sm:$0xff]  ;;  %8998 = vst [vmem:[#allocation101_spill] sm:$0xff] %v5030_v2  ;;  %v5034_v51 = vld [vmem:[#allocation4 + $0x248] sm:$0xff] }
  0x9c   :  { %802 = vmatpush2.msra.mxu0 %v5006_v54  ;;  %8995 = vst [vmem:[#allocation98_spill] sm:$0xff] %v5020_v43  ;;  %3257 = vmatpush3.msra.mxu1 %v5020_v43  ;;  %v5026_v54 = vld [vmem:[#allocation4 + $0x268] sm:$0xff]  ;;  %9000 = vst [vmem:[#allocation103_spill] sm:$0xff] %v5034_v51  ;;  %v5040_v43 = vld [vmem:[#allocation4 + $0x240] sm:$0xff] }
  0x9d   :  { %803 = vmatprep.subr.mxu0 %v5012_v14  ;;  %8997 = vst [vmem:[#allocation100_spill] sm:$0xff] %v5026_v54  ;;  %3258 = vmatprep.subr.mxu1 %v5026_v54  ;;  %v5032_v14 = vld [vmem:[#allocation4 + $0xe8] sm:$0xff]  ;;  %9002 = vst [vmem:[#allocation105_spill] sm:$0xff] %v5040_v43  ;;  %v5048_v54 = vld [vmem:[#allocation4 + $0x238] sm:$0xff] }
  0x9e   :  { %804 = vmatpush2.msra.mxu0 %v5018_v37  ;;  %8999 = vst [vmem:[#allocation102_spill] sm:$0xff] %v5032_v14  ;;  %3259 = vmatpush3.msra.mxu1 %v5032_v14  ;;  %v5038_v37 = vld [vmem:[#allocation4 + $0x250] sm:$0xff]  ;;  %9005 = vst [vmem:[#allocation108_spill] sm:$0xff] %v5048_v54  ;;  %v5056_v14 = vld [vmem:[#allocation4 + $0x218] sm:$0xff] }
  0x9f   :  { %805 = vmatprep.subr.mxu0 %v5024_v34  ;;  %9001 = vst [vmem:[#allocation104_spill] sm:$0xff] %v5038_v37  ;;  %3260 = vmatprep.subr.mxu1 %v5038_v37  ;;  %v5046_v34 = vld [vmem:[#allocation4 + $0x230] sm:$0xff]  ;;  %9008 = vst [vmem:[#allocation111_spill] sm:$0xff] %v5056_v14  ;;  %v5064_v37 = vld [vmem:[#allocation4 + $0xa0] sm:$0xff] }
  0xa0   :  { %806 = vmatpush2.msra.mxu0 %v5030_v2  ;;  %9004 = vst [vmem:[#allocation107_spill] sm:$0xff] %v5046_v34  ;;  %3261 = vmatpush3.msra.mxu1 %v5042_v36  ;;  %v5054_v2 = vld [vmem:[#allocation4 + $0xb8] sm:$0xff]  ;;  %9011 = vst [vmem:[#allocation114_spill] sm:$0xff] %v5064_v37  ;;  %v5070_v36 = vld [vmem:[#allocation4 + $0x208] sm:$0xff] }
  0xa1   :  { %807 = vmatprep.subr.mxu0 %v5034_v51  ;;  %9007 = vst [vmem:[#allocation110_spill] sm:$0xff] %v5054_v2  ;;  %3262 = vmatprep.subr.mxu1 %v5048_v54  ;;  %v5062_v51 = vld [vmem:[#allocation4 + $0x210] sm:$0xff]  ;;  %9013 = vst [vmem:[#allocation116_spill] sm:$0xff] %v5070_v36  ;;  %v5080_v54 = vld [vmem:[#allocation4 + $0x1e8] sm:$0xff] }
  0xa2   :  { %808 = vmatpush2.msra.mxu0 %v5040_v43  ;;  %9010 = vst [vmem:[#allocation113_spill] sm:$0xff] %v5062_v51  ;;  %3263 = vmatpush3.msra.mxu1 %v5054_v2  ;;  %v5068_v43 = vld [vmem:[#allocation4 + $0x200] sm:$0xff]  ;;  %9016 = vst [vmem:[#allocation119_spill] sm:$0xff] %v5080_v54 }
  0xa3   :  { %809 = vmatprep.subr.mxu0 %v5046_v34  ;;  %9012 = vst [vmem:[#allocation115_spill] sm:$0xff] %v5068_v43  ;;  %3264 = vmatprep.subr.mxu1 %v5058_v39  ;;  %v5076_v34 = vld [vmem:[#allocation4 + $0x88] sm:$0xff]  ;;  %v5086_v2 = vld [vmem:[#allocation4 + $0x1e0] sm:$0xff]  ;;  %v5092_v39 = vld [vmem:[#allocation4 + $0x1d0] sm:$0xff] }
  0xa4   :  { %810 = vmatpush2.msra.mxu0 %v5050_v26  ;;  %9015 = vst [vmem:[#allocation118_spill] sm:$0xff] %v5076_v34  ;;  %3265 = vmatpush3.msra.mxu1 %v5064_v37  ;;  %v5082_v26 = vld [vmem:[#allocation4 + $0x1f0] sm:$0xff]  ;;  %9018 = vst [vmem:[#allocation121_spill] sm:$0xff] %v5086_v2  ;;  %v5098_v37 = vld [vmem:[#allocation4 + $0x1c8] sm:$0xff] }
  0xa5   :  { %811 = vmatprep.subr.mxu0 %v5056_v14  ;;  %9017 = vst [vmem:[#allocation120_spill] sm:$0xff] %v5082_v26  ;;  %3266 = vmatprep.subr.mxu1 %v5070_v36  ;;  %v5088_v14 = vld [vmem:[#allocation4 + $0x70] sm:$0xff]  ;;  %9020 = vst [vmem:[#allocation123_spill] sm:$0xff] %v5092_v39  ;;  %v5104_v36 = vld [vmem:[#allocation4 + $0x1b8] sm:$0xff] }
  0xa6   :  { %812 = vmatpush2.msra.mxu0 %v5062_v51  ;;  %9019 = vst [vmem:[#allocation122_spill] sm:$0xff] %v5088_v14  ;;  %3267 = vmatpush3.msra.mxu1 %v5076_v34  ;;  %v5094_v51 = vld [vmem:[#allocation4 + $0x1d8] sm:$0xff]  ;;  %9022 = vst [vmem:[#allocation125_spill] sm:$0xff] %v5098_v37  ;;  %v5110_v34 = vld [vmem:[#allocation4 + $0x1b0] sm:$0xff] }
  0xa7   :  { %813 = vmatprep.subr.mxu0 %v5068_v43  ;;  %9021 = vst [vmem:[#allocation124_spill] sm:$0xff] %v5094_v51  ;;  %3268 = vmatprep.subr.mxu1 %v5082_v26  ;;  %v5100_v43 = vld [vmem:[#allocation4 + $0x58] sm:$0xff]  ;;  %9024 = vst [vmem:[#allocation127_spill] sm:$0xff] %v5104_v36  ;;  %v5116_v26 = vld [vmem:[#allocation4 + $0x1a0] sm:$0xff] }
  0xa8   :  { %814 = vmatpush2.msra.mxu0 %v5074_v31  ;;  %9023 = vst [vmem:[#allocation126_spill] sm:$0xff] %v5100_v43  ;;  %3269 = vmatpush3.msra.mxu1 %v5088_v14  ;;  %v5106_v31 = vld [vmem:[#allocation4 + $0x1c0] sm:$0xff]  ;;  %9026 = vst [vmem:[#allocation129_spill] sm:$0xff] %v5110_v34  ;;  %v5122_v14 = vld [vmem:[#allocation4 + $0x198] sm:$0xff] }
  0xa9   :  { %815 = vmatprep.subr.mxu0 %v5080_v54  ;;  %9025 = vst [vmem:[#allocation128_spill] sm:$0xff] %v5106_v31  ;;  %3270 = vmatprep.subr.mxu1 %v5094_v51  ;;  %v5112_v54 = vld [vmem:[#allocation4 + $0x40] sm:$0xff]  ;;  %9028 = vst [vmem:[#allocation131_spill] sm:$0xff] %v5116_v26  ;;  %v5128_v51 = vld [vmem:[#allocation4 + $0x188] sm:$0xff] }
  0xaa   :  { %816 = vmatpush2.msra.mxu0 %v5086_v2  ;;  %9027 = vst [vmem:[#allocation130_spill] sm:$0xff] %v5112_v54  ;;  %3271 = vmatpush3.msra.mxu1 %v5100_v43  ;;  %v5118_v2 = vld [vmem:[#allocation4 + $0x1a8] sm:$0xff]  ;;  %9030 = vst [vmem:[#allocation133_spill] sm:$0xff] %v5122_v14  ;;  %v5134_v43 = vld [vmem:[#allocation4 + $0x180] sm:$0xff] }
  0xab   :  { %817 = vmatprep.subr.mxu0 %v5092_v39  ;;  %9029 = vst [vmem:[#allocation132_spill] sm:$0xff] %v5118_v2  ;;  %3272 = vmatprep.subr.mxu1 %v5106_v31  ;;  %v5124_v39 = vld [vmem:[#allocation4 + $0x28] sm:$0xff]  ;;  %9032 = vst [vmem:[#allocation135_spill] sm:$0xff] %v5128_v51 }
  0xac   :  { %818 = vmatpush2.msra.mxu0 %v5098_v37  ;;  %9031 = vst [vmem:[#allocation134_spill] sm:$0xff] %v5124_v39  ;;  %3273 = vmatpush3.msra.mxu1 %v5112_v54  ;;  %v5130_v37 = vld [vmem:[#allocation4 + $0x190] sm:$0xff]  ;;  %9034 = vst [vmem:[#allocation137_spill] sm:$0xff] %v5134_v43 }
  0xad   :  { %819 = vmatprep.subr.mxu0 %v5104_v36  ;;  %9033 = vst [vmem:[#allocation136_spill] sm:$0xff] %v5130_v37  ;;  %3274 = vmatprep.subr.mxu1 %v5118_v2  ;;  %v5136_v36 = vld [vmem:[#allocation4 + $0x10] sm:$0xff] }
  0xae   :  { %820 = vmatpush2.msra.mxu0 %v5110_v34  ;;  %9035 = vst [vmem:[#allocation138_spill] sm:$0xff] %v5136_v36  ;;  %3275 = vmatpush3.msra.mxu1 %v5124_v39 }
  0xaf   :  { %821 = vmatprep.subr.mxu0 %v5116_v26  ;;  %3276 = vmatprep.subr.mxu1 %v5130_v37  ;;  %v68_v26 = vlaneseq }
  0xb0   :  { %822 = vmatpush2.msra.mxu0 %v5122_v14  ;;  %3277 = vmatpush3.msra.mxu1 %v5136_v36 }
  0xb1   :  { %823 = vmatprep.subr.mxu0 %v5128_v51  ;;  %921 = vmatprep.subr.mxu1 %v4539_v4  ;;  %v5146_v34 = vshrl.u32 %v68_v26, 7  ;;  %v66_v51 = vld [vmem:[%s8320_s2] sm:$0x7] }
  0xb2   :  { %824 = vmatpush2.msra.mxu0 %v5134_v43 }
  0xb3   :  { %992 = vmatprep.subr.mxu0 %v4551_v16  ;;  %v5149_v14 = vsub.s32 0, %v5146_v34  ;;  %v5155_v37 = vsub.s32 1, %v5146_v34 }
  0xb5   :  { %9036 = vst [vmem:[#allocation139_spill] sm:$0xff] %v5149_v14  ;;  %v71_v36 = vrot.slane %v66_v51, %v5149_v14  ;;  %v75_v16 = vrot.slane %v66_v51, %v5155_v37 }
  0xe1   :  { %v184_v2 = vpop.f32.mrf.mxu0 }
  0xe3   :  { %v186_v43 = vpop.f32.mrf.mxu0 }
  0xe9   :  { %v190_v4 = vpop.f32.mrf.mxu0 }
  0xea   :  { %v5159_v39 = vadd.f32 %v190_v4, %v71_v36 }
  0xeb   :  { %v192_v26 = vpop.f32.mrf.mxu0 }
  0xec   :  { %9037 = vst [vmem:[#allocation140_spill] sm:$0xff] %v5159_v39  ;;  %v5161_v54 = vadd.f32 %v192_v26, %v75_v16 }
  0xee   :  { %9038 = vst [vmem:[#allocation141_spill] sm:$0xff] %v5161_v54 }
  0xef   :  { %v196_v31 = vpop.f32.mrf.mxu0 }
  0xf0   :  { %v5163_v41 = vadd.f32 %v196_v31, %v71_v36 }
  0xf1   :  { %v198_v29 = vpop.f32.mrf.mxu0 }
  0xf2   :  { %9039 = vst [vmem:[#allocation142_spill] sm:$0xff] %v5163_v41  ;;  %v5165_v32 = vadd.f32 %v198_v29, %v75_v16 }
  0xf4   :  { %9040 = vst [vmem:[#allocation143_spill] sm:$0xff] %v5165_v32 }
  0xf5   :  { %v202_v27 = vpop.f32.mrf.mxu0 }
  0xf6   :  { %v5167_v44 = vadd.f32 %v202_v27, %v71_v36 }
  0xf7   :  { %v204_v25 = vpop.f32.mrf.mxu0 }
  0xf8   :  { %9041 = vst [vmem:[#allocation144_spill] sm:$0xff] %v5167_v44  ;;  %v5169_v62 = vadd.f32 %v204_v25, %v75_v16 }
  0xfa   :  { %9042 = vst [vmem:[#allocation145_spill] sm:$0xff] %v5169_v62 }
  0xfb   :  { %v208_v23 = vpop.f32.mrf.mxu0 }
  0xfc   :  { %v5171_v3 = vadd.f32 %v208_v23, %v71_v36 }
  0xfd   :  { %v210_v4 = vpop.f32.mrf.mxu0 }
  0xfe   :  { %9043 = vst [vmem:[#allocation146_spill] sm:$0xff] %v5171_v3  ;;  %v5173_v39 = vadd.f32 %v210_v4, %v75_v16  ;;  %v5190_v4 = vld [vmem:[%s8322_s4] sm:$0xf] }
 0x100   :  { %9044 = vst [vmem:[#allocation147_spill] sm:$0xff] %v5173_v39  ;;  %v187_v39 = vadd.f32 %v186_v43, %v75_v16 }
 0x101   :  { %v214_v26 = vpop.f32.mrf.mxu0 }
 0x102   :  { %v5175_v54 = vadd.f32 %v214_v26, %v71_v36  ;;  %v5194_v26 = vrot.slane %v5190_v4, %v5149_v14 }
 0x103   :  { %v216_v31 = vpop.f32.mrf.mxu0 }
 0x104   :  { %9045 = vst [vmem:[#allocation148_spill] sm:$0xff] %v5175_v54  ;;  %v5177_v41 = vadd.f32 %v216_v31, %v75_v16 }
 0x106   :  { %9046 = vst [vmem:[#allocation149_spill] sm:$0xff] %v5177_v41 }
 0x107   :  { %v220_v29 = vpop.f32.mrf.mxu0 }
 0x108   :  { %v5179_v32 = vadd.f32 %v220_v29, %v71_v36  ;;  %v185_v29 = vadd.f32 %v184_v2, %v71_v36 }
 0x109   :  { %v222_v27 = vpop.f32.mrf.mxu0 }
 0x10a   :  { %9047 = vst [vmem:[#allocation150_spill] sm:$0xff] %v5179_v32  ;;  %v5181_v44 = vadd.f32 %v222_v27, %v75_v16 }
 0x10c   :  { %9048 = vst [vmem:[#allocation151_spill] sm:$0xff] %v5181_v44  ;;  %v5197_v44 = vpop.f32.mrf.mxu1 }
 0x10d   :  { %v226_v25 = vpop.f32.mrf.mxu0  ;;  %9051 = vst [vmem:[#allocation154_spill] sm:$0xff] %v5197_v44 }
 0x10e   :  { %v5183_v62 = vadd.f32 %v226_v25, %v71_v36  ;;  %v297_v32 = vpop.f32.mrf.mxu1 }
 0x10f   :  { %v228_v23 = vpop.f32.mrf.mxu0 }
 0x110   :  { %9049 = vst [vmem:[#allocation152_spill] sm:$0xff] %v5183_v62  ;;  %v5185_v3 = vadd.f32 %v228_v23, %v75_v16  ;;  %v5201_v23 = vrot.slane %v5190_v4, %v5155_v37 }
 0x112   :  { %9050 = vst [vmem:[#allocation153_spill] sm:$0xff] %v5185_v3  ;;  %9052 = vst [vmem:[#allocation155_spill] sm:$0xff] %v5201_v23 }
 0x121   :  { %v665_v31 = vpop.f32.mrf.mxu0 }
 0x122   :  { %v666_v27 = vadd.f32 %v665_v31, %v5194_v26  ;;  %v5203_v41 = vpop.f32.mrf.mxu1 }
 0x123   :  { %v667_v3 = vpop.f32.mrf.mxu0  ;;  %9053 = vst [vmem:[#allocation156_spill] sm:$0xff] %v5203_v41 }
 0x124   :  { %v741_v25 = vadd.f32 %v666_v27, %v185_v29  ;;  %v668_v54 = vadd.f32 %v667_v3, %v5201_v23  ;;  %v5206_v14 = vpop.f32.mrf.mxu1 }
 0x125   :  { %9054 = vst [vmem:[#allocation157_spill] sm:$0xff] %v5206_v14 }
 0x126   :  { %v3205_v62 = vmul.f32 -1.442695, %v741_v25  ;;  %v748_v36 = vadd.f32 %v668_v54, %v187_v39  ;;  %v5208_v2 = vpop.f32.mrf.mxu1 }
 0x127   :  { %9055 = vst [vmem:[#allocation158_spill] sm:$0xff] %v5208_v2 }
 0x128   :  { %3548 = vpow2.f32 %v3205_v62  ;;  %v3206_v31 = vmul.f32 -1.442695, %v748_v36  ;;  %v5210_v27 = vpop.f32.mrf.mxu1  ;;  %v5215_v62 = vsub.s32 2, %v5146_v34 }
 0x129   :  { %9056 = vst [vmem:[#allocation159_spill] sm:$0xff] %v5210_v27 }
 0x12a   :  { %3550 = vpow2.f32 %v3206_v31  ;;  %v5212_v44 = vpop.f32.mrf.mxu1  ;;  %v5221_v3 = vrot.slane %v5190_v4, %v5215_v62  ;;  %v5224_v43 = vrot.slane %v66_v51, %v5215_v62  ;;  %v5232_v51 = vld [vmem:[#allocation2 + $0x1e0] sm:$0xff] }
 0x12b   :  { %9057 = vst [vmem:[#allocation160_spill] sm:$0xff] %v5212_v44 }
 0x12c   :  { %v5217_v41 = vpop.f32.mrf.mxu1  ;;  %v298_v31 = vadd.f32 %v297_v32, %v5224_v43  ;;  %v5235_v32 = vld [vmem:[#allocation2 + $0x1f0] sm:$0xff] }
 0x12d   :  { %9058 = vst [vmem:[#allocation161_spill] sm:$0xff] %v5217_v41 }
 0x135   :  { %v3549_v29 = vpop.eup %3548 }
 0x136   :  { %v745_v25 = vadd.f32 1.0, %v3549_v29  ;;  %v736_v39 = vpop.f32.mrf.mxu1 }
 0x137   :  { %v737_v54 = vadd.f32 %v736_v39, %v5221_v3  ;;  %v3551_v16 = vpop.eup %3550  ;;  %v5241_v39 = vld [vmem:[#allocation2 + $0x1d8] sm:$0xff] }
 0x138   :  { %3552 = vrcp.f32 %v745_v25  ;;  %v752_v25 = vadd.f32 1.0, %v3551_v16  ;;  %v5259_v16 = vld [vmem:[#allocation2 + $0x1b0] sm:$0xff] }
 0x139   :  { %9060 = vst [vmem:[#allocation163_spill] sm:$0xff] %v5259_v16 }
 0x145   :  { %v3553_v36 = vpop.eup %3552 }
 0x146   :  { %v755_v29 = vmul.f32 %v3553_v36, %v737_v54  ;;  %v5256_v54 = vld [vmem:[#allocation2 + $0x1a0] sm:$0xff]  ;;  %v5262_v36 = vld [vmem:[#allocation2 + $0x188] sm:$0xff] }
 0x147   :  { %9059 = vst [vmem:[#allocation162_spill] sm:$0xff] %v5256_v54  ;;  %9061 = vst [vmem:[#allocation164_spill] sm:$0xff] %v5262_v36 }
 0x148   :  { %v756_v44 = vadd.f32 %v755_v29, %v298_v31  ;;  %v5265_v31 = vld [vmem:[#allocation2 + $0x198] sm:$0xff]  ;;  %v5268_v29 = vld [vmem:[#allocation2 + $0x180] sm:$0xff] }
 0x149   :  { %9062 = vst [vmem:[#allocation165_spill] sm:$0xff] %v5265_v31  ;;  %9063 = vst [vmem:[#allocation166_spill] sm:$0xff] %v5268_v29 }
 0x14a   :  { %3554 = vtanh.f32 %v756_v44  ;;  %v5238_v44 = vld [vmem:[#allocation2 + $0x1c8] sm:$0xff] }
 0x14b   :  { %3556 = vrcp.f32 %v752_v25  ;;  %v5271_v25 = vld [vmem:[#allocation2 + $0x190] sm:$0xff] }
 0x14c   :  { %9064 = vst [vmem:[#allocation167_spill] sm:$0xff] %v5271_v25 }
 0x157   :  { %v3555_v41 = vpop.eup %3554 }
 0x158   :  { %v758_v2 = vsub.f32 0.0, %v3555_v41  ;;  %v3557_v27 = vpop.eup %3556 }
 0x15a   :  { %v759_v14 = vmul.f32 %v3557_v27, %v758_v2  ;;  %v5250_v2 = vld [vmem:[#allocation2 + $0x1a8] sm:$0xff]  ;;  %v5253_v27 = vld [vmem:[#allocation2 + $0x1b8] sm:$0xff] }
 0x15c   :  { %v5228_v23 = vadd.f32 %v3555_v41, %v759_v14  ;;  %v5244_v41 = vld [vmem:[#allocation2 + $0x1c0] sm:$0xff]  ;;  %v5247_v14 = vld [vmem:[#allocation2 + $0x1d0] sm:$0xff] }
 0x15e   :  { %826 = vmatmul.mubr.f32.vlgmr.msra.gmra.mxu0 %v5228_v23  ;;  %897 = vmatmul.mubr.f32.vlgmr.msra.gmra.mxu1 %v5228_v23 }
 0x15f   :  { %922 = vmatpush1.msra.mxu1 %v5232_v51  ;;  %993 = vmatpush1.msra.mxu0 %v5235_v32 }
 0x160   :  { %923 = vmatprep.subr.mxu1 %v5238_v44  ;;  %994 = vmatprep.subr.mxu0 %v5241_v39 }
 0x161   :  { %924 = vmatpush1.msra.mxu1 %v5244_v41  ;;  %995 = vmatpush1.msra.mxu0 %v5247_v14 }
 0x162   :  { %925 = vmatprep.subr.mxu1 %v5250_v2  ;;  %996 = vmatprep.subr.mxu0 %v5253_v27 }
 0x163   :  { %926 = vmatpush1.msra.mxu1 %v5256_v54  ;;  %997 = vmatpush1.msra.mxu0 %v5259_v16  ;;  %v5274_v54 = vld [vmem:[#allocation2 + $0x168] sm:$0xff]  ;;  %v5277_v16 = vld [vmem:[#allocation2 + $0x178] sm:$0xff] }
 0x164   :  { %927 = vmatprep.subr.mxu1 %v5262_v36  ;;  %998 = vmatprep.subr.mxu0 %v5265_v31  ;;  %9065 = vst [vmem:[#allocation168_spill] sm:$0xff] %v5274_v54  ;;  %9066 = vst [vmem:[#allocation169_spill] sm:$0xff] %v5277_v16  ;;  %v5280_v36 = vld [vmem:[#allocation2 + $0x160] sm:$0xff]  ;;  %v5283_v31 = vld [vmem:[#allocation2 + $0x170] sm:$0xff] }
 0x165   :  { %928 = vmatpush1.msra.mxu1 %v5268_v29  ;;  %999 = vmatpush1.msra.mxu0 %v5271_v25  ;;  %9067 = vst [vmem:[#allocation170_spill] sm:$0xff] %v5283_v31  ;;  %v5286_v29 = vld [vmem:[#allocation2 + $0x148] sm:$0xff]  ;;  %v5289_v25 = vld [vmem:[#allocation2 + $0x158] sm:$0xff] }
 0x166   :  { %929 = vmatprep.subr.mxu1 %v5274_v54  ;;  %1000 = vmatprep.subr.mxu0 %v5277_v16  ;;  %9068 = vst [vmem:[#allocation171_spill] sm:$0xff] %v5286_v29  ;;  %v5292_v54 = vld [vmem:[#allocation2 + $0x140] sm:$0xff]  ;;  %v5296_v16 = vld [vmem:[#allocation2 + $0x128] sm:$0xff] }
 0x167   :  { %930 = vmatpush1.msra.mxu1 %v5280_v36  ;;  %1001 = vmatpush1.msra.mxu0 %v5283_v31  ;;  %9069 = vst [vmem:[#allocation172_spill] sm:$0xff] %v5292_v54  ;;  %v5300_v31 = vld [vmem:[#allocation2 + $0x120] sm:$0xff] }
 0x168   :  { %931 = vmatprep.subr.mxu1 %v5286_v29  ;;  %1002 = vmatprep.subr.mxu0 %v5289_v25  ;;  %v5304_v29 = vld [vmem:[#allocation2 + $0x108] sm:$0xff] }
 0x169   :  { %932 = vmatpush1.msra.mxu1 %v5292_v54  ;;  %1003 = vmatpush1.msra.mxu0 %v4573_v45  ;;  %v5308_v54 = vld [vmem:[#allocation2 + $0x100] sm:$0xff]  ;;  %v5312_v45 = vld [vmem:[#allocation2 + $0xe8] sm:$0xff] }
 0x16a   :  { %933 = vmatprep.subr.mxu1 %v5296_v16  ;;  %1004 = vmatprep.subr.mxu0 %v4575_v47  ;;  %v5316_v47 = vld [vmem:[#allocation2 + $0xe0] sm:$0xff] }
 0x16b   :  { %934 = vmatpush1.msra.mxu1 %v5300_v31  ;;  %1005 = vmatpush1.msra.mxu0 %v4580_v50  ;;  %v5320_v50 = vld [vmem:[#allocation2 + $0xc8] sm:$0xff] }
 0x16c   :  { %935 = vmatprep.subr.mxu1 %v5304_v29  ;;  %1006 = vmatprep.subr.mxu0 %v4583_v52  ;;  %v5324_v52 = vld [vmem:[#allocation2 + $0xc0] sm:$0xff] }
 0x16d   :  { %936 = vmatpush1.msra.mxu1 %v5308_v54  ;;  %1007 = vmatpush1.msra.mxu0 %v4592_v56  ;;  %v5328_v56 = vld [vmem:[#allocation2 + $0xa8] sm:$0xff] }
 0x16e   :  { %937 = vmatprep.subr.mxu1 %v5312_v45  ;;  %1008 = vmatprep.subr.mxu0 %v4595_v58  ;;  %v5332_v58 = vld [vmem:[#allocation2 + $0xa0] sm:$0xff] }
 0x16f   :  { %938 = vmatpush1.msra.mxu1 %v5316_v47  ;;  %1009 = vmatpush1.msra.mxu0 %v4600_v61  ;;  %v5336_v61 = vld [vmem:[#allocation2 + $0x88] sm:$0xff] }
 0x170   :  { %939 = vmatprep.subr.mxu1 %v5320_v50  ;;  %1010 = vmatprep.subr.mxu0 %v4603_v63  ;;  %v5340_v63 = vld [vmem:[#allocation2 + $0x80] sm:$0xff] }
 0x171   :  { %940 = vmatpush1.msra.mxu1 %v5324_v52  ;;  %1011 = vmatpush1.msra.mxu0 %v4612_v5  ;;  %v5344_v5 = vld [vmem:[#allocation2 + $0x68] sm:$0xff] }
 0x172   :  { %941 = vmatprep.subr.mxu1 %v5328_v56  ;;  %1012 = vmatprep.subr.mxu0 %v4615_v7  ;;  %v5348_v7 = vld [vmem:[#allocation2 + $0x60] sm:$0xff] }
 0x173   :  { %942 = vmatpush1.msra.mxu1 %v5332_v58  ;;  %1013 = vmatpush1.msra.mxu0 %v4622_v10  ;;  %v5352_v10 = vld [vmem:[#allocation2 + $0x48] sm:$0xff] }
 0x174   :  { %943 = vmatprep.subr.mxu1 %v5336_v61  ;;  %1014 = vmatprep.subr.mxu0 %v4627_v12  ;;  %v5356_v12 = vld [vmem:[#allocation2 + $0x40] sm:$0xff] }
 0x175   :  { %944 = vmatpush1.msra.mxu1 %v5340_v63  ;;  %1015 = vmatpush1.msra.mxu0 %v4641_v17  ;;  %v5360_v17 = vld [vmem:[#allocation2 + $0x28] sm:$0xff] }
 0x176   :  { %945 = vmatprep.subr.mxu1 %v5344_v5  ;;  %1016 = vmatprep.subr.mxu0 %v4647_v19  ;;  %v5364_v19 = vld [vmem:[#allocation2 + $0x20] sm:$0xff] }
 0x177   :  { %946 = vmatpush1.msra.mxu1 %v5348_v7  ;;  %1017 = vmatpush1.msra.mxu0 %v4658_v22  ;;  %v5368_v22 = vld [vmem:[#allocation2 + $0x8] sm:$0xff] }
 0x178   :  { %947 = vmatprep.subr.mxu1 %v5352_v10  ;;  %1018 = vmatprep.subr.mxu0 %v4664_v24  ;;  %v5372_v24 = vld [vmem:[#allocation2] sm:$0xff] }
 0x179   :  { %948 = vmatpush1.msra.mxu1 %v5356_v12  ;;  %1019 = vmatpush1.msra.mxu0 %v4679_v28  ;;  %v5376_v28 = vld [vmem:[#allocation2 + $0x3e8] sm:$0xff] }
 0x17a   :  { %949 = vmatprep.subr.mxu1 %v5360_v17  ;;  %1020 = vmatprep.subr.mxu0 %v4685_v30  ;;  %v5380_v30 = vld [vmem:[#allocation2 + $0x3e0] sm:$0xff] }
 0x17b   :  { %950 = vmatpush1.msra.mxu1 %v5364_v19  ;;  %1021 = vmatpush1.msra.mxu0 %v4692_v33  ;;  %v5384_v33 = vld [vmem:[#allocation2 + $0x3c8] sm:$0xff] }
 0x17c   :  { %951 = vmatprep.subr.mxu1 %v5368_v22  ;;  %1022 = vmatprep.subr.mxu0 %v4698_v35  ;;  %v5388_v35 = vld [vmem:[#allocation2 + $0x3c0] sm:$0xff] }
 0x17d   :  { %952 = vmatpush1.msra.mxu1 %v5372_v24  ;;  %1023 = vmatpush1.msra.mxu0 %v4708_v38  ;;  %v5392_v38 = vld [vmem:[#allocation2 + $0x3a8] sm:$0xff] }
 0x17e   :  { %953 = vmatprep.subr.mxu1 %v5376_v28  ;;  %1024 = vmatprep.subr.mxu0 %v4714_v40  ;;  %v5396_v40 = vld [vmem:[#allocation2 + $0x3a0] sm:$0xff] }
 0x17f   :  { %954 = vmatpush2.msra.mxu1 %v5380_v30  ;;  %1025 = vmatpush2.msra.mxu0 %v4720_v42  ;;  %v5400_v42 = vld [vmem:[#allocation2 + $0x388] sm:$0xff] }
 0x180   :  { %955 = vmatprep.subr.mxu1 %v5384_v33  ;;  %1026 = vmatprep.subr.mxu0 %v4726_v46  ;;  %v5404_v46 = vld [vmem:[#allocation2 + $0x380] sm:$0xff] }
 0x181   :  { %956 = vmatpush2.msra.mxu1 %v5388_v35  ;;  %1027 = vmatpush2.msra.mxu0 %v4732_v49  ;;  %v9075_v49 = vld [vmem:[#allocation10_spill] sm:$0xff] }
 0x182   :  { %957 = vmatprep.subr.mxu1 %v5392_v38  ;;  %1028 = vmatprep.subr.mxu0 %v4738_v53  ;;  %v9077_v53 = vld [vmem:[#allocation11_spill] sm:$0xff] }
 0x183   :  { %958 = vmatpush2.msra.mxu1 %v5396_v40  ;;  %1029 = vmatpush2.msra.mxu0 %v4744_v57  ;;  %v9082_v57 = vld [vmem:[#allocation31_spill] sm:$0xff] }
 0x184   :  { %959 = vmatprep.subr.mxu1 %v5400_v42  ;;  %1030 = vmatprep.subr.mxu0 %v4750_v60  ;;  %v9084_v60 = vld [vmem:[#allocation32_spill] sm:$0xff] }
 0x185   :  { %960 = vmatpush2.msra.mxu1 %v5404_v46  ;;  %1031 = vmatpush2.msra.mxu0 %v4756_v1  ;;  %v9085_v1 = vld [vmem:[#allocation15_spill] sm:$0xff] }
 0x186   :  { %961 = vmatprep.subr.mxu1 %v4619_v9  ;;  %1032 = vmatprep.subr.mxu0 %v4762_v6  ;;  %v9070_v9 = vld [vmem:[#allocation25_spill] sm:$0xff] }
 0x187   :  { %962 = vmatpush2.msra.mxu1 %v4624_v11  ;;  %1033 = vmatpush2.msra.mxu0 %v4766_v8  ;;  %v9071_v11 = vld [vmem:[#allocation8_spill] sm:$0xff]  ;;  %v9086_v6 = vld [vmem:[#allocation33_spill] sm:$0xff] }
 0x188   :  { %963 = vmatprep.subr.mxu1 %v4629_v13  ;;  %1034 = vmatprep.subr.mxu0 %v4770_v0  ;;  %v9072_v13 = vld [vmem:[#allocation26_spill] sm:$0xff]  ;;  %v9073_v0 = vld [vmem:[#allocation9_spill] sm:$0xff]  ;;  %v9087_v8 = vld [vmem:[#allocation16_spill] sm:$0xff] }
 0x189   :  { %964 = vmatpush2.msra.mxu1 %v4638_v15  ;;  %1035 = vmatpush2.msra.mxu0 %v4774_v55  ;;  %v9074_v15 = vld [vmem:[#allocation27_spill] sm:$0xff]  ;;  %v9081_v55 = vld [vmem:[#allocation13_spill] sm:$0xff] }
 0x18a   :  { %965 = vmatprep.subr.mxu1 %v4644_v18  ;;  %1036 = vmatprep.subr.mxu0 %v4778_v59  ;;  %v9076_v18 = vld [vmem:[#allocation28_spill] sm:$0xff]  ;;  %v9083_v59 = vld [vmem:[#allocation14_spill] sm:$0xff] }
 0x18b   :  { %966 = vmatpush2.msra.mxu1 %v4650_v20  ;;  %1037 = vmatpush2.msra.mxu0 %v4781_v48  ;;  %v9078_v20 = vld [vmem:[#allocation29_spill] sm:$0xff]  ;;  %v9079_v48 = vld [vmem:[#allocation12_spill] sm:$0xff] }
 0x18c   :  { %967 = vmatprep.subr.mxu1 %v4655_v21  ;;  %1038 = vmatprep.subr.mxu0 %v9070_v9  ;;  %v9080_v21 = vld [vmem:[#allocation30_spill] sm:$0xff] }
 0x18d   :  { %968 = vmatpush2.msra.mxu1 %v9071_v11  ;;  %1039 = vmatpush2.msra.mxu0 %v9072_v13  ;;  %v9088_v9 = vld [vmem:[#allocation34_spill] sm:$0xff]  ;;  %v9089_v11 = vld [vmem:[#allocation17_spill] sm:$0xff]  ;;  %v9090_v13 = vld [vmem:[#allocation35_spill] sm:$0xff] }
 0x18e   :  { %969 = vmatprep.subr.mxu1 %v9073_v0  ;;  %1040 = vmatprep.subr.mxu0 %v9074_v15  ;;  %v9091_v0 = vld [vmem:[#allocation18_spill] sm:$0xff]  ;;  %v9092_v15 = vld [vmem:[#allocation36_spill] sm:$0xff] }
 0x18f   :  { %970 = vmatpush2.msra.mxu1 %v9075_v49  ;;  %1041 = vmatpush2.msra.mxu0 %v9076_v18  ;;  %v9093_v49 = vld [vmem:[#allocation19_spill] sm:$0xff]  ;;  %v9094_v18 = vld [vmem:[#allocation37_spill] sm:$0xff] }
 0x190   :  { %971 = vmatprep.subr.mxu1 %v9077_v53  ;;  %1042 = vmatprep.subr.mxu0 %v9078_v20  ;;  %v9095_v53 = vld [vmem:[#allocation20_spill] sm:$0xff]  ;;  %v9096_v20 = vld [vmem:[#allocation38_spill] sm:$0xff] }
 0x191   :  { %972 = vmatpush2.msra.mxu1 %v9079_v48  ;;  %1043 = vmatpush2.msra.mxu0 %v9080_v21  ;;  %v9097_v48 = vld [vmem:[#allocation21_spill] sm:$0xff]  ;;  %v9098_v21 = vld [vmem:[#allocation39_spill] sm:$0xff] }
 0x192   :  { %973 = vmatprep.subr.mxu1 %v9081_v55  ;;  %1044 = vmatprep.subr.mxu0 %v9082_v57  ;;  %v9099_v55 = vld [vmem:[#allocation22_spill] sm:$0xff]  ;;  %v9100_v57 = vld [vmem:[#allocation40_spill] sm:$0xff] }
 0x193   :  { %974 = vmatpush2.msra.mxu1 %v9083_v59  ;;  %1045 = vmatpush2.msra.mxu0 %v9084_v60  ;;  %v9101_v59 = vld [vmem:[#allocation23_spill] sm:$0xff]  ;;  %v9102_v60 = vld [vmem:[#allocation41_spill] sm:$0xff] }
 0x194   :  { %975 = vmatprep.subr.mxu1 %v9085_v1  ;;  %1046 = vmatprep.subr.mxu0 %v9086_v6  ;;  %v9103_v1 = vld [vmem:[#allocation24_spill] sm:$0xff]  ;;  %v9104_v6 = vld [vmem:[#allocation42_spill] sm:$0xff] }
 0x195   :  { %976 = vmatpush2.msra.mxu1 %v9087_v8  ;;  %1047 = vmatpush2.msra.mxu0 %v9088_v9  ;;  %v9105_v8 = vld [vmem:[#allocation43_spill] sm:$0xff]  ;;  %v9106_v9 = vld [vmem:[#allocation76_spill] sm:$0xff] }
 0x196   :  { %977 = vmatprep.subr.mxu1 %v9089_v11  ;;  %1048 = vmatprep.subr.mxu0 %v9090_v13  ;;  %v582_v11 = vld [vmem:[%s8324_s6] sm:$0x7]  ;;  %v9107_v13 = vld [vmem:[#allocation139_spill] sm:$0xff] }
 0x197   :  { %978 = vmatpush2.msra.mxu1 %v9091_v0  ;;  %1049 = vmatpush2.msra.mxu0 %v9092_v15  ;;  %v5462_v0 = vrot.slane %v582_v11, %v9107_v13 }
 0x198   :  { %979 = vmatprep.subr.mxu1 %v9093_v49  ;;  %1050 = vmatprep.subr.mxu0 %v9094_v18 }
 0x199   :  { %980 = vmatpush2.msra.mxu1 %v9095_v53  ;;  %1051 = vmatpush2.msra.mxu0 %v9096_v20  ;;  %9108 = vst [vmem:[#allocation25_spill] sm:$0xff] %v5462_v0  ;;  %v5466_v53 = vrot.slane %v582_v11, %v5155_v37 }
 0x19a   :  { %981 = vmatprep.subr.mxu1 %v9097_v48  ;;  %1052 = vmatprep.subr.mxu0 %v9098_v21 }
 0x19b   :  { %982 = vmatpush2.msra.mxu1 %v9099_v55  ;;  %1053 = vmatpush2.msra.mxu0 %v9100_v57 }
 0x19c   :  { %983 = vmatprep.subr.mxu1 %v9101_v59  ;;  %1054 = vmatprep.subr.mxu0 %v9102_v60  ;;  %v738_v59 = vpop.f32.mrf.mxu1 }
 0x19d   :  { %984 = vmatpush2.msra.mxu1 %v9103_v1  ;;  %1055 = vmatpush2.msra.mxu0 %v9104_v6  ;;  %v576_v1 = vsub.s32 3, %v5146_v34 }
 0x19e   :  { %1083 = vmatprep.subr.mxu1 %v9105_v8  ;;  %3281 = vmatprep.subr.mxu0 %v9106_v9  ;;  %v5474_v9 = vrot.slane %v582_v11, %v5215_v62  ;;  %v9109_v62 = vld [vmem:[#allocation44_spill] sm:$0xff]  ;;  %v9110_v11 = vld [vmem:[#allocation78_spill] sm:$0xff] }
 0x19f   :  { %v5471_v8 = vrot.slane %v5190_v4, %v576_v1 }
 0x21e   :  { %v827_v15 = vpop.f32.mrf.mxu0  ;;  %v3278_v60 = vpop.f32.mrf.mxu1 }
 0x21f   :  { %v828_v49 = vadd.f32 %v827_v15, %v5462_v0  ;;  %v739_v15 = vadd.f32 %v738_v59, %v5471_v8  ;;  %v9111_v59 = vld [vmem:[#allocation45_spill] sm:$0xff] }
 0x220   :  { %v829_v20 = vpop.f32.mrf.mxu0  ;;  %v3279_v6 = vpop.f32.mrf.mxu1 }
 0x221   :  { %v3207_v18 = vmul.f32 -1.442695, %v828_v49  ;;  %v830_v48 = vadd.f32 %v829_v20, %v5466_v53  ;;  %v3280_v37 = vadd.f32 %v3279_v6, %v3278_v60  ;;  %v9112_v60 = vld [vmem:[#allocation79_spill] sm:$0xff]  ;;  %v9113_v6 = vld [vmem:[#allocation46_spill] sm:$0xff] }
 0x223   :  { %3558 = vpow2.f32 %v3207_v18  ;;  %v3208_v21 = vmul.f32 -1.442695, %v830_v48  ;;  %v899_v18 = vadd.f32 %v3280_v37, %v5474_v9  ;;  %v9114_v37 = vld [vmem:[#allocation82_spill] sm:$0xff] }
 0x225   :  { %3560 = vpow2.f32 %v3208_v21 }
 0x230   :  { %v3559_v55 = vpop.eup %3558 }
 0x231   :  { %v905_v57 = vadd.f32 1.0, %v3559_v55 }
 0x232   :  { %v3561_v13 = vpop.eup %3560 }
 0x233   :  { %3562 = vrcp.f32 %v905_v57  ;;  %v911_v48 = vadd.f32 1.0, %v3561_v13  ;;  %v9115_v13 = vld [vmem:[#allocation47_spill] sm:$0xff] }
 0x240   :  { %v3563_v49 = vpop.eup %3562 }
 0x241   :  { %v914_v20 = vmul.f32 %v3563_v49, %v739_v15  ;;  %v9116_v15 = vld [vmem:[#allocation84_spill] sm:$0xff] }
 0x242   :  { %v9117_v49 = vld [vmem:[#allocation48_spill] sm:$0xff] }
 0x243   :  { %v915_v21 = vadd.f32 %v914_v20, %v899_v18  ;;  %v9118_v18 = vld [vmem:[#allocation86_spill] sm:$0xff]  ;;  %v9119_v20 = vld [vmem:[#allocation49_spill] sm:$0xff] }
 0x245   :  { %3564 = vtanh.f32 %v915_v21  ;;  %v9121_v21 = vld [vmem:[#allocation50_spill] sm:$0xff] }
 0x246   :  { %3566 = vrcp.f32 %v911_v48  ;;  %v9120_v48 = vld [vmem:[#allocation88_spill] sm:$0xff] }
 0x252   :  { %v3565_v34 = vpop.eup %3564 }
 0x253   :  { %v917_v55 = vsub.f32 0.0, %v3565_v34  ;;  %v3567_v57 = vpop.eup %3566 }
 0x255   :  { %v918_v4 = vmul.f32 %v3567_v57, %v917_v55  ;;  %v9123_v55 = vld [vmem:[#allocation51_spill] sm:$0xff]  ;;  %v9124_v57 = vld [vmem:[#allocation92_spill] sm:$0xff] }
 0x257   :  { %v5478_v1 = vadd.f32 %v3565_v34, %v918_v4  ;;  %v9122_v34 = vld [vmem:[#allocation90_spill] sm:$0xff]  ;;  %v9125_v4 = vld [vmem:[#allocation52_spill] sm:$0xff] }
 0x259   :  { %920 = vst [vmem:[%s8325_s7] sm:$0xff] %v5478_v1  ;;  %985 = vmatprep.mubr.f32.mxu1 %v5478_v1  ;;  %1056 = vmatprep.mubr.f32.mxu0 %v5478_v1 }
 0x25a   :  { %986 = vmatmul.mubr.f32.vlgmr.msra.gmra.mxu1 %v5228_v23  ;;  %1057 = vmatmul.mubr.f32.vlgmr.msra.gmra.mxu0 %v5228_v23 }
 0x25b   :  { %1147 = vmatprep.mubr.f32.mxu1 %v5478_v1  ;;  %1218 = vmatprep.mubr.f32.mxu0 %v5478_v1 }
 0x25c   :  { %1084 = vmatpush1.msra.mxu1 %v9109_v62  ;;  %3282 = vmatpush3.msra.mxu0 %v9110_v11  ;;  %v9126_v62 = vld [vmem:[#allocation94_spill] sm:$0xff]  ;;  %v9127_v11 = vld [vmem:[#allocation53_spill] sm:$0xff] }
 0x25d   :  { %1085 = vmatprep.subr.mxu1 %v9111_v59  ;;  %3283 = vmatprep.subr.mxu0 %v9112_v60  ;;  %v9128_v59 = vld [vmem:[#allocation96_spill] sm:$0xff]  ;;  %v9129_v60 = vld [vmem:[#allocation54_spill] sm:$0xff] }
 0x25e   :  { %1086 = vmatpush1.msra.mxu1 %v9113_v6  ;;  %3284 = vmatpush3.msra.mxu0 %v9114_v37  ;;  %v9130_v6 = vld [vmem:[#allocation98_spill] sm:$0xff]  ;;  %v9131_v37 = vld [vmem:[#allocation55_spill] sm:$0xff] }
 0x25f   :  { %1087 = vmatprep.subr.mxu1 %v9115_v13  ;;  %3285 = vmatprep.subr.mxu0 %v9116_v15  ;;  %v9132_v13 = vld [vmem:[#allocation100_spill] sm:$0xff] }
 0x260   :  { %1088 = vmatpush1.msra.mxu1 %v9117_v49  ;;  %3286 = vmatpush3.msra.mxu0 %v9118_v18  ;;  %v9133_v15 = vld [vmem:[#allocation56_spill] sm:$0xff]  ;;  %v9134_v49 = vld [vmem:[#allocation102_spill] sm:$0xff]  ;;  %v9135_v18 = vld [vmem:[#allocation57_spill] sm:$0xff] }
 0x261   :  { %1089 = vmatprep.subr.mxu1 %v9119_v20  ;;  %3287 = vmatprep.subr.mxu0 %v9120_v48  ;;  %v9136_v20 = vld [vmem:[#allocation104_spill] sm:$0xff]  ;;  %v9137_v48 = vld [vmem:[#allocation58_spill] sm:$0xff] }
 0x262   :  { %1090 = vmatpush1.msra.mxu1 %v9121_v21  ;;  %3288 = vmatpush3.msra.mxu0 %v9122_v34  ;;  %v9138_v21 = vld [vmem:[#allocation106_spill] sm:$0xff]  ;;  %v9139_v34 = vld [vmem:[#allocation59_spill] sm:$0xff] }
 0x263   :  { %1091 = vmatprep.subr.mxu1 %v9123_v55  ;;  %3289 = vmatprep.subr.mxu0 %v9124_v57  ;;  %v9140_v55 = vld [vmem:[#allocation108_spill] sm:$0xff] }
 0x264   :  { %1092 = vmatpush1.msra.mxu1 %v9125_v4  ;;  %3290 = vmatpush3.msra.mxu0 %v9126_v62  ;;  %v9141_v57 = vld [vmem:[#allocation60_spill] sm:$0xff]  ;;  %v9142_v4 = vld [vmem:[#allocation110_spill] sm:$0xff]  ;;  %v9143_v62 = vld [vmem:[#allocation61_spill] sm:$0xff] }
 0x265   :  { %1093 = vmatprep.subr.mxu1 %v9127_v11  ;;  %3291 = vmatprep.subr.mxu0 %v9128_v59  ;;  %v9144_v11 = vld [vmem:[#allocation112_spill] sm:$0xff]  ;;  %v9145_v59 = vld [vmem:[#allocation62_spill] sm:$0xff] }
 0x266   :  { %1094 = vmatpush1.msra.mxu1 %v9129_v60  ;;  %3292 = vmatpush3.msra.mxu0 %v9130_v6  ;;  %v9146_v60 = vld [vmem:[#allocation114_spill] sm:$0xff]  ;;  %v9147_v6 = vld [vmem:[#allocation63_spill] sm:$0xff] }
 0x267   :  { %1095 = vmatprep.subr.mxu1 %v9131_v37  ;;  %3293 = vmatprep.subr.mxu0 %v9132_v13  ;;  %v9148_v37 = vld [vmem:[#allocation116_spill] sm:$0xff] }
 0x268   :  { %1096 = vmatpush1.msra.mxu1 %v9133_v15  ;;  %3294 = vmatpush3.msra.mxu0 %v9134_v49  ;;  %v9149_v13 = vld [vmem:[#allocation64_spill] sm:$0xff]  ;;  %v9150_v15 = vld [vmem:[#allocation118_spill] sm:$0xff]  ;;  %v9151_v49 = vld [vmem:[#allocation65_spill] sm:$0xff] }
 0x269   :  { %1097 = vmatprep.subr.mxu1 %v9135_v18  ;;  %3295 = vmatprep.subr.mxu0 %v9136_v20  ;;  %v9152_v18 = vld [vmem:[#allocation120_spill] sm:$0xff]  ;;  %v9153_v20 = vld [vmem:[#allocation66_spill] sm:$0xff] }
 0x26a   :  { %1098 = vmatpush1.msra.mxu1 %v9137_v48  ;;  %3296 = vmatpush3.msra.mxu0 %v9138_v21  ;;  %v9154_v48 = vld [vmem:[#allocation122_spill] sm:$0xff]  ;;  %v9155_v21 = vld [vmem:[#allocation67_spill] sm:$0xff] }
 0x26b   :  { %1099 = vmatprep.subr.mxu1 %v9139_v34  ;;  %3297 = vmatprep.subr.mxu0 %v9140_v55  ;;  %v9156_v34 = vld [vmem:[#allocation124_spill] sm:$0xff] }
 0x26c   :  { %1100 = vmatpush1.msra.mxu1 %v9141_v57  ;;  %3298 = vmatpush3.msra.mxu0 %v9142_v4  ;;  %v9157_v55 = vld [vmem:[#allocation68_spill] sm:$0xff]  ;;  %v9158_v57 = vld [vmem:[#allocation126_spill] sm:$0xff]  ;;  %v9159_v4 = vld [vmem:[#allocation69_spill] sm:$0xff] }
 0x26d   :  { %1101 = vmatprep.subr.mxu1 %v9143_v62  ;;  %3299 = vmatprep.subr.mxu0 %v9144_v11  ;;  %v9160_v62 = vld [vmem:[#allocation128_spill] sm:$0xff]  ;;  %v9161_v11 = vld [vmem:[#allocation70_spill] sm:$0xff] }
 0x26e   :  { %1102 = vmatpush1.msra.mxu1 %v9145_v59  ;;  %3300 = vmatpush3.msra.mxu0 %v9146_v60  ;;  %v9162_v59 = vld [vmem:[#allocation130_spill] sm:$0xff]  ;;  %v9163_v60 = vld [vmem:[#allocation71_spill] sm:$0xff] }
 0x26f   :  { %1103 = vmatprep.subr.mxu1 %v9147_v6  ;;  %3301 = vmatprep.subr.mxu0 %v9148_v37  ;;  %v9164_v6 = vld [vmem:[#allocation132_spill] sm:$0xff] }
 0x270   :  { %1104 = vmatpush1.msra.mxu1 %v9149_v13  ;;  %3302 = vmatpush3.msra.mxu0 %v9150_v15  ;;  %v9165_v37 = vld [vmem:[#allocation72_spill] sm:$0xff]  ;;  %v9166_v13 = vld [vmem:[#allocation134_spill] sm:$0xff]  ;;  %v9167_v15 = vld [vmem:[#allocation73_spill] sm:$0xff] }
 0x271   :  { %1105 = vmatprep.subr.mxu1 %v9151_v49  ;;  %3303 = vmatprep.subr.mxu0 %v9152_v18  ;;  %v9168_v49 = vld [vmem:[#allocation136_spill] sm:$0xff]  ;;  %v9169_v18 = vld [vmem:[#allocation74_spill] sm:$0xff] }
 0x272   :  { %1106 = vmatpush1.msra.mxu1 %v9153_v20  ;;  %3304 = vmatpush3.msra.mxu0 %v9154_v48  ;;  %v9170_v20 = vld [vmem:[#allocation138_spill] sm:$0xff]  ;;  %v9171_v48 = vld [vmem:[#allocation75_spill] sm:$0xff] }
 0x273   :  { %1107 = vmatprep.subr.mxu1 %v9155_v21  ;;  %3305 = vmatprep.subr.mxu0 %v9156_v34  ;;  %v5553_v21 = vld [vmem:[#allocation2 + $0x1e8] sm:$0xff] }
 0x274   :  { %1108 = vmatpush1.msra.mxu1 %v9157_v55  ;;  %3306 = vmatpush3.msra.mxu0 %v9158_v57  ;;  %9172 = vst [vmem:[#allocation8_spill] sm:$0xff] %v5553_v21  ;;  %v9173_v34 = vld [vmem:[#allocation77_spill] sm:$0xff]  ;;  %v9174_v55 = vld [vmem:[#allocation80_spill] sm:$0xff] }
 0x275   :  { %1109 = vmatprep.subr.mxu1 %v9159_v4  ;;  %3307 = vmatprep.subr.mxu0 %v9160_v62  ;;  %v9175_v57 = vld [vmem:[#allocation81_spill] sm:$0xff]  ;;  %v9176_v4 = vld [vmem:[#allocation83_spill] sm:$0xff] }
 0x276   :  { %1110 = vmatpush1.msra.mxu1 %v9161_v11  ;;  %3308 = vmatpush3.msra.mxu0 %v9162_v59  ;;  %v9177_v62 = vld [vmem:[#allocation85_spill] sm:$0xff]  ;;  %v9178_v11 = vld [vmem:[#allocation87_spill] sm:$0xff] }
 0x277   :  { %1111 = vmatprep.subr.mxu1 %v9163_v60  ;;  %3309 = vmatprep.subr.mxu0 %v9164_v6  ;;  %v9179_v59 = vld [vmem:[#allocation89_spill] sm:$0xff]  ;;  %v9180_v60 = vld [vmem:[#allocation91_spill] sm:$0xff] }
 0x278   :  { %1112 = vmatpush1.msra.mxu1 %v9165_v37  ;;  %3310 = vmatpush3.msra.mxu0 %v9166_v13  ;;  %v9181_v6 = vld [vmem:[#allocation93_spill] sm:$0xff]  ;;  %v9182_v37 = vld [vmem:[#allocation95_spill] sm:$0xff] }
 0x279   :  { %1113 = vmatprep.subr.mxu1 %v9167_v15  ;;  %3311 = vmatprep.subr.mxu0 %v9168_v49  ;;  %v9183_v13 = vld [vmem:[#allocation97_spill] sm:$0xff]  ;;  %v9184_v15 = vld [vmem:[#allocation99_spill] sm:$0xff] }
 0x27a   :  { %1114 = vmatpush1.msra.mxu1 %v9169_v18  ;;  %3312 = vmatpush3.msra.mxu0 %v9170_v20  ;;  %v9185_v49 = vld [vmem:[#allocation101_spill] sm:$0xff]  ;;  %v9186_v18 = vld [vmem:[#allocation103_spill] sm:$0xff] }
 0x27b   :  { %1115 = vmatprep.subr.mxu1 %v9171_v48  ;;  %1243 = vmatprep.subr.mxu0 %v5553_v21  ;;  %v9187_v20 = vld [vmem:[#allocation105_spill] sm:$0xff]  ;;  %v9188_v48 = vld [vmem:[#allocation107_spill] sm:$0xff] }
 0x27c   :  { %1116 = vmatpush2.msra.mxu1 %v9173_v34  ;;  %v9189_v34 = vld [vmem:[#allocation109_spill] sm:$0xff] }
 0x27d   :  { %1117 = vmatprep.subr.mxu1 %v9174_v55  ;;  %v9190_v55 = vld [vmem:[#allocation111_spill] sm:$0xff] }
 0x27e   :  { %1118 = vmatpush2.msra.mxu1 %v9175_v57  ;;  %v9191_v57 = vld [vmem:[#allocation113_spill] sm:$0xff] }
 0x27f   :  { %1119 = vmatprep.subr.mxu1 %v9176_v4  ;;  %v9192_v4 = vld [vmem:[#allocation115_spill] sm:$0xff] }
 0x280   :  { %1120 = vmatpush2.msra.mxu1 %v9177_v62  ;;  %v9193_v62 = vld [vmem:[#allocation117_spill] sm:$0xff] }
 0x281   :  { %1121 = vmatprep.subr.mxu1 %v9178_v11  ;;  %v9194_v11 = vld [vmem:[#allocation119_spill] sm:$0xff] }
 0x282   :  { %1122 = vmatpush2.msra.mxu1 %v9179_v59  ;;  %v9195_v59 = vld [vmem:[#allocation121_spill] sm:$0xff] }
 0x283   :  { %1123 = vmatprep.subr.mxu1 %v9180_v60  ;;  %v9196_v60 = vld [vmem:[#allocation123_spill] sm:$0xff] }
 0x284   :  { %1124 = vmatpush2.msra.mxu1 %v9181_v6  ;;  %v9197_v6 = vld [vmem:[#allocation125_spill] sm:$0xff] }
 0x285   :  { %1125 = vmatprep.subr.mxu1 %v9182_v37  ;;  %v9198_v37 = vld [vmem:[#allocation127_spill] sm:$0xff] }
 0x286   :  { %1126 = vmatpush2.msra.mxu1 %v9183_v13  ;;  %v9199_v13 = vld [vmem:[#allocation129_spill] sm:$0xff] }
 0x287   :  { %1127 = vmatprep.subr.mxu1 %v9184_v15  ;;  %v9200_v15 = vld [vmem:[#allocation131_spill] sm:$0xff] }
 0x288   :  { %1128 = vmatpush2.msra.mxu1 %v9185_v49  ;;  %v9201_v49 = vld [vmem:[#allocation133_spill] sm:$0xff] }
 0x289   :  { %1129 = vmatprep.subr.mxu1 %v9186_v18  ;;  %v9202_v18 = vld [vmem:[#allocation135_spill] sm:$0xff] }
 0x28a   :  { %1130 = vmatpush2.msra.mxu1 %v9187_v20  ;;  %v9203_v20 = vld [vmem:[#allocation137_spill] sm:$0xff] }
 0x28b   :  { %1131 = vmatprep.subr.mxu1 %v9188_v48  ;;  %v5587_v48 = vld [vmem:[#allocation2 + $0x1f8] sm:$0xff] }
 0x28c   :  { %1132 = vmatpush2.msra.mxu1 %v9189_v34  ;;  %9204 = vst [vmem:[#allocation26_spill] sm:$0xff] %v5587_v48 }
 0x28d   :  { %1133 = vmatprep.subr.mxu1 %v9190_v55 }
 0x28e   :  { %1134 = vmatpush2.msra.mxu1 %v9191_v57  ;;  %v9205_v57 = vld [vmem:[#allocation140_spill] sm:$0xff] }
 0x28f   :  { %1135 = vmatprep.subr.mxu1 %v9192_v4 }
 0x290   :  { %1136 = vmatpush2.msra.mxu1 %v9193_v62 }
 0x291   :  { %1137 = vmatprep.subr.mxu1 %v9194_v11 }
 0x292   :  { %1138 = vmatpush2.msra.mxu1 %v9195_v59  ;;  %v9206_v59 = vld [vmem:[#allocation155_spill] sm:$0xff] }
 0x293   :  { %1139 = vmatprep.subr.mxu1 %v9196_v60 }
 0x294   :  { %1140 = vmatpush2.msra.mxu1 %v9197_v6  ;;  %v9207_v6 = vld [vmem:[#allocation141_spill] sm:$0xff] }
 0x295   :  { %1141 = vmatprep.subr.mxu1 %v9198_v37 }
 0x296   :  { %1142 = vmatpush2.msra.mxu1 %v9199_v13 }
 0x297   :  { %1143 = vmatprep.subr.mxu1 %v9200_v15 }
 0x298   :  { %1144 = vmatpush2.msra.mxu1 %v9201_v49 }
 0x299   :  { %1145 = vmatprep.subr.mxu1 %v9202_v18 }
 0x29a   :  { %1146 = vmatpush2.msra.mxu1 %v9203_v20 }
 0x29b   :  { %1314 = vmatprep.subr.mxu1 %v5587_v48 }
 0x31a   :  { %v987_v34 = vpop.f32.mrf.mxu1  ;;  %v1058_v18 = vpop.f32.mrf.mxu0 }
 0x31b   :  { %v988_v55 = vadd.f32 %v987_v34, %v5194_v26  ;;  %v1059_v48 = vadd.f32 %v1058_v18, %v5221_v3  ;;  %v9208_v34 = vld [vmem:[#allocation154_spill] sm:$0xff] }
 0x31c   :  { %v989_v11 = vpop.f32.mrf.mxu1  ;;  %v5639_v18 = vld [vmem:[#allocation2 + $0x110] sm:$0xff] }
 0x31d   :  { %v1063_v4 = vadd.f32 %v988_v55, %v9205_v57  ;;  %v990_v60 = vadd.f32 %v989_v11, %v9206_v59  ;;  %v303_v55 = vadd.f32 %v9208_v34, %v5224_v43  ;;  %v5753_v34 = vld [vmem:[#allocation2 + $0x358] sm:$0xff] }
 0x31f   :  { %v3209_v62 = vmul.f32 -1.442695, %v1063_v4  ;;  %v1070_v37 = vadd.f32 %v990_v60, %v9207_v6 }
 0x321   :  { %3568 = vpow2.f32 %v3209_v62  ;;  %v3210_v13 = vmul.f32 -1.442695, %v1070_v37 }
 0x323   :  { %3570 = vpow2.f32 %v3210_v13 }
 0x32e   :  { %v3569_v15 = vpop.eup %3568 }
 0x32f   :  { %v1067_v49 = vadd.f32 1.0, %v3569_v15  ;;  %v5623_v15 = vld [vmem:[#allocation2 + $0x150] sm:$0xff] }
 0x330   :  { %v3571_v20 = vpop.eup %3570 }
 0x331   :  { %3572 = vrcp.f32 %v1067_v49  ;;  %v1074_v62 = vadd.f32 1.0, %v3571_v20  ;;  %v5627_v49 = vld [vmem:[#allocation2 + $0x138] sm:$0xff]  ;;  %v5744_v20 = vld [vmem:[#allocation2 + $0x360] sm:$0xff] }
 0x33e   :  { %v3573_v21 = vpop.eup %3572 }
 0x33f   :  { %v1077_v57 = vmul.f32 %v3573_v21, %v1059_v48  ;;  %v9210_v21 = vld [vmem:[#allocation163_spill] sm:$0xff]  ;;  %v9211_v48 = vld [vmem:[#allocation164_spill] sm:$0xff] }
 0x341   :  { %v1078_v4 = vadd.f32 %v1077_v57, %v303_v55  ;;  %v5756_v55 = vld [vmem:[#allocation2 + $0x340] sm:$0xff]  ;;  %v5759_v57 = vld [vmem:[#allocation2 + $0x350] sm:$0xff] }
 0x343   :  { %3574 = vtanh.f32 %v1078_v4  ;;  %v5762_v4 = vld [vmem:[#allocation2 + $0x328] sm:$0xff] }
 0x344   :  { %3576 = vrcp.f32 %v1074_v62  ;;  %v5765_v62 = vld [vmem:[#allocation2 + $0x338] sm:$0xff] }
 0x350   :  { %v3575_v11 = vpop.eup %3574 }
 0x351   :  { %v1080_v60 = vsub.f32 %v5228_v23, %v3575_v11  ;;  %v3577_v6 = vpop.eup %3576  ;;  %v9209_v23 = vld [vmem:[#allocation162_spill] sm:$0xff] }
 0x353   :  { %v1081_v37 = vmul.f32 %v3577_v6, %v1080_v60  ;;  %v5771_v60 = vld [vmem:[#allocation2 + $0x330] sm:$0xff]  ;;  %v5774_v6 = vld [vmem:[#allocation2 + $0x308] sm:$0xff] }
 0x354   :  { %9221 = vst [vmem:[#allocation27_spill] sm:$0xff] %v5771_v60  ;;  %9222 = vst [vmem:[#allocation10_spill] sm:$0xff] %v5774_v6 }
 0x355   :  { %v5598_v13 = vadd.f32 %v3575_v11, %v1081_v37  ;;  %v5768_v11 = vld [vmem:[#allocation2 + $0x320] sm:$0xff]  ;;  %v5777_v37 = vld [vmem:[#allocation2 + $0x318] sm:$0xff] }
 0x356   :  { %9220 = vst [vmem:[#allocation9_spill] sm:$0xff] %v5768_v11  ;;  %9223 = vst [vmem:[#allocation28_spill] sm:$0xff] %v5777_v37 }
 0x357   :  { %1148 = vmatmul.mubr.f32.vlgmr.msra.gmra.mxu1 %v5598_v13  ;;  %1219 = vmatmul.mubr.f32.vlgmr.msra.gmra.mxu0 %v5598_v13 }
 0x358   :  { %1244 = vmatpush1.msra.mxu0 %v5232_v51  ;;  %1315 = vmatpush1.msra.mxu1 %v5235_v32  ;;  %v9212_v51 = vld [vmem:[#allocation165_spill] sm:$0xff]  ;;  %v9213_v32 = vld [vmem:[#allocation166_spill] sm:$0xff] }
 0x359   :  { %1245 = vmatprep.subr.mxu0 %v5238_v44  ;;  %1316 = vmatprep.subr.mxu1 %v5241_v39  ;;  %v9214_v44 = vld [vmem:[#allocation167_spill] sm:$0xff]  ;;  %v9215_v39 = vld [vmem:[#allocation168_spill] sm:$0xff] }
 0x35a   :  { %1246 = vmatpush1.msra.mxu0 %v5244_v41  ;;  %1317 = vmatpush1.msra.mxu1 %v5247_v14  ;;  %v9216_v41 = vld [vmem:[#allocation169_spill] sm:$0xff]  ;;  %v9217_v14 = vld [vmem:[#allocation170_spill] sm:$0xff] }
 0x35b   :  { %1247 = vmatprep.subr.mxu0 %v5250_v2  ;;  %1318 = vmatprep.subr.mxu1 %v5253_v27  ;;  %v9218_v2 = vld [vmem:[#allocation171_spill] sm:$0xff]  ;;  %v9219_v27 = vld [vmem:[#allocation172_spill] sm:$0xff] }
 0x35c   :  { %1248 = vmatpush1.msra.mxu0 %v9209_v23  ;;  %1319 = vmatpush1.msra.mxu1 %v9210_v21  ;;  %v5780_v23 = vld [vmem:[#allocation2 + $0x300] sm:$0xff]  ;;  %v5783_v21 = vld [vmem:[#allocation2 + $0x310] sm:$0xff] }
 0x35d   :  { %1249 = vmatprep.subr.mxu0 %v9211_v48  ;;  %1320 = vmatprep.subr.mxu1 %v9212_v51  ;;  %9224 = vst [vmem:[#allocation11_spill] sm:$0xff] %v5780_v23  ;;  %9225 = vst [vmem:[#allocation29_spill] sm:$0xff] %v5783_v21  ;;  %v5786_v48 = vld [vmem:[#allocation2 + $0x2e8] sm:$0xff]  ;;  %v5789_v51 = vld [vmem:[#allocation2 + $0x2f8] sm:$0xff] }
 0x35e   :  { %1250 = vmatpush1.msra.mxu0 %v9213_v32  ;;  %1321 = vmatpush1.msra.mxu1 %v9214_v44  ;;  %9226 = vst [vmem:[#allocation12_spill] sm:$0xff] %v5786_v48  ;;  %9227 = vst [vmem:[#allocation30_spill] sm:$0xff] %v5789_v51  ;;  %v5792_v32 = vld [vmem:[#allocation2 + $0x2e0] sm:$0xff]  ;;  %v5795_v44 = vld [vmem:[#allocation2 + $0x2f0] sm:$0xff] }
 0x35f   :  { %1251 = vmatprep.subr.mxu0 %v9215_v39  ;;  %1322 = vmatprep.subr.mxu1 %v9216_v41  ;;  %9228 = vst [vmem:[#allocation13_spill] sm:$0xff] %v5792_v32  ;;  %9229 = vst [vmem:[#allocation31_spill] sm:$0xff] %v5795_v44  ;;  %v5798_v39 = vld [vmem:[#allocation2 + $0x2c8] sm:$0xff]  ;;  %v5801_v41 = vld [vmem:[#allocation2 + $0x2d8] sm:$0xff] }
 0x360   :  { %1252 = vmatpush1.msra.mxu0 %v5280_v36  ;;  %1323 = vmatpush1.msra.mxu1 %v9217_v14  ;;  %v5631_v36 = vld [vmem:[#allocation2 + $0x130] sm:$0xff]  ;;  %9230 = vst [vmem:[#allocation14_spill] sm:$0xff] %v5798_v39  ;;  %9231 = vst [vmem:[#allocation32_spill] sm:$0xff] %v5801_v41  ;;  %v5804_v14 = vld [vmem:[#allocation2 + $0x2c0] sm:$0xff] }
 0x361   :  { %1253 = vmatprep.subr.mxu0 %v9218_v2  ;;  %1324 = vmatprep.subr.mxu1 %v5289_v25  ;;  %v5635_v25 = vld [vmem:[#allocation2 + $0x118] sm:$0xff]  ;;  %9232 = vst [vmem:[#allocation15_spill] sm:$0xff] %v5804_v14  ;;  %v5807_v2 = vld [vmem:[#allocation2 + $0x2d0] sm:$0xff] }
 0x362   :  { %1254 = vmatpush1.msra.mxu0 %v9219_v27  ;;  %1325 = vmatpush1.msra.mxu1 %v5623_v15  ;;  %9233 = vst [vmem:[#allocation33_spill] sm:$0xff] %v5807_v2  ;;  %v5810_v27 = vld [vmem:[#allocation2 + $0x2a8] sm:$0xff] }
 0x363   :  { %1255 = vmatprep.subr.mxu0 %v5296_v16  ;;  %1326 = vmatprep.subr.mxu1 %v5627_v49  ;;  %v5643_v16 = vld [vmem:[#allocation2 + $0xf8] sm:$0xff]  ;;  %9234 = vst [vmem:[#allocation16_spill] sm:$0xff] %v5810_v27 }
 0x364   :  { %1256 = vmatpush1.msra.mxu0 %v5300_v31  ;;  %1327 = vmatpush1.msra.mxu1 %v5631_v36  ;;  %v5647_v31 = vld [vmem:[#allocation2 + $0xf0] sm:$0xff] }
 0x365   :  { %1257 = vmatprep.subr.mxu0 %v5304_v29  ;;  %1328 = vmatprep.subr.mxu1 %v5635_v25  ;;  %v5651_v29 = vld [vmem:[#allocation2 + $0xd8] sm:$0xff] }
 0x366   :  { %1258 = vmatpush1.msra.mxu0 %v5308_v54  ;;  %1329 = vmatpush1.msra.mxu1 %v5639_v18  ;;  %v5655_v54 = vld [vmem:[#allocation2 + $0xd0] sm:$0xff] }
 0x367   :  { %1259 = vmatprep.subr.mxu0 %v5312_v45  ;;  %1330 = vmatprep.subr.mxu1 %v5643_v16  ;;  %v5659_v45 = vld [vmem:[#allocation2 + $0xb8] sm:$0xff] }
 0x368   :  { %1260 = vmatpush1.msra.mxu0 %v5316_v47  ;;  %1331 = vmatpush1.msra.mxu1 %v5647_v31  ;;  %v5663_v47 = vld [vmem:[#allocation2 + $0xb0] sm:$0xff] }
 0x369   :  { %1261 = vmatprep.subr.mxu0 %v5320_v50  ;;  %1332 = vmatprep.subr.mxu1 %v5651_v29  ;;  %v5667_v50 = vld [vmem:[#allocation2 + $0x98] sm:$0xff] }
 0x36a   :  { %1262 = vmatpush1.msra.mxu0 %v5324_v52  ;;  %1333 = vmatpush1.msra.mxu1 %v5655_v54  ;;  %v5671_v52 = vld [vmem:[#allocation2 + $0x90] sm:$0xff] }
 0x36b   :  { %1263 = vmatprep.subr.mxu0 %v5328_v56  ;;  %1334 = vmatprep.subr.mxu1 %v5659_v45  ;;  %v5675_v56 = vld [vmem:[#allocation2 + $0x78] sm:$0xff] }
 0x36c   :  { %1264 = vmatpush1.msra.mxu0 %v5332_v58  ;;  %1335 = vmatpush1.msra.mxu1 %v5663_v47  ;;  %v5679_v58 = vld [vmem:[#allocation2 + $0x70] sm:$0xff] }
 0x36d   :  { %1265 = vmatprep.subr.mxu0 %v5336_v61  ;;  %1336 = vmatprep.subr.mxu1 %v5667_v50  ;;  %v5683_v61 = vld [vmem:[#allocation2 + $0x58] sm:$0xff] }
 0x36e   :  { %1266 = vmatpush1.msra.mxu0 %v5340_v63  ;;  %1337 = vmatpush1.msra.mxu1 %v5671_v52  ;;  %v5687_v63 = vld [vmem:[#allocation2 + $0x50] sm:$0xff] }
 0x36f   :  { %1267 = vmatprep.subr.mxu0 %v5344_v5  ;;  %1338 = vmatprep.subr.mxu1 %v5675_v56  ;;  %v5691_v5 = vld [vmem:[#allocation2 + $0x38] sm:$0xff] }
 0x370   :  { %1268 = vmatpush1.msra.mxu0 %v5348_v7  ;;  %1339 = vmatpush1.msra.mxu1 %v5679_v58  ;;  %v5695_v7 = vld [vmem:[#allocation2 + $0x30] sm:$0xff] }
 0x371   :  { %1269 = vmatprep.subr.mxu0 %v5352_v10  ;;  %1340 = vmatprep.subr.mxu1 %v5683_v61  ;;  %v5699_v10 = vld [vmem:[#allocation2 + $0x18] sm:$0xff] }
 0x372   :  { %1270 = vmatpush1.msra.mxu0 %v5356_v12  ;;  %1341 = vmatpush1.msra.mxu1 %v5687_v63  ;;  %v5703_v12 = vld [vmem:[#allocation2 + $0x10] sm:$0xff] }
 0x373   :  { %1271 = vmatprep.subr.mxu0 %v5360_v17  ;;  %1342 = vmatprep.subr.mxu1 %v5691_v5  ;;  %v5707_v17 = vld [vmem:[#allocation2 + $0x3f8] sm:$0xff] }
 0x374   :  { %1272 = vmatpush1.msra.mxu0 %v5364_v19  ;;  %1343 = vmatpush1.msra.mxu1 %v5695_v7  ;;  %v5711_v19 = vld [vmem:[#allocation2 + $0x3f0] sm:$0xff] }
 0x375   :  { %1273 = vmatprep.subr.mxu0 %v5368_v22  ;;  %1344 = vmatprep.subr.mxu1 %v5699_v10  ;;  %v5715_v22 = vld [vmem:[#allocation2 + $0x3d8] sm:$0xff] }
 0x376   :  { %1274 = vmatpush1.msra.mxu0 %v5372_v24  ;;  %1345 = vmatpush1.msra.mxu1 %v5703_v12  ;;  %v5719_v24 = vld [vmem:[#allocation2 + $0x3d0] sm:$0xff] }
 0x377   :  { %1275 = vmatprep.subr.mxu0 %v5376_v28  ;;  %1346 = vmatprep.subr.mxu1 %v5707_v17  ;;  %v5723_v28 = vld [vmem:[#allocation2 + $0x3b8] sm:$0xff] }
 0x378   :  { %1276 = vmatpush2.msra.mxu0 %v5380_v30  ;;  %1347 = vmatpush2.msra.mxu1 %v5711_v19  ;;  %v5727_v30 = vld [vmem:[#allocation2 + $0x3b0] sm:$0xff] }
 0x379   :  { %1277 = vmatprep.subr.mxu0 %v5384_v33  ;;  %1348 = vmatprep.subr.mxu1 %v5715_v22  ;;  %v5731_v33 = vld [vmem:[#allocation2 + $0x398] sm:$0xff] }
 0x37a   :  { %1278 = vmatpush2.msra.mxu0 %v5388_v35  ;;  %1349 = vmatpush2.msra.mxu1 %v5719_v24  ;;  %v5735_v35 = vld [vmem:[#allocation2 + $0x390] sm:$0xff] }
 0x37b   :  { %1279 = vmatprep.subr.mxu0 %v5392_v38  ;;  %1350 = vmatprep.subr.mxu1 %v5723_v28  ;;  %v5738_v38 = vld [vmem:[#allocation2 + $0x368] sm:$0xff] }
 0x37c   :  { %1280 = vmatpush2.msra.mxu0 %v5396_v40  ;;  %1351 = vmatpush2.msra.mxu1 %v5727_v30  ;;  %v5741_v40 = vld [vmem:[#allocation2 + $0x378] sm:$0xff] }
 0x37d   :  { %1281 = vmatprep.subr.mxu0 %v5400_v42  ;;  %1352 = vmatprep.subr.mxu1 %v5731_v33  ;;  %v5747_v42 = vld [vmem:[#allocation2 + $0x370] sm:$0xff] }
 0x37e   :  { %1282 = vmatpush2.msra.mxu0 %v5404_v46  ;;  %1353 = vmatpush2.msra.mxu1 %v5735_v35  ;;  %v5750_v46 = vld [vmem:[#allocation2 + $0x348] sm:$0xff] }
 0x37f   :  { %1283 = vmatprep.subr.mxu0 %v5738_v38  ;;  %1354 = vmatprep.subr.mxu1 %v5741_v40 }
 0x380   :  { %1284 = vmatpush2.msra.mxu0 %v5744_v20  ;;  %1355 = vmatpush2.msra.mxu1 %v5747_v42 }
 0x381   :  { %1285 = vmatprep.subr.mxu0 %v5750_v46  ;;  %1356 = vmatprep.subr.mxu1 %v5753_v34 }
 0x382   :  { %1286 = vmatpush2.msra.mxu0 %v5756_v55  ;;  %1357 = vmatpush2.msra.mxu1 %v5759_v57 }
 0x383   :  { %1287 = vmatprep.subr.mxu0 %v5762_v4  ;;  %1358 = vmatprep.subr.mxu1 %v5765_v62 }
 0x384   :  { %1288 = vmatpush2.msra.mxu0 %v5768_v11  ;;  %1359 = vmatpush2.msra.mxu1 %v5771_v60 }
 0x385   :  { %1289 = vmatprep.subr.mxu0 %v5774_v6  ;;  %1360 = vmatprep.subr.mxu1 %v5777_v37 }
 0x386   :  { %1290 = vmatpush2.msra.mxu0 %v5780_v23  ;;  %1361 = vmatpush2.msra.mxu1 %v5783_v21 }
 0x387   :  { %1291 = vmatprep.subr.mxu0 %v5786_v48  ;;  %1362 = vmatprep.subr.mxu1 %v5789_v51 }
 0x388   :  { %1292 = vmatpush2.msra.mxu0 %v5792_v32  ;;  %1363 = vmatpush2.msra.mxu1 %v5795_v44  ;;  %v5813_v44 = vld [vmem:[#allocation2 + $0x2b8] sm:$0xff] }
 0x389   :  { %1293 = vmatprep.subr.mxu0 %v5798_v39  ;;  %1364 = vmatprep.subr.mxu1 %v5801_v41  ;;  %9235 = vst [vmem:[#allocation34_spill] sm:$0xff] %v5813_v44  ;;  %v5816_v39 = vld [vmem:[#allocation2 + $0x2a0] sm:$0xff]  ;;  %v5819_v41 = vld [vmem:[#allocation2 + $0x2b0] sm:$0xff] }
 0x38a   :  { %1294 = vmatpush2.msra.mxu0 %v5804_v14  ;;  %1365 = vmatpush2.msra.mxu1 %v5807_v2  ;;  %9236 = vst [vmem:[#allocation17_spill] sm:$0xff] %v5816_v39  ;;  %9237 = vst [vmem:[#allocation35_spill] sm:$0xff] %v5819_v41  ;;  %v5822_v14 = vld [vmem:[#allocation2 + $0x288] sm:$0xff]  ;;  %v5825_v2 = vld [vmem:[#allocation2 + $0x298] sm:$0xff] }
 0x38b   :  { %1295 = vmatprep.subr.mxu0 %v5810_v27  ;;  %1366 = vmatprep.subr.mxu1 %v5813_v44  ;;  %9238 = vst [vmem:[#allocation18_spill] sm:$0xff] %v5822_v14  ;;  %9239 = vst [vmem:[#allocation36_spill] sm:$0xff] %v5825_v2  ;;  %v5828_v27 = vld [vmem:[#allocation2 + $0x280] sm:$0xff]  ;;  %v5831_v44 = vld [vmem:[#allocation2 + $0x290] sm:$0xff] }
 0x38c   :  { %1296 = vmatpush2.msra.mxu0 %v5816_v39  ;;  %1367 = vmatpush2.msra.mxu1 %v5819_v41  ;;  %9240 = vst [vmem:[#allocation19_spill] sm:$0xff] %v5828_v27  ;;  %9241 = vst [vmem:[#allocation37_spill] sm:$0xff] %v5831_v44  ;;  %v5834_v39 = vld [vmem:[#allocation2 + $0x268] sm:$0xff]  ;;  %v5837_v41 = vld [vmem:[#allocation2 + $0x278] sm:$0xff] }
 0x38d   :  { %1297 = vmatprep.subr.mxu0 %v5822_v14  ;;  %1368 = vmatprep.subr.mxu1 %v5825_v2  ;;  %9242 = vst [vmem:[#allocation20_spill] sm:$0xff] %v5834_v39  ;;  %9243 = vst [vmem:[#allocation38_spill] sm:$0xff] %v5837_v41  ;;  %v5840_v14 = vld [vmem:[#allocation2 + $0x260] sm:$0xff]  ;;  %v5843_v2 = vld [vmem:[#allocation2 + $0x270] sm:$0xff] }
 0x38e   :  { %1298 = vmatpush2.msra.mxu0 %v5828_v27  ;;  %1369 = vmatpush2.msra.mxu1 %v5831_v44  ;;  %9244 = vst [vmem:[#allocation21_spill] sm:$0xff] %v5840_v14  ;;  %9245 = vst [vmem:[#allocation39_spill] sm:$0xff] %v5843_v2  ;;  %v5846_v27 = vld [vmem:[#allocation2 + $0x248] sm:$0xff]  ;;  %v5849_v44 = vld [vmem:[#allocation2 + $0x258] sm:$0xff] }
 0x38f   :  { %1299 = vmatprep.subr.mxu0 %v5834_v39  ;;  %1370 = vmatprep.subr.mxu1 %v5837_v41  ;;  %9246 = vst [vmem:[#allocation22_spill] sm:$0xff] %v5846_v27  ;;  %9247 = vst [vmem:[#allocation40_spill] sm:$0xff] %v5849_v44  ;;  %v5852_v39 = vld [vmem:[#allocation2 + $0x240] sm:$0xff]  ;;  %v5855_v41 = vld [vmem:[#allocation2 + $0x250] sm:$0xff] }
 0x390   :  { %1300 = vmatpush2.msra.mxu0 %v5840_v14  ;;  %1371 = vmatpush2.msra.mxu1 %v5843_v2  ;;  %9248 = vst [vmem:[#allocation23_spill] sm:$0xff] %v5852_v39  ;;  %9249 = vst [vmem:[#allocation41_spill] sm:$0xff] %v5855_v41  ;;  %v5858_v14 = vld [vmem:[#allocation2 + $0x228] sm:$0xff]  ;;  %v5861_v2 = vld [vmem:[#allocation2 + $0x238] sm:$0xff] }
 0x391   :  { %1301 = vmatprep.subr.mxu0 %v5846_v27  ;;  %1372 = vmatprep.subr.mxu1 %v5849_v44  ;;  %9250 = vst [vmem:[#allocation24_spill] sm:$0xff] %v5858_v14  ;;  %9251 = vst [vmem:[#allocation42_spill] sm:$0xff] %v5861_v2  ;;  %v5864_v27 = vld [vmem:[#allocation2 + $0x220] sm:$0xff]  ;;  %v5867_v44 = vld [vmem:[#allocation2 + $0x230] sm:$0xff] }
 0x392   :  { %1302 = vmatpush2.msra.mxu0 %v5852_v39  ;;  %1373 = vmatpush2.msra.mxu1 %v5855_v41  ;;  %9252 = vst [vmem:[#allocation43_spill] sm:$0xff] %v5864_v27  ;;  %9253 = vst [vmem:[#allocation76_spill] sm:$0xff] %v5867_v44  ;;  %v5870_v39 = vld [vmem:[#allocation2 + $0x208] sm:$0xff]  ;;  %v5873_v41 = vld [vmem:[#allocation2 + $0x218] sm:$0xff] }
 0x393   :  { %1303 = vmatprep.subr.mxu0 %v5858_v14  ;;  %1374 = vmatprep.subr.mxu1 %v5861_v2  ;;  %9254 = vst [vmem:[#allocation139_spill] sm:$0xff] %v5870_v39  ;;  %9255 = vst [vmem:[#allocation44_spill] sm:$0xff] %v5873_v41  ;;  %v5876_v14 = vld [vmem:[#allocation2 + $0x200] sm:$0xff]  ;;  %v5879_v2 = vld [vmem:[#allocation2 + $0x210] sm:$0xff] }
 0x394   :  { %1304 = vmatpush2.msra.mxu0 %v5864_v27  ;;  %1375 = vmatpush2.msra.mxu1 %v5867_v44  ;;  %9256 = vst [vmem:[#allocation78_spill] sm:$0xff] %v5876_v14  ;;  %9257 = vst [vmem:[#allocation45_spill] sm:$0xff] %v5879_v2  ;;  %v5882_v27 = vld [vmem:[#allocation4 + $0x170] sm:$0xff]  ;;  %v5885_v44 = vld [vmem:[#allocation4 + $0x2f8] sm:$0xff] }
 0x395   :  { %1305 = vmatprep.subr.mxu0 %v5870_v39  ;;  %1376 = vmatprep.subr.mxu1 %v5873_v41  ;;  %9258 = vst [vmem:[#allocation79_spill] sm:$0xff] %v5882_v27  ;;  %9259 = vst [vmem:[#allocation46_spill] sm:$0xff] %v5885_v44 }
 0x396   :  { %1306 = vmatpush2.msra.mxu0 %v5876_v14  ;;  %1377 = vmatpush2.msra.mxu1 %v5879_v2  ;;  %v1060_v2 = vpop.f32.mrf.mxu0 }
 0x397   :  { %1405 = vmatprep.subr.mxu0 %v5882_v27  ;;  %3316 = vmatprep.subr.mxu1 %v5885_v44  ;;  %v1061_v44 = vadd.f32 %v1060_v2, %v5471_v8  ;;  %v5926_v2 = vld [vmem:[#allocation4 + $0x2c8] sm:$0xff] }
 0x398   :  { %9267 = vst [vmem:[#allocation50_spill] sm:$0xff] %v5926_v2 }
 0x417   :  { %v1149_v39 = vpop.f32.mrf.mxu1  ;;  %v3313_v37 = vpop.f32.mrf.mxu0 }
 0x418   :  { %v1150_v32 = vadd.f32 %v1149_v39, %v5462_v0 }
 0x419   :  { %v1151_v51 = vpop.f32.mrf.mxu1  ;;  %v3314_v27 = vpop.f32.mrf.mxu0 }
 0x41a   :  { %v3211_v41 = vmul.f32 -1.442695, %v1150_v32  ;;  %v1152_v14 = vadd.f32 %v1151_v51, %v5466_v53  ;;  %v3315_v6 = vadd.f32 %v3314_v27, %v3313_v37  ;;  %v5920_v37 = vld [vmem:[#allocation4 + $0x160] sm:$0xff]  ;;  %v5929_v27 = vld [vmem:[#allocation4 + $0x138] sm:$0xff] }
 0x41b   :  { %9265 = vst [vmem:[#allocation49_spill] sm:$0xff] %v5920_v37  ;;  %9268 = vst [vmem:[#allocation90_spill] sm:$0xff] %v5929_v27 }
 0x41c   :  { %3578 = vpow2.f32 %v3211_v41  ;;  %v3212_v48 = vmul.f32 -1.442695, %v1152_v14  ;;  %v1221_v39 = vadd.f32 %v3315_v6, %v5474_v9  ;;  %v5917_v6 = vld [vmem:[#allocation4 + $0x150] sm:$0xff] }
 0x41d   :  { %9264 = vst [vmem:[#allocation86_spill] sm:$0xff] %v5917_v6 }
 0x41e   :  { %3580 = vpow2.f32 %v3212_v48 }
 0x429   :  { %v3579_v21 = vpop.eup %3578 }
 0x42a   :  { %v1227_v23 = vadd.f32 1.0, %v3579_v21 }
 0x42b   :  { %v3581_v60 = vpop.eup %3580 }
 0x42c   :  { %3582 = vrcp.f32 %v1227_v23  ;;  %v1233_v41 = vadd.f32 1.0, %v3581_v60  ;;  %v5914_v60 = vld [vmem:[#allocation4 + $0x2e0] sm:$0xff] }
 0x42d   :  { %9263 = vst [vmem:[#allocation48_spill] sm:$0xff] %v5914_v60 }
 0x439   :  { %v3583_v11 = vpop.eup %3582 }
 0x43a   :  { %v1236_v32 = vmul.f32 %v3583_v11, %v1061_v44  ;;  %v5911_v11 = vld [vmem:[#allocation4 + $0x158] sm:$0xff]  ;;  %v5923_v44 = vld [vmem:[#allocation4 + $0x140] sm:$0xff] }
 0x43b   :  { %9262 = vst [vmem:[#allocation84_spill] sm:$0xff] %v5911_v11  ;;  %9266 = vst [vmem:[#allocation88_spill] sm:$0xff] %v5923_v44 }
 0x43c   :  { %v1237_v0 = vadd.f32 %v1236_v32, %v1221_v39  ;;  %v5932_v39 = vld [vmem:[#allocation4 + $0x148] sm:$0xff] }
 0x43d   :  { %9269 = vst [vmem:[#allocation51_spill] sm:$0xff] %v5932_v39  ;;  %v5935_v32 = vld [vmem:[#allocation4 + $0x128] sm:$0xff] }
 0x43e   :  { %3584 = vtanh.f32 %v1237_v0  ;;  %v5905_v0 = vld [vmem:[#allocation4 + $0x168] sm:$0xff]  ;;  %9270 = vst [vmem:[#allocation92_spill] sm:$0xff] %v5935_v32 }
 0x43f   :  { %3586 = vrcp.f32 %v1233_v41  ;;  %9260 = vst [vmem:[#allocation82_spill] sm:$0xff] %v5905_v0  ;;  %v5938_v41 = vld [vmem:[#allocation4 + $0x2b0] sm:$0xff] }
 0x440   :  { %9271 = vst [vmem:[#allocation52_spill] sm:$0xff] %v5938_v41 }
 0x44b   :  { %v3585_v51 = vpop.eup %3584 }
 0x44c   :  { %v1239_v21 = vsub.f32 %v5478_v1, %v3585_v51  ;;  %v3587_v48 = vpop.eup %3586  ;;  %v5908_v1 = vld [vmem:[#allocation4 + $0x178] sm:$0xff] }
 0x44d   :  { %9261 = vst [vmem:[#allocation47_spill] sm:$0xff] %v5908_v1 }
 0x44e   :  { %v1240_v23 = vmul.f32 %v3587_v48, %v1239_v21  ;;  %v5944_v21 = vld [vmem:[#allocation4 + $0x130] sm:$0xff] }
 0x44f   :  { %9273 = vst [vmem:[#allocation53_spill] sm:$0xff] %v5944_v21  ;;  %v5947_v48 = vld [vmem:[#allocation4 + $0x110] sm:$0xff] }
 0x450   :  { %v5893_v14 = vadd.f32 %v3585_v51, %v1240_v23  ;;  %v5941_v51 = vld [vmem:[#allocation4 + $0x120] sm:$0xff]  ;;  %9274 = vst [vmem:[#allocation96_spill] sm:$0xff] %v5947_v48  ;;  %v5950_v23 = vld [vmem:[#allocation4 + $0x298] sm:$0xff] }
 0x451   :  { %9272 = vst [vmem:[#allocation94_spill] sm:$0xff] %v5941_v51  ;;  %9275 = vst [vmem:[#allocation54_spill] sm:$0xff] %v5950_v23 }
 0x452   :  { %1242 = vst [vmem:[%s8325_s7 + $0x8] sm:$0xff] %v5893_v14  ;;  %1307 = vmatprep.mubr.f32.mxu0 %v5893_v14  ;;  %1378 = vmatprep.mubr.f32.mxu1 %v5893_v14 }
 0x453   :  { %1308 = vmatmul.mubr.f32.vlgmr.msra.gmra.mxu0 %v5598_v13  ;;  %1379 = vmatmul.mubr.f32.vlgmr.msra.gmra.mxu1 %v5598_v13 }
 0x454   :  { %1469 = vmatprep.mubr.f32.mxu0 %v5893_v14  ;;  %1540 = vmatprep.mubr.f32.mxu1 %v5893_v14 }
 0x455   :  { %1406 = vmatpush1.msra.mxu0 %v5905_v0  ;;  %3317 = vmatpush3.msra.mxu1 %v5908_v1 }
 0x456   :  { %1407 = vmatprep.subr.mxu0 %v5911_v11  ;;  %3318 = vmatprep.subr.mxu1 %v5914_v60 }
 0x457   :  { %1408 = vmatpush1.msra.mxu0 %v5917_v6  ;;  %3319 = vmatpush3.msra.mxu1 %v5920_v37  ;;  %v9357_v37 = vld [vmem:[#allocation143_spill] sm:$0xff] }
 0x458   :  { %1409 = vmatprep.subr.mxu0 %v5923_v44  ;;  %3320 = vmatprep.subr.mxu1 %v5926_v2 }
 0x459   :  { %1410 = vmatpush1.msra.mxu0 %v5929_v27  ;;  %3321 = vmatpush3.msra.mxu1 %v5932_v39  ;;  %v6095_v39 = vld [vmem:[#allocation4 + $0x2e8] sm:$0xff]  ;;  %v9356_v27 = vld [vmem:[#allocation142_spill] sm:$0xff] }
 0x45a   :  { %1411 = vmatprep.subr.mxu0 %v5935_v32  ;;  %3322 = vmatprep.subr.mxu1 %v5938_v41  ;;  %v5953_v32 = vld [vmem:[#allocation4 + $0x108] sm:$0xff]  ;;  %v5956_v41 = vld [vmem:[#allocation4 + $0x118] sm:$0xff]  ;;  %9324 = vst [vmem:[#allocation87_spill] sm:$0xff] %v6095_v39 }
 0x45b   :  { %1412 = vmatpush1.msra.mxu0 %v5941_v51  ;;  %3323 = vmatpush3.msra.mxu1 %v5944_v21  ;;  %9276 = vst [vmem:[#allocation98_spill] sm:$0xff] %v5953_v32  ;;  %9277 = vst [vmem:[#allocation55_spill] sm:$0xff] %v5956_v41  ;;  %v5959_v51 = vld [vmem:[#allocation4 + $0xf8] sm:$0xff]  ;;  %v5962_v21 = vld [vmem:[#allocation4 + $0x280] sm:$0xff] }
 0x45c   :  { %1413 = vmatprep.subr.mxu0 %v5947_v48  ;;  %3324 = vmatprep.subr.mxu1 %v5950_v23  ;;  %9278 = vst [vmem:[#allocation100_spill] sm:$0xff] %v5959_v51  ;;  %9279 = vst [vmem:[#allocation56_spill] sm:$0xff] %v5962_v21  ;;  %v5965_v48 = vld [vmem:[#allocation4 + $0xf0] sm:$0xff]  ;;  %v5968_v23 = vld [vmem:[#allocation4 + $0x100] sm:$0xff] }
 0x45d   :  { %1414 = vmatpush1.msra.mxu0 %v5953_v32  ;;  %3325 = vmatpush3.msra.mxu1 %v5956_v41  ;;  %9280 = vst [vmem:[#allocation102_spill] sm:$0xff] %v5965_v48  ;;  %9281 = vst [vmem:[#allocation57_spill] sm:$0xff] %v5968_v23  ;;  %v5971_v32 = vld [vmem:[#allocation4 + $0xe0] sm:$0xff]  ;;  %v5974_v41 = vld [vmem:[#allocation4 + $0x268] sm:$0xff] }
 0x45e   :  { %1415 = vmatprep.subr.mxu0 %v5959_v51  ;;  %3326 = vmatprep.subr.mxu1 %v5962_v21  ;;  %9282 = vst [vmem:[#allocation104_spill] sm:$0xff] %v5971_v32  ;;  %9283 = vst [vmem:[#allocation58_spill] sm:$0xff] %v5974_v41  ;;  %v5977_v51 = vld [vmem:[#allocation4 + $0xd8] sm:$0xff]  ;;  %v5980_v21 = vld [vmem:[#allocation4 + $0xe8] sm:$0xff] }
 0x45f   :  { %1416 = vmatpush1.msra.mxu0 %v5965_v48  ;;  %3327 = vmatpush3.msra.mxu1 %v5968_v23  ;;  %9284 = vst [vmem:[#allocation106_spill] sm:$0xff] %v5977_v51  ;;  %9285 = vst [vmem:[#allocation59_spill] sm:$0xff] %v5980_v21  ;;  %v5983_v48 = vld [vmem:[#allocation4 + $0xc8] sm:$0xff]  ;;  %v5986_v23 = vld [vmem:[#allocation4 + $0x250] sm:$0xff] }
 0x460   :  { %1417 = vmatprep.subr.mxu0 %v5971_v32  ;;  %3328 = vmatprep.subr.mxu1 %v5974_v41  ;;  %9286 = vst [vmem:[#allocation108_spill] sm:$0xff] %v5983_v48  ;;  %9287 = vst [vmem:[#allocation60_spill] sm:$0xff] %v5986_v23  ;;  %v5989_v32 = vld [vmem:[#allocation4 + $0xc0] sm:$0xff]  ;;  %v5992_v41 = vld [vmem:[#allocation4 + $0xd0] sm:$0xff] }
 0x461   :  { %1418 = vmatpush1.msra.mxu0 %v5977_v51  ;;  %3329 = vmatpush3.msra.mxu1 %v5980_v21  ;;  %9288 = vst [vmem:[#allocation110_spill] sm:$0xff] %v5989_v32  ;;  %9289 = vst [vmem:[#allocation61_spill] sm:$0xff] %v5992_v41  ;;  %v5995_v51 = vld [vmem:[#allocation4 + $0xb0] sm:$0xff]  ;;  %v5998_v21 = vld [vmem:[#allocation4 + $0x238] sm:$0xff] }
 0x462   :  { %1419 = vmatprep.subr.mxu0 %v5983_v48  ;;  %3330 = vmatprep.subr.mxu1 %v5986_v23  ;;  %9290 = vst [vmem:[#allocation112_spill] sm:$0xff] %v5995_v51  ;;  %9291 = vst [vmem:[#allocation62_spill] sm:$0xff] %v5998_v21  ;;  %v6001_v48 = vld [vmem:[#allocation4 + $0xa8] sm:$0xff]  ;;  %v6004_v23 = vld [vmem:[#allocation4 + $0xb8] sm:$0xff] }
 0x463   :  { %1420 = vmatpush1.msra.mxu0 %v5989_v32  ;;  %3331 = vmatpush3.msra.mxu1 %v5992_v41  ;;  %9292 = vst [vmem:[#allocation114_spill] sm:$0xff] %v6001_v48  ;;  %9293 = vst [vmem:[#allocation63_spill] sm:$0xff] %v6004_v23  ;;  %v6007_v32 = vld [vmem:[#allocation4 + $0x98] sm:$0xff]  ;;  %v6010_v41 = vld [vmem:[#allocation4 + $0x220] sm:$0xff] }
 0x464   :  { %1421 = vmatprep.subr.mxu0 %v5995_v51  ;;  %3332 = vmatprep.subr.mxu1 %v5998_v21  ;;  %9294 = vst [vmem:[#allocation116_spill] sm:$0xff] %v6007_v32  ;;  %9295 = vst [vmem:[#allocation64_spill] sm:$0xff] %v6010_v41  ;;  %v6013_v51 = vld [vmem:[#allocation4 + $0x90] sm:$0xff]  ;;  %v6016_v21 = vld [vmem:[#allocation4 + $0xa0] sm:$0xff] }
 0x465   :  { %1422 = vmatpush1.msra.mxu0 %v6001_v48  ;;  %3333 = vmatpush3.msra.mxu1 %v6004_v23  ;;  %9296 = vst [vmem:[#allocation118_spill] sm:$0xff] %v6013_v51  ;;  %9297 = vst [vmem:[#allocation65_spill] sm:$0xff] %v6016_v21  ;;  %v6019_v48 = vld [vmem:[#allocation4 + $0x80] sm:$0xff]  ;;  %v6022_v23 = vld [vmem:[#allocation4 + $0x208] sm:$0xff] }
 0x466   :  { %1423 = vmatprep.subr.mxu0 %v6007_v32  ;;  %3334 = vmatprep.subr.mxu1 %v6010_v41  ;;  %9298 = vst [vmem:[#allocation120_spill] sm:$0xff] %v6019_v48  ;;  %9299 = vst [vmem:[#allocation66_spill] sm:$0xff] %v6022_v23  ;;  %v6025_v32 = vld [vmem:[#allocation4 + $0x78] sm:$0xff]  ;;  %v6028_v41 = vld [vmem:[#allocation4 + $0x88] sm:$0xff] }
 0x467   :  { %1424 = vmatpush1.msra.mxu0 %v6013_v51  ;;  %3335 = vmatpush3.msra.mxu1 %v6016_v21  ;;  %9300 = vst [vmem:[#allocation122_spill] sm:$0xff] %v6025_v32  ;;  %9301 = vst [vmem:[#allocation67_spill] sm:$0xff] %v6028_v41  ;;  %v6031_v51 = vld [vmem:[#allocation4 + $0x68] sm:$0xff]  ;;  %v6034_v21 = vld [vmem:[#allocation4 + $0x1f0] sm:$0xff] }
 0x468   :  { %1425 = vmatprep.subr.mxu0 %v6019_v48  ;;  %3336 = vmatprep.subr.mxu1 %v6022_v23  ;;  %9302 = vst [vmem:[#allocation124_spill] sm:$0xff] %v6031_v51  ;;  %9303 = vst [vmem:[#allocation68_spill] sm:$0xff] %v6034_v21  ;;  %v6037_v48 = vld [vmem:[#allocation4 + $0x60] sm:$0xff]  ;;  %v6040_v23 = vld [vmem:[#allocation4 + $0x70] sm:$0xff] }
 0x469   :  { %1426 = vmatpush1.msra.mxu0 %v6025_v32  ;;  %3337 = vmatpush3.msra.mxu1 %v6028_v41  ;;  %9304 = vst [vmem:[#allocation126_spill] sm:$0xff] %v6037_v48  ;;  %9305 = vst [vmem:[#allocation69_spill] sm:$0xff] %v6040_v23  ;;  %v6043_v32 = vld [vmem:[#allocation4 + $0x50] sm:$0xff]  ;;  %v6046_v41 = vld [vmem:[#allocation4 + $0x1d8] sm:$0xff] }
 0x46a   :  { %1427 = vmatprep.subr.mxu0 %v6031_v51  ;;  %3338 = vmatprep.subr.mxu1 %v6034_v21  ;;  %9306 = vst [vmem:[#allocation128_spill] sm:$0xff] %v6043_v32  ;;  %9307 = vst [vmem:[#allocation70_spill] sm:$0xff] %v6046_v41  ;;  %v6049_v51 = vld [vmem:[#allocation4 + $0x48] sm:$0xff]  ;;  %v6052_v21 = vld [vmem:[#allocation4 + $0x58] sm:$0xff] }
 0x46b   :  { %1428 = vmatpush1.msra.mxu0 %v6037_v48  ;;  %3339 = vmatpush3.msra.mxu1 %v6040_v23  ;;  %9308 = vst [vmem:[#allocation130_spill] sm:$0xff] %v6049_v51  ;;  %9309 = vst [vmem:[#allocation71_spill] sm:$0xff] %v6052_v21  ;;  %v6055_v48 = vld [vmem:[#allocation4 + $0x38] sm:$0xff]  ;;  %v6058_v23 = vld [vmem:[#allocation4 + $0x1c0] sm:$0xff] }
 0x46c   :  { %1429 = vmatprep.subr.mxu0 %v6043_v32  ;;  %3340 = vmatprep.subr.mxu1 %v6046_v41  ;;  %9310 = vst [vmem:[#allocation132_spill] sm:$0xff] %v6055_v48  ;;  %9311 = vst [vmem:[#allocation72_spill] sm:$0xff] %v6058_v23  ;;  %v6061_v32 = vld [vmem:[#allocation4 + $0x30] sm:$0xff]  ;;  %v6064_v41 = vld [vmem:[#allocation4 + $0x40] sm:$0xff] }
 0x46d   :  { %1430 = vmatpush1.msra.mxu0 %v6049_v51  ;;  %3341 = vmatpush3.msra.mxu1 %v6052_v21  ;;  %9312 = vst [vmem:[#allocation134_spill] sm:$0xff] %v6061_v32  ;;  %9313 = vst [vmem:[#allocation73_spill] sm:$0xff] %v6064_v41  ;;  %v6067_v51 = vld [vmem:[#allocation4 + $0x20] sm:$0xff]  ;;  %v6070_v21 = vld [vmem:[#allocation4 + $0x1a8] sm:$0xff] }
 0x46e   :  { %1431 = vmatprep.subr.mxu0 %v6055_v48  ;;  %3342 = vmatprep.subr.mxu1 %v6058_v23  ;;  %9314 = vst [vmem:[#allocation136_spill] sm:$0xff] %v6067_v51  ;;  %9315 = vst [vmem:[#allocation74_spill] sm:$0xff] %v6070_v21  ;;  %v6073_v48 = vld [vmem:[#allocation4 + $0x18] sm:$0xff]  ;;  %v6076_v23 = vld [vmem:[#allocation4 + $0x28] sm:$0xff] }
 0x46f   :  { %1432 = vmatpush1.msra.mxu0 %v6061_v32  ;;  %3343 = vmatpush3.msra.mxu1 %v6064_v41  ;;  %9316 = vst [vmem:[#allocation138_spill] sm:$0xff] %v6073_v48  ;;  %9317 = vst [vmem:[#allocation75_spill] sm:$0xff] %v6076_v23  ;;  %v6079_v32 = vld [vmem:[#allocation4 + $0x8] sm:$0xff]  ;;  %v6082_v41 = vld [vmem:[#allocation4 + $0x190] sm:$0xff] }
 0x470   :  { %1433 = vmatprep.subr.mxu0 %v6067_v51  ;;  %3344 = vmatprep.subr.mxu1 %v6070_v21  ;;  %9318 = vst [vmem:[#allocation77_spill] sm:$0xff] %v6079_v32  ;;  %9319 = vst [vmem:[#allocation80_spill] sm:$0xff] %v6082_v41  ;;  %v6085_v51 = vld [vmem:[#allocation4] sm:$0xff]  ;;  %v6088_v21 = vld [vmem:[#allocation4 + $0x10] sm:$0xff] }
 0x471   :  { %1434 = vmatpush1.msra.mxu0 %v6073_v48  ;;  %3345 = vmatpush3.msra.mxu1 %v6076_v23  ;;  %9320 = vst [vmem:[#allocation81_spill] sm:$0xff] %v6085_v51  ;;  %9321 = vst [vmem:[#allocation83_spill] sm:$0xff] %v6088_v21  ;;  %v6091_v48 = vld [vmem:[#allocation4 + $0x2f0] sm:$0xff]  ;;  %v9323_v23 = vld [vmem:[#allocation8_spill] sm:$0xff] }
 0x472   :  { %1435 = vmatprep.subr.mxu0 %v6079_v32  ;;  %3346 = vmatprep.subr.mxu1 %v6082_v41  ;;  %9322 = vst [vmem:[#allocation85_spill] sm:$0xff] %v6091_v48  ;;  %v6098_v32 = vld [vmem:[#allocation4 + $0x2d8] sm:$0xff]  ;;  %v6101_v41 = vld [vmem:[#allocation4 + $0x2d0] sm:$0xff] }
 0x473   :  { %1436 = vmatpush1.msra.mxu0 %v6085_v51  ;;  %3347 = vmatpush3.msra.mxu1 %v6088_v21  ;;  %9325 = vst [vmem:[#allocation89_spill] sm:$0xff] %v6098_v32  ;;  %9326 = vst [vmem:[#allocation91_spill] sm:$0xff] %v6101_v41  ;;  %v6104_v51 = vld [vmem:[#allocation4 + $0x2c0] sm:$0xff]  ;;  %v6107_v21 = vld [vmem:[#allocation4 + $0x2b8] sm:$0xff] }
 0x474   :  { %1437 = vmatprep.subr.mxu0 %v6091_v48  ;;  %1565 = vmatprep.subr.mxu1 %v9323_v23  ;;  %9327 = vst [vmem:[#allocation93_spill] sm:$0xff] %v6104_v51  ;;  %9328 = vst [vmem:[#allocation95_spill] sm:$0xff] %v6107_v21  ;;  %v6110_v23 = vld [vmem:[#allocation4 + $0x2a8] sm:$0xff] }
 0x475   :  { %1438 = vmatpush2.msra.mxu0 %v6095_v39  ;;  %9329 = vst [vmem:[#allocation97_spill] sm:$0xff] %v6110_v23  ;;  %v6113_v39 = vld [vmem:[#allocation4 + $0x2a0] sm:$0xff] }
 0x476   :  { %1439 = vmatprep.subr.mxu0 %v6098_v32  ;;  %9330 = vst [vmem:[#allocation99_spill] sm:$0xff] %v6113_v39  ;;  %v6116_v32 = vld [vmem:[#allocation4 + $0x290] sm:$0xff] }
 0x477   :  { %1440 = vmatpush2.msra.mxu0 %v6101_v41  ;;  %9331 = vst [vmem:[#allocation101_spill] sm:$0xff] %v6116_v32  ;;  %v6119_v41 = vld [vmem:[#allocation4 + $0x288] sm:$0xff] }
 0x478   :  { %1441 = vmatprep.subr.mxu0 %v6104_v51  ;;  %9332 = vst [vmem:[#allocation103_spill] sm:$0xff] %v6119_v41  ;;  %v6122_v51 = vld [vmem:[#allocation4 + $0x278] sm:$0xff] }
 0x479   :  { %1442 = vmatpush2.msra.mxu0 %v6107_v21  ;;  %9333 = vst [vmem:[#allocation105_spill] sm:$0xff] %v6122_v51  ;;  %v6125_v21 = vld [vmem:[#allocation4 + $0x270] sm:$0xff] }
 0x47a   :  { %1443 = vmatprep.subr.mxu0 %v6110_v23  ;;  %9334 = vst [vmem:[#allocation107_spill] sm:$0xff] %v6125_v21  ;;  %v6128_v23 = vld [vmem:[#allocation4 + $0x260] sm:$0xff] }
 0x47b   :  { %1444 = vmatpush2.msra.mxu0 %v6113_v39  ;;  %9335 = vst [vmem:[#allocation109_spill] sm:$0xff] %v6128_v23  ;;  %v6131_v39 = vld [vmem:[#allocation4 + $0x258] sm:$0xff] }
 0x47c   :  { %1445 = vmatprep.subr.mxu0 %v6116_v32  ;;  %9336 = vst [vmem:[#allocation111_spill] sm:$0xff] %v6131_v39  ;;  %v6134_v32 = vld [vmem:[#allocation4 + $0x248] sm:$0xff] }
 0x47d   :  { %1446 = vmatpush2.msra.mxu0 %v6119_v41  ;;  %9337 = vst [vmem:[#allocation113_spill] sm:$0xff] %v6134_v32  ;;  %v6137_v41 = vld [vmem:[#allocation4 + $0x240] sm:$0xff] }
 0x47e   :  { %1447 = vmatprep.subr.mxu0 %v6122_v51  ;;  %9338 = vst [vmem:[#allocation115_spill] sm:$0xff] %v6137_v41  ;;  %v6140_v51 = vld [vmem:[#allocation4 + $0x230] sm:$0xff] }
 0x47f   :  { %1448 = vmatpush2.msra.mxu0 %v6125_v21  ;;  %9339 = vst [vmem:[#allocation117_spill] sm:$0xff] %v6140_v51  ;;  %v6143_v21 = vld [vmem:[#allocation4 + $0x228] sm:$0xff] }
 0x480   :  { %1449 = vmatprep.subr.mxu0 %v6128_v23  ;;  %9340 = vst [vmem:[#allocation119_spill] sm:$0xff] %v6143_v21  ;;  %v6146_v23 = vld [vmem:[#allocation4 + $0x218] sm:$0xff] }
 0x481   :  { %1450 = vmatpush2.msra.mxu0 %v6131_v39  ;;  %9341 = vst [vmem:[#allocation121_spill] sm:$0xff] %v6146_v23  ;;  %v6149_v39 = vld [vmem:[#allocation4 + $0x210] sm:$0xff] }
 0x482   :  { %1451 = vmatprep.subr.mxu0 %v6134_v32  ;;  %9342 = vst [vmem:[#allocation123_spill] sm:$0xff] %v6149_v39  ;;  %v6152_v32 = vld [vmem:[#allocation4 + $0x200] sm:$0xff] }
 0x483   :  { %1452 = vmatpush2.msra.mxu0 %v6137_v41  ;;  %9343 = vst [vmem:[#allocation125_spill] sm:$0xff] %v6152_v32  ;;  %v6155_v41 = vld [vmem:[#allocation4 + $0x1f8] sm:$0xff] }
 0x484   :  { %1453 = vmatprep.subr.mxu0 %v6140_v51  ;;  %9344 = vst [vmem:[#allocation127_spill] sm:$0xff] %v6155_v41  ;;  %v6158_v51 = vld [vmem:[#allocation4 + $0x1e8] sm:$0xff] }
 0x485   :  { %1454 = vmatpush2.msra.mxu0 %v6143_v21  ;;  %9345 = vst [vmem:[#allocation129_spill] sm:$0xff] %v6158_v51  ;;  %v6161_v21 = vld [vmem:[#allocation4 + $0x1e0] sm:$0xff] }
 0x486   :  { %1455 = vmatprep.subr.mxu0 %v6146_v23  ;;  %9346 = vst [vmem:[#allocation131_spill] sm:$0xff] %v6161_v21  ;;  %v6164_v23 = vld [vmem:[#allocation4 + $0x1d0] sm:$0xff] }
 0x487   :  { %1456 = vmatpush2.msra.mxu0 %v6149_v39  ;;  %9347 = vst [vmem:[#allocation133_spill] sm:$0xff] %v6164_v23  ;;  %v6167_v39 = vld [vmem:[#allocation4 + $0x1c8] sm:$0xff] }
 0x488   :  { %1457 = vmatprep.subr.mxu0 %v6152_v32  ;;  %9348 = vst [vmem:[#allocation135_spill] sm:$0xff] %v6167_v39  ;;  %v6170_v32 = vld [vmem:[#allocation4 + $0x1b8] sm:$0xff] }
 0x489   :  { %1458 = vmatpush2.msra.mxu0 %v6155_v41  ;;  %9349 = vst [vmem:[#allocation137_spill] sm:$0xff] %v6170_v32  ;;  %v6173_v41 = vld [vmem:[#allocation4 + $0x1b0] sm:$0xff] }
 0x48a   :  { %1459 = vmatprep.subr.mxu0 %v6158_v51  ;;  %9350 = vst [vmem:[#allocation140_spill] sm:$0xff] %v6173_v41  ;;  %v6176_v51 = vld [vmem:[#allocation4 + $0x1a0] sm:$0xff] }
 0x48b   :  { %1460 = vmatpush2.msra.mxu0 %v6161_v21  ;;  %9351 = vst [vmem:[#allocation155_spill] sm:$0xff] %v6176_v51  ;;  %v6179_v21 = vld [vmem:[#allocation4 + $0x198] sm:$0xff] }
 0x48c   :  { %1461 = vmatprep.subr.mxu0 %v6164_v23  ;;  %9352 = vst [vmem:[#allocation141_spill] sm:$0xff] %v6179_v21  ;;  %v6182_v23 = vld [vmem:[#allocation4 + $0x188] sm:$0xff] }
 0x48d   :  { %1462 = vmatpush2.msra.mxu0 %v6167_v39  ;;  %9353 = vst [vmem:[#allocation154_spill] sm:$0xff] %v6182_v23  ;;  %v6185_v39 = vld [vmem:[#allocation4 + $0x180] sm:$0xff] }
 0x48e   :  { %1463 = vmatprep.subr.mxu0 %v6170_v32  ;;  %9354 = vst [vmem:[#allocation162_spill] sm:$0xff] %v6185_v39  ;;  %v9355_v32 = vld [vmem:[#allocation26_spill] sm:$0xff] }
 0x48f   :  { %1464 = vmatpush2.msra.mxu0 %v6173_v41 }
 0x490   :  { %1465 = vmatprep.subr.mxu0 %v6176_v51 }
 0x491   :  { %1466 = vmatpush2.msra.mxu0 %v6179_v21 }
 0x492   :  { %1467 = vmatprep.subr.mxu0 %v6182_v23 }
 0x493   :  { %1468 = vmatpush2.msra.mxu0 %v6185_v39 }
 0x494   :  { %1636 = vmatprep.subr.mxu0 %v9355_v32 }
 0x513   :  { %v1309_v48 = vpop.f32.mrf.mxu0  ;;  %v1380_v39 = vpop.f32.mrf.mxu1 }
 0x514   :  { %v1310_v41 = vadd.f32 %v1309_v48, %v5194_v26  ;;  %v1381_v32 = vadd.f32 %v1380_v39, %v5221_v3  ;;  %v9358_v48 = vld [vmem:[#allocation157_spill] sm:$0xff]  ;;  %v6213_v39 = vld [vmem:[#allocation2 + $0x1c0] sm:$0xff] }
 0x515   :  { %v1311_v44 = vpop.f32.mrf.mxu0 }
 0x516   :  { %v1385_v2 = vadd.f32 %v1310_v41, %v9356_v27  ;;  %v1312_v21 = vadd.f32 %v1311_v44, %v9206_v59  ;;  %v308_v27 = vadd.f32 %v9358_v48, %v5224_v43  ;;  %v6222_v48 = vld [vmem:[#allocation2 + $0x1b8] sm:$0xff] }
 0x518   :  { %v3213_v51 = vmul.f32 -1.442695, %v1385_v2  ;;  %v1392_v6 = vadd.f32 %v1312_v21, %v9357_v37 }
 0x51a   :  { %3588 = vpow2.f32 %v3213_v51  ;;  %v3214_v60 = vmul.f32 -1.442695, %v1392_v6 }
 0x51c   :  { %3590 = vpow2.f32 %v3214_v60 }
 0x527   :  { %v3589_v23 = vpop.eup %3588 }
 0x528   :  { %v1389_v11 = vadd.f32 1.0, %v3589_v23  ;;  %v6216_v23 = vld [vmem:[#allocation2 + $0x1d0] sm:$0xff] }
 0x529   :  { %v3591_v1 = vpop.eup %3590 }
 0x52a   :  { %3592 = vrcp.f32 %v1389_v11  ;;  %v1396_v51 = vadd.f32 1.0, %v3591_v1  ;;  %v6201_v11 = vld [vmem:[#allocation2 + $0x1e0] sm:$0xff]  ;;  %v6207_v1 = vld [vmem:[#allocation2 + $0x1c8] sm:$0xff] }
 0x537   :  { %v3593_v0 = vpop.eup %3592 }
 0x538   :  { %v1399_v2 = vmul.f32 %v3593_v0, %v1381_v32  ;;  %v6204_v0 = vld [vmem:[#allocation2 + $0x1f0] sm:$0xff]  ;;  %v6219_v32 = vld [vmem:[#allocation2 + $0x1a8] sm:$0xff] }
 0x53a   :  { %v1400_v41 = vadd.f32 %v1399_v2, %v308_v27  ;;  %v6225_v27 = vld [vmem:[#allocation2 + $0x1a0] sm:$0xff]  ;;  %v6228_v2 = vld [vmem:[#allocation2 + $0x1b0] sm:$0xff] }
 0x53c   :  { %3594 = vtanh.f32 %v1400_v41  ;;  %v6231_v41 = vld [vmem:[#allocation2 + $0x188] sm:$0xff] }
 0x53d   :  { %3596 = vrcp.f32 %v1396_v51  ;;  %9359 = vst [vmem:[#allocation163_spill] sm:$0xff] %v6231_v41  ;;  %v6234_v51 = vld [vmem:[#allocation2 + $0x198] sm:$0xff] }
 0x53e   :  { %9360 = vst [vmem:[#allocation164_spill] sm:$0xff] %v6234_v51 }
 0x549   :  { %v3595_v44 = vpop.eup %3594 }
 0x54a   :  { %v1402_v6 = vsub.f32 %v5598_v13, %v3595_v44  ;;  %v3597_v37 = vpop.eup %3596  ;;  %v6210_v13 = vld [vmem:[#allocation2 + $0x1d8] sm:$0xff] }
 0x54c   :  { %v1403_v21 = vmul.f32 %v3597_v37, %v1402_v6  ;;  %v6240_v6 = vld [vmem:[#allocation2 + $0x190] sm:$0xff]  ;;  %v6243_v37 = vld [vmem:[#allocation2 + $0x168] sm:$0xff] }
 0x54d   :  { %9362 = vst [vmem:[#allocation166_spill] sm:$0xff] %v6240_v6  ;;  %9363 = vst [vmem:[#allocation167_spill] sm:$0xff] %v6243_v37 }
 0x54e   :  { %v6197_v60 = vadd.f32 %v3595_v44, %v1403_v21  ;;  %v6237_v44 = vld [vmem:[#allocation2 + $0x180] sm:$0xff]  ;;  %v6246_v21 = vld [vmem:[#allocation2 + $0x178] sm:$0xff] }
 0x54f   :  { %9361 = vst [vmem:[#allocation165_spill] sm:$0xff] %v6237_v44  ;;  %9364 = vst [vmem:[#allocation168_spill] sm:$0xff] %v6246_v21 }
 0x550   :  { %1470 = vmatmul.mubr.f32.vlgmr.msra.gmra.mxu0 %v6197_v60  ;;  %1541 = vmatmul.mubr.f32.vlgmr.msra.gmra.mxu1 %v6197_v60 }
 0x551   :  { %1566 = vmatpush1.msra.mxu1 %v6201_v11  ;;  %1637 = vmatpush1.msra.mxu0 %v6204_v0 }
 0x552   :  { %1567 = vmatprep.subr.mxu1 %v6207_v1  ;;  %1638 = vmatprep.subr.mxu0 %v6210_v13 }
 0x553   :  { %1568 = vmatpush1.msra.mxu1 %v6213_v39  ;;  %1639 = vmatpush1.msra.mxu0 %v6216_v23 }
 0x554   :  { %1569 = vmatprep.subr.mxu1 %v6219_v32  ;;  %1640 = vmatprep.subr.mxu0 %v6222_v48 }
 0x555   :  { %1570 = vmatpush1.msra.mxu1 %v6225_v27  ;;  %1641 = vmatpush1.msra.mxu0 %v6228_v2 }
 0x556   :  { %1571 = vmatprep.subr.mxu1 %v6231_v41  ;;  %1642 = vmatprep.subr.mxu0 %v6234_v51  ;;  %v6249_v41 = vld [vmem:[#allocation2 + $0x160] sm:$0xff]  ;;  %v6252_v51 = vld [vmem:[#allocation2 + $0x170] sm:$0xff] }
 0x557   :  { %1572 = vmatpush1.msra.mxu1 %v6237_v44  ;;  %1643 = vmatpush1.msra.mxu0 %v6240_v6  ;;  %9365 = vst [vmem:[#allocation169_spill] sm:$0xff] %v6252_v51  ;;  %v6255_v44 = vld [vmem:[#allocation2 + $0x148] sm:$0xff]  ;;  %v6258_v6 = vld [vmem:[#allocation2 + $0x158] sm:$0xff] }
 0x558   :  { %1573 = vmatprep.subr.mxu1 %v6243_v37  ;;  %1644 = vmatprep.subr.mxu0 %v6246_v21  ;;  %9366 = vst [vmem:[#allocation170_spill] sm:$0xff] %v6255_v44  ;;  %v6261_v37 = vld [vmem:[#allocation2 + $0x140] sm:$0xff]  ;;  %v6265_v21 = vld [vmem:[#allocation2 + $0x128] sm:$0xff] }
 0x559   :  { %1574 = vmatpush1.msra.mxu1 %v6249_v41  ;;  %1645 = vmatpush1.msra.mxu0 %v6252_v51  ;;  %9367 = vst [vmem:[#allocation171_spill] sm:$0xff] %v6261_v37  ;;  %v6269_v51 = vld [vmem:[#allocation2 + $0x120] sm:$0xff] }
 0x55a   :  { %1575 = vmatprep.subr.mxu1 %v6255_v44  ;;  %1646 = vmatprep.subr.mxu0 %v6258_v6  ;;  %v6273_v44 = vld [vmem:[#allocation2 + $0x108] sm:$0xff] }
 0x55b   :  { %1576 = vmatpush1.msra.mxu1 %v6261_v37  ;;  %1647 = vmatpush1.msra.mxu0 %v5623_v15  ;;  %v6277_v37 = vld [vmem:[#allocation2 + $0x100] sm:$0xff]  ;;  %v6281_v15 = vld [vmem:[#allocation2 + $0xe8] sm:$0xff] }
 0x55c   :  { %1577 = vmatprep.subr.mxu1 %v6265_v21  ;;  %1648 = vmatprep.subr.mxu0 %v5627_v49  ;;  %v6285_v49 = vld [vmem:[#allocation2 + $0xe0] sm:$0xff] }
 0x55d   :  { %1578 = vmatpush1.msra.mxu1 %v6269_v51  ;;  %1649 = vmatpush1.msra.mxu0 %v5631_v36  ;;  %v6289_v36 = vld [vmem:[#allocation2 + $0xc8] sm:$0xff] }
 0x55e   :  { %1579 = vmatprep.subr.mxu1 %v6273_v44  ;;  %1650 = vmatprep.subr.mxu0 %v5635_v25  ;;  %v6293_v25 = vld [vmem:[#allocation2 + $0xc0] sm:$0xff] }
 0x55f   :  { %1580 = vmatpush1.msra.mxu1 %v6277_v37  ;;  %1651 = vmatpush1.msra.mxu0 %v5639_v18  ;;  %v6297_v18 = vld [vmem:[#allocation2 + $0xa8] sm:$0xff] }
 0x560   :  { %1581 = vmatprep.subr.mxu1 %v6281_v15  ;;  %1652 = vmatprep.subr.mxu0 %v5643_v16  ;;  %v6301_v16 = vld [vmem:[#allocation2 + $0xa0] sm:$0xff] }
 0x561   :  { %1582 = vmatpush1.msra.mxu1 %v6285_v49  ;;  %1653 = vmatpush1.msra.mxu0 %v5647_v31  ;;  %v6305_v31 = vld [vmem:[#allocation2 + $0x88] sm:$0xff] }
 0x562   :  { %1583 = vmatprep.subr.mxu1 %v6289_v36  ;;  %1654 = vmatprep.subr.mxu0 %v5651_v29  ;;  %v6309_v29 = vld [vmem:[#allocation2 + $0x80] sm:$0xff] }
 0x563   :  { %1584 = vmatpush1.msra.mxu1 %v6293_v25  ;;  %1655 = vmatpush1.msra.mxu0 %v5655_v54  ;;  %v6313_v54 = vld [vmem:[#allocation2 + $0x68] sm:$0xff] }
 0x564   :  { %1585 = vmatprep.subr.mxu1 %v6297_v18  ;;  %1656 = vmatprep.subr.mxu0 %v5659_v45  ;;  %v6317_v45 = vld [vmem:[#allocation2 + $0x60] sm:$0xff] }
 0x565   :  { %1586 = vmatpush1.msra.mxu1 %v6301_v16  ;;  %1657 = vmatpush1.msra.mxu0 %v5663_v47  ;;  %v6321_v47 = vld [vmem:[#allocation2 + $0x48] sm:$0xff] }
 0x566   :  { %1587 = vmatprep.subr.mxu1 %v6305_v31  ;;  %1658 = vmatprep.subr.mxu0 %v5667_v50  ;;  %v6325_v50 = vld [vmem:[#allocation2 + $0x40] sm:$0xff] }
 0x567   :  { %1588 = vmatpush1.msra.mxu1 %v6309_v29  ;;  %1659 = vmatpush1.msra.mxu0 %v5671_v52  ;;  %v6329_v52 = vld [vmem:[#allocation2 + $0x28] sm:$0xff] }
 0x568   :  { %1589 = vmatprep.subr.mxu1 %v6313_v54  ;;  %1660 = vmatprep.subr.mxu0 %v5675_v56  ;;  %v6333_v56 = vld [vmem:[#allocation2 + $0x20] sm:$0xff] }
 0x569   :  { %1590 = vmatpush1.msra.mxu1 %v6317_v45  ;;  %1661 = vmatpush1.msra.mxu0 %v5679_v58  ;;  %v6337_v58 = vld [vmem:[#allocation2 + $0x8] sm:$0xff] }
 0x56a   :  { %1591 = vmatprep.subr.mxu1 %v6321_v47  ;;  %1662 = vmatprep.subr.mxu0 %v5683_v61  ;;  %v6341_v61 = vld [vmem:[#allocation2] sm:$0xff] }
 0x56b   :  { %1592 = vmatpush1.msra.mxu1 %v6325_v50  ;;  %1663 = vmatpush1.msra.mxu0 %v5687_v63  ;;  %v6345_v63 = vld [vmem:[#allocation2 + $0x3e8] sm:$0xff] }
 0x56c   :  { %1593 = vmatprep.subr.mxu1 %v6329_v52  ;;  %1664 = vmatprep.subr.mxu0 %v5691_v5  ;;  %v6349_v5 = vld [vmem:[#allocation2 + $0x3e0] sm:$0xff] }
 0x56d   :  { %1594 = vmatpush1.msra.mxu1 %v6333_v56  ;;  %1665 = vmatpush1.msra.mxu0 %v5695_v7  ;;  %v6353_v7 = vld [vmem:[#allocation2 + $0x3c8] sm:$0xff] }
 0x56e   :  { %1595 = vmatprep.subr.mxu1 %v6337_v58  ;;  %1666 = vmatprep.subr.mxu0 %v5699_v10  ;;  %v6357_v10 = vld [vmem:[#allocation2 + $0x3c0] sm:$0xff] }
 0x56f   :  { %1596 = vmatpush1.msra.mxu1 %v6341_v61  ;;  %1667 = vmatpush1.msra.mxu0 %v5703_v12  ;;  %v6361_v12 = vld [vmem:[#allocation2 + $0x3a8] sm:$0xff] }
 0x570   :  { %1597 = vmatprep.subr.mxu1 %v6345_v63  ;;  %1668 = vmatprep.subr.mxu0 %v5707_v17  ;;  %v6365_v17 = vld [vmem:[#allocation2 + $0x3a0] sm:$0xff] }
 0x571   :  { %1598 = vmatpush2.msra.mxu1 %v6349_v5  ;;  %1669 = vmatpush2.msra.mxu0 %v5711_v19  ;;  %v6369_v19 = vld [vmem:[#allocation2 + $0x388] sm:$0xff] }
 0x572   :  { %1599 = vmatprep.subr.mxu1 %v6353_v7  ;;  %1670 = vmatprep.subr.mxu0 %v5715_v22  ;;  %v6373_v22 = vld [vmem:[#allocation2 + $0x380] sm:$0xff] }
 0x573   :  { %1600 = vmatpush2.msra.mxu1 %v6357_v10  ;;  %1671 = vmatpush2.msra.mxu0 %v5719_v24  ;;  %9368 = vst [vmem:[#allocation172_spill] sm:$0xff] %v6373_v22  ;;  %v9369_v24 = vld [vmem:[#allocation9_spill] sm:$0xff] }
 0x574   :  { %1601 = vmatprep.subr.mxu1 %v6361_v12  ;;  %1672 = vmatprep.subr.mxu0 %v5723_v28  ;;  %v9370_v28 = vld [vmem:[#allocation27_spill] sm:$0xff] }
 0x575   :  { %1602 = vmatpush2.msra.mxu1 %v6365_v17  ;;  %1673 = vmatpush2.msra.mxu0 %v5727_v30  ;;  %v9371_v30 = vld [vmem:[#allocation10_spill] sm:$0xff] }
 0x576   :  { %1603 = vmatprep.subr.mxu1 %v6369_v19  ;;  %1674 = vmatprep.subr.mxu0 %v5731_v33  ;;  %v9372_v33 = vld [vmem:[#allocation28_spill] sm:$0xff] }
 0x577   :  { %1604 = vmatpush2.msra.mxu1 %v6373_v22  ;;  %1675 = vmatpush2.msra.mxu0 %v5735_v35  ;;  %v9373_v35 = vld [vmem:[#allocation11_spill] sm:$0xff] }
 0x578   :  { %1605 = vmatprep.subr.mxu1 %v5738_v38  ;;  %1676 = vmatprep.subr.mxu0 %v5741_v40  ;;  %v9374_v38 = vld [vmem:[#allocation29_spill] sm:$0xff]  ;;  %v9375_v40 = vld [vmem:[#allocation12_spill] sm:$0xff] }
 0x579   :  { %1606 = vmatpush2.msra.mxu1 %v5744_v20  ;;  %1677 = vmatpush2.msra.mxu0 %v5747_v42  ;;  %v9376_v20 = vld [vmem:[#allocation30_spill] sm:$0xff]  ;;  %v9377_v42 = vld [vmem:[#allocation13_spill] sm:$0xff] }
 0x57a   :  { %1607 = vmatprep.subr.mxu1 %v5750_v46  ;;  %1678 = vmatprep.subr.mxu0 %v5753_v34  ;;  %v9378_v46 = vld [vmem:[#allocation31_spill] sm:$0xff]  ;;  %v9379_v34 = vld [vmem:[#allocation14_spill] sm:$0xff] }
 0x57b   :  { %1608 = vmatpush2.msra.mxu1 %v5756_v55  ;;  %1679 = vmatpush2.msra.mxu0 %v5759_v57  ;;  %v9380_v55 = vld [vmem:[#allocation32_spill] sm:$0xff]  ;;  %v9381_v57 = vld [vmem:[#allocation15_spill] sm:$0xff] }
 0x57c   :  { %1609 = vmatprep.subr.mxu1 %v5762_v4  ;;  %1680 = vmatprep.subr.mxu0 %v5765_v62  ;;  %v9382_v4 = vld [vmem:[#allocation33_spill] sm:$0xff]  ;;  %v9383_v62 = vld [vmem:[#allocation16_spill] sm:$0xff] }
 0x57d   :  { %1610 = vmatpush2.msra.mxu1 %v9369_v24  ;;  %1681 = vmatpush2.msra.mxu0 %v9370_v28  ;;  %v9384_v24 = vld [vmem:[#allocation34_spill] sm:$0xff]  ;;  %v9385_v28 = vld [vmem:[#allocation17_spill] sm:$0xff] }
 0x57e   :  { %1611 = vmatprep.subr.mxu1 %v9371_v30  ;;  %1682 = vmatprep.subr.mxu0 %v9372_v33  ;;  %v9386_v30 = vld [vmem:[#allocation35_spill] sm:$0xff]  ;;  %v9387_v33 = vld [vmem:[#allocation18_spill] sm:$0xff] }
 0x57f   :  { %1612 = vmatpush2.msra.mxu1 %v9373_v35  ;;  %1683 = vmatpush2.msra.mxu0 %v9374_v38  ;;  %v9388_v35 = vld [vmem:[#allocation36_spill] sm:$0xff]  ;;  %v9389_v38 = vld [vmem:[#allocation19_spill] sm:$0xff] }
 0x580   :  { %1613 = vmatprep.subr.mxu1 %v9375_v40  ;;  %1684 = vmatprep.subr.mxu0 %v9376_v20  ;;  %v9390_v40 = vld [vmem:[#allocation37_spill] sm:$0xff]  ;;  %v9391_v20 = vld [vmem:[#allocation20_spill] sm:$0xff] }
 0x581   :  { %1614 = vmatpush2.msra.mxu1 %v9377_v42  ;;  %1685 = vmatpush2.msra.mxu0 %v9378_v46  ;;  %v9392_v42 = vld [vmem:[#allocation38_spill] sm:$0xff]  ;;  %v9393_v46 = vld [vmem:[#allocation21_spill] sm:$0xff] }
 0x582   :  { %1615 = vmatprep.subr.mxu1 %v9379_v34  ;;  %1686 = vmatprep.subr.mxu0 %v9380_v55  ;;  %v9394_v34 = vld [vmem:[#allocation39_spill] sm:$0xff]  ;;  %v9395_v55 = vld [vmem:[#allocation22_spill] sm:$0xff] }
 0x583   :  { %1616 = vmatpush2.msra.mxu1 %v9381_v57  ;;  %1687 = vmatpush2.msra.mxu0 %v9382_v4  ;;  %v9396_v57 = vld [vmem:[#allocation40_spill] sm:$0xff]  ;;  %v9397_v4 = vld [vmem:[#allocation23_spill] sm:$0xff] }
 0x584   :  { %1617 = vmatprep.subr.mxu1 %v9383_v62  ;;  %1688 = vmatprep.subr.mxu0 %v9384_v24  ;;  %v9398_v62 = vld [vmem:[#allocation41_spill] sm:$0xff]  ;;  %v9399_v24 = vld [vmem:[#allocation24_spill] sm:$0xff] }
 0x585   :  { %1618 = vmatpush2.msra.mxu1 %v9385_v28  ;;  %1689 = vmatpush2.msra.mxu0 %v9386_v30  ;;  %v9400_v28 = vld [vmem:[#allocation42_spill] sm:$0xff]  ;;  %v9401_v30 = vld [vmem:[#allocation43_spill] sm:$0xff] }
 0x586   :  { %1619 = vmatprep.subr.mxu1 %v9387_v33  ;;  %1690 = vmatprep.subr.mxu0 %v9388_v35  ;;  %v9402_v33 = vld [vmem:[#allocation76_spill] sm:$0xff]  ;;  %v9403_v35 = vld [vmem:[#allocation139_spill] sm:$0xff] }
 0x587   :  { %1620 = vmatpush2.msra.mxu1 %v9389_v38  ;;  %1691 = vmatpush2.msra.mxu0 %v9390_v40  ;;  %v9404_v38 = vld [vmem:[#allocation44_spill] sm:$0xff]  ;;  %v9405_v40 = vld [vmem:[#allocation78_spill] sm:$0xff] }
 0x588   :  { %1621 = vmatprep.subr.mxu1 %v9391_v20  ;;  %1692 = vmatprep.subr.mxu0 %v9392_v42  ;;  %v9406_v20 = vld [vmem:[#allocation45_spill] sm:$0xff]  ;;  %v9407_v42 = vld [vmem:[#allocation79_spill] sm:$0xff] }
 0x589   :  { %1622 = vmatpush2.msra.mxu1 %v9393_v46  ;;  %1693 = vmatpush2.msra.mxu0 %v9394_v34  ;;  %v9408_v46 = vld [vmem:[#allocation46_spill] sm:$0xff] }
 0x58a   :  { %1623 = vmatprep.subr.mxu1 %v9395_v55  ;;  %1694 = vmatprep.subr.mxu0 %v9396_v57  ;;  %v9409_v55 = vld [vmem:[#allocation25_spill] sm:$0xff] }
 0x58b   :  { %1624 = vmatpush2.msra.mxu1 %v9397_v4  ;;  %1695 = vmatpush2.msra.mxu0 %v9398_v62 }
 0x58c   :  { %1625 = vmatprep.subr.mxu1 %v9399_v24  ;;  %1696 = vmatprep.subr.mxu0 %v9400_v28 }
 0x58d   :  { %1626 = vmatpush2.msra.mxu1 %v9401_v30  ;;  %1697 = vmatpush2.msra.mxu0 %v9402_v33 }
 0x58e   :  { %1627 = vmatprep.subr.mxu1 %v9403_v35  ;;  %1698 = vmatprep.subr.mxu0 %v9404_v38  ;;  %v1382_v35 = vpop.f32.mrf.mxu1 }
 0x58f   :  { %1628 = vmatpush2.msra.mxu1 %v9405_v40  ;;  %1699 = vmatpush2.msra.mxu0 %v9406_v20 }
 0x590   :  { %1727 = vmatprep.subr.mxu1 %v9407_v42  ;;  %3351 = vmatprep.subr.mxu0 %v9408_v46  ;;  %v1383_v46 = vadd.f32 %v1382_v35, %v5471_v8  ;;  %v9413_v35 = vld [vmem:[#allocation48_spill] sm:$0xff] }
 0x610   :  { %v1471_v34 = vpop.f32.mrf.mxu0  ;;  %v3348_v38 = vpop.f32.mrf.mxu1 }
 0x611   :  { %v1472_v57 = vadd.f32 %v1471_v34, %v9409_v55 }
 0x612   :  { %v1473_v62 = vpop.f32.mrf.mxu0  ;;  %v3349_v40 = vpop.f32.mrf.mxu1 }
 0x613   :  { %v3215_v4 = vmul.f32 -1.442695, %v1472_v57  ;;  %v1474_v24 = vadd.f32 %v1473_v62, %v5466_v53  ;;  %v3350_v20 = vadd.f32 %v3349_v40, %v3348_v38  ;;  %v9414_v38 = vld [vmem:[#allocation86_spill] sm:$0xff]  ;;  %v9415_v40 = vld [vmem:[#allocation49_spill] sm:$0xff] }
 0x615   :  { %3598 = vpow2.f32 %v3215_v4  ;;  %v3216_v28 = vmul.f32 -1.442695, %v1474_v24  ;;  %v1543_v34 = vadd.f32 %v3350_v20, %v5474_v9  ;;  %v9416_v20 = vld [vmem:[#allocation88_spill] sm:$0xff] }
 0x617   :  { %3600 = vpow2.f32 %v3216_v28 }
 0x622   :  { %v3599_v30 = vpop.eup %3598 }
 0x623   :  { %v1549_v33 = vadd.f32 1.0, %v3599_v30 }
 0x624   :  { %v3601_v42 = vpop.eup %3600 }
 0x625   :  { %3602 = vrcp.f32 %v1549_v33  ;;  %v1555_v4 = vadd.f32 1.0, %v3601_v42  ;;  %v9417_v42 = vld [vmem:[#allocation50_spill] sm:$0xff] }
 0x632   :  { %v3603_v22 = vpop.eup %3602 }
 0x633   :  { %v1558_v57 = vmul.f32 %v3603_v22, %v1383_v46  ;;  %v9411_v22 = vld [vmem:[#allocation47_spill] sm:$0xff]  ;;  %v9418_v46 = vld [vmem:[#allocation90_spill] sm:$0xff] }
 0x635   :  { %v1559_v55 = vadd.f32 %v1558_v57, %v1543_v34  ;;  %v9419_v34 = vld [vmem:[#allocation51_spill] sm:$0xff]  ;;  %v9420_v57 = vld [vmem:[#allocation92_spill] sm:$0xff] }
 0x637   :  { %3604 = vtanh.f32 %v1559_v55  ;;  %v9412_v55 = vld [vmem:[#allocation84_spill] sm:$0xff] }
 0x638   :  { %3606 = vrcp.f32 %v1555_v4  ;;  %v9421_v4 = vld [vmem:[#allocation52_spill] sm:$0xff] }
 0x644   :  { %v3605_v62 = vpop.eup %3604 }
 0x645   :  { %v1561_v24 = vsub.f32 %v5893_v14, %v3605_v62  ;;  %v3607_v28 = vpop.eup %3606  ;;  %v9410_v14 = vld [vmem:[#allocation82_spill] sm:$0xff] }
 0x647   :  { %v1562_v30 = vmul.f32 %v3607_v28, %v1561_v24  ;;  %v9423_v24 = vld [vmem:[#allocation53_spill] sm:$0xff]  ;;  %v9424_v28 = vld [vmem:[#allocation96_spill] sm:$0xff] }
 0x649   :  { %v6432_v33 = vadd.f32 %v3605_v62, %v1562_v30  ;;  %v9422_v62 = vld [vmem:[#allocation94_spill] sm:$0xff] }
 0x64a   :  { %v9425_v30 = vld [vmem:[#allocation54_spill] sm:$0xff] }
 0x64b   :  { %1564 = vst [vmem:[%s8325_s7 + $0x10] sm:$0xff] %v6432_v33  ;;  %1629 = vmatprep.mubr.f32.mxu1 %v6432_v33  ;;  %1700 = vmatprep.mubr.f32.mxu0 %v6432_v33 }
 0x64c   :  { %1630 = vmatmul.mubr.f32.vlgmr.msra.gmra.mxu1 %v6197_v60  ;;  %1701 = vmatmul.mubr.f32.vlgmr.msra.gmra.mxu0 %v6197_v60 }
 0x64d   :  { %1791 = vmatprep.mubr.f32.mxu1 %v6432_v33  ;;  %1862 = vmatprep.mubr.f32.mxu0 %v6432_v33 }
 0x64e   :  { %1728 = vmatpush1.msra.mxu1 %v9410_v14  ;;  %3352 = vmatpush3.msra.mxu0 %v9411_v22  ;;  %v9426_v14 = vld [vmem:[#allocation98_spill] sm:$0xff]  ;;  %v9427_v22 = vld [vmem:[#allocation55_spill] sm:$0xff] }
 0x64f   :  { %1729 = vmatprep.subr.mxu1 %v9412_v55  ;;  %3353 = vmatprep.subr.mxu0 %v9413_v35  ;;  %v9428_v55 = vld [vmem:[#allocation100_spill] sm:$0xff] }
 0x650   :  { %1730 = vmatpush1.msra.mxu1 %v9414_v38  ;;  %3354 = vmatpush3.msra.mxu0 %v9415_v40  ;;  %v9429_v35 = vld [vmem:[#allocation56_spill] sm:$0xff]  ;;  %v9430_v38 = vld [vmem:[#allocation102_spill] sm:$0xff]  ;;  %v9431_v40 = vld [vmem:[#allocation57_spill] sm:$0xff] }
 0x651   :  { %1731 = vmatprep.subr.mxu1 %v9416_v20  ;;  %3355 = vmatprep.subr.mxu0 %v9417_v42  ;;  %v9432_v20 = vld [vmem:[#allocation104_spill] sm:$0xff]  ;;  %v9433_v42 = vld [vmem:[#allocation58_spill] sm:$0xff] }
 0x652   :  { %1732 = vmatpush1.msra.mxu1 %v9418_v46  ;;  %3356 = vmatpush3.msra.mxu0 %v9419_v34  ;;  %v9434_v46 = vld [vmem:[#allocation106_spill] sm:$0xff]  ;;  %v9435_v34 = vld [vmem:[#allocation59_spill] sm:$0xff] }
 0x653   :  { %1733 = vmatprep.subr.mxu1 %v9420_v57  ;;  %3357 = vmatprep.subr.mxu0 %v9421_v4  ;;  %v9436_v57 = vld [vmem:[#allocation108_spill] sm:$0xff] }
 0x654   :  { %1734 = vmatpush1.msra.mxu1 %v9422_v62  ;;  %3358 = vmatpush3.msra.mxu0 %v9423_v24  ;;  %v9437_v4 = vld [vmem:[#allocation60_spill] sm:$0xff]  ;;  %v9438_v62 = vld [vmem:[#allocation110_spill] sm:$0xff]  ;;  %v9439_v24 = vld [vmem:[#allocation61_spill] sm:$0xff] }
 0x655   :  { %1735 = vmatprep.subr.mxu1 %v9424_v28  ;;  %3359 = vmatprep.subr.mxu0 %v9425_v30  ;;  %v9440_v28 = vld [vmem:[#allocation112_spill] sm:$0xff]  ;;  %v9441_v30 = vld [vmem:[#allocation62_spill] sm:$0xff] }
 0x656   :  { %1736 = vmatpush1.msra.mxu1 %v9426_v14  ;;  %3360 = vmatpush3.msra.mxu0 %v9427_v22  ;;  %v9442_v14 = vld [vmem:[#allocation114_spill] sm:$0xff]  ;;  %v9443_v22 = vld [vmem:[#allocation63_spill] sm:$0xff] }
 0x657   :  { %1737 = vmatprep.subr.mxu1 %v9428_v55  ;;  %3361 = vmatprep.subr.mxu0 %v9429_v35  ;;  %v9444_v55 = vld [vmem:[#allocation116_spill] sm:$0xff] }
 0x658   :  { %1738 = vmatpush1.msra.mxu1 %v9430_v38  ;;  %3362 = vmatpush3.msra.mxu0 %v9431_v40  ;;  %v9445_v35 = vld [vmem:[#allocation64_spill] sm:$0xff]  ;;  %v9446_v38 = vld [vmem:[#allocation118_spill] sm:$0xff]  ;;  %v9447_v40 = vld [vmem:[#allocation65_spill] sm:$0xff] }
 0x659   :  { %1739 = vmatprep.subr.mxu1 %v9432_v20  ;;  %3363 = vmatprep.subr.mxu0 %v9433_v42  ;;  %v9448_v20 = vld [vmem:[#allocation120_spill] sm:$0xff]  ;;  %v9449_v42 = vld [vmem:[#allocation66_spill] sm:$0xff] }
 0x65a   :  { %1740 = vmatpush1.msra.mxu1 %v9434_v46  ;;  %3364 = vmatpush3.msra.mxu0 %v9435_v34  ;;  %v9450_v46 = vld [vmem:[#allocation122_spill] sm:$0xff]  ;;  %v9451_v34 = vld [vmem:[#allocation67_spill] sm:$0xff] }
 0x65b   :  { %1741 = vmatprep.subr.mxu1 %v9436_v57  ;;  %3365 = vmatprep.subr.mxu0 %v9437_v4  ;;  %v9452_v57 = vld [vmem:[#allocation124_spill] sm:$0xff] }
 0x65c   :  { %1742 = vmatpush1.msra.mxu1 %v9438_v62  ;;  %3366 = vmatpush3.msra.mxu0 %v9439_v24  ;;  %v9453_v4 = vld [vmem:[#allocation68_spill] sm:$0xff]  ;;  %v9454_v62 = vld [vmem:[#allocation126_spill] sm:$0xff]  ;;  %v9455_v24 = vld [vmem:[#allocation69_spill] sm:$0xff] }
 0x65d   :  { %1743 = vmatprep.subr.mxu1 %v9440_v28  ;;  %3367 = vmatprep.subr.mxu0 %v9441_v30  ;;  %v9456_v28 = vld [vmem:[#allocation128_spill] sm:$0xff]  ;;  %v9457_v30 = vld [vmem:[#allocation70_spill] sm:$0xff] }
 0x65e   :  { %1744 = vmatpush1.msra.mxu1 %v9442_v14  ;;  %3368 = vmatpush3.msra.mxu0 %v9443_v22  ;;  %v9458_v14 = vld [vmem:[#allocation130_spill] sm:$0xff]  ;;  %v9459_v22 = vld [vmem:[#allocation71_spill] sm:$0xff] }
 0x65f   :  { %1745 = vmatprep.subr.mxu1 %v9444_v55  ;;  %3369 = vmatprep.subr.mxu0 %v9445_v35  ;;  %v9460_v55 = vld [vmem:[#allocation132_spill] sm:$0xff] }
 0x660   :  { %1746 = vmatpush1.msra.mxu1 %v9446_v38  ;;  %3370 = vmatpush3.msra.mxu0 %v9447_v40  ;;  %v9461_v35 = vld [vmem:[#allocation72_spill] sm:$0xff]  ;;  %v9462_v38 = vld [vmem:[#allocation134_spill] sm:$0xff]  ;;  %v9463_v40 = vld [vmem:[#allocation73_spill] sm:$0xff] }
 0x661   :  { %1747 = vmatprep.subr.mxu1 %v9448_v20  ;;  %3371 = vmatprep.subr.mxu0 %v9449_v42  ;;  %v9464_v20 = vld [vmem:[#allocation136_spill] sm:$0xff]  ;;  %v9465_v42 = vld [vmem:[#allocation74_spill] sm:$0xff] }
 0x662   :  { %1748 = vmatpush1.msra.mxu1 %v9450_v46  ;;  %3372 = vmatpush3.msra.mxu0 %v9451_v34  ;;  %v9466_v46 = vld [vmem:[#allocation138_spill] sm:$0xff]  ;;  %v9467_v34 = vld [vmem:[#allocation75_spill] sm:$0xff] }
 0x663   :  { %1749 = vmatprep.subr.mxu1 %v9452_v57  ;;  %3373 = vmatprep.subr.mxu0 %v9453_v4  ;;  %v9468_v57 = vld [vmem:[#allocation77_spill] sm:$0xff]  ;;  %v9469_v4 = vld [vmem:[#allocation80_spill] sm:$0xff] }
 0x664   :  { %1750 = vmatpush1.msra.mxu1 %v9454_v62  ;;  %3374 = vmatpush3.msra.mxu0 %v9455_v24  ;;  %v9470_v62 = vld [vmem:[#allocation81_spill] sm:$0xff]  ;;  %v9471_v24 = vld [vmem:[#allocation83_spill] sm:$0xff] }
 0x665   :  { %1751 = vmatprep.subr.mxu1 %v9456_v28  ;;  %3375 = vmatprep.subr.mxu0 %v9457_v30  ;;  %v9472_v28 = vld [vmem:[#allocation85_spill] sm:$0xff] }
 0x666   :  { %1752 = vmatpush1.msra.mxu1 %v9458_v14  ;;  %3376 = vmatpush3.msra.mxu0 %v9459_v22  ;;  %v6507_v30 = vld [vmem:[#allocation2 + $0x1e8] sm:$0xff]  ;;  %v9474_v14 = vld [vmem:[#allocation87_spill] sm:$0xff] }
 0x667   :  { %1753 = vmatprep.subr.mxu1 %v9460_v55  ;;  %3377 = vmatprep.subr.mxu0 %v9461_v35  ;;  %9473 = vst [vmem:[#allocation8_spill] sm:$0xff] %v6507_v30  ;;  %v9475_v22 = vld [vmem:[#allocation89_spill] sm:$0xff]  ;;  %v9476_v55 = vld [vmem:[#allocation91_spill] sm:$0xff] }
 0x668   :  { %1754 = vmatpush1.msra.mxu1 %v9462_v38  ;;  %3378 = vmatpush3.msra.mxu0 %v9463_v40  ;;  %v9477_v35 = vld [vmem:[#allocation93_spill] sm:$0xff]  ;;  %v9478_v38 = vld [vmem:[#allocation95_spill] sm:$0xff] }
 0x669   :  { %1755 = vmatprep.subr.mxu1 %v9464_v20  ;;  %3379 = vmatprep.subr.mxu0 %v9465_v42  ;;  %v9479_v40 = vld [vmem:[#allocation97_spill] sm:$0xff]  ;;  %v9480_v20 = vld [vmem:[#allocation99_spill] sm:$0xff] }
 0x66a   :  { %1756 = vmatpush1.msra.mxu1 %v9466_v46  ;;  %3380 = vmatpush3.msra.mxu0 %v9467_v34  ;;  %v9481_v42 = vld [vmem:[#allocation101_spill] sm:$0xff]  ;;  %v9482_v46 = vld [vmem:[#allocation103_spill] sm:$0xff] }
 0x66b   :  { %1757 = vmatprep.subr.mxu1 %v9468_v57  ;;  %3381 = vmatprep.subr.mxu0 %v9469_v4  ;;  %v9483_v34 = vld [vmem:[#allocation105_spill] sm:$0xff]  ;;  %v9484_v57 = vld [vmem:[#allocation107_spill] sm:$0xff] }
 0x66c   :  { %1758 = vmatpush1.msra.mxu1 %v9470_v62  ;;  %3382 = vmatpush3.msra.mxu0 %v9471_v24  ;;  %v9485_v4 = vld [vmem:[#allocation109_spill] sm:$0xff]  ;;  %v9486_v62 = vld [vmem:[#allocation111_spill] sm:$0xff] }
 0x66d   :  { %1759 = vmatprep.subr.mxu1 %v9472_v28  ;;  %1887 = vmatprep.subr.mxu0 %v6507_v30  ;;  %v9487_v24 = vld [vmem:[#allocation113_spill] sm:$0xff]  ;;  %v9488_v28 = vld [vmem:[#allocation115_spill] sm:$0xff] }
 0x66e   :  { %1760 = vmatpush2.msra.mxu1 %v9474_v14  ;;  %v9489_v14 = vld [vmem:[#allocation117_spill] sm:$0xff] }
 0x66f   :  { %1761 = vmatprep.subr.mxu1 %v9475_v22  ;;  %v9490_v22 = vld [vmem:[#allocation119_spill] sm:$0xff] }
 0x670   :  { %1762 = vmatpush2.msra.mxu1 %v9476_v55  ;;  %v9491_v55 = vld [vmem:[#allocation121_spill] sm:$0xff] }
 0x671   :  { %1763 = vmatprep.subr.mxu1 %v9477_v35  ;;  %v9492_v35 = vld [vmem:[#allocation123_spill] sm:$0xff] }
 0x672   :  { %1764 = vmatpush2.msra.mxu1 %v9478_v38  ;;  %v9493_v38 = vld [vmem:[#allocation125_spill] sm:$0xff] }
 0x673   :  { %1765 = vmatprep.subr.mxu1 %v9479_v40  ;;  %v9494_v40 = vld [vmem:[#allocation127_spill] sm:$0xff] }
 0x674   :  { %1766 = vmatpush2.msra.mxu1 %v9480_v20  ;;  %v9495_v20 = vld [vmem:[#allocation129_spill] sm:$0xff] }
 0x675   :  { %1767 = vmatprep.subr.mxu1 %v9481_v42  ;;  %v9496_v42 = vld [vmem:[#allocation131_spill] sm:$0xff] }
 0x676   :  { %1768 = vmatpush2.msra.mxu1 %v9482_v46  ;;  %v9497_v46 = vld [vmem:[#allocation133_spill] sm:$0xff] }
 0x677   :  { %1769 = vmatprep.subr.mxu1 %v9483_v34  ;;  %v9498_v34 = vld [vmem:[#allocation135_spill] sm:$0xff] }
 0x678   :  { %1770 = vmatpush2.msra.mxu1 %v9484_v57  ;;  %v9499_v57 = vld [vmem:[#allocation137_spill] sm:$0xff] }
 0x679   :  { %1771 = vmatprep.subr.mxu1 %v9485_v4  ;;  %v9500_v4 = vld [vmem:[#allocation140_spill] sm:$0xff] }
 0x67a   :  { %1772 = vmatpush2.msra.mxu1 %v9486_v62  ;;  %v9501_v62 = vld [vmem:[#allocation155_spill] sm:$0xff] }
 0x67b   :  { %1773 = vmatprep.subr.mxu1 %v9487_v24  ;;  %v9502_v24 = vld [vmem:[#allocation141_spill] sm:$0xff] }
 0x67c   :  { %1774 = vmatpush2.msra.mxu1 %v9488_v28  ;;  %v9503_v28 = vld [vmem:[#allocation154_spill] sm:$0xff] }
 0x67d   :  { %1775 = vmatprep.subr.mxu1 %v9489_v14  ;;  %v9504_v14 = vld [vmem:[#allocation162_spill] sm:$0xff] }
 0x67e   :  { %1776 = vmatpush2.msra.mxu1 %v9490_v22  ;;  %v6541_v22 = vld [vmem:[#allocation2 + $0x1f8] sm:$0xff] }
 0x67f   :  { %1777 = vmatprep.subr.mxu1 %v9491_v55  ;;  %9505 = vst [vmem:[#allocation26_spill] sm:$0xff] %v6541_v22 }
 0x680   :  { %1778 = vmatpush2.msra.mxu1 %v9492_v35 }
 0x681   :  { %1779 = vmatprep.subr.mxu1 %v9493_v38  ;;  %v9506_v38 = vld [vmem:[#allocation144_spill] sm:$0xff] }
 0x682   :  { %1780 = vmatpush2.msra.mxu1 %v9494_v40 }
 0x683   :  { %1781 = vmatprep.subr.mxu1 %v9495_v20 }
 0x684   :  { %1782 = vmatpush2.msra.mxu1 %v9496_v42 }
 0x685   :  { %1783 = vmatprep.subr.mxu1 %v9497_v46 }
 0x686   :  { %1784 = vmatpush2.msra.mxu1 %v9498_v34  ;;  %v9507_v34 = vld [vmem:[#allocation145_spill] sm:$0xff] }
 0x687   :  { %1785 = vmatprep.subr.mxu1 %v9499_v57 }
 0x688   :  { %1786 = vmatpush2.msra.mxu1 %v9500_v4 }
 0x689   :  { %1787 = vmatprep.subr.mxu1 %v9501_v62 }
 0x68a   :  { %1788 = vmatpush2.msra.mxu1 %v9502_v24 }
 0x68b   :  { %1789 = vmatprep.subr.mxu1 %v9503_v28 }
 0x68c   :  { %1790 = vmatpush2.msra.mxu1 %v9504_v14 }
 0x68d   :  { %1958 = vmatprep.subr.mxu1 %v6541_v22 }
 0x70c   :  { %v1631_v55 = vpop.f32.mrf.mxu1  ;;  %v1702_v28 = vpop.f32.mrf.mxu0 }
 0x70d   :  { %v1632_v35 = vadd.f32 %v1631_v55, %v5194_v26  ;;  %v1703_v22 = vadd.f32 %v1702_v28, %v5221_v3  ;;  %v9508_v55 = vld [vmem:[#allocation156_spill] sm:$0xff]  ;;  %v6707_v28 = vld [vmem:[#allocation2 + $0x358] sm:$0xff] }
 0x70e   :  { %v1633_v42 = vpop.f32.mrf.mxu1 }
 0x70f   :  { %v1707_v40 = vadd.f32 %v1632_v35, %v9506_v38  ;;  %v1634_v46 = vadd.f32 %v1633_v42, %v9206_v59  ;;  %v313_v35 = vadd.f32 %v9508_v55, %v5224_v43  ;;  %v6713_v55 = vld [vmem:[#allocation2 + $0x350] sm:$0xff] }
 0x711   :  { %v3217_v20 = vmul.f32 -1.442695, %v1707_v40  ;;  %v1714_v57 = vadd.f32 %v1634_v46, %v9507_v34 }
 0x713   :  { %3608 = vpow2.f32 %v3217_v20  ;;  %v3218_v4 = vmul.f32 -1.442695, %v1714_v57 }
 0x715   :  { %3610 = vpow2.f32 %v3218_v4 }
 0x720   :  { %v3609_v62 = vpop.eup %3608 }
 0x721   :  { %v1711_v24 = vadd.f32 1.0, %v3609_v62  ;;  %v6698_v62 = vld [vmem:[#allocation2 + $0x360] sm:$0xff] }
 0x722   :  { %v3611_v14 = vpop.eup %3610 }
 0x723   :  { %3612 = vrcp.f32 %v1711_v24  ;;  %v1718_v20 = vadd.f32 1.0, %v3611_v14  ;;  %v6704_v24 = vld [vmem:[#allocation2 + $0x348] sm:$0xff]  ;;  %v6710_v14 = vld [vmem:[#allocation2 + $0x340] sm:$0xff] }
 0x730   :  { %v3613_v30 = vpop.eup %3612 }
 0x731   :  { %v1721_v38 = vmul.f32 %v3613_v30, %v1703_v22  ;;  %v6593_v30 = vld [vmem:[#allocation2 + $0x110] sm:$0xff] }
 0x732   :  { %v6689_v22 = vld [vmem:[#allocation2 + $0x390] sm:$0xff] }
 0x733   :  { %v1722_v40 = vadd.f32 %v1721_v38, %v313_v35  ;;  %v6716_v35 = vld [vmem:[#allocation2 + $0x328] sm:$0xff]  ;;  %v6719_v38 = vld [vmem:[#allocation2 + $0x338] sm:$0xff] }
 0x735   :  { %3614 = vtanh.f32 %v1722_v40  ;;  %v6722_v40 = vld [vmem:[#allocation2 + $0x320] sm:$0xff] }
 0x736   :  { %3616 = vrcp.f32 %v1718_v20  ;;  %9519 = vst [vmem:[#allocation142_spill] sm:$0xff] %v6722_v40  ;;  %v6725_v20 = vld [vmem:[#allocation2 + $0x330] sm:$0xff] }
 0x737   :  { %9520 = vst [vmem:[#allocation143_spill] sm:$0xff] %v6725_v20 }
 0x742   :  { %v3615_v42 = vpop.eup %3614 }
 0x743   :  { %v1724_v46 = vsub.f32 %v6197_v60, %v3615_v42  ;;  %v3617_v34 = vpop.eup %3616  ;;  %v9509_v60 = vld [vmem:[#allocation163_spill] sm:$0xff] }
 0x745   :  { %v1725_v57 = vmul.f32 %v3617_v34, %v1724_v46  ;;  %v6731_v46 = vld [vmem:[#allocation2 + $0x318] sm:$0xff]  ;;  %v6734_v34 = vld [vmem:[#allocation2 + $0x300] sm:$0xff] }
 0x746   :  { %9522 = vst [vmem:[#allocation9_spill] sm:$0xff] %v6731_v46  ;;  %9523 = vst [vmem:[#allocation27_spill] sm:$0xff] %v6734_v34 }
 0x747   :  { %v6552_v4 = vadd.f32 %v3615_v42, %v1725_v57  ;;  %v6728_v42 = vld [vmem:[#allocation2 + $0x308] sm:$0xff]  ;;  %v6737_v57 = vld [vmem:[#allocation2 + $0x310] sm:$0xff] }
 0x748   :  { %9521 = vst [vmem:[#allocation157_spill] sm:$0xff] %v6728_v42  ;;  %9524 = vst [vmem:[#allocation10_spill] sm:$0xff] %v6737_v57 }
 0x749   :  { %1792 = vmatmul.mubr.f32.vlgmr.msra.gmra.mxu1 %v6552_v4  ;;  %1863 = vmatmul.mubr.f32.vlgmr.msra.gmra.mxu0 %v6552_v4 }
 0x74a   :  { %1888 = vmatpush1.msra.mxu0 %v6201_v11  ;;  %1959 = vmatpush1.msra.mxu1 %v6204_v0  ;;  %v9510_v11 = vld [vmem:[#allocation164_spill] sm:$0xff]  ;;  %v9511_v0 = vld [vmem:[#allocation165_spill] sm:$0xff] }
 0x74b   :  { %1889 = vmatprep.subr.mxu0 %v6207_v1  ;;  %1960 = vmatprep.subr.mxu1 %v6210_v13  ;;  %v9512_v1 = vld [vmem:[#allocation166_spill] sm:$0xff]  ;;  %v9513_v13 = vld [vmem:[#allocation167_spill] sm:$0xff] }
 0x74c   :  { %1890 = vmatpush1.msra.mxu0 %v6213_v39  ;;  %1961 = vmatpush1.msra.mxu1 %v6216_v23  ;;  %v9514_v39 = vld [vmem:[#allocation168_spill] sm:$0xff]  ;;  %v9515_v23 = vld [vmem:[#allocation169_spill] sm:$0xff] }
 0x74d   :  { %1891 = vmatprep.subr.mxu0 %v6219_v32  ;;  %1962 = vmatprep.subr.mxu1 %v6222_v48  ;;  %v9516_v32 = vld [vmem:[#allocation170_spill] sm:$0xff]  ;;  %v9517_v48 = vld [vmem:[#allocation171_spill] sm:$0xff] }
 0x74e   :  { %1892 = vmatpush1.msra.mxu0 %v6225_v27  ;;  %1963 = vmatpush1.msra.mxu1 %v6228_v2  ;;  %v6577_v27 = vld [vmem:[#allocation2 + $0x150] sm:$0xff]  ;;  %v6581_v2 = vld [vmem:[#allocation2 + $0x138] sm:$0xff] }
 0x74f   :  { %1893 = vmatprep.subr.mxu0 %v9509_v60  ;;  %1964 = vmatprep.subr.mxu1 %v9510_v11  ;;  %v6740_v60 = vld [vmem:[#allocation2 + $0x2e8] sm:$0xff]  ;;  %v6743_v11 = vld [vmem:[#allocation2 + $0x2f8] sm:$0xff] }
 0x750   :  { %1894 = vmatpush1.msra.mxu0 %v9511_v0  ;;  %1965 = vmatpush1.msra.mxu1 %v9512_v1  ;;  %9525 = vst [vmem:[#allocation28_spill] sm:$0xff] %v6740_v60  ;;  %9526 = vst [vmem:[#allocation11_spill] sm:$0xff] %v6743_v11  ;;  %v6746_v0 = vld [vmem:[#allocation2 + $0x2e0] sm:$0xff]  ;;  %v6749_v1 = vld [vmem:[#allocation2 + $0x2f0] sm:$0xff] }
 0x751   :  { %1895 = vmatprep.subr.mxu0 %v9513_v13  ;;  %1966 = vmatprep.subr.mxu1 %v9514_v39  ;;  %9527 = vst [vmem:[#allocation29_spill] sm:$0xff] %v6746_v0  ;;  %9528 = vst [vmem:[#allocation12_spill] sm:$0xff] %v6749_v1  ;;  %v6752_v13 = vld [vmem:[#allocation2 + $0x2c8] sm:$0xff]  ;;  %v6755_v39 = vld [vmem:[#allocation2 + $0x2d8] sm:$0xff] }
 0x752   :  { %1896 = vmatpush1.msra.mxu0 %v6249_v41  ;;  %1967 = vmatpush1.msra.mxu1 %v9515_v23  ;;  %v6585_v41 = vld [vmem:[#allocation2 + $0x130] sm:$0xff]  ;;  %9529 = vst [vmem:[#allocation30_spill] sm:$0xff] %v6752_v13  ;;  %9530 = vst [vmem:[#allocation13_spill] sm:$0xff] %v6755_v39  ;;  %v6758_v23 = vld [vmem:[#allocation2 + $0x2c0] sm:$0xff] }
 0x753   :  { %1897 = vmatprep.subr.mxu0 %v9516_v32  ;;  %1968 = vmatprep.subr.mxu1 %v6258_v6  ;;  %v6589_v6 = vld [vmem:[#allocation2 + $0x118] sm:$0xff]  ;;  %9531 = vst [vmem:[#allocation31_spill] sm:$0xff] %v6758_v23  ;;  %v6761_v32 = vld [vmem:[#allocation2 + $0x2d0] sm:$0xff] }
 0x754   :  { %1898 = vmatpush1.msra.mxu0 %v9517_v48  ;;  %1969 = vmatpush1.msra.mxu1 %v6577_v27  ;;  %9532 = vst [vmem:[#allocation14_spill] sm:$0xff] %v6761_v32  ;;  %v6764_v48 = vld [vmem:[#allocation2 + $0x2a8] sm:$0xff] }
 0x755   :  { %1899 = vmatprep.subr.mxu0 %v6265_v21  ;;  %1970 = vmatprep.subr.mxu1 %v6581_v2  ;;  %v6597_v21 = vld [vmem:[#allocation2 + $0xf8] sm:$0xff]  ;;  %9533 = vst [vmem:[#allocation32_spill] sm:$0xff] %v6764_v48 }
 0x756   :  { %1900 = vmatpush1.msra.mxu0 %v6269_v51  ;;  %1971 = vmatpush1.msra.mxu1 %v6585_v41  ;;  %v6601_v51 = vld [vmem:[#allocation2 + $0xf0] sm:$0xff] }
 0x757   :  { %1901 = vmatprep.subr.mxu0 %v6273_v44  ;;  %1972 = vmatprep.subr.mxu1 %v6589_v6  ;;  %v6605_v44 = vld [vmem:[#allocation2 + $0xd8] sm:$0xff] }
 0x758   :  { %1902 = vmatpush1.msra.mxu0 %v6277_v37  ;;  %1973 = vmatpush1.msra.mxu1 %v6593_v30  ;;  %v6609_v37 = vld [vmem:[#allocation2 + $0xd0] sm:$0xff] }
 0x759   :  { %1903 = vmatprep.subr.mxu0 %v6281_v15  ;;  %1974 = vmatprep.subr.mxu1 %v6597_v21  ;;  %v6613_v15 = vld [vmem:[#allocation2 + $0xb8] sm:$0xff] }
 0x75a   :  { %1904 = vmatpush1.msra.mxu0 %v6285_v49  ;;  %1975 = vmatpush1.msra.mxu1 %v6601_v51  ;;  %v6617_v49 = vld [vmem:[#allocation2 + $0xb0] sm:$0xff] }
 0x75b   :  { %1905 = vmatprep.subr.mxu0 %v6289_v36  ;;  %1976 = vmatprep.subr.mxu1 %v6605_v44  ;;  %v6621_v36 = vld [vmem:[#allocation2 + $0x98] sm:$0xff] }
 0x75c   :  { %1906 = vmatpush1.msra.mxu0 %v6293_v25  ;;  %1977 = vmatpush1.msra.mxu1 %v6609_v37  ;;  %v6625_v25 = vld [vmem:[#allocation2 + $0x90] sm:$0xff] }
 0x75d   :  { %1907 = vmatprep.subr.mxu0 %v6297_v18  ;;  %1978 = vmatprep.subr.mxu1 %v6613_v15  ;;  %v6629_v18 = vld [vmem:[#allocation2 + $0x78] sm:$0xff] }
 0x75e   :  { %1908 = vmatpush1.msra.mxu0 %v6301_v16  ;;  %1979 = vmatpush1.msra.mxu1 %v6617_v49  ;;  %v6633_v16 = vld [vmem:[#allocation2 + $0x70] sm:$0xff] }
 0x75f   :  { %1909 = vmatprep.subr.mxu0 %v6305_v31  ;;  %1980 = vmatprep.subr.mxu1 %v6621_v36  ;;  %v6637_v31 = vld [vmem:[#allocation2 + $0x58] sm:$0xff] }
 0x760   :  { %1910 = vmatpush1.msra.mxu0 %v6309_v29  ;;  %1981 = vmatpush1.msra.mxu1 %v6625_v25  ;;  %v6641_v29 = vld [vmem:[#allocation2 + $0x50] sm:$0xff] }
 0x761   :  { %1911 = vmatprep.subr.mxu0 %v6313_v54  ;;  %1982 = vmatprep.subr.mxu1 %v6629_v18  ;;  %v6645_v54 = vld [vmem:[#allocation2 + $0x38] sm:$0xff] }
 0x762   :  { %1912 = vmatpush1.msra.mxu0 %v6317_v45  ;;  %1983 = vmatpush1.msra.mxu1 %v6633_v16  ;;  %v6649_v45 = vld [vmem:[#allocation2 + $0x30] sm:$0xff] }
 0x763   :  { %1913 = vmatprep.subr.mxu0 %v6321_v47  ;;  %1984 = vmatprep.subr.mxu1 %v6637_v31  ;;  %v6653_v47 = vld [vmem:[#allocation2 + $0x18] sm:$0xff] }
 0x764   :  { %1914 = vmatpush1.msra.mxu0 %v6325_v50  ;;  %1985 = vmatpush1.msra.mxu1 %v6641_v29  ;;  %v6657_v50 = vld [vmem:[#allocation2 + $0x10] sm:$0xff] }
 0x765   :  { %1915 = vmatprep.subr.mxu0 %v6329_v52  ;;  %1986 = vmatprep.subr.mxu1 %v6645_v54  ;;  %v6661_v52 = vld [vmem:[#allocation2 + $0x3f8] sm:$0xff] }
 0x766   :  { %1916 = vmatpush1.msra.mxu0 %v6333_v56  ;;  %1987 = vmatpush1.msra.mxu1 %v6649_v45  ;;  %v6665_v56 = vld [vmem:[#allocation2 + $0x3f0] sm:$0xff] }
 0x767   :  { %1917 = vmatprep.subr.mxu0 %v6337_v58  ;;  %1988 = vmatprep.subr.mxu1 %v6653_v47  ;;  %v6669_v58 = vld [vmem:[#allocation2 + $0x3d8] sm:$0xff] }
 0x768   :  { %1918 = vmatpush1.msra.mxu0 %v6341_v61  ;;  %1989 = vmatpush1.msra.mxu1 %v6657_v50  ;;  %v6673_v61 = vld [vmem:[#allocation2 + $0x3d0] sm:$0xff] }
 0x769   :  { %1919 = vmatprep.subr.mxu0 %v6345_v63  ;;  %1990 = vmatprep.subr.mxu1 %v6661_v52  ;;  %v6677_v63 = vld [vmem:[#allocation2 + $0x3b8] sm:$0xff] }
 0x76a   :  { %1920 = vmatpush2.msra.mxu0 %v6349_v5  ;;  %1991 = vmatpush2.msra.mxu1 %v6665_v56  ;;  %v6681_v5 = vld [vmem:[#allocation2 + $0x3b0] sm:$0xff] }
 0x76b   :  { %1921 = vmatprep.subr.mxu0 %v6353_v7  ;;  %1992 = vmatprep.subr.mxu1 %v6669_v58  ;;  %v6685_v7 = vld [vmem:[#allocation2 + $0x398] sm:$0xff] }
 0x76c   :  { %1922 = vmatpush2.msra.mxu0 %v6357_v10  ;;  %1993 = vmatpush2.msra.mxu1 %v6673_v61  ;;  %v9518_v10 = vld [vmem:[#allocation172_spill] sm:$0xff] }
 0x76d   :  { %1923 = vmatprep.subr.mxu0 %v6361_v12  ;;  %1994 = vmatprep.subr.mxu1 %v6677_v63  ;;  %v6692_v12 = vld [vmem:[#allocation2 + $0x368] sm:$0xff] }
 0x76e   :  { %1924 = vmatpush2.msra.mxu0 %v6365_v17  ;;  %1995 = vmatpush2.msra.mxu1 %v6681_v5  ;;  %v6695_v17 = vld [vmem:[#allocation2 + $0x378] sm:$0xff] }
 0x76f   :  { %1925 = vmatprep.subr.mxu0 %v6369_v19  ;;  %1996 = vmatprep.subr.mxu1 %v6685_v7  ;;  %v6701_v19 = vld [vmem:[#allocation2 + $0x370] sm:$0xff] }
 0x770   :  { %1926 = vmatpush2.msra.mxu0 %v9518_v10  ;;  %1997 = vmatpush2.msra.mxu1 %v6689_v22  ;;  %v6767_v10 = vld [vmem:[#allocation2 + $0x2b8] sm:$0xff] }
 0x771   :  { %1927 = vmatprep.subr.mxu0 %v6692_v12  ;;  %1998 = vmatprep.subr.mxu1 %v6695_v17  ;;  %9534 = vst [vmem:[#allocation15_spill] sm:$0xff] %v6767_v10 }
 0x772   :  { %1928 = vmatpush2.msra.mxu0 %v6698_v62  ;;  %1999 = vmatpush2.msra.mxu1 %v6701_v19 }
 0x773   :  { %1929 = vmatprep.subr.mxu0 %v6704_v24  ;;  %2000 = vmatprep.subr.mxu1 %v6707_v28 }
 0x774   :  { %1930 = vmatpush2.msra.mxu0 %v6710_v14  ;;  %2001 = vmatpush2.msra.mxu1 %v6713_v55 }
 0x775   :  { %1931 = vmatprep.subr.mxu0 %v6716_v35  ;;  %2002 = vmatprep.subr.mxu1 %v6719_v38 }
 0x776   :  { %1932 = vmatpush2.msra.mxu0 %v6722_v40  ;;  %2003 = vmatpush2.msra.mxu1 %v6725_v20 }
 0x777   :  { %1933 = vmatprep.subr.mxu0 %v6728_v42  ;;  %2004 = vmatprep.subr.mxu1 %v6731_v46 }
 0x778   :  { %1934 = vmatpush2.msra.mxu0 %v6734_v34  ;;  %2005 = vmatpush2.msra.mxu1 %v6737_v57 }
 0x779   :  { %1935 = vmatprep.subr.mxu0 %v6740_v60  ;;  %2006 = vmatprep.subr.mxu1 %v6743_v11 }
 0x77a   :  { %1936 = vmatpush2.msra.mxu0 %v6746_v0  ;;  %2007 = vmatpush2.msra.mxu1 %v6749_v1  ;;  %v9559_v1 = vld [vmem:[#allocation25_spill] sm:$0xff] }
 0x77b   :  { %1937 = vmatprep.subr.mxu0 %v6752_v13  ;;  %2008 = vmatprep.subr.mxu1 %v6755_v39  ;;  %v6770_v13 = vld [vmem:[#allocation2 + $0x2a0] sm:$0xff]  ;;  %v6773_v39 = vld [vmem:[#allocation2 + $0x2b0] sm:$0xff] }
 0x77c   :  { %1938 = vmatpush2.msra.mxu0 %v6758_v23  ;;  %2009 = vmatpush2.msra.mxu1 %v6761_v32  ;;  %9535 = vst [vmem:[#allocation33_spill] sm:$0xff] %v6770_v13  ;;  %9536 = vst [vmem:[#allocation16_spill] sm:$0xff] %v6773_v39  ;;  %v6776_v23 = vld [vmem:[#allocation2 + $0x288] sm:$0xff]  ;;  %v6779_v32 = vld [vmem:[#allocation2 + $0x298] sm:$0xff] }
 0x77d   :  { %1939 = vmatprep.subr.mxu0 %v6764_v48  ;;  %2010 = vmatprep.subr.mxu1 %v6767_v10  ;;  %9537 = vst [vmem:[#allocation34_spill] sm:$0xff] %v6776_v23  ;;  %9538 = vst [vmem:[#allocation17_spill] sm:$0xff] %v6779_v32  ;;  %v6782_v48 = vld [vmem:[#allocation2 + $0x280] sm:$0xff]  ;;  %v6785_v10 = vld [vmem:[#allocation2 + $0x290] sm:$0xff] }
 0x77e   :  { %1940 = vmatpush2.msra.mxu0 %v6770_v13  ;;  %2011 = vmatpush2.msra.mxu1 %v6773_v39  ;;  %9539 = vst [vmem:[#allocation35_spill] sm:$0xff] %v6782_v48  ;;  %9540 = vst [vmem:[#allocation18_spill] sm:$0xff] %v6785_v10  ;;  %v6788_v13 = vld [vmem:[#allocation2 + $0x268] sm:$0xff]  ;;  %v6791_v39 = vld [vmem:[#allocation2 + $0x278] sm:$0xff] }
 0x77f   :  { %1941 = vmatprep.subr.mxu0 %v6776_v23  ;;  %2012 = vmatprep.subr.mxu1 %v6779_v32  ;;  %9541 = vst [vmem:[#allocation36_spill] sm:$0xff] %v6788_v13  ;;  %9542 = vst [vmem:[#allocation19_spill] sm:$0xff] %v6791_v39  ;;  %v6794_v23 = vld [vmem:[#allocation2 + $0x260] sm:$0xff]  ;;  %v6797_v32 = vld [vmem:[#allocation2 + $0x270] sm:$0xff] }
 0x780   :  { %1942 = vmatpush2.msra.mxu0 %v6782_v48  ;;  %2013 = vmatpush2.msra.mxu1 %v6785_v10  ;;  %9543 = vst [vmem:[#allocation37_spill] sm:$0xff] %v6794_v23  ;;  %9544 = vst [vmem:[#allocation20_spill] sm:$0xff] %v6797_v32  ;;  %v6800_v48 = vld [vmem:[#allocation2 + $0x248] sm:$0xff]  ;;  %v6803_v10 = vld [vmem:[#allocation2 + $0x258] sm:$0xff] }
 0x781   :  { %1943 = vmatprep.subr.mxu0 %v6788_v13  ;;  %2014 = vmatprep.subr.mxu1 %v6791_v39  ;;  %9545 = vst [vmem:[#allocation38_spill] sm:$0xff] %v6800_v48  ;;  %9546 = vst [vmem:[#allocation21_spill] sm:$0xff] %v6803_v10  ;;  %v6806_v13 = vld [vmem:[#allocation2 + $0x240] sm:$0xff]  ;;  %v6809_v39 = vld [vmem:[#allocation2 + $0x250] sm:$0xff] }
 0x782   :  { %1944 = vmatpush2.msra.mxu0 %v6794_v23  ;;  %2015 = vmatpush2.msra.mxu1 %v6797_v32  ;;  %9547 = vst [vmem:[#allocation39_spill] sm:$0xff] %v6806_v13  ;;  %9548 = vst [vmem:[#allocation22_spill] sm:$0xff] %v6809_v39  ;;  %v6812_v23 = vld [vmem:[#allocation2 + $0x228] sm:$0xff]  ;;  %v6815_v32 = vld [vmem:[#allocation2 + $0x238] sm:$0xff] }
 0x783   :  { %1945 = vmatprep.subr.mxu0 %v6800_v48  ;;  %2016 = vmatprep.subr.mxu1 %v6803_v10  ;;  %9549 = vst [vmem:[#allocation40_spill] sm:$0xff] %v6812_v23  ;;  %9550 = vst [vmem:[#allocation23_spill] sm:$0xff] %v6815_v32  ;;  %v6818_v48 = vld [vmem:[#allocation2 + $0x220] sm:$0xff]  ;;  %v6821_v10 = vld [vmem:[#allocation2 + $0x230] sm:$0xff] }
 0x784   :  { %1946 = vmatpush2.msra.mxu0 %v6806_v13  ;;  %2017 = vmatpush2.msra.mxu1 %v6809_v39  ;;  %9551 = vst [vmem:[#allocation41_spill] sm:$0xff] %v6818_v48  ;;  %9552 = vst [vmem:[#allocation24_spill] sm:$0xff] %v6821_v10  ;;  %v6824_v13 = vld [vmem:[#allocation2 + $0x208] sm:$0xff]  ;;  %v6827_v39 = vld [vmem:[#allocation2 + $0x218] sm:$0xff] }
 0x785   :  { %1947 = vmatprep.subr.mxu0 %v6812_v23  ;;  %2018 = vmatprep.subr.mxu1 %v6815_v32  ;;  %9553 = vst [vmem:[#allocation42_spill] sm:$0xff] %v6824_v13  ;;  %9554 = vst [vmem:[#allocation43_spill] sm:$0xff] %v6827_v39  ;;  %v6830_v23 = vld [vmem:[#allocation2 + $0x200] sm:$0xff]  ;;  %v6833_v32 = vld [vmem:[#allocation2 + $0x210] sm:$0xff] }
 0x786   :  { %1948 = vmatpush2.msra.mxu0 %v6818_v48  ;;  %2019 = vmatpush2.msra.mxu1 %v6821_v10  ;;  %9555 = vst [vmem:[#allocation76_spill] sm:$0xff] %v6830_v23  ;;  %9556 = vst [vmem:[#allocation139_spill] sm:$0xff] %v6833_v32  ;;  %v6836_v48 = vld [vmem:[#allocation4 + $0x170] sm:$0xff]  ;;  %v6839_v10 = vld [vmem:[#allocation4 + $0x2f8] sm:$0xff] }
 0x787   :  { %1949 = vmatprep.subr.mxu0 %v6824_v13  ;;  %2020 = vmatprep.subr.mxu1 %v6827_v39  ;;  %9557 = vst [vmem:[#allocation44_spill] sm:$0xff] %v6836_v48  ;;  %9558 = vst [vmem:[#allocation78_spill] sm:$0xff] %v6839_v10 }
 0x788   :  { %1950 = vmatpush2.msra.mxu0 %v6830_v23  ;;  %2021 = vmatpush2.msra.mxu1 %v6833_v32  ;;  %v1704_v32 = vpop.f32.mrf.mxu0 }
 0x789   :  { %2049 = vmatprep.subr.mxu0 %v6836_v48  ;;  %3386 = vmatprep.subr.mxu1 %v6839_v10  ;;  %v1705_v10 = vadd.f32 %v1704_v32, %v5471_v8  ;;  %v6877_v32 = vld [vmem:[#allocation4 + $0x140] sm:$0xff] }
 0x78a   :  { %9566 = vst [vmem:[#allocation48_spill] sm:$0xff] %v6877_v32 }
 0x809   :  { %v1793_v13 = vpop.f32.mrf.mxu1  ;;  %v3383_v46 = vpop.f32.mrf.mxu0 }
 0x80a   :  { %v1794_v0 = vadd.f32 %v1793_v13, %v9559_v1 }
 0x80b   :  { %v1795_v11 = vpop.f32.mrf.mxu1  ;;  %v3384_v48 = vpop.f32.mrf.mxu0 }
 0x80c   :  { %v3219_v39 = vmul.f32 -1.442695, %v1794_v0  ;;  %v1796_v23 = vadd.f32 %v1795_v11, %v5466_v53  ;;  %v3385_v42 = vadd.f32 %v3384_v48, %v3383_v46  ;;  %v6871_v46 = vld [vmem:[#allocation4 + $0x150] sm:$0xff]  ;;  %v6880_v48 = vld [vmem:[#allocation4 + $0x2c8] sm:$0xff] }
 0x80d   :  { %9564 = vst [vmem:[#allocation47_spill] sm:$0xff] %v6871_v46  ;;  %9567 = vst [vmem:[#allocation86_spill] sm:$0xff] %v6880_v48 }
 0x80e   :  { %3618 = vpow2.f32 %v3219_v39  ;;  %v3220_v60 = vmul.f32 -1.442695, %v1796_v23  ;;  %v1865_v13 = vadd.f32 %v3385_v42, %v5474_v9  ;;  %v6868_v42 = vld [vmem:[#allocation4 + $0x2e0] sm:$0xff] }
 0x80f   :  { %9563 = vst [vmem:[#allocation82_spill] sm:$0xff] %v6868_v42 }
 0x810   :  { %3620 = vpow2.f32 %v3220_v60 }
 0x81b   :  { %v3619_v57 = vpop.eup %3618 }
 0x81c   :  { %v1871_v34 = vadd.f32 1.0, %v3619_v57 }
 0x81d   :  { %v3621_v20 = vpop.eup %3620 }
 0x81e   :  { %3622 = vrcp.f32 %v1871_v34  ;;  %v1877_v39 = vadd.f32 1.0, %v3621_v20  ;;  %v6865_v20 = vld [vmem:[#allocation4 + $0x158] sm:$0xff] }
 0x81f   :  { %9562 = vst [vmem:[#allocation46_spill] sm:$0xff] %v6865_v20 }
 0x82b   :  { %v3623_v40 = vpop.eup %3622 }
 0x82c   :  { %v1880_v0 = vmul.f32 %v3623_v40, %v1705_v10  ;;  %v6862_v40 = vld [vmem:[#allocation4 + $0x178] sm:$0xff] }
 0x82d   :  { %9561 = vst [vmem:[#allocation79_spill] sm:$0xff] %v6862_v40  ;;  %v6883_v10 = vld [vmem:[#allocation4 + $0x138] sm:$0xff] }
 0x82e   :  { %v1881_v1 = vadd.f32 %v1880_v0, %v1865_v13  ;;  %9568 = vst [vmem:[#allocation49_spill] sm:$0xff] %v6883_v10  ;;  %v6886_v13 = vld [vmem:[#allocation4 + $0x148] sm:$0xff] }
 0x82f   :  { %9569 = vst [vmem:[#allocation88_spill] sm:$0xff] %v6886_v13  ;;  %v6889_v0 = vld [vmem:[#allocation4 + $0x128] sm:$0xff] }
 0x830   :  { %3624 = vtanh.f32 %v1881_v1  ;;  %v6874_v1 = vld [vmem:[#allocation4 + $0x160] sm:$0xff]  ;;  %9570 = vst [vmem:[#allocation50_spill] sm:$0xff] %v6889_v0 }
 0x831   :  { %3626 = vrcp.f32 %v1877_v39  ;;  %9565 = vst [vmem:[#allocation84_spill] sm:$0xff] %v6874_v1  ;;  %v6892_v39 = vld [vmem:[#allocation4 + $0x2b0] sm:$0xff] }
 0x832   :  { %9571 = vst [vmem:[#allocation90_spill] sm:$0xff] %v6892_v39 }
 0x83d   :  { %v3625_v11 = vpop.eup %3624 }
 0x83e   :  { %v1883_v57 = vsub.f32 %v6432_v33, %v3625_v11  ;;  %v3627_v60 = vpop.eup %3626  ;;  %v6859_v33 = vld [vmem:[#allocation4 + $0x168] sm:$0xff] }
 0x83f   :  { %9560 = vst [vmem:[#allocation45_spill] sm:$0xff] %v6859_v33 }
 0x840   :  { %v1884_v34 = vmul.f32 %v3627_v60, %v1883_v57  ;;  %v6898_v57 = vld [vmem:[#allocation4 + $0x130] sm:$0xff] }
 0x841   :  { %9573 = vst [vmem:[#allocation92_spill] sm:$0xff] %v6898_v57  ;;  %v6901_v60 = vld [vmem:[#allocation4 + $0x110] sm:$0xff] }
 0x842   :  { %v6847_v23 = vadd.f32 %v3625_v11, %v1884_v34  ;;  %v6895_v11 = vld [vmem:[#allocation4 + $0x120] sm:$0xff]  ;;  %9574 = vst [vmem:[#allocation52_spill] sm:$0xff] %v6901_v60  ;;  %v6904_v34 = vld [vmem:[#allocation4 + $0x298] sm:$0xff] }
 0x843   :  { %9572 = vst [vmem:[#allocation51_spill] sm:$0xff] %v6895_v11  ;;  %9575 = vst [vmem:[#allocation94_spill] sm:$0xff] %v6904_v34 }
 0x844   :  { %1886 = vst [vmem:[%s8325_s7 + $0x18] sm:$0xff] %v6847_v23  ;;  %1951 = vmatprep.mubr.f32.mxu0 %v6847_v23  ;;  %2022 = vmatprep.mubr.f32.mxu1 %v6847_v23 }
 0x845   :  { %1952 = vmatmul.mubr.f32.vlgmr.msra.gmra.mxu0 %v6552_v4  ;;  %2023 = vmatmul.mubr.f32.vlgmr.msra.gmra.mxu1 %v6552_v4 }
 0x846   :  { %2113 = vmatprep.mubr.f32.mxu0 %v6847_v23  ;;  %2184 = vmatprep.mubr.f32.mxu1 %v6847_v23 }
 0x847   :  { %2050 = vmatpush1.msra.mxu0 %v6859_v33  ;;  %3387 = vmatpush3.msra.mxu1 %v6862_v40 }
 0x848   :  { %2051 = vmatprep.subr.mxu0 %v6865_v20  ;;  %3388 = vmatprep.subr.mxu1 %v6868_v42 }
 0x849   :  { %2052 = vmatpush1.msra.mxu0 %v6871_v46  ;;  %3389 = vmatpush3.msra.mxu1 %v6874_v1  ;;  %v9657_v1 = vld [vmem:[#allocation147_spill] sm:$0xff] }
 0x84a   :  { %2053 = vmatprep.subr.mxu0 %v6877_v32  ;;  %3390 = vmatprep.subr.mxu1 %v6880_v48 }
 0x84b   :  { %2054 = vmatpush1.msra.mxu0 %v6883_v10  ;;  %3391 = vmatpush3.msra.mxu1 %v6886_v13  ;;  %v7049_v13 = vld [vmem:[#allocation4 + $0x2e8] sm:$0xff]  ;;  %v9656_v10 = vld [vmem:[#allocation146_spill] sm:$0xff] }
 0x84c   :  { %2055 = vmatprep.subr.mxu0 %v6889_v0  ;;  %3392 = vmatprep.subr.mxu1 %v6892_v39  ;;  %v6907_v0 = vld [vmem:[#allocation4 + $0x108] sm:$0xff]  ;;  %v6910_v39 = vld [vmem:[#allocation4 + $0x118] sm:$0xff]  ;;  %9624 = vst [vmem:[#allocation81_spill] sm:$0xff] %v7049_v13 }
 0x84d   :  { %2056 = vmatpush1.msra.mxu0 %v6895_v11  ;;  %3393 = vmatpush3.msra.mxu1 %v6898_v57  ;;  %9576 = vst [vmem:[#allocation53_spill] sm:$0xff] %v6907_v0  ;;  %9577 = vst [vmem:[#allocation96_spill] sm:$0xff] %v6910_v39  ;;  %v6913_v11 = vld [vmem:[#allocation4 + $0xf8] sm:$0xff]  ;;  %v6916_v57 = vld [vmem:[#allocation4 + $0x280] sm:$0xff] }
 0x84e   :  { %2057 = vmatprep.subr.mxu0 %v6901_v60  ;;  %3394 = vmatprep.subr.mxu1 %v6904_v34  ;;  %9578 = vst [vmem:[#allocation54_spill] sm:$0xff] %v6913_v11  ;;  %9579 = vst [vmem:[#allocation98_spill] sm:$0xff] %v6916_v57  ;;  %v6919_v60 = vld [vmem:[#allocation4 + $0xf0] sm:$0xff]  ;;  %v6922_v34 = vld [vmem:[#allocation4 + $0x100] sm:$0xff] }
 0x84f   :  { %2058 = vmatpush1.msra.mxu0 %v6907_v0  ;;  %3395 = vmatpush3.msra.mxu1 %v6910_v39  ;;  %9580 = vst [vmem:[#allocation55_spill] sm:$0xff] %v6919_v60  ;;  %9581 = vst [vmem:[#allocation100_spill] sm:$0xff] %v6922_v34  ;;  %v6925_v0 = vld [vmem:[#allocation4 + $0xe0] sm:$0xff]  ;;  %v6928_v39 = vld [vmem:[#allocation4 + $0x268] sm:$0xff] }
 0x850   :  { %2059 = vmatprep.subr.mxu0 %v6913_v11  ;;  %3396 = vmatprep.subr.mxu1 %v6916_v57  ;;  %9582 = vst [vmem:[#allocation56_spill] sm:$0xff] %v6925_v0  ;;  %9583 = vst [vmem:[#allocation102_spill] sm:$0xff] %v6928_v39  ;;  %v6931_v11 = vld [vmem:[#allocation4 + $0xd8] sm:$0xff]  ;;  %v6934_v57 = vld [vmem:[#allocation4 + $0xe8] sm:$0xff] }
 0x851   :  { %2060 = vmatpush1.msra.mxu0 %v6919_v60  ;;  %3397 = vmatpush3.msra.mxu1 %v6922_v34  ;;  %9584 = vst [vmem:[#allocation57_spill] sm:$0xff] %v6931_v11  ;;  %9585 = vst [vmem:[#allocation104_spill] sm:$0xff] %v6934_v57  ;;  %v6937_v60 = vld [vmem:[#allocation4 + $0xc8] sm:$0xff]  ;;  %v6940_v34 = vld [vmem:[#allocation4 + $0x250] sm:$0xff] }
 0x852   :  { %2061 = vmatprep.subr.mxu0 %v6925_v0  ;;  %3398 = vmatprep.subr.mxu1 %v6928_v39  ;;  %9586 = vst [vmem:[#allocation58_spill] sm:$0xff] %v6937_v60  ;;  %9587 = vst [vmem:[#allocation106_spill] sm:$0xff] %v6940_v34  ;;  %v6943_v0 = vld [vmem:[#allocation4 + $0xc0] sm:$0xff]  ;;  %v6946_v39 = vld [vmem:[#allocation4 + $0xd0] sm:$0xff] }
 0x853   :  { %2062 = vmatpush1.msra.mxu0 %v6931_v11  ;;  %3399 = vmatpush3.msra.mxu1 %v6934_v57  ;;  %9588 = vst [vmem:[#allocation59_spill] sm:$0xff] %v6943_v0  ;;  %9589 = vst [vmem:[#allocation108_spill] sm:$0xff] %v6946_v39  ;;  %v6949_v11 = vld [vmem:[#allocation4 + $0xb0] sm:$0xff]  ;;  %v6952_v57 = vld [vmem:[#allocation4 + $0x238] sm:$0xff] }
 0x854   :  { %2063 = vmatprep.subr.mxu0 %v6937_v60  ;;  %3400 = vmatprep.subr.mxu1 %v6940_v34  ;;  %9590 = vst [vmem:[#allocation60_spill] sm:$0xff] %v6949_v11  ;;  %9591 = vst [vmem:[#allocation110_spill] sm:$0xff] %v6952_v57  ;;  %v6955_v60 = vld [vmem:[#allocation4 + $0xa8] sm:$0xff]  ;;  %v6958_v34 = vld [vmem:[#allocation4 + $0xb8] sm:$0xff] }
 0x855   :  { %2064 = vmatpush1.msra.mxu0 %v6943_v0  ;;  %3401 = vmatpush3.msra.mxu1 %v6946_v39  ;;  %9592 = vst [vmem:[#allocation61_spill] sm:$0xff] %v6955_v60  ;;  %9593 = vst [vmem:[#allocation112_spill] sm:$0xff] %v6958_v34  ;;  %v6961_v0 = vld [vmem:[#allocation4 + $0x98] sm:$0xff]  ;;  %v6964_v39 = vld [vmem:[#allocation4 + $0x220] sm:$0xff] }
 0x856   :  { %2065 = vmatprep.subr.mxu0 %v6949_v11  ;;  %3402 = vmatprep.subr.mxu1 %v6952_v57  ;;  %9594 = vst [vmem:[#allocation62_spill] sm:$0xff] %v6961_v0  ;;  %9595 = vst [vmem:[#allocation114_spill] sm:$0xff] %v6964_v39  ;;  %v6967_v11 = vld [vmem:[#allocation4 + $0x90] sm:$0xff]  ;;  %v6970_v57 = vld [vmem:[#allocation4 + $0xa0] sm:$0xff] }
 0x857   :  { %2066 = vmatpush1.msra.mxu0 %v6955_v60  ;;  %3403 = vmatpush3.msra.mxu1 %v6958_v34  ;;  %9596 = vst [vmem:[#allocation63_spill] sm:$0xff] %v6967_v11  ;;  %9597 = vst [vmem:[#allocation116_spill] sm:$0xff] %v6970_v57  ;;  %v6973_v60 = vld [vmem:[#allocation4 + $0x80] sm:$0xff]  ;;  %v6976_v34 = vld [vmem:[#allocation4 + $0x208] sm:$0xff] }
 0x858   :  { %2067 = vmatprep.subr.mxu0 %v6961_v0  ;;  %3404 = vmatprep.subr.mxu1 %v6964_v39  ;;  %9598 = vst [vmem:[#allocation64_spill] sm:$0xff] %v6973_v60  ;;  %9599 = vst [vmem:[#allocation118_spill] sm:$0xff] %v6976_v34  ;;  %v6979_v0 = vld [vmem:[#allocation4 + $0x78] sm:$0xff]  ;;  %v6982_v39 = vld [vmem:[#allocation4 + $0x88] sm:$0xff] }
 0x859   :  { %2068 = vmatpush1.msra.mxu0 %v6967_v11  ;;  %3405 = vmatpush3.msra.mxu1 %v6970_v57  ;;  %9600 = vst [vmem:[#allocation65_spill] sm:$0xff] %v6979_v0  ;;  %9601 = vst [vmem:[#allocation120_spill] sm:$0xff] %v6982_v39  ;;  %v6985_v11 = vld [vmem:[#allocation4 + $0x68] sm:$0xff]  ;;  %v6988_v57 = vld [vmem:[#allocation4 + $0x1f0] sm:$0xff] }
 0x85a   :  { %2069 = vmatprep.subr.mxu0 %v6973_v60  ;;  %3406 = vmatprep.subr.mxu1 %v6976_v34  ;;  %9602 = vst [vmem:[#allocation66_spill] sm:$0xff] %v6985_v11  ;;  %9603 = vst [vmem:[#allocation122_spill] sm:$0xff] %v6988_v57  ;;  %v6991_v60 = vld [vmem:[#allocation4 + $0x60] sm:$0xff]  ;;  %v6994_v34 = vld [vmem:[#allocation4 + $0x70] sm:$0xff] }
 0x85b   :  { %2070 = vmatpush1.msra.mxu0 %v6979_v0  ;;  %3407 = vmatpush3.msra.mxu1 %v6982_v39  ;;  %9604 = vst [vmem:[#allocation67_spill] sm:$0xff] %v6991_v60  ;;  %9605 = vst [vmem:[#allocation124_spill] sm:$0xff] %v6994_v34  ;;  %v6997_v0 = vld [vmem:[#allocation4 + $0x50] sm:$0xff]  ;;  %v7000_v39 = vld [vmem:[#allocation4 + $0x1d8] sm:$0xff] }
 0x85c   :  { %2071 = vmatprep.subr.mxu0 %v6985_v11  ;;  %3408 = vmatprep.subr.mxu1 %v6988_v57  ;;  %9606 = vst [vmem:[#allocation68_spill] sm:$0xff] %v6997_v0  ;;  %9607 = vst [vmem:[#allocation126_spill] sm:$0xff] %v7000_v39  ;;  %v7003_v11 = vld [vmem:[#allocation4 + $0x48] sm:$0xff]  ;;  %v7006_v57 = vld [vmem:[#allocation4 + $0x58] sm:$0xff] }
 0x85d   :  { %2072 = vmatpush1.msra.mxu0 %v6991_v60  ;;  %3409 = vmatpush3.msra.mxu1 %v6994_v34  ;;  %9608 = vst [vmem:[#allocation69_spill] sm:$0xff] %v7003_v11  ;;  %9609 = vst [vmem:[#allocation128_spill] sm:$0xff] %v7006_v57  ;;  %v7009_v60 = vld [vmem:[#allocation4 + $0x38] sm:$0xff]  ;;  %v7012_v34 = vld [vmem:[#allocation4 + $0x1c0] sm:$0xff] }
 0x85e   :  { %2073 = vmatprep.subr.mxu0 %v6997_v0  ;;  %3410 = vmatprep.subr.mxu1 %v7000_v39  ;;  %9610 = vst [vmem:[#allocation70_spill] sm:$0xff] %v7009_v60  ;;  %9611 = vst [vmem:[#allocation130_spill] sm:$0xff] %v7012_v34  ;;  %v7015_v0 = vld [vmem:[#allocation4 + $0x30] sm:$0xff]  ;;  %v7018_v39 = vld [vmem:[#allocation4 + $0x40] sm:$0xff] }
 0x85f   :  { %2074 = vmatpush1.msra.mxu0 %v7003_v11  ;;  %3411 = vmatpush3.msra.mxu1 %v7006_v57  ;;  %9612 = vst [vmem:[#allocation71_spill] sm:$0xff] %v7015_v0  ;;  %9613 = vst [vmem:[#allocation132_spill] sm:$0xff] %v7018_v39  ;;  %v7021_v11 = vld [vmem:[#allocation4 + $0x20] sm:$0xff]  ;;  %v7024_v57 = vld [vmem:[#allocation4 + $0x1a8] sm:$0xff] }
 0x860   :  { %2075 = vmatprep.subr.mxu0 %v7009_v60  ;;  %3412 = vmatprep.subr.mxu1 %v7012_v34  ;;  %9614 = vst [vmem:[#allocation72_spill] sm:$0xff] %v7021_v11  ;;  %9615 = vst [vmem:[#allocation134_spill] sm:$0xff] %v7024_v57  ;;  %v7027_v60 = vld [vmem:[#allocation4 + $0x18] sm:$0xff]  ;;  %v7030_v34 = vld [vmem:[#allocation4 + $0x28] sm:$0xff] }
 0x861   :  { %2076 = vmatpush1.msra.mxu0 %v7015_v0  ;;  %3413 = vmatpush3.msra.mxu1 %v7018_v39  ;;  %9616 = vst [vmem:[#allocation73_spill] sm:$0xff] %v7027_v60  ;;  %9617 = vst [vmem:[#allocation136_spill] sm:$0xff] %v7030_v34  ;;  %v7033_v0 = vld [vmem:[#allocation4 + $0x8] sm:$0xff]  ;;  %v7036_v39 = vld [vmem:[#allocation4 + $0x190] sm:$0xff] }
 0x862   :  { %2077 = vmatprep.subr.mxu0 %v7021_v11  ;;  %3414 = vmatprep.subr.mxu1 %v7024_v57  ;;  %9618 = vst [vmem:[#allocation74_spill] sm:$0xff] %v7033_v0  ;;  %9619 = vst [vmem:[#allocation138_spill] sm:$0xff] %v7036_v39  ;;  %v7039_v11 = vld [vmem:[#allocation4] sm:$0xff]  ;;  %v7042_v57 = vld [vmem:[#allocation4 + $0x10] sm:$0xff] }
 0x863   :  { %2078 = vmatpush1.msra.mxu0 %v7027_v60  ;;  %3415 = vmatpush3.msra.mxu1 %v7030_v34  ;;  %9620 = vst [vmem:[#allocation75_spill] sm:$0xff] %v7039_v11  ;;  %9621 = vst [vmem:[#allocation77_spill] sm:$0xff] %v7042_v57  ;;  %v7045_v60 = vld [vmem:[#allocation4 + $0x2f0] sm:$0xff]  ;;  %v9623_v34 = vld [vmem:[#allocation8_spill] sm:$0xff] }
 0x864   :  { %2079 = vmatprep.subr.mxu0 %v7033_v0  ;;  %3416 = vmatprep.subr.mxu1 %v7036_v39  ;;  %9622 = vst [vmem:[#allocation80_spill] sm:$0xff] %v7045_v60  ;;  %v7052_v0 = vld [vmem:[#allocation4 + $0x2d8] sm:$0xff]  ;;  %v7055_v39 = vld [vmem:[#allocation4 + $0x2d0] sm:$0xff] }
 0x865   :  { %2080 = vmatpush1.msra.mxu0 %v7039_v11  ;;  %3417 = vmatpush3.msra.mxu1 %v7042_v57  ;;  %9625 = vst [vmem:[#allocation83_spill] sm:$0xff] %v7052_v0  ;;  %9626 = vst [vmem:[#allocation85_spill] sm:$0xff] %v7055_v39  ;;  %v7058_v11 = vld [vmem:[#allocation4 + $0x2c0] sm:$0xff]  ;;  %v7061_v57 = vld [vmem:[#allocation4 + $0x2b8] sm:$0xff] }
 0x866   :  { %2081 = vmatprep.subr.mxu0 %v7045_v60  ;;  %2209 = vmatprep.subr.mxu1 %v9623_v34  ;;  %9627 = vst [vmem:[#allocation87_spill] sm:$0xff] %v7058_v11  ;;  %9628 = vst [vmem:[#allocation89_spill] sm:$0xff] %v7061_v57  ;;  %v7064_v34 = vld [vmem:[#allocation4 + $0x2a8] sm:$0xff] }
 0x867   :  { %2082 = vmatpush2.msra.mxu0 %v7049_v13  ;;  %9629 = vst [vmem:[#allocation91_spill] sm:$0xff] %v7064_v34  ;;  %v7067_v13 = vld [vmem:[#allocation4 + $0x2a0] sm:$0xff] }
 0x868   :  { %2083 = vmatprep.subr.mxu0 %v7052_v0  ;;  %9630 = vst [vmem:[#allocation93_spill] sm:$0xff] %v7067_v13  ;;  %v7070_v0 = vld [vmem:[#allocation4 + $0x290] sm:$0xff] }
 0x869   :  { %2084 = vmatpush2.msra.mxu0 %v7055_v39  ;;  %9631 = vst [vmem:[#allocation95_spill] sm:$0xff] %v7070_v0  ;;  %v7073_v39 = vld [vmem:[#allocation4 + $0x288] sm:$0xff] }
 0x86a   :  { %2085 = vmatprep.subr.mxu0 %v7058_v11  ;;  %9632 = vst [vmem:[#allocation97_spill] sm:$0xff] %v7073_v39  ;;  %v7076_v11 = vld [vmem:[#allocation4 + $0x278] sm:$0xff] }
 0x86b   :  { %2086 = vmatpush2.msra.mxu0 %v7061_v57  ;;  %9633 = vst [vmem:[#allocation99_spill] sm:$0xff] %v7076_v11  ;;  %v7079_v57 = vld [vmem:[#allocation4 + $0x270] sm:$0xff] }
 0x86c   :  { %2087 = vmatprep.subr.mxu0 %v7064_v34  ;;  %9634 = vst [vmem:[#allocation101_spill] sm:$0xff] %v7079_v57  ;;  %v7082_v34 = vld [vmem:[#allocation4 + $0x260] sm:$0xff] }
 0x86d   :  { %2088 = vmatpush2.msra.mxu0 %v7067_v13  ;;  %9635 = vst [vmem:[#allocation103_spill] sm:$0xff] %v7082_v34  ;;  %v7085_v13 = vld [vmem:[#allocation4 + $0x258] sm:$0xff] }
 0x86e   :  { %2089 = vmatprep.subr.mxu0 %v7070_v0  ;;  %9636 = vst [vmem:[#allocation105_spill] sm:$0xff] %v7085_v13  ;;  %v7088_v0 = vld [vmem:[#allocation4 + $0x248] sm:$0xff] }
 0x86f   :  { %2090 = vmatpush2.msra.mxu0 %v7073_v39  ;;  %9637 = vst [vmem:[#allocation107_spill] sm:$0xff] %v7088_v0  ;;  %v7091_v39 = vld [vmem:[#allocation4 + $0x240] sm:$0xff] }
 0x870   :  { %2091 = vmatprep.subr.mxu0 %v7076_v11  ;;  %9638 = vst [vmem:[#allocation109_spill] sm:$0xff] %v7091_v39  ;;  %v7094_v11 = vld [vmem:[#allocation4 + $0x230] sm:$0xff] }
 0x871   :  { %2092 = vmatpush2.msra.mxu0 %v7079_v57  ;;  %9639 = vst [vmem:[#allocation111_spill] sm:$0xff] %v7094_v11  ;;  %v7097_v57 = vld [vmem:[#allocation4 + $0x228] sm:$0xff] }
 0x872   :  { %2093 = vmatprep.subr.mxu0 %v7082_v34  ;;  %9640 = vst [vmem:[#allocation113_spill] sm:$0xff] %v7097_v57  ;;  %v7100_v34 = vld [vmem:[#allocation4 + $0x218] sm:$0xff] }
 0x873   :  { %2094 = vmatpush2.msra.mxu0 %v7085_v13  ;;  %9641 = vst [vmem:[#allocation115_spill] sm:$0xff] %v7100_v34  ;;  %v7103_v13 = vld [vmem:[#allocation4 + $0x210] sm:$0xff] }
 0x874   :  { %2095 = vmatprep.subr.mxu0 %v7088_v0  ;;  %9642 = vst [vmem:[#allocation117_spill] sm:$0xff] %v7103_v13  ;;  %v7106_v0 = vld [vmem:[#allocation4 + $0x200] sm:$0xff] }
 0x875   :  { %2096 = vmatpush2.msra.mxu0 %v7091_v39  ;;  %9643 = vst [vmem:[#allocation119_spill] sm:$0xff] %v7106_v0  ;;  %v7109_v39 = vld [vmem:[#allocation4 + $0x1f8] sm:$0xff] }
 0x876   :  { %2097 = vmatprep.subr.mxu0 %v7094_v11  ;;  %9644 = vst [vmem:[#allocation121_spill] sm:$0xff] %v7109_v39  ;;  %v7112_v11 = vld [vmem:[#allocation4 + $0x1e8] sm:$0xff] }
 0x877   :  { %2098 = vmatpush2.msra.mxu0 %v7097_v57  ;;  %9645 = vst [vmem:[#allocation123_spill] sm:$0xff] %v7112_v11  ;;  %v7115_v57 = vld [vmem:[#allocation4 + $0x1e0] sm:$0xff] }
 0x878   :  { %2099 = vmatprep.subr.mxu0 %v7100_v34  ;;  %9646 = vst [vmem:[#allocation125_spill] sm:$0xff] %v7115_v57  ;;  %v7118_v34 = vld [vmem:[#allocation4 + $0x1d0] sm:$0xff] }
 0x879   :  { %2100 = vmatpush2.msra.mxu0 %v7103_v13  ;;  %9647 = vst [vmem:[#allocation127_spill] sm:$0xff] %v7118_v34  ;;  %v7121_v13 = vld [vmem:[#allocation4 + $0x1c8] sm:$0xff] }
 0x87a   :  { %2101 = vmatprep.subr.mxu0 %v7106_v0  ;;  %9648 = vst [vmem:[#allocation129_spill] sm:$0xff] %v7121_v13  ;;  %v7124_v0 = vld [vmem:[#allocation4 + $0x1b8] sm:$0xff] }
 0x87b   :  { %2102 = vmatpush2.msra.mxu0 %v7109_v39  ;;  %9649 = vst [vmem:[#allocation131_spill] sm:$0xff] %v7124_v0  ;;  %v7127_v39 = vld [vmem:[#allocation4 + $0x1b0] sm:$0xff] }
 0x87c   :  { %2103 = vmatprep.subr.mxu0 %v7112_v11  ;;  %9650 = vst [vmem:[#allocation133_spill] sm:$0xff] %v7127_v39  ;;  %v7130_v11 = vld [vmem:[#allocation4 + $0x1a0] sm:$0xff] }
 0x87d   :  { %2104 = vmatpush2.msra.mxu0 %v7115_v57  ;;  %9651 = vst [vmem:[#allocation135_spill] sm:$0xff] %v7130_v11  ;;  %v7133_v57 = vld [vmem:[#allocation4 + $0x198] sm:$0xff] }
 0x87e   :  { %2105 = vmatprep.subr.mxu0 %v7118_v34  ;;  %9652 = vst [vmem:[#allocation137_spill] sm:$0xff] %v7133_v57  ;;  %v7136_v34 = vld [vmem:[#allocation4 + $0x188] sm:$0xff] }
 0x87f   :  { %2106 = vmatpush2.msra.mxu0 %v7121_v13  ;;  %9653 = vst [vmem:[#allocation140_spill] sm:$0xff] %v7136_v34  ;;  %v7139_v13 = vld [vmem:[#allocation4 + $0x180] sm:$0xff] }
 0x880   :  { %2107 = vmatprep.subr.mxu0 %v7124_v0  ;;  %9654 = vst [vmem:[#allocation155_spill] sm:$0xff] %v7139_v13  ;;  %v9655_v0 = vld [vmem:[#allocation26_spill] sm:$0xff] }
 0x881   :  { %2108 = vmatpush2.msra.mxu0 %v7127_v39 }
 0x882   :  { %2109 = vmatprep.subr.mxu0 %v7130_v11 }
 0x883   :  { %2110 = vmatpush2.msra.mxu0 %v7133_v57 }
 0x884   :  { %2111 = vmatprep.subr.mxu0 %v7136_v34 }
 0x885   :  { %2112 = vmatpush2.msra.mxu0 %v7139_v13 }
 0x886   :  { %2280 = vmatprep.subr.mxu0 %v9655_v0 }
 0x905   :  { %v1953_v60 = vpop.f32.mrf.mxu0  ;;  %v2024_v13 = vpop.f32.mrf.mxu1 }
 0x906   :  { %v1954_v39 = vadd.f32 %v1953_v60, %v5194_v26  ;;  %v2025_v0 = vadd.f32 %v2024_v13, %v5221_v3  ;;  %v9658_v60 = vld [vmem:[#allocation159_spill] sm:$0xff]  ;;  %v7167_v13 = vld [vmem:[#allocation2 + $0x1c0] sm:$0xff] }
 0x907   :  { %v1955_v32 = vpop.f32.mrf.mxu0 }
 0x908   :  { %v2029_v48 = vadd.f32 %v1954_v39, %v9656_v10  ;;  %v1956_v57 = vadd.f32 %v1955_v32, %v9206_v59  ;;  %v318_v10 = vadd.f32 %v9658_v60, %v5224_v43  ;;  %v7176_v60 = vld [vmem:[#allocation2 + $0x1b8] sm:$0xff] }
 0x90a   :  { %v3221_v11 = vmul.f32 -1.442695, %v2029_v48  ;;  %v2036_v46 = vadd.f32 %v1956_v57, %v9657_v1 }
 0x90c   :  { %3628 = vpow2.f32 %v3221_v11  ;;  %v3222_v42 = vmul.f32 -1.442695, %v2036_v46 }
 0x90e   :  { %3630 = vpow2.f32 %v3222_v42 }
 0x919   :  { %v3629_v34 = vpop.eup %3628 }
 0x91a   :  { %v2033_v20 = vadd.f32 1.0, %v3629_v34  ;;  %v7170_v34 = vld [vmem:[#allocation2 + $0x1d0] sm:$0xff] }
 0x91b   :  { %v3631_v40 = vpop.eup %3630 }
 0x91c   :  { %3632 = vrcp.f32 %v2033_v20  ;;  %v2040_v11 = vadd.f32 1.0, %v3631_v40  ;;  %v7155_v20 = vld [vmem:[#allocation2 + $0x1e0] sm:$0xff]  ;;  %v7161_v40 = vld [vmem:[#allocation2 + $0x1c8] sm:$0xff] }
 0x929   :  { %v3633_v33 = vpop.eup %3632 }
 0x92a   :  { %v2043_v48 = vmul.f32 %v3633_v33, %v2025_v0  ;;  %v7158_v33 = vld [vmem:[#allocation2 + $0x1f0] sm:$0xff]  ;;  %v7173_v0 = vld [vmem:[#allocation2 + $0x1a8] sm:$0xff] }
 0x92c   :  { %v2044_v39 = vadd.f32 %v2043_v48, %v318_v10  ;;  %v7179_v10 = vld [vmem:[#allocation2 + $0x1a0] sm:$0xff]  ;;  %v7182_v48 = vld [vmem:[#allocation2 + $0x1b0] sm:$0xff] }
 0x92e   :  { %3634 = vtanh.f32 %v2044_v39  ;;  %v7185_v39 = vld [vmem:[#allocation2 + $0x188] sm:$0xff] }
 0x92f   :  { %3636 = vrcp.f32 %v2040_v11  ;;  %9659 = vst [vmem:[#allocation141_spill] sm:$0xff] %v7185_v39  ;;  %v7188_v11 = vld [vmem:[#allocation2 + $0x198] sm:$0xff] }
 0x930   :  { %9660 = vst [vmem:[#allocation154_spill] sm:$0xff] %v7188_v11 }
 0x93b   :  { %v3635_v32 = vpop.eup %3634 }
 0x93c   :  { %v2046_v46 = vsub.f32 %v6552_v4, %v3635_v32  ;;  %v3637_v1 = vpop.eup %3636  ;;  %v7164_v4 = vld [vmem:[#allocation2 + $0x1d8] sm:$0xff] }
 0x93e   :  { %v2047_v57 = vmul.f32 %v3637_v1, %v2046_v46  ;;  %v7194_v46 = vld [vmem:[#allocation2 + $0x190] sm:$0xff]  ;;  %v7197_v1 = vld [vmem:[#allocation2 + $0x168] sm:$0xff] }
 0x93f   :  { %9662 = vst [vmem:[#allocation144_spill] sm:$0xff] %v7194_v46  ;;  %9663 = vst [vmem:[#allocation145_spill] sm:$0xff] %v7197_v1 }
 0x940   :  { %v7151_v42 = vadd.f32 %v3635_v32, %v2047_v57  ;;  %v7191_v32 = vld [vmem:[#allocation2 + $0x180] sm:$0xff]  ;;  %v7200_v57 = vld [vmem:[#allocation2 + $0x178] sm:$0xff] }
 0x941   :  { %9661 = vst [vmem:[#allocation162_spill] sm:$0xff] %v7191_v32  ;;  %9664 = vst [vmem:[#allocation156_spill] sm:$0xff] %v7200_v57 }
 0x942   :  { %2114 = vmatmul.mubr.f32.vlgmr.msra.gmra.mxu0 %v7151_v42  ;;  %2185 = vmatmul.mubr.f32.vlgmr.msra.gmra.mxu1 %v7151_v42 }
 0x943   :  { %2210 = vmatpush1.msra.mxu1 %v7155_v20  ;;  %2281 = vmatpush1.msra.mxu0 %v7158_v33 }
 0x944   :  { %2211 = vmatprep.subr.mxu1 %v7161_v40  ;;  %2282 = vmatprep.subr.mxu0 %v7164_v4 }
 0x945   :  { %2212 = vmatpush1.msra.mxu1 %v7167_v13  ;;  %2283 = vmatpush1.msra.mxu0 %v7170_v34 }
 0x946   :  { %2213 = vmatprep.subr.mxu1 %v7173_v0  ;;  %2284 = vmatprep.subr.mxu0 %v7176_v60 }
 0x947   :  { %2214 = vmatpush1.msra.mxu1 %v7179_v10  ;;  %2285 = vmatpush1.msra.mxu0 %v7182_v48 }
 0x948   :  { %2215 = vmatprep.subr.mxu1 %v7185_v39  ;;  %2286 = vmatprep.subr.mxu0 %v7188_v11  ;;  %v7203_v39 = vld [vmem:[#allocation2 + $0x160] sm:$0xff]  ;;  %v7206_v11 = vld [vmem:[#allocation2 + $0x170] sm:$0xff] }
 0x949   :  { %2216 = vmatpush1.msra.mxu1 %v7191_v32  ;;  %2287 = vmatpush1.msra.mxu0 %v7194_v46  ;;  %9665 = vst [vmem:[#allocation163_spill] sm:$0xff] %v7206_v11  ;;  %v7209_v32 = vld [vmem:[#allocation2 + $0x148] sm:$0xff]  ;;  %v7212_v46 = vld [vmem:[#allocation2 + $0x158] sm:$0xff] }
 0x94a   :  { %2217 = vmatprep.subr.mxu1 %v7197_v1  ;;  %2288 = vmatprep.subr.mxu0 %v7200_v57  ;;  %9666 = vst [vmem:[#allocation164_spill] sm:$0xff] %v7209_v32  ;;  %v7215_v1 = vld [vmem:[#allocation2 + $0x140] sm:$0xff]  ;;  %v7219_v57 = vld [vmem:[#allocation2 + $0x128] sm:$0xff] }
 0x94b   :  { %2218 = vmatpush1.msra.mxu1 %v7203_v39  ;;  %2289 = vmatpush1.msra.mxu0 %v7206_v11  ;;  %9667 = vst [vmem:[#allocation165_spill] sm:$0xff] %v7215_v1  ;;  %v7223_v11 = vld [vmem:[#allocation2 + $0x120] sm:$0xff] }
 0x94c   :  { %2219 = vmatprep.subr.mxu1 %v7209_v32  ;;  %2290 = vmatprep.subr.mxu0 %v7212_v46  ;;  %v7227_v32 = vld [vmem:[#allocation2 + $0x108] sm:$0xff] }
 0x94d   :  { %2220 = vmatpush1.msra.mxu1 %v7215_v1  ;;  %2291 = vmatpush1.msra.mxu0 %v6577_v27  ;;  %v7231_v1 = vld [vmem:[#allocation2 + $0x100] sm:$0xff]  ;;  %v7235_v27 = vld [vmem:[#allocation2 + $0xe8] sm:$0xff] }
 0x94e   :  { %2221 = vmatprep.subr.mxu1 %v7219_v57  ;;  %2292 = vmatprep.subr.mxu0 %v6581_v2  ;;  %v7239_v2 = vld [vmem:[#allocation2 + $0xe0] sm:$0xff] }
 0x94f   :  { %2222 = vmatpush1.msra.mxu1 %v7223_v11  ;;  %2293 = vmatpush1.msra.mxu0 %v6585_v41  ;;  %v7243_v41 = vld [vmem:[#allocation2 + $0xc8] sm:$0xff] }
 0x950   :  { %2223 = vmatprep.subr.mxu1 %v7227_v32  ;;  %2294 = vmatprep.subr.mxu0 %v6589_v6  ;;  %v7247_v6 = vld [vmem:[#allocation2 + $0xc0] sm:$0xff] }
 0x951   :  { %2224 = vmatpush1.msra.mxu1 %v7231_v1  ;;  %2295 = vmatpush1.msra.mxu0 %v6593_v30  ;;  %v7251_v30 = vld [vmem:[#allocation2 + $0xa8] sm:$0xff] }
 0x952   :  { %2225 = vmatprep.subr.mxu1 %v7235_v27  ;;  %2296 = vmatprep.subr.mxu0 %v6597_v21  ;;  %v7255_v21 = vld [vmem:[#allocation2 + $0xa0] sm:$0xff] }
 0x953   :  { %2226 = vmatpush1.msra.mxu1 %v7239_v2  ;;  %2297 = vmatpush1.msra.mxu0 %v6601_v51  ;;  %v7259_v51 = vld [vmem:[#allocation2 + $0x88] sm:$0xff] }
 0x954   :  { %2227 = vmatprep.subr.mxu1 %v7243_v41  ;;  %2298 = vmatprep.subr.mxu0 %v6605_v44  ;;  %v7263_v44 = vld [vmem:[#allocation2 + $0x80] sm:$0xff] }
 0x955   :  { %2228 = vmatpush1.msra.mxu1 %v7247_v6  ;;  %2299 = vmatpush1.msra.mxu0 %v6609_v37  ;;  %v7267_v37 = vld [vmem:[#allocation2 + $0x68] sm:$0xff] }
 0x956   :  { %2229 = vmatprep.subr.mxu1 %v7251_v30  ;;  %2300 = vmatprep.subr.mxu0 %v6613_v15  ;;  %v7271_v15 = vld [vmem:[#allocation2 + $0x60] sm:$0xff] }
 0x957   :  { %2230 = vmatpush1.msra.mxu1 %v7255_v21  ;;  %2301 = vmatpush1.msra.mxu0 %v6617_v49  ;;  %v7275_v49 = vld [vmem:[#allocation2 + $0x48] sm:$0xff] }
 0x958   :  { %2231 = vmatprep.subr.mxu1 %v7259_v51  ;;  %2302 = vmatprep.subr.mxu0 %v6621_v36  ;;  %v7279_v36 = vld [vmem:[#allocation2 + $0x40] sm:$0xff] }
 0x959   :  { %2232 = vmatpush1.msra.mxu1 %v7263_v44  ;;  %2303 = vmatpush1.msra.mxu0 %v6625_v25  ;;  %v7283_v25 = vld [vmem:[#allocation2 + $0x28] sm:$0xff] }
 0x95a   :  { %2233 = vmatprep.subr.mxu1 %v7267_v37  ;;  %2304 = vmatprep.subr.mxu0 %v6629_v18  ;;  %v7287_v18 = vld [vmem:[#allocation2 + $0x20] sm:$0xff] }
 0x95b   :  { %2234 = vmatpush1.msra.mxu1 %v7271_v15  ;;  %2305 = vmatpush1.msra.mxu0 %v6633_v16  ;;  %v7291_v16 = vld [vmem:[#allocation2 + $0x8] sm:$0xff] }
 0x95c   :  { %2235 = vmatprep.subr.mxu1 %v7275_v49  ;;  %2306 = vmatprep.subr.mxu0 %v6637_v31  ;;  %v7295_v31 = vld [vmem:[#allocation2] sm:$0xff] }
 0x95d   :  { %2236 = vmatpush1.msra.mxu1 %v7279_v36  ;;  %2307 = vmatpush1.msra.mxu0 %v6641_v29  ;;  %v7299_v29 = vld [vmem:[#allocation2 + $0x3e8] sm:$0xff] }
 0x95e   :  { %2237 = vmatprep.subr.mxu1 %v7283_v25  ;;  %2308 = vmatprep.subr.mxu0 %v6645_v54  ;;  %v7303_v54 = vld [vmem:[#allocation2 + $0x3e0] sm:$0xff] }
 0x95f   :  { %2238 = vmatpush1.msra.mxu1 %v7287_v18  ;;  %2309 = vmatpush1.msra.mxu0 %v6649_v45  ;;  %v7307_v45 = vld [vmem:[#allocation2 + $0x3c8] sm:$0xff] }
 0x960   :  { %2239 = vmatprep.subr.mxu1 %v7291_v16  ;;  %2310 = vmatprep.subr.mxu0 %v6653_v47  ;;  %v7311_v47 = vld [vmem:[#allocation2 + $0x3c0] sm:$0xff] }
 0x961   :  { %2240 = vmatpush1.msra.mxu1 %v7295_v31  ;;  %2311 = vmatpush1.msra.mxu0 %v6657_v50  ;;  %v7315_v50 = vld [vmem:[#allocation2 + $0x3a8] sm:$0xff] }
 0x962   :  { %2241 = vmatprep.subr.mxu1 %v7299_v29  ;;  %2312 = vmatprep.subr.mxu0 %v6661_v52  ;;  %v7319_v52 = vld [vmem:[#allocation2 + $0x3a0] sm:$0xff] }
 0x963   :  { %2242 = vmatpush2.msra.mxu1 %v7303_v54  ;;  %2313 = vmatpush2.msra.mxu0 %v6665_v56  ;;  %v7323_v56 = vld [vmem:[#allocation2 + $0x388] sm:$0xff] }
 0x964   :  { %2243 = vmatprep.subr.mxu1 %v7307_v45  ;;  %2314 = vmatprep.subr.mxu0 %v6669_v58  ;;  %v7327_v58 = vld [vmem:[#allocation2 + $0x380] sm:$0xff] }
 0x965   :  { %2244 = vmatpush2.msra.mxu1 %v7311_v47  ;;  %2315 = vmatpush2.msra.mxu0 %v6673_v61  ;;  %9668 = vst [vmem:[#allocation166_spill] sm:$0xff] %v7327_v58  ;;  %v9669_v61 = vld [vmem:[#allocation142_spill] sm:$0xff] }
 0x966   :  { %2245 = vmatprep.subr.mxu1 %v7315_v50  ;;  %2316 = vmatprep.subr.mxu0 %v6677_v63  ;;  %v9670_v63 = vld [vmem:[#allocation143_spill] sm:$0xff] }
 0x967   :  { %2246 = vmatpush2.msra.mxu1 %v7319_v52  ;;  %2317 = vmatpush2.msra.mxu0 %v6681_v5  ;;  %v9671_v5 = vld [vmem:[#allocation157_spill] sm:$0xff] }
 0x968   :  { %2247 = vmatprep.subr.mxu1 %v7323_v56  ;;  %2318 = vmatprep.subr.mxu0 %v6685_v7  ;;  %v9672_v7 = vld [vmem:[#allocation9_spill] sm:$0xff] }
 0x969   :  { %2248 = vmatpush2.msra.mxu1 %v7327_v58  ;;  %2319 = vmatpush2.msra.mxu0 %v6689_v22  ;;  %v9673_v22 = vld [vmem:[#allocation27_spill] sm:$0xff] }
 0x96a   :  { %2249 = vmatprep.subr.mxu1 %v6692_v12  ;;  %2320 = vmatprep.subr.mxu0 %v6695_v17  ;;  %v9674_v12 = vld [vmem:[#allocation10_spill] sm:$0xff]  ;;  %v9675_v17 = vld [vmem:[#allocation28_spill] sm:$0xff] }
 0x96b   :  { %2250 = vmatpush2.msra.mxu1 %v6698_v62  ;;  %2321 = vmatpush2.msra.mxu0 %v6701_v19  ;;  %v9676_v62 = vld [vmem:[#allocation11_spill] sm:$0xff]  ;;  %v9677_v19 = vld [vmem:[#allocation29_spill] sm:$0xff] }
 0x96c   :  { %2251 = vmatprep.subr.mxu1 %v6704_v24  ;;  %2322 = vmatprep.subr.mxu0 %v6707_v28  ;;  %v9678_v24 = vld [vmem:[#allocation12_spill] sm:$0xff]  ;;  %v9679_v28 = vld [vmem:[#allocation30_spill] sm:$0xff] }
 0x96d   :  { %2252 = vmatpush2.msra.mxu1 %v6710_v14  ;;  %2323 = vmatpush2.msra.mxu0 %v6713_v55  ;;  %v9680_v14 = vld [vmem:[#allocation13_spill] sm:$0xff]  ;;  %v9681_v55 = vld [vmem:[#allocation31_spill] sm:$0xff] }
 0x96e   :  { %2253 = vmatprep.subr.mxu1 %v6716_v35  ;;  %2324 = vmatprep.subr.mxu0 %v6719_v38  ;;  %v9682_v35 = vld [vmem:[#allocation14_spill] sm:$0xff]  ;;  %v9683_v38 = vld [vmem:[#allocation32_spill] sm:$0xff] }
 0x96f   :  { %2254 = vmatpush2.msra.mxu1 %v9669_v61  ;;  %2325 = vmatpush2.msra.mxu0 %v9670_v63  ;;  %v9684_v61 = vld [vmem:[#allocation15_spill] sm:$0xff]  ;;  %v9685_v63 = vld [vmem:[#allocation33_spill] sm:$0xff] }
 0x970   :  { %2255 = vmatprep.subr.mxu1 %v9671_v5  ;;  %2326 = vmatprep.subr.mxu0 %v9672_v7  ;;  %v9686_v5 = vld [vmem:[#allocation16_spill] sm:$0xff]  ;;  %v9687_v7 = vld [vmem:[#allocation34_spill] sm:$0xff] }
 0x971   :  { %2256 = vmatpush2.msra.mxu1 %v9673_v22  ;;  %2327 = vmatpush2.msra.mxu0 %v9674_v12  ;;  %v9688_v22 = vld [vmem:[#allocation17_spill] sm:$0xff]  ;;  %v9689_v12 = vld [vmem:[#allocation35_spill] sm:$0xff] }
 0x972   :  { %2257 = vmatprep.subr.mxu1 %v9675_v17  ;;  %2328 = vmatprep.subr.mxu0 %v9676_v62  ;;  %v9690_v17 = vld [vmem:[#allocation18_spill] sm:$0xff]  ;;  %v9691_v62 = vld [vmem:[#allocation36_spill] sm:$0xff] }
 0x973   :  { %2258 = vmatpush2.msra.mxu1 %v9677_v19  ;;  %2329 = vmatpush2.msra.mxu0 %v9678_v24  ;;  %v9692_v19 = vld [vmem:[#allocation19_spill] sm:$0xff]  ;;  %v9693_v24 = vld [vmem:[#allocation37_spill] sm:$0xff] }
 0x974   :  { %2259 = vmatprep.subr.mxu1 %v9679_v28  ;;  %2330 = vmatprep.subr.mxu0 %v9680_v14  ;;  %v9694_v28 = vld [vmem:[#allocation20_spill] sm:$0xff]  ;;  %v9695_v14 = vld [vmem:[#allocation38_spill] sm:$0xff] }
 0x975   :  { %2260 = vmatpush2.msra.mxu1 %v9681_v55  ;;  %2331 = vmatpush2.msra.mxu0 %v9682_v35  ;;  %v9696_v55 = vld [vmem:[#allocation21_spill] sm:$0xff]  ;;  %v9697_v35 = vld [vmem:[#allocation39_spill] sm:$0xff] }
 0x976   :  { %2261 = vmatprep.subr.mxu1 %v9683_v38  ;;  %2332 = vmatprep.subr.mxu0 %v9684_v61  ;;  %v9698_v38 = vld [vmem:[#allocation22_spill] sm:$0xff]  ;;  %v9699_v61 = vld [vmem:[#allocation40_spill] sm:$0xff] }
 0x977   :  { %2262 = vmatpush2.msra.mxu1 %v9685_v63  ;;  %2333 = vmatpush2.msra.mxu0 %v9686_v5  ;;  %v9700_v63 = vld [vmem:[#allocation23_spill] sm:$0xff]  ;;  %v9701_v5 = vld [vmem:[#allocation41_spill] sm:$0xff] }
 0x978   :  { %2263 = vmatprep.subr.mxu1 %v9687_v7  ;;  %2334 = vmatprep.subr.mxu0 %v9688_v22  ;;  %v9702_v7 = vld [vmem:[#allocation24_spill] sm:$0xff]  ;;  %v9703_v22 = vld [vmem:[#allocation42_spill] sm:$0xff] }
 0x979   :  { %2264 = vmatpush2.msra.mxu1 %v9689_v12  ;;  %2335 = vmatpush2.msra.mxu0 %v9690_v17  ;;  %v9704_v12 = vld [vmem:[#allocation43_spill] sm:$0xff]  ;;  %v9705_v17 = vld [vmem:[#allocation76_spill] sm:$0xff] }
 0x97a   :  { %2265 = vmatprep.subr.mxu1 %v9691_v62  ;;  %2336 = vmatprep.subr.mxu0 %v9692_v19  ;;  %v9706_v62 = vld [vmem:[#allocation139_spill] sm:$0xff]  ;;  %v9707_v19 = vld [vmem:[#allocation44_spill] sm:$0xff] }
 0x97b   :  { %2266 = vmatpush2.msra.mxu1 %v9693_v24  ;;  %2337 = vmatpush2.msra.mxu0 %v9694_v28  ;;  %v9708_v24 = vld [vmem:[#allocation78_spill] sm:$0xff] }
 0x97c   :  { %2267 = vmatprep.subr.mxu1 %v9695_v14  ;;  %2338 = vmatprep.subr.mxu0 %v9696_v55  ;;  %v9709_v14 = vld [vmem:[#allocation25_spill] sm:$0xff] }
 0x97d   :  { %2268 = vmatpush2.msra.mxu1 %v9697_v35  ;;  %2339 = vmatpush2.msra.mxu0 %v9698_v38 }
 0x97e   :  { %2269 = vmatprep.subr.mxu1 %v9699_v61  ;;  %2340 = vmatprep.subr.mxu0 %v9700_v63 }
 0x97f   :  { %2270 = vmatpush2.msra.mxu1 %v9701_v5  ;;  %2341 = vmatpush2.msra.mxu0 %v9702_v7 }
 0x980   :  { %2271 = vmatprep.subr.mxu1 %v9703_v22  ;;  %2342 = vmatprep.subr.mxu0 %v9704_v12  ;;  %v2026_v22 = vpop.f32.mrf.mxu1 }
 0x981   :  { %2272 = vmatpush2.msra.mxu1 %v9705_v17  ;;  %2343 = vmatpush2.msra.mxu0 %v9706_v62 }
 0x982   :  { %2371 = vmatprep.subr.mxu1 %v9707_v19  ;;  %3421 = vmatprep.subr.mxu0 %v9708_v24  ;;  %v2027_v24 = vadd.f32 %v2026_v22, %v5471_v8  ;;  %v9713_v22 = vld [vmem:[#allocation82_spill] sm:$0xff] }
 0xa02   :  { %v2115_v28 = vpop.f32.mrf.mxu0  ;;  %v3418_v12 = vpop.f32.mrf.mxu1 }
 0xa03   :  { %v2116_v55 = vadd.f32 %v2115_v28, %v9709_v14 }
 0xa04   :  { %v2117_v38 = vpop.f32.mrf.mxu0  ;;  %v3419_v17 = vpop.f32.mrf.mxu1 }
 0xa05   :  { %v3223_v35 = vmul.f32 -1.442695, %v2116_v55  ;;  %v2118_v61 = vadd.f32 %v2117_v38, %v5466_v53  ;;  %v3420_v62 = vadd.f32 %v3419_v17, %v3418_v12  ;;  %v9714_v12 = vld [vmem:[#allocation47_spill] sm:$0xff]  ;;  %v9715_v17 = vld [vmem:[#allocation84_spill] sm:$0xff] }
 0xa07   :  { %3638 = vpow2.f32 %v3223_v35  ;;  %v3224_v63 = vmul.f32 -1.442695, %v2118_v61  ;;  %v2187_v28 = vadd.f32 %v3420_v62, %v5474_v9  ;;  %v9716_v62 = vld [vmem:[#allocation48_spill] sm:$0xff] }
 0xa09   :  { %3640 = vpow2.f32 %v3224_v63 }
 0xa14   :  { %v3639_v5 = vpop.eup %3638 }
 0xa15   :  { %v2193_v7 = vadd.f32 1.0, %v3639_v5 }
 0xa16   :  { %v3641_v19 = vpop.eup %3640 }
 0xa17   :  { %3642 = vrcp.f32 %v2193_v7  ;;  %v2199_v35 = vadd.f32 1.0, %v3641_v19  ;;  %v9717_v19 = vld [vmem:[#allocation86_spill] sm:$0xff] }
 0xa24   :  { %v3643_v58 = vpop.eup %3642 }
 0xa25   :  { %v2202_v55 = vmul.f32 %v3643_v58, %v2027_v24  ;;  %v9711_v58 = vld [vmem:[#allocation79_spill] sm:$0xff]  ;;  %v9718_v24 = vld [vmem:[#allocation49_spill] sm:$0xff] }
 0xa27   :  { %v2203_v14 = vadd.f32 %v2202_v55, %v2187_v28  ;;  %v9719_v28 = vld [vmem:[#allocation88_spill] sm:$0xff]  ;;  %v9720_v55 = vld [vmem:[#allocation50_spill] sm:$0xff] }
 0xa29   :  { %3644 = vtanh.f32 %v2203_v14  ;;  %v9712_v14 = vld [vmem:[#allocation46_spill] sm:$0xff] }
 0xa2a   :  { %3646 = vrcp.f32 %v2199_v35  ;;  %v9721_v35 = vld [vmem:[#allocation90_spill] sm:$0xff] }
 0xa36   :  { %v3645_v38 = vpop.eup %3644 }
 0xa37   :  { %v2205_v61 = vsub.f32 %v6847_v23, %v3645_v38  ;;  %v3647_v63 = vpop.eup %3646  ;;  %v9710_v23 = vld [vmem:[#allocation45_spill] sm:$0xff] }
 0xa39   :  { %v2206_v5 = vmul.f32 %v3647_v63, %v2205_v61  ;;  %v9723_v61 = vld [vmem:[#allocation92_spill] sm:$0xff] }
 0xa3a   :  { %v9724_v63 = vld [vmem:[#allocation52_spill] sm:$0xff] }
 0xa3b   :  { %v7386_v7 = vadd.f32 %v3645_v38, %v2206_v5  ;;  %v9722_v38 = vld [vmem:[#allocation51_spill] sm:$0xff]  ;;  %v9725_v5 = vld [vmem:[#allocation94_spill] sm:$0xff] }
 0xa3d   :  { %2208 = vst [vmem:[%s8325_s7 + $0x20] sm:$0xff] %v7386_v7  ;;  %2273 = vmatprep.mubr.f32.mxu1 %v7386_v7  ;;  %2344 = vmatprep.mubr.f32.mxu0 %v7386_v7 }
 0xa3e   :  { %2274 = vmatmul.mubr.f32.vlgmr.msra.gmra.mxu1 %v7151_v42  ;;  %2345 = vmatmul.mubr.f32.vlgmr.msra.gmra.mxu0 %v7151_v42 }
 0xa3f   :  { %2435 = vmatprep.mubr.f32.mxu1 %v7386_v7  ;;  %2506 = vmatprep.mubr.f32.mxu0 %v7386_v7 }
 0xa40   :  { %2372 = vmatpush1.msra.mxu1 %v9710_v23  ;;  %3422 = vmatpush3.msra.mxu0 %v9711_v58  ;;  %v9726_v23 = vld [vmem:[#allocation53_spill] sm:$0xff]  ;;  %v9727_v58 = vld [vmem:[#allocation96_spill] sm:$0xff] }
 0xa41   :  { %2373 = vmatprep.subr.mxu1 %v9712_v14  ;;  %3423 = vmatprep.subr.mxu0 %v9713_v22  ;;  %v9728_v14 = vld [vmem:[#allocation54_spill] sm:$0xff] }
 0xa42   :  { %2374 = vmatpush1.msra.mxu1 %v9714_v12  ;;  %3424 = vmatpush3.msra.mxu0 %v9715_v17  ;;  %v9729_v22 = vld [vmem:[#allocation98_spill] sm:$0xff]  ;;  %v9730_v12 = vld [vmem:[#allocation55_spill] sm:$0xff]  ;;  %v9731_v17 = vld [vmem:[#allocation100_spill] sm:$0xff] }
 0xa43   :  { %2375 = vmatprep.subr.mxu1 %v9716_v62  ;;  %3425 = vmatprep.subr.mxu0 %v9717_v19  ;;  %v9732_v62 = vld [vmem:[#allocation56_spill] sm:$0xff]  ;;  %v9733_v19 = vld [vmem:[#allocation102_spill] sm:$0xff] }
 0xa44   :  { %2376 = vmatpush1.msra.mxu1 %v9718_v24  ;;  %3426 = vmatpush3.msra.mxu0 %v9719_v28  ;;  %v9734_v24 = vld [vmem:[#allocation57_spill] sm:$0xff]  ;;  %v9735_v28 = vld [vmem:[#allocation104_spill] sm:$0xff] }
 0xa45   :  { %2377 = vmatprep.subr.mxu1 %v9720_v55  ;;  %3427 = vmatprep.subr.mxu0 %v9721_v35  ;;  %v9736_v55 = vld [vmem:[#allocation58_spill] sm:$0xff] }
 0xa46   :  { %2378 = vmatpush1.msra.mxu1 %v9722_v38  ;;  %3428 = vmatpush3.msra.mxu0 %v9723_v61  ;;  %v9737_v35 = vld [vmem:[#allocation106_spill] sm:$0xff]  ;;  %v9738_v38 = vld [vmem:[#allocation59_spill] sm:$0xff]  ;;  %v9739_v61 = vld [vmem:[#allocation108_spill] sm:$0xff] }
 0xa47   :  { %2379 = vmatprep.subr.mxu1 %v9724_v63  ;;  %3429 = vmatprep.subr.mxu0 %v9725_v5  ;;  %v9740_v63 = vld [vmem:[#allocation60_spill] sm:$0xff]  ;;  %v9741_v5 = vld [vmem:[#allocation110_spill] sm:$0xff] }
 0xa48   :  { %2380 = vmatpush1.msra.mxu1 %v9726_v23  ;;  %3430 = vmatpush3.msra.mxu0 %v9727_v58  ;;  %v9742_v23 = vld [vmem:[#allocation61_spill] sm:$0xff]  ;;  %v9743_v58 = vld [vmem:[#allocation112_spill] sm:$0xff] }
 0xa49   :  { %2381 = vmatprep.subr.mxu1 %v9728_v14  ;;  %3431 = vmatprep.subr.mxu0 %v9729_v22  ;;  %v9744_v14 = vld [vmem:[#allocation62_spill] sm:$0xff] }
 0xa4a   :  { %2382 = vmatpush1.msra.mxu1 %v9730_v12  ;;  %3432 = vmatpush3.msra.mxu0 %v9731_v17  ;;  %v9745_v22 = vld [vmem:[#allocation114_spill] sm:$0xff]  ;;  %v9746_v12 = vld [vmem:[#allocation63_spill] sm:$0xff]  ;;  %v9747_v17 = vld [vmem:[#allocation116_spill] sm:$0xff] }
 0xa4b   :  { %2383 = vmatprep.subr.mxu1 %v9732_v62  ;;  %3433 = vmatprep.subr.mxu0 %v9733_v19  ;;  %v9748_v62 = vld [vmem:[#allocation64_spill] sm:$0xff]  ;;  %v9749_v19 = vld [vmem:[#allocation118_spill] sm:$0xff] }
 0xa4c   :  { %2384 = vmatpush1.msra.mxu1 %v9734_v24  ;;  %3434 = vmatpush3.msra.mxu0 %v9735_v28  ;;  %v9750_v24 = vld [vmem:[#allocation65_spill] sm:$0xff]  ;;  %v9751_v28 = vld [vmem:[#allocation120_spill] sm:$0xff] }
 0xa4d   :  { %2385 = vmatprep.subr.mxu1 %v9736_v55  ;;  %3435 = vmatprep.subr.mxu0 %v9737_v35  ;;  %v9752_v55 = vld [vmem:[#allocation66_spill] sm:$0xff] }
 0xa4e   :  { %2386 = vmatpush1.msra.mxu1 %v9738_v38  ;;  %3436 = vmatpush3.msra.mxu0 %v9739_v61  ;;  %v9753_v35 = vld [vmem:[#allocation122_spill] sm:$0xff]  ;;  %v9754_v38 = vld [vmem:[#allocation67_spill] sm:$0xff]  ;;  %v9755_v61 = vld [vmem:[#allocation124_spill] sm:$0xff] }
 0xa4f   :  { %2387 = vmatprep.subr.mxu1 %v9740_v63  ;;  %3437 = vmatprep.subr.mxu0 %v9741_v5  ;;  %v9756_v63 = vld [vmem:[#allocation68_spill] sm:$0xff]  ;;  %v9757_v5 = vld [vmem:[#allocation126_spill] sm:$0xff] }
 0xa50   :  { %2388 = vmatpush1.msra.mxu1 %v9742_v23  ;;  %3438 = vmatpush3.msra.mxu0 %v9743_v58  ;;  %v9758_v23 = vld [vmem:[#allocation69_spill] sm:$0xff]  ;;  %v9759_v58 = vld [vmem:[#allocation128_spill] sm:$0xff] }
 0xa51   :  { %2389 = vmatprep.subr.mxu1 %v9744_v14  ;;  %3439 = vmatprep.subr.mxu0 %v9745_v22  ;;  %v9760_v14 = vld [vmem:[#allocation70_spill] sm:$0xff] }
 0xa52   :  { %2390 = vmatpush1.msra.mxu1 %v9746_v12  ;;  %3440 = vmatpush3.msra.mxu0 %v9747_v17  ;;  %v9761_v22 = vld [vmem:[#allocation130_spill] sm:$0xff]  ;;  %v9762_v12 = vld [vmem:[#allocation71_spill] sm:$0xff]  ;;  %v9763_v17 = vld [vmem:[#allocation132_spill] sm:$0xff] }
 0xa53   :  { %2391 = vmatprep.subr.mxu1 %v9748_v62  ;;  %3441 = vmatprep.subr.mxu0 %v9749_v19  ;;  %v9764_v62 = vld [vmem:[#allocation72_spill] sm:$0xff]  ;;  %v9765_v19 = vld [vmem:[#allocation134_spill] sm:$0xff] }
 0xa54   :  { %2392 = vmatpush1.msra.mxu1 %v9750_v24  ;;  %3442 = vmatpush3.msra.mxu0 %v9751_v28  ;;  %v9766_v24 = vld [vmem:[#allocation73_spill] sm:$0xff]  ;;  %v9767_v28 = vld [vmem:[#allocation136_spill] sm:$0xff] }
 0xa55   :  { %2393 = vmatprep.subr.mxu1 %v9752_v55  ;;  %3443 = vmatprep.subr.mxu0 %v9753_v35  ;;  %v9768_v55 = vld [vmem:[#allocation74_spill] sm:$0xff] }
 0xa56   :  { %2394 = vmatpush1.msra.mxu1 %v9754_v38  ;;  %3444 = vmatpush3.msra.mxu0 %v9755_v61  ;;  %v9769_v35 = vld [vmem:[#allocation138_spill] sm:$0xff]  ;;  %v9770_v38 = vld [vmem:[#allocation75_spill] sm:$0xff]  ;;  %v9771_v61 = vld [vmem:[#allocation77_spill] sm:$0xff] }
 0xa57   :  { %2395 = vmatprep.subr.mxu1 %v9756_v63  ;;  %3445 = vmatprep.subr.mxu0 %v9757_v5  ;;  %v9772_v63 = vld [vmem:[#allocation80_spill] sm:$0xff]  ;;  %v7461_v5 = vld [vmem:[#allocation2 + $0x1e8] sm:$0xff] }
 0xa58   :  { %2396 = vmatpush1.msra.mxu1 %v9758_v23  ;;  %3446 = vmatpush3.msra.mxu0 %v9759_v58  ;;  %9773 = vst [vmem:[#allocation167_spill] sm:$0xff] %v7461_v5  ;;  %v9774_v23 = vld [vmem:[#allocation81_spill] sm:$0xff]  ;;  %v9775_v58 = vld [vmem:[#allocation83_spill] sm:$0xff] }
 0xa59   :  { %2397 = vmatprep.subr.mxu1 %v9760_v14  ;;  %3447 = vmatprep.subr.mxu0 %v9761_v22  ;;  %v9776_v14 = vld [vmem:[#allocation85_spill] sm:$0xff]  ;;  %v9777_v22 = vld [vmem:[#allocation87_spill] sm:$0xff] }
 0xa5a   :  { %2398 = vmatpush1.msra.mxu1 %v9762_v12  ;;  %3448 = vmatpush3.msra.mxu0 %v9763_v17  ;;  %v9778_v12 = vld [vmem:[#allocation89_spill] sm:$0xff]  ;;  %v9779_v17 = vld [vmem:[#allocation91_spill] sm:$0xff] }
 0xa5b   :  { %2399 = vmatprep.subr.mxu1 %v9764_v62  ;;  %3449 = vmatprep.subr.mxu0 %v9765_v19  ;;  %v9780_v62 = vld [vmem:[#allocation93_spill] sm:$0xff]  ;;  %v9781_v19 = vld [vmem:[#allocation95_spill] sm:$0xff] }
 0xa5c   :  { %2400 = vmatpush1.msra.mxu1 %v9766_v24  ;;  %3450 = vmatpush3.msra.mxu0 %v9767_v28  ;;  %v9782_v24 = vld [vmem:[#allocation97_spill] sm:$0xff]  ;;  %v9783_v28 = vld [vmem:[#allocation99_spill] sm:$0xff] }
 0xa5d   :  { %2401 = vmatprep.subr.mxu1 %v9768_v55  ;;  %3451 = vmatprep.subr.mxu0 %v9769_v35  ;;  %v9784_v55 = vld [vmem:[#allocation101_spill] sm:$0xff]  ;;  %v9785_v35 = vld [vmem:[#allocation103_spill] sm:$0xff] }
 0xa5e   :  { %2402 = vmatpush1.msra.mxu1 %v9770_v38  ;;  %3452 = vmatpush3.msra.mxu0 %v9771_v61  ;;  %v9786_v38 = vld [vmem:[#allocation105_spill] sm:$0xff]  ;;  %v9787_v61 = vld [vmem:[#allocation107_spill] sm:$0xff] }
 0xa5f   :  { %2403 = vmatprep.subr.mxu1 %v9772_v63  ;;  %2531 = vmatprep.subr.mxu0 %v7461_v5  ;;  %v9788_v63 = vld [vmem:[#allocation109_spill] sm:$0xff] }
 0xa60   :  { %2404 = vmatpush2.msra.mxu1 %v9774_v23  ;;  %v9789_v23 = vld [vmem:[#allocation111_spill] sm:$0xff] }
 0xa61   :  { %2405 = vmatprep.subr.mxu1 %v9775_v58  ;;  %v9790_v58 = vld [vmem:[#allocation113_spill] sm:$0xff] }
 0xa62   :  { %2406 = vmatpush2.msra.mxu1 %v9776_v14  ;;  %v9791_v14 = vld [vmem:[#allocation115_spill] sm:$0xff] }
 0xa63   :  { %2407 = vmatprep.subr.mxu1 %v9777_v22  ;;  %v9792_v22 = vld [vmem:[#allocation117_spill] sm:$0xff] }
 0xa64   :  { %2408 = vmatpush2.msra.mxu1 %v9778_v12  ;;  %v9793_v12 = vld [vmem:[#allocation119_spill] sm:$0xff] }
 0xa65   :  { %2409 = vmatprep.subr.mxu1 %v9779_v17  ;;  %v9794_v17 = vld [vmem:[#allocation121_spill] sm:$0xff] }
 0xa66   :  { %2410 = vmatpush2.msra.mxu1 %v9780_v62  ;;  %v9795_v62 = vld [vmem:[#allocation123_spill] sm:$0xff] }
 0xa67   :  { %2411 = vmatprep.subr.mxu1 %v9781_v19  ;;  %v9796_v19 = vld [vmem:[#allocation125_spill] sm:$0xff] }
 0xa68   :  { %2412 = vmatpush2.msra.mxu1 %v9782_v24  ;;  %v9797_v24 = vld [vmem:[#allocation127_spill] sm:$0xff] }
 0xa69   :  { %2413 = vmatprep.subr.mxu1 %v9783_v28  ;;  %v9798_v28 = vld [vmem:[#allocation129_spill] sm:$0xff] }
 0xa6a   :  { %2414 = vmatpush2.msra.mxu1 %v9784_v55  ;;  %v9799_v55 = vld [vmem:[#allocation131_spill] sm:$0xff] }
 0xa6b   :  { %2415 = vmatprep.subr.mxu1 %v9785_v35  ;;  %v9800_v35 = vld [vmem:[#allocation133_spill] sm:$0xff] }
 0xa6c   :  { %2416 = vmatpush2.msra.mxu1 %v9786_v38  ;;  %v9801_v38 = vld [vmem:[#allocation135_spill] sm:$0xff] }
 0xa6d   :  { %2417 = vmatprep.subr.mxu1 %v9787_v61  ;;  %v9802_v61 = vld [vmem:[#allocation137_spill] sm:$0xff] }
 0xa6e   :  { %2418 = vmatpush2.msra.mxu1 %v9788_v63  ;;  %v9803_v63 = vld [vmem:[#allocation140_spill] sm:$0xff] }
 0xa6f   :  { %2419 = vmatprep.subr.mxu1 %v9789_v23  ;;  %v9804_v23 = vld [vmem:[#allocation155_spill] sm:$0xff] }
 0xa70   :  { %2420 = vmatpush2.msra.mxu1 %v9790_v58  ;;  %v7495_v58 = vld [vmem:[#allocation2 + $0x1f8] sm:$0xff] }
 0xa71   :  { %2421 = vmatprep.subr.mxu1 %v9791_v14  ;;  %9805 = vst [vmem:[#allocation168_spill] sm:$0xff] %v7495_v58 }
 0xa72   :  { %2422 = vmatpush2.msra.mxu1 %v9792_v22 }
 0xa73   :  { %2423 = vmatprep.subr.mxu1 %v9793_v12  ;;  %v9806_v12 = vld [vmem:[#allocation148_spill] sm:$0xff] }
 0xa74   :  { %2424 = vmatpush2.msra.mxu1 %v9794_v17 }
 0xa75   :  { %2425 = vmatprep.subr.mxu1 %v9795_v62 }
 0xa76   :  { %2426 = vmatpush2.msra.mxu1 %v9796_v19 }
 0xa77   :  { %2427 = vmatprep.subr.mxu1 %v9797_v24 }
 0xa78   :  { %2428 = vmatpush2.msra.mxu1 %v9798_v28  ;;  %v9807_v28 = vld [vmem:[#allocation149_spill] sm:$0xff] }
 0xa79   :  { %2429 = vmatprep.subr.mxu1 %v9799_v55 }
 0xa7a   :  { %2430 = vmatpush2.msra.mxu1 %v9800_v35 }
 0xa7b   :  { %2431 = vmatprep.subr.mxu1 %v9801_v38 }
 0xa7c   :  { %2432 = vmatpush2.msra.mxu1 %v9802_v61 }
 0xa7d   :  { %2433 = vmatprep.subr.mxu1 %v9803_v63 }
 0xa7e   :  { %2434 = vmatpush2.msra.mxu1 %v9804_v23 }
 0xa7f   :  { %2602 = vmatprep.subr.mxu1 %v7495_v58 }
 0xafe   :  { %v2275_v14 = vpop.f32.mrf.mxu1  ;;  %v2346_v63 = vpop.f32.mrf.mxu0 }
 0xaff   :  { %v2276_v22 = vadd.f32 %v2275_v14, %v5194_v26  ;;  %v2347_v58 = vadd.f32 %v2346_v63, %v5221_v3  ;;  %v9808_v14 = vld [vmem:[#allocation158_spill] sm:$0xff]  ;;  %v7661_v63 = vld [vmem:[#allocation2 + $0x358] sm:$0xff] }
 0xb00   :  { %v2277_v19 = vpop.f32.mrf.mxu1 }
 0xb01   :  { %v2351_v17 = vadd.f32 %v2276_v22, %v9806_v12  ;;  %v2278_v24 = vadd.f32 %v2277_v19, %v9206_v59  ;;  %v323_v22 = vadd.f32 %v9808_v14, %v5224_v43  ;;  %v7667_v14 = vld [vmem:[#allocation2 + $0x350] sm:$0xff] }
 0xb03   :  { %v3225_v62 = vmul.f32 -1.442695, %v2351_v17  ;;  %v2358_v55 = vadd.f32 %v2278_v24, %v9807_v28 }
 0xb05   :  { %3648 = vpow2.f32 %v3225_v62  ;;  %v3226_v35 = vmul.f32 -1.442695, %v2358_v55 }
 0xb07   :  { %3650 = vpow2.f32 %v3226_v35 }
 0xb12   :  { %v3649_v38 = vpop.eup %3648 }
 0xb13   :  { %v2355_v61 = vadd.f32 1.0, %v3649_v38  ;;  %v7652_v38 = vld [vmem:[#allocation2 + $0x360] sm:$0xff] }
 0xb14   :  { %v3651_v23 = vpop.eup %3650 }
 0xb15   :  { %3652 = vrcp.f32 %v2355_v61  ;;  %v2362_v62 = vadd.f32 1.0, %v3651_v23  ;;  %v7658_v61 = vld [vmem:[#allocation2 + $0x348] sm:$0xff]  ;;  %v7664_v23 = vld [vmem:[#allocation2 + $0x340] sm:$0xff] }
 0xb22   :  { %v3653_v5 = vpop.eup %3652 }
 0xb23   :  { %v2365_v12 = vmul.f32 %v3653_v5, %v2347_v58  ;;  %v7547_v5 = vld [vmem:[#allocation2 + $0x110] sm:$0xff] }
 0xb24   :  { %v7643_v58 = vld [vmem:[#allocation2 + $0x390] sm:$0xff] }
 0xb25   :  { %v2366_v17 = vadd.f32 %v2365_v12, %v323_v22  ;;  %v7670_v22 = vld [vmem:[#allocation2 + $0x328] sm:$0xff]  ;;  %v7673_v12 = vld [vmem:[#allocation2 + $0x338] sm:$0xff] }
 0xb27   :  { %3654 = vtanh.f32 %v2366_v17  ;;  %v7676_v17 = vld [vmem:[#allocation2 + $0x320] sm:$0xff] }
 0xb28   :  { %3656 = vrcp.f32 %v2362_v62  ;;  %9819 = vst [vmem:[#allocation169_spill] sm:$0xff] %v7676_v17  ;;  %v7679_v62 = vld [vmem:[#allocation2 + $0x330] sm:$0xff] }
 0xb29   :  { %9820 = vst [vmem:[#allocation170_spill] sm:$0xff] %v7679_v62 }
 0xb34   :  { %v3655_v19 = vpop.eup %3654 }
 0xb35   :  { %v2368_v24 = vsub.f32 %v7151_v42, %v3655_v19  ;;  %v3657_v28 = vpop.eup %3656  ;;  %v9809_v42 = vld [vmem:[#allocation141_spill] sm:$0xff] }
 0xb37   :  { %v2369_v55 = vmul.f32 %v3657_v28, %v2368_v24  ;;  %v7685_v24 = vld [vmem:[#allocation2 + $0x318] sm:$0xff]  ;;  %v7688_v28 = vld [vmem:[#allocation2 + $0x300] sm:$0xff] }
 0xb38   :  { %9822 = vst [vmem:[#allocation172_spill] sm:$0xff] %v7685_v24  ;;  %9823 = vst [vmem:[#allocation8_spill] sm:$0xff] %v7688_v28 }
 0xb39   :  { %v7506_v35 = vadd.f32 %v3655_v19, %v2369_v55  ;;  %v7682_v19 = vld [vmem:[#allocation2 + $0x308] sm:$0xff]  ;;  %v7691_v55 = vld [vmem:[#allocation2 + $0x310] sm:$0xff] }
 0xb3a   :  { %9821 = vst [vmem:[#allocation171_spill] sm:$0xff] %v7682_v19  ;;  %9824 = vst [vmem:[#allocation26_spill] sm:$0xff] %v7691_v55 }
 0xb3b   :  { %2436 = vmatmul.mubr.f32.vlgmr.msra.gmra.mxu1 %v7506_v35  ;;  %2507 = vmatmul.mubr.f32.vlgmr.msra.gmra.mxu0 %v7506_v35 }
 0xb3c   :  { %2532 = vmatpush1.msra.mxu0 %v7155_v20  ;;  %2603 = vmatpush1.msra.mxu1 %v7158_v33  ;;  %v9810_v20 = vld [vmem:[#allocation154_spill] sm:$0xff] }
 0xb3d   :  { %2533 = vmatprep.subr.mxu0 %v7161_v40  ;;  %2604 = vmatprep.subr.mxu1 %v7164_v4  ;;  %v9811_v33 = vld [vmem:[#allocation162_spill] sm:$0xff]  ;;  %v9812_v40 = vld [vmem:[#allocation144_spill] sm:$0xff]  ;;  %v9813_v4 = vld [vmem:[#allocation145_spill] sm:$0xff] }
 0xb3e   :  { %2534 = vmatpush1.msra.mxu0 %v7167_v13  ;;  %2605 = vmatpush1.msra.mxu1 %v7170_v34  ;;  %v9814_v13 = vld [vmem:[#allocation156_spill] sm:$0xff]  ;;  %v9815_v34 = vld [vmem:[#allocation163_spill] sm:$0xff] }
 0xb3f   :  { %2535 = vmatprep.subr.mxu0 %v7173_v0  ;;  %2606 = vmatprep.subr.mxu1 %v7176_v60  ;;  %v9816_v0 = vld [vmem:[#allocation164_spill] sm:$0xff]  ;;  %v9817_v60 = vld [vmem:[#allocation165_spill] sm:$0xff] }
 0xb40   :  { %2536 = vmatpush1.msra.mxu0 %v7179_v10  ;;  %2607 = vmatpush1.msra.mxu1 %v7182_v48  ;;  %v7531_v10 = vld [vmem:[#allocation2 + $0x150] sm:$0xff]  ;;  %v7535_v48 = vld [vmem:[#allocation2 + $0x138] sm:$0xff] }
 0xb41   :  { %2537 = vmatprep.subr.mxu0 %v9809_v42  ;;  %2608 = vmatprep.subr.mxu1 %v9810_v20  ;;  %v7694_v42 = vld [vmem:[#allocation2 + $0x2e8] sm:$0xff]  ;;  %v7697_v20 = vld [vmem:[#allocation2 + $0x2f8] sm:$0xff] }
 0xb42   :  { %2538 = vmatpush1.msra.mxu0 %v9811_v33  ;;  %2609 = vmatpush1.msra.mxu1 %v9812_v40  ;;  %9825 = vst [vmem:[#allocation146_spill] sm:$0xff] %v7694_v42  ;;  %9826 = vst [vmem:[#allocation147_spill] sm:$0xff] %v7697_v20  ;;  %v7700_v33 = vld [vmem:[#allocation2 + $0x2e0] sm:$0xff]  ;;  %v7703_v40 = vld [vmem:[#allocation2 + $0x2f0] sm:$0xff] }
 0xb43   :  { %2539 = vmatprep.subr.mxu0 %v9813_v4  ;;  %2610 = vmatprep.subr.mxu1 %v9814_v13  ;;  %9827 = vst [vmem:[#allocation159_spill] sm:$0xff] %v7700_v33  ;;  %9828 = vst [vmem:[#allocation142_spill] sm:$0xff] %v7703_v40  ;;  %v7706_v4 = vld [vmem:[#allocation2 + $0x2c8] sm:$0xff]  ;;  %v7709_v13 = vld [vmem:[#allocation2 + $0x2d8] sm:$0xff] }
 0xb44   :  { %2540 = vmatpush1.msra.mxu0 %v7203_v39  ;;  %2611 = vmatpush1.msra.mxu1 %v9815_v34  ;;  %v7539_v39 = vld [vmem:[#allocation2 + $0x130] sm:$0xff]  ;;  %9829 = vst [vmem:[#allocation143_spill] sm:$0xff] %v7706_v4  ;;  %9830 = vst [vmem:[#allocation157_spill] sm:$0xff] %v7709_v13  ;;  %v7712_v34 = vld [vmem:[#allocation2 + $0x2c0] sm:$0xff] }
 0xb45   :  { %2541 = vmatprep.subr.mxu0 %v9816_v0  ;;  %2612 = vmatprep.subr.mxu1 %v7212_v46  ;;  %v7543_v46 = vld [vmem:[#allocation2 + $0x118] sm:$0xff]  ;;  %9831 = vst [vmem:[#allocation9_spill] sm:$0xff] %v7712_v34  ;;  %v7715_v0 = vld [vmem:[#allocation2 + $0x2d0] sm:$0xff] }
 0xb46   :  { %2542 = vmatpush1.msra.mxu0 %v9817_v60  ;;  %2613 = vmatpush1.msra.mxu1 %v7531_v10  ;;  %9832 = vst [vmem:[#allocation27_spill] sm:$0xff] %v7715_v0  ;;  %v7718_v60 = vld [vmem:[#allocation2 + $0x2a8] sm:$0xff] }
 0xb47   :  { %2543 = vmatprep.subr.mxu0 %v7219_v57  ;;  %2614 = vmatprep.subr.mxu1 %v7535_v48  ;;  %v7551_v57 = vld [vmem:[#allocation2 + $0xf8] sm:$0xff]  ;;  %9833 = vst [vmem:[#allocation10_spill] sm:$0xff] %v7718_v60 }
 0xb48   :  { %2544 = vmatpush1.msra.mxu0 %v7223_v11  ;;  %2615 = vmatpush1.msra.mxu1 %v7539_v39  ;;  %v7555_v11 = vld [vmem:[#allocation2 + $0xf0] sm:$0xff] }
 0xb49   :  { %2545 = vmatprep.subr.mxu0 %v7227_v32  ;;  %2616 = vmatprep.subr.mxu1 %v7543_v46  ;;  %v7559_v32 = vld [vmem:[#allocation2 + $0xd8] sm:$0xff] }
 0xb4a   :  { %2546 = vmatpush1.msra.mxu0 %v7231_v1  ;;  %2617 = vmatpush1.msra.mxu1 %v7547_v5  ;;  %v7563_v1 = vld [vmem:[#allocation2 + $0xd0] sm:$0xff] }
 0xb4b   :  { %2547 = vmatprep.subr.mxu0 %v7235_v27  ;;  %2618 = vmatprep.subr.mxu1 %v7551_v57  ;;  %v7567_v27 = vld [vmem:[#allocation2 + $0xb8] sm:$0xff] }
 0xb4c   :  { %2548 = vmatpush1.msra.mxu0 %v7239_v2  ;;  %2619 = vmatpush1.msra.mxu1 %v7555_v11  ;;  %v7571_v2 = vld [vmem:[#allocation2 + $0xb0] sm:$0xff] }
 0xb4d   :  { %2549 = vmatprep.subr.mxu0 %v7243_v41  ;;  %2620 = vmatprep.subr.mxu1 %v7559_v32  ;;  %v7575_v41 = vld [vmem:[#allocation2 + $0x98] sm:$0xff] }
 0xb4e   :  { %2550 = vmatpush1.msra.mxu0 %v7247_v6  ;;  %2621 = vmatpush1.msra.mxu1 %v7563_v1  ;;  %v7579_v6 = vld [vmem:[#allocation2 + $0x90] sm:$0xff] }
 0xb4f   :  { %2551 = vmatprep.subr.mxu0 %v7251_v30  ;;  %2622 = vmatprep.subr.mxu1 %v7567_v27  ;;  %v7583_v30 = vld [vmem:[#allocation2 + $0x78] sm:$0xff] }
 0xb50   :  { %2552 = vmatpush1.msra.mxu0 %v7255_v21  ;;  %2623 = vmatpush1.msra.mxu1 %v7571_v2  ;;  %v7587_v21 = vld [vmem:[#allocation2 + $0x70] sm:$0xff] }
 0xb51   :  { %2553 = vmatprep.subr.mxu0 %v7259_v51  ;;  %2624 = vmatprep.subr.mxu1 %v7575_v41  ;;  %v7591_v51 = vld [vmem:[#allocation2 + $0x58] sm:$0xff] }
 0xb52   :  { %2554 = vmatpush1.msra.mxu0 %v7263_v44  ;;  %2625 = vmatpush1.msra.mxu1 %v7579_v6  ;;  %v7595_v44 = vld [vmem:[#allocation2 + $0x50] sm:$0xff] }
 0xb53   :  { %2555 = vmatprep.subr.mxu0 %v7267_v37  ;;  %2626 = vmatprep.subr.mxu1 %v7583_v30  ;;  %v7599_v37 = vld [vmem:[#allocation2 + $0x38] sm:$0xff] }
 0xb54   :  { %2556 = vmatpush1.msra.mxu0 %v7271_v15  ;;  %2627 = vmatpush1.msra.mxu1 %v7587_v21  ;;  %v7603_v15 = vld [vmem:[#allocation2 + $0x30] sm:$0xff] }
 0xb55   :  { %2557 = vmatprep.subr.mxu0 %v7275_v49  ;;  %2628 = vmatprep.subr.mxu1 %v7591_v51  ;;  %v7607_v49 = vld [vmem:[#allocation2 + $0x18] sm:$0xff] }
 0xb56   :  { %2558 = vmatpush1.msra.mxu0 %v7279_v36  ;;  %2629 = vmatpush1.msra.mxu1 %v7595_v44  ;;  %v7611_v36 = vld [vmem:[#allocation2 + $0x10] sm:$0xff] }
 0xb57   :  { %2559 = vmatprep.subr.mxu0 %v7283_v25  ;;  %2630 = vmatprep.subr.mxu1 %v7599_v37  ;;  %v7615_v25 = vld [vmem:[#allocation2 + $0x3f8] sm:$0xff] }
 0xb58   :  { %2560 = vmatpush1.msra.mxu0 %v7287_v18  ;;  %2631 = vmatpush1.msra.mxu1 %v7603_v15  ;;  %v7619_v18 = vld [vmem:[#allocation2 + $0x3f0] sm:$0xff] }
 0xb59   :  { %2561 = vmatprep.subr.mxu0 %v7291_v16  ;;  %2632 = vmatprep.subr.mxu1 %v7607_v49  ;;  %v7623_v16 = vld [vmem:[#allocation2 + $0x3d8] sm:$0xff] }
 0xb5a   :  { %2562 = vmatpush1.msra.mxu0 %v7295_v31  ;;  %2633 = vmatpush1.msra.mxu1 %v7611_v36  ;;  %v7627_v31 = vld [vmem:[#allocation2 + $0x3d0] sm:$0xff] }
 0xb5b   :  { %2563 = vmatprep.subr.mxu0 %v7299_v29  ;;  %2634 = vmatprep.subr.mxu1 %v7615_v25  ;;  %v7631_v29 = vld [vmem:[#allocation2 + $0x3b8] sm:$0xff] }
 0xb5c   :  { %2564 = vmatpush2.msra.mxu0 %v7303_v54  ;;  %2635 = vmatpush2.msra.mxu1 %v7619_v18  ;;  %v7635_v54 = vld [vmem:[#allocation2 + $0x3b0] sm:$0xff] }
 0xb5d   :  { %2565 = vmatprep.subr.mxu0 %v7307_v45  ;;  %2636 = vmatprep.subr.mxu1 %v7623_v16  ;;  %v7639_v45 = vld [vmem:[#allocation2 + $0x398] sm:$0xff] }
 0xb5e   :  { %2566 = vmatpush2.msra.mxu0 %v7311_v47  ;;  %2637 = vmatpush2.msra.mxu1 %v7627_v31  ;;  %v9818_v47 = vld [vmem:[#allocation166_spill] sm:$0xff] }
 0xb5f   :  { %2567 = vmatprep.subr.mxu0 %v7315_v50  ;;  %2638 = vmatprep.subr.mxu1 %v7631_v29  ;;  %v7646_v50 = vld [vmem:[#allocation2 + $0x368] sm:$0xff] }
 0xb60   :  { %2568 = vmatpush2.msra.mxu0 %v7319_v52  ;;  %2639 = vmatpush2.msra.mxu1 %v7635_v54  ;;  %v7649_v52 = vld [vmem:[#allocation2 + $0x378] sm:$0xff] }
 0xb61   :  { %2569 = vmatprep.subr.mxu0 %v7323_v56  ;;  %2640 = vmatprep.subr.mxu1 %v7639_v45  ;;  %v7655_v56 = vld [vmem:[#allocation2 + $0x370] sm:$0xff] }
 0xb62   :  { %2570 = vmatpush2.msra.mxu0 %v9818_v47  ;;  %2641 = vmatpush2.msra.mxu1 %v7643_v58  ;;  %v7721_v47 = vld [vmem:[#allocation2 + $0x2b8] sm:$0xff] }
 0xb63   :  { %2571 = vmatprep.subr.mxu0 %v7646_v50  ;;  %2642 = vmatprep.subr.mxu1 %v7649_v52  ;;  %9834 = vst [vmem:[#allocation28_spill] sm:$0xff] %v7721_v47 }
 0xb64   :  { %2572 = vmatpush2.msra.mxu0 %v7652_v38  ;;  %2643 = vmatpush2.msra.mxu1 %v7655_v56 }
 0xb65   :  { %2573 = vmatprep.subr.mxu0 %v7658_v61  ;;  %2644 = vmatprep.subr.mxu1 %v7661_v63 }
 0xb66   :  { %2574 = vmatpush2.msra.mxu0 %v7664_v23  ;;  %2645 = vmatpush2.msra.mxu1 %v7667_v14 }
 0xb67   :  { %2575 = vmatprep.subr.mxu0 %v7670_v22  ;;  %2646 = vmatprep.subr.mxu1 %v7673_v12 }
 0xb68   :  { %2576 = vmatpush2.msra.mxu0 %v7676_v17  ;;  %2647 = vmatpush2.msra.mxu1 %v7679_v62 }
 0xb69   :  { %2577 = vmatprep.subr.mxu0 %v7682_v19  ;;  %2648 = vmatprep.subr.mxu1 %v7685_v24 }
 0xb6a   :  { %2578 = vmatpush2.msra.mxu0 %v7688_v28  ;;  %2649 = vmatpush2.msra.mxu1 %v7691_v55 }
 0xb6b   :  { %2579 = vmatprep.subr.mxu0 %v7694_v42  ;;  %2650 = vmatprep.subr.mxu1 %v7697_v20 }
 0xb6c   :  { %2580 = vmatpush2.msra.mxu0 %v7700_v33  ;;  %2651 = vmatpush2.msra.mxu1 %v7703_v40  ;;  %v9859_v40 = vld [vmem:[#allocation25_spill] sm:$0xff] }
 0xb6d   :  { %2581 = vmatprep.subr.mxu0 %v7706_v4  ;;  %2652 = vmatprep.subr.mxu1 %v7709_v13  ;;  %v7724_v4 = vld [vmem:[#allocation2 + $0x2a0] sm:$0xff]  ;;  %v7727_v13 = vld [vmem:[#allocation2 + $0x2b0] sm:$0xff] }
 0xb6e   :  { %2582 = vmatpush2.msra.mxu0 %v7712_v34  ;;  %2653 = vmatpush2.msra.mxu1 %v7715_v0  ;;  %9835 = vst [vmem:[#allocation11_spill] sm:$0xff] %v7724_v4  ;;  %9836 = vst [vmem:[#allocation29_spill] sm:$0xff] %v7727_v13  ;;  %v7730_v34 = vld [vmem:[#allocation2 + $0x288] sm:$0xff]  ;;  %v7733_v0 = vld [vmem:[#allocation2 + $0x298] sm:$0xff] }
 0xb6f   :  { %2583 = vmatprep.subr.mxu0 %v7718_v60  ;;  %2654 = vmatprep.subr.mxu1 %v7721_v47  ;;  %9837 = vst [vmem:[#allocation12_spill] sm:$0xff] %v7730_v34  ;;  %9838 = vst [vmem:[#allocation30_spill] sm:$0xff] %v7733_v0  ;;  %v7736_v60 = vld [vmem:[#allocation2 + $0x280] sm:$0xff]  ;;  %v7739_v47 = vld [vmem:[#allocation2 + $0x290] sm:$0xff] }
 0xb70   :  { %2584 = vmatpush2.msra.mxu0 %v7724_v4  ;;  %2655 = vmatpush2.msra.mxu1 %v7727_v13  ;;  %9839 = vst [vmem:[#allocation13_spill] sm:$0xff] %v7736_v60  ;;  %9840 = vst [vmem:[#allocation31_spill] sm:$0xff] %v7739_v47  ;;  %v7742_v4 = vld [vmem:[#allocation2 + $0x268] sm:$0xff]  ;;  %v7745_v13 = vld [vmem:[#allocation2 + $0x278] sm:$0xff] }
 0xb71   :  { %2585 = vmatprep.subr.mxu0 %v7730_v34  ;;  %2656 = vmatprep.subr.mxu1 %v7733_v0  ;;  %9841 = vst [vmem:[#allocation14_spill] sm:$0xff] %v7742_v4  ;;  %9842 = vst [vmem:[#allocation32_spill] sm:$0xff] %v7745_v13  ;;  %v7748_v34 = vld [vmem:[#allocation2 + $0x260] sm:$0xff]  ;;  %v7751_v0 = vld [vmem:[#allocation2 + $0x270] sm:$0xff] }
 0xb72   :  { %2586 = vmatpush2.msra.mxu0 %v7736_v60  ;;  %2657 = vmatpush2.msra.mxu1 %v7739_v47  ;;  %9843 = vst [vmem:[#allocation15_spill] sm:$0xff] %v7748_v34  ;;  %9844 = vst [vmem:[#allocation33_spill] sm:$0xff] %v7751_v0  ;;  %v7754_v60 = vld [vmem:[#allocation2 + $0x248] sm:$0xff]  ;;  %v7757_v47 = vld [vmem:[#allocation2 + $0x258] sm:$0xff] }
 0xb73   :  { %2587 = vmatprep.subr.mxu0 %v7742_v4  ;;  %2658 = vmatprep.subr.mxu1 %v7745_v13  ;;  %9845 = vst [vmem:[#allocation16_spill] sm:$0xff] %v7754_v60  ;;  %9846 = vst [vmem:[#allocation34_spill] sm:$0xff] %v7757_v47  ;;  %v7760_v4 = vld [vmem:[#allocation2 + $0x240] sm:$0xff]  ;;  %v7763_v13 = vld [vmem:[#allocation2 + $0x250] sm:$0xff] }
 0xb74   :  { %2588 = vmatpush2.msra.mxu0 %v7748_v34  ;;  %2659 = vmatpush2.msra.mxu1 %v7751_v0  ;;  %9847 = vst [vmem:[#allocation17_spill] sm:$0xff] %v7760_v4  ;;  %9848 = vst [vmem:[#allocation35_spill] sm:$0xff] %v7763_v13  ;;  %v7766_v34 = vld [vmem:[#allocation2 + $0x228] sm:$0xff]  ;;  %v7769_v0 = vld [vmem:[#allocation2 + $0x238] sm:$0xff] }
 0xb75   :  { %2589 = vmatprep.subr.mxu0 %v7754_v60  ;;  %2660 = vmatprep.subr.mxu1 %v7757_v47  ;;  %9849 = vst [vmem:[#allocation18_spill] sm:$0xff] %v7766_v34  ;;  %9850 = vst [vmem:[#allocation36_spill] sm:$0xff] %v7769_v0  ;;  %v7772_v60 = vld [vmem:[#allocation2 + $0x220] sm:$0xff]  ;;  %v7775_v47 = vld [vmem:[#allocation2 + $0x230] sm:$0xff] }
 0xb76   :  { %2590 = vmatpush2.msra.mxu0 %v7760_v4  ;;  %2661 = vmatpush2.msra.mxu1 %v7763_v13  ;;  %9851 = vst [vmem:[#allocation19_spill] sm:$0xff] %v7772_v60  ;;  %9852 = vst [vmem:[#allocation37_spill] sm:$0xff] %v7775_v47  ;;  %v7778_v4 = vld [vmem:[#allocation2 + $0x208] sm:$0xff]  ;;  %v7781_v13 = vld [vmem:[#allocation2 + $0x218] sm:$0xff] }
 0xb77   :  { %2591 = vmatprep.subr.mxu0 %v7766_v34  ;;  %2662 = vmatprep.subr.mxu1 %v7769_v0  ;;  %9853 = vst [vmem:[#allocation20_spill] sm:$0xff] %v7778_v4  ;;  %9854 = vst [vmem:[#allocation38_spill] sm:$0xff] %v7781_v13  ;;  %v7784_v34 = vld [vmem:[#allocation2 + $0x200] sm:$0xff]  ;;  %v7787_v0 = vld [vmem:[#allocation2 + $0x210] sm:$0xff] }
 0xb78   :  { %2592 = vmatpush2.msra.mxu0 %v7772_v60  ;;  %2663 = vmatpush2.msra.mxu1 %v7775_v47  ;;  %9855 = vst [vmem:[#allocation21_spill] sm:$0xff] %v7784_v34  ;;  %9856 = vst [vmem:[#allocation39_spill] sm:$0xff] %v7787_v0  ;;  %v7790_v60 = vld [vmem:[#allocation4 + $0x170] sm:$0xff]  ;;  %v7793_v47 = vld [vmem:[#allocation4 + $0x2f8] sm:$0xff] }
 0xb79   :  { %2593 = vmatprep.subr.mxu0 %v7778_v4  ;;  %2664 = vmatprep.subr.mxu1 %v7781_v13  ;;  %9857 = vst [vmem:[#allocation22_spill] sm:$0xff] %v7790_v60  ;;  %9858 = vst [vmem:[#allocation40_spill] sm:$0xff] %v7793_v47 }
 0xb7a   :  { %2594 = vmatpush2.msra.mxu0 %v7784_v34  ;;  %2665 = vmatpush2.msra.mxu1 %v7787_v0  ;;  %v2348_v0 = vpop.f32.mrf.mxu0 }
 0xb7b   :  { %2693 = vmatprep.subr.mxu0 %v7790_v60  ;;  %3456 = vmatprep.subr.mxu1 %v7793_v47  ;;  %v2349_v47 = vadd.f32 %v2348_v0, %v5471_v8  ;;  %v7831_v0 = vld [vmem:[#allocation4 + $0x140] sm:$0xff] }
 0xb7c   :  { %9866 = vst [vmem:[#allocation139_spill] sm:$0xff] %v7831_v0 }
 0xbfb   :  { %v2437_v4 = vpop.f32.mrf.mxu1  ;;  %v3453_v24 = vpop.f32.mrf.mxu0 }
 0xbfc   :  { %v2438_v33 = vadd.f32 %v2437_v4, %v9859_v40 }
 0xbfd   :  { %v2439_v20 = vpop.f32.mrf.mxu1  ;;  %v3454_v60 = vpop.f32.mrf.mxu0 }
 0xbfe   :  { %v3227_v13 = vmul.f32 -1.442695, %v2438_v33  ;;  %v2440_v34 = vadd.f32 %v2439_v20, %v5466_v53  ;;  %v3455_v19 = vadd.f32 %v3454_v60, %v3453_v24  ;;  %v7825_v24 = vld [vmem:[#allocation4 + $0x150] sm:$0xff]  ;;  %v7834_v60 = vld [vmem:[#allocation4 + $0x2c8] sm:$0xff] }
 0xbff   :  { %9864 = vst [vmem:[#allocation43_spill] sm:$0xff] %v7825_v24  ;;  %9867 = vst [vmem:[#allocation44_spill] sm:$0xff] %v7834_v60 }
 0xc00   :  { %3658 = vpow2.f32 %v3227_v13  ;;  %v3228_v42 = vmul.f32 -1.442695, %v2440_v34  ;;  %v2509_v4 = vadd.f32 %v3455_v19, %v5474_v9  ;;  %v7822_v19 = vld [vmem:[#allocation4 + $0x2e0] sm:$0xff] }
 0xc01   :  { %9863 = vst [vmem:[#allocation42_spill] sm:$0xff] %v7822_v19 }
 0xc02   :  { %3660 = vpow2.f32 %v3228_v42 }
 0xc0d   :  { %v3659_v55 = vpop.eup %3658 }
 0xc0e   :  { %v2515_v28 = vadd.f32 1.0, %v3659_v55 }
 0xc0f   :  { %v3661_v62 = vpop.eup %3660 }
 0xc10   :  { %3662 = vrcp.f32 %v2515_v28  ;;  %v2521_v13 = vadd.f32 1.0, %v3661_v62  ;;  %v7819_v62 = vld [vmem:[#allocation4 + $0x158] sm:$0xff] }
 0xc11   :  { %9862 = vst [vmem:[#allocation24_spill] sm:$0xff] %v7819_v62 }
 0xc1d   :  { %v3663_v17 = vpop.eup %3662 }
 0xc1e   :  { %v2524_v33 = vmul.f32 %v3663_v17, %v2349_v47  ;;  %v7816_v17 = vld [vmem:[#allocation4 + $0x178] sm:$0xff] }
 0xc1f   :  { %9861 = vst [vmem:[#allocation41_spill] sm:$0xff] %v7816_v17  ;;  %v7837_v47 = vld [vmem:[#allocation4 + $0x138] sm:$0xff] }
 0xc20   :  { %v2525_v40 = vadd.f32 %v2524_v33, %v2509_v4  ;;  %9868 = vst [vmem:[#allocation78_spill] sm:$0xff] %v7837_v47  ;;  %v7840_v4 = vld [vmem:[#allocation4 + $0x148] sm:$0xff] }
 0xc21   :  { %9869 = vst [vmem:[#allocation45_spill] sm:$0xff] %v7840_v4  ;;  %v7843_v33 = vld [vmem:[#allocation4 + $0x128] sm:$0xff] }
 0xc22   :  { %3664 = vtanh.f32 %v2525_v40  ;;  %v7828_v40 = vld [vmem:[#allocation4 + $0x160] sm:$0xff]  ;;  %9870 = vst [vmem:[#allocation79_spill] sm:$0xff] %v7843_v33 }
 0xc23   :  { %3666 = vrcp.f32 %v2521_v13  ;;  %9865 = vst [vmem:[#allocation76_spill] sm:$0xff] %v7828_v40  ;;  %v7846_v13 = vld [vmem:[#allocation4 + $0x2b0] sm:$0xff] }
 0xc24   :  { %9871 = vst [vmem:[#allocation46_spill] sm:$0xff] %v7846_v13 }
 0xc2f   :  { %v3665_v20 = vpop.eup %3664 }
 0xc30   :  { %v2527_v55 = vsub.f32 %v7386_v7, %v3665_v20  ;;  %v3667_v42 = vpop.eup %3666  ;;  %v7813_v7 = vld [vmem:[#allocation4 + $0x168] sm:$0xff] }
 0xc31   :  { %9860 = vst [vmem:[#allocation23_spill] sm:$0xff] %v7813_v7 }
 0xc32   :  { %v2528_v28 = vmul.f32 %v3667_v42, %v2527_v55  ;;  %v7852_v55 = vld [vmem:[#allocation4 + $0x130] sm:$0xff] }
 0xc33   :  { %9873 = vst [vmem:[#allocation47_spill] sm:$0xff] %v7852_v55  ;;  %v7855_v42 = vld [vmem:[#allocation4 + $0x110] sm:$0xff] }
 0xc34   :  { %v7801_v34 = vadd.f32 %v3665_v20, %v2528_v28  ;;  %v7849_v20 = vld [vmem:[#allocation4 + $0x120] sm:$0xff]  ;;  %9874 = vst [vmem:[#allocation84_spill] sm:$0xff] %v7855_v42  ;;  %v7858_v28 = vld [vmem:[#allocation4 + $0x298] sm:$0xff] }
 0xc35   :  { %9872 = vst [vmem:[#allocation82_spill] sm:$0xff] %v7849_v20  ;;  %9875 = vst [vmem:[#allocation48_spill] sm:$0xff] %v7858_v28 }
 0xc36   :  { %2530 = vst [vmem:[%s8325_s7 + $0x28] sm:$0xff] %v7801_v34  ;;  %2595 = vmatprep.mubr.f32.mxu0 %v7801_v34  ;;  %2666 = vmatprep.mubr.f32.mxu1 %v7801_v34 }
 0xc37   :  { %2596 = vmatmul.mubr.f32.vlgmr.msra.gmra.mxu0 %v7506_v35  ;;  %2667 = vmatmul.mubr.f32.vlgmr.msra.gmra.mxu1 %v7506_v35 }
 0xc38   :  { %2757 = vmatprep.mubr.f32.mxu0 %v7801_v34  ;;  %2828 = vmatprep.mubr.f32.mxu1 %v7801_v34 }
 0xc39   :  { %2694 = vmatpush1.msra.mxu0 %v7813_v7  ;;  %3457 = vmatpush3.msra.mxu1 %v7816_v17 }
 0xc3a   :  { %2695 = vmatprep.subr.mxu0 %v7819_v62  ;;  %3458 = vmatprep.subr.mxu1 %v7822_v19 }
 0xc3b   :  { %2696 = vmatpush1.msra.mxu0 %v7825_v24  ;;  %3459 = vmatpush3.msra.mxu1 %v7828_v40  ;;  %v9957_v40 = vld [vmem:[#allocation151_spill] sm:$0xff] }
 0xc3c   :  { %2697 = vmatprep.subr.mxu0 %v7831_v0  ;;  %3460 = vmatprep.subr.mxu1 %v7834_v60 }
 0xc3d   :  { %2698 = vmatpush1.msra.mxu0 %v7837_v47  ;;  %3461 = vmatpush3.msra.mxu1 %v7840_v4  ;;  %v8003_v4 = vld [vmem:[#allocation4 + $0x2e8] sm:$0xff]  ;;  %v9956_v47 = vld [vmem:[#allocation150_spill] sm:$0xff] }
 0xc3e   :  { %2699 = vmatprep.subr.mxu0 %v7843_v33  ;;  %3462 = vmatprep.subr.mxu1 %v7846_v13  ;;  %v7861_v33 = vld [vmem:[#allocation4 + $0x108] sm:$0xff]  ;;  %v7864_v13 = vld [vmem:[#allocation4 + $0x118] sm:$0xff]  ;;  %9924 = vst [vmem:[#allocation72_spill] sm:$0xff] %v8003_v4 }
 0xc3f   :  { %2700 = vmatpush1.msra.mxu0 %v7849_v20  ;;  %3463 = vmatpush3.msra.mxu1 %v7852_v55  ;;  %9876 = vst [vmem:[#allocation86_spill] sm:$0xff] %v7861_v33  ;;  %9877 = vst [vmem:[#allocation49_spill] sm:$0xff] %v7864_v13  ;;  %v7867_v20 = vld [vmem:[#allocation4 + $0xf8] sm:$0xff]  ;;  %v7870_v55 = vld [vmem:[#allocation4 + $0x280] sm:$0xff] }
 0xc40   :  { %2701 = vmatprep.subr.mxu0 %v7855_v42  ;;  %3464 = vmatprep.subr.mxu1 %v7858_v28  ;;  %9878 = vst [vmem:[#allocation88_spill] sm:$0xff] %v7867_v20  ;;  %9879 = vst [vmem:[#allocation50_spill] sm:$0xff] %v7870_v55  ;;  %v7873_v42 = vld [vmem:[#allocation4 + $0xf0] sm:$0xff]  ;;  %v7876_v28 = vld [vmem:[#allocation4 + $0x100] sm:$0xff] }
 0xc41   :  { %2702 = vmatpush1.msra.mxu0 %v7861_v33  ;;  %3465 = vmatpush3.msra.mxu1 %v7864_v13  ;;  %9880 = vst [vmem:[#allocation90_spill] sm:$0xff] %v7873_v42  ;;  %9881 = vst [vmem:[#allocation51_spill] sm:$0xff] %v7876_v28  ;;  %v7879_v33 = vld [vmem:[#allocation4 + $0xe0] sm:$0xff]  ;;  %v7882_v13 = vld [vmem:[#allocation4 + $0x268] sm:$0xff] }
 0xc42   :  { %2703 = vmatprep.subr.mxu0 %v7867_v20  ;;  %3466 = vmatprep.subr.mxu1 %v7870_v55  ;;  %9882 = vst [vmem:[#allocation92_spill] sm:$0xff] %v7879_v33  ;;  %9883 = vst [vmem:[#allocation52_spill] sm:$0xff] %v7882_v13  ;;  %v7885_v20 = vld [vmem:[#allocation4 + $0xd8] sm:$0xff]  ;;  %v7888_v55 = vld [vmem:[#allocation4 + $0xe8] sm:$0xff] }
 0xc43   :  { %2704 = vmatpush1.msra.mxu0 %v7873_v42  ;;  %3467 = vmatpush3.msra.mxu1 %v7876_v28  ;;  %9884 = vst [vmem:[#allocation94_spill] sm:$0xff] %v7885_v20  ;;  %9885 = vst [vmem:[#allocation53_spill] sm:$0xff] %v7888_v55  ;;  %v7891_v42 = vld [vmem:[#allocation4 + $0xc8] sm:$0xff]  ;;  %v7894_v28 = vld [vmem:[#allocation4 + $0x250] sm:$0xff] }
 0xc44   :  { %2705 = vmatprep.subr.mxu0 %v7879_v33  ;;  %3468 = vmatprep.subr.mxu1 %v7882_v13  ;;  %9886 = vst [vmem:[#allocation96_spill] sm:$0xff] %v7891_v42  ;;  %9887 = vst [vmem:[#allocation54_spill] sm:$0xff] %v7894_v28  ;;  %v7897_v33 = vld [vmem:[#allocation4 + $0xc0] sm:$0xff]  ;;  %v7900_v13 = vld [vmem:[#allocation4 + $0xd0] sm:$0xff] }
 0xc45   :  { %2706 = vmatpush1.msra.mxu0 %v7885_v20  ;;  %3469 = vmatpush3.msra.mxu1 %v7888_v55  ;;  %9888 = vst [vmem:[#allocation98_spill] sm:$0xff] %v7897_v33  ;;  %9889 = vst [vmem:[#allocation55_spill] sm:$0xff] %v7900_v13  ;;  %v7903_v20 = vld [vmem:[#allocation4 + $0xb0] sm:$0xff]  ;;  %v7906_v55 = vld [vmem:[#allocation4 + $0x238] sm:$0xff] }
 0xc46   :  { %2707 = vmatprep.subr.mxu0 %v7891_v42  ;;  %3470 = vmatprep.subr.mxu1 %v7894_v28  ;;  %9890 = vst [vmem:[#allocation100_spill] sm:$0xff] %v7903_v20  ;;  %9891 = vst [vmem:[#allocation56_spill] sm:$0xff] %v7906_v55  ;;  %v7909_v42 = vld [vmem:[#allocation4 + $0xa8] sm:$0xff]  ;;  %v7912_v28 = vld [vmem:[#allocation4 + $0xb8] sm:$0xff] }
 0xc47   :  { %2708 = vmatpush1.msra.mxu0 %v7897_v33  ;;  %3471 = vmatpush3.msra.mxu1 %v7900_v13  ;;  %9892 = vst [vmem:[#allocation102_spill] sm:$0xff] %v7909_v42  ;;  %9893 = vst [vmem:[#allocation57_spill] sm:$0xff] %v7912_v28  ;;  %v7915_v33 = vld [vmem:[#allocation4 + $0x98] sm:$0xff]  ;;  %v7918_v13 = vld [vmem:[#allocation4 + $0x220] sm:$0xff] }
 0xc48   :  { %2709 = vmatprep.subr.mxu0 %v7903_v20  ;;  %3472 = vmatprep.subr.mxu1 %v7906_v55  ;;  %9894 = vst [vmem:[#allocation104_spill] sm:$0xff] %v7915_v33  ;;  %9895 = vst [vmem:[#allocation58_spill] sm:$0xff] %v7918_v13  ;;  %v7921_v20 = vld [vmem:[#allocation4 + $0x90] sm:$0xff]  ;;  %v7924_v55 = vld [vmem:[#allocation4 + $0xa0] sm:$0xff] }
 0xc49   :  { %2710 = vmatpush1.msra.mxu0 %v7909_v42  ;;  %3473 = vmatpush3.msra.mxu1 %v7912_v28  ;;  %9896 = vst [vmem:[#allocation106_spill] sm:$0xff] %v7921_v20  ;;  %9897 = vst [vmem:[#allocation59_spill] sm:$0xff] %v7924_v55  ;;  %v7927_v42 = vld [vmem:[#allocation4 + $0x80] sm:$0xff]  ;;  %v7930_v28 = vld [vmem:[#allocation4 + $0x208] sm:$0xff] }
 0xc4a   :  { %2711 = vmatprep.subr.mxu0 %v7915_v33  ;;  %3474 = vmatprep.subr.mxu1 %v7918_v13  ;;  %9898 = vst [vmem:[#allocation108_spill] sm:$0xff] %v7927_v42  ;;  %9899 = vst [vmem:[#allocation60_spill] sm:$0xff] %v7930_v28  ;;  %v7933_v33 = vld [vmem:[#allocation4 + $0x78] sm:$0xff]  ;;  %v7936_v13 = vld [vmem:[#allocation4 + $0x88] sm:$0xff] }
 0xc4b   :  { %2712 = vmatpush1.msra.mxu0 %v7921_v20  ;;  %3475 = vmatpush3.msra.mxu1 %v7924_v55  ;;  %9900 = vst [vmem:[#allocation110_spill] sm:$0xff] %v7933_v33  ;;  %9901 = vst [vmem:[#allocation61_spill] sm:$0xff] %v7936_v13  ;;  %v7939_v20 = vld [vmem:[#allocation4 + $0x68] sm:$0xff]  ;;  %v7942_v55 = vld [vmem:[#allocation4 + $0x1f0] sm:$0xff] }
 0xc4c   :  { %2713 = vmatprep.subr.mxu0 %v7927_v42  ;;  %3476 = vmatprep.subr.mxu1 %v7930_v28  ;;  %9902 = vst [vmem:[#allocation112_spill] sm:$0xff] %v7939_v20  ;;  %9903 = vst [vmem:[#allocation62_spill] sm:$0xff] %v7942_v55  ;;  %v7945_v42 = vld [vmem:[#allocation4 + $0x60] sm:$0xff]  ;;  %v7948_v28 = vld [vmem:[#allocation4 + $0x70] sm:$0xff] }
 0xc4d   :  { %2714 = vmatpush1.msra.mxu0 %v7933_v33  ;;  %3477 = vmatpush3.msra.mxu1 %v7936_v13  ;;  %9904 = vst [vmem:[#allocation114_spill] sm:$0xff] %v7945_v42  ;;  %9905 = vst [vmem:[#allocation63_spill] sm:$0xff] %v7948_v28  ;;  %v7951_v33 = vld [vmem:[#allocation4 + $0x50] sm:$0xff]  ;;  %v7954_v13 = vld [vmem:[#allocation4 + $0x1d8] sm:$0xff] }
 0xc4e   :  { %2715 = vmatprep.subr.mxu0 %v7939_v20  ;;  %3478 = vmatprep.subr.mxu1 %v7942_v55  ;;  %9906 = vst [vmem:[#allocation116_spill] sm:$0xff] %v7951_v33  ;;  %9907 = vst [vmem:[#allocation64_spill] sm:$0xff] %v7954_v13  ;;  %v7957_v20 = vld [vmem:[#allocation4 + $0x48] sm:$0xff]  ;;  %v7960_v55 = vld [vmem:[#allocation4 + $0x58] sm:$0xff] }
 0xc4f   :  { %2716 = vmatpush1.msra.mxu0 %v7945_v42  ;;  %3479 = vmatpush3.msra.mxu1 %v7948_v28  ;;  %9908 = vst [vmem:[#allocation118_spill] sm:$0xff] %v7957_v20  ;;  %9909 = vst [vmem:[#allocation65_spill] sm:$0xff] %v7960_v55  ;;  %v7963_v42 = vld [vmem:[#allocation4 + $0x38] sm:$0xff]  ;;  %v7966_v28 = vld [vmem:[#allocation4 + $0x1c0] sm:$0xff] }
 0xc50   :  { %2717 = vmatprep.subr.mxu0 %v7951_v33  ;;  %3480 = vmatprep.subr.mxu1 %v7954_v13  ;;  %9910 = vst [vmem:[#allocation120_spill] sm:$0xff] %v7963_v42  ;;  %9911 = vst [vmem:[#allocation66_spill] sm:$0xff] %v7966_v28  ;;  %v7969_v33 = vld [vmem:[#allocation4 + $0x30] sm:$0xff]  ;;  %v7972_v13 = vld [vmem:[#allocation4 + $0x40] sm:$0xff] }
 0xc51   :  { %2718 = vmatpush1.msra.mxu0 %v7957_v20  ;;  %3481 = vmatpush3.msra.mxu1 %v7960_v55  ;;  %9912 = vst [vmem:[#allocation122_spill] sm:$0xff] %v7969_v33  ;;  %9913 = vst [vmem:[#allocation67_spill] sm:$0xff] %v7972_v13  ;;  %v7975_v20 = vld [vmem:[#allocation4 + $0x20] sm:$0xff]  ;;  %v7978_v55 = vld [vmem:[#allocation4 + $0x1a8] sm:$0xff] }
 0xc52   :  { %2719 = vmatprep.subr.mxu0 %v7963_v42  ;;  %3482 = vmatprep.subr.mxu1 %v7966_v28  ;;  %9914 = vst [vmem:[#allocation124_spill] sm:$0xff] %v7975_v20  ;;  %9915 = vst [vmem:[#allocation68_spill] sm:$0xff] %v7978_v55  ;;  %v7981_v42 = vld [vmem:[#allocation4 + $0x18] sm:$0xff]  ;;  %v7984_v28 = vld [vmem:[#allocation4 + $0x28] sm:$0xff] }
 0xc53   :  { %2720 = vmatpush1.msra.mxu0 %v7969_v33  ;;  %3483 = vmatpush3.msra.mxu1 %v7972_v13  ;;  %9916 = vst [vmem:[#allocation126_spill] sm:$0xff] %v7981_v42  ;;  %9917 = vst [vmem:[#allocation69_spill] sm:$0xff] %v7984_v28  ;;  %v7987_v33 = vld [vmem:[#allocation4 + $0x8] sm:$0xff]  ;;  %v7990_v13 = vld [vmem:[#allocation4 + $0x190] sm:$0xff] }
 0xc54   :  { %2721 = vmatprep.subr.mxu0 %v7975_v20  ;;  %3484 = vmatprep.subr.mxu1 %v7978_v55  ;;  %9918 = vst [vmem:[#allocation128_spill] sm:$0xff] %v7987_v33  ;;  %9919 = vst [vmem:[#allocation70_spill] sm:$0xff] %v7990_v13  ;;  %v7993_v20 = vld [vmem:[#allocation4] sm:$0xff]  ;;  %v7996_v55 = vld [vmem:[#allocation4 + $0x10] sm:$0xff] }
 0xc55   :  { %2722 = vmatpush1.msra.mxu0 %v7981_v42  ;;  %3485 = vmatpush3.msra.mxu1 %v7984_v28  ;;  %9920 = vst [vmem:[#allocation130_spill] sm:$0xff] %v7993_v20  ;;  %9921 = vst [vmem:[#allocation71_spill] sm:$0xff] %v7996_v55  ;;  %v7999_v42 = vld [vmem:[#allocation4 + $0x2f0] sm:$0xff]  ;;  %v9923_v28 = vld [vmem:[#allocation167_spill] sm:$0xff] }
 0xc56   :  { %2723 = vmatprep.subr.mxu0 %v7987_v33  ;;  %3486 = vmatprep.subr.mxu1 %v7990_v13  ;;  %9922 = vst [vmem:[#allocation132_spill] sm:$0xff] %v7999_v42  ;;  %v8006_v33 = vld [vmem:[#allocation4 + $0x2d8] sm:$0xff]  ;;  %v8009_v13 = vld [vmem:[#allocation4 + $0x2d0] sm:$0xff] }
 0xc57   :  { %2724 = vmatpush1.msra.mxu0 %v7993_v20  ;;  %3487 = vmatpush3.msra.mxu1 %v7996_v55  ;;  %9925 = vst [vmem:[#allocation134_spill] sm:$0xff] %v8006_v33  ;;  %9926 = vst [vmem:[#allocation73_spill] sm:$0xff] %v8009_v13  ;;  %v8012_v20 = vld [vmem:[#allocation4 + $0x2c0] sm:$0xff]  ;;  %v8015_v55 = vld [vmem:[#allocation4 + $0x2b8] sm:$0xff] }
 0xc58   :  { %2725 = vmatprep.subr.mxu0 %v7999_v42  ;;  %2853 = vmatprep.subr.mxu1 %v9923_v28  ;;  %9927 = vst [vmem:[#allocation136_spill] sm:$0xff] %v8012_v20  ;;  %9928 = vst [vmem:[#allocation74_spill] sm:$0xff] %v8015_v55  ;;  %v8018_v28 = vld [vmem:[#allocation4 + $0x2a8] sm:$0xff] }
 0xc59   :  { %2726 = vmatpush2.msra.mxu0 %v8003_v4  ;;  %9929 = vst [vmem:[#allocation138_spill] sm:$0xff] %v8018_v28  ;;  %v8021_v4 = vld [vmem:[#allocation4 + $0x2a0] sm:$0xff] }
 0xc5a   :  { %2727 = vmatprep.subr.mxu0 %v8006_v33  ;;  %9930 = vst [vmem:[#allocation75_spill] sm:$0xff] %v8021_v4  ;;  %v8024_v33 = vld [vmem:[#allocation4 + $0x290] sm:$0xff] }
 0xc5b   :  { %2728 = vmatpush2.msra.mxu0 %v8009_v13  ;;  %9931 = vst [vmem:[#allocation77_spill] sm:$0xff] %v8024_v33  ;;  %v8027_v13 = vld [vmem:[#allocation4 + $0x288] sm:$0xff] }
 0xc5c   :  { %2729 = vmatprep.subr.mxu0 %v8012_v20  ;;  %9932 = vst [vmem:[#allocation80_spill] sm:$0xff] %v8027_v13  ;;  %v8030_v20 = vld [vmem:[#allocation4 + $0x278] sm:$0xff] }
 0xc5d   :  { %2730 = vmatpush2.msra.mxu0 %v8015_v55  ;;  %9933 = vst [vmem:[#allocation81_spill] sm:$0xff] %v8030_v20  ;;  %v8033_v55 = vld [vmem:[#allocation4 + $0x270] sm:$0xff] }
 0xc5e   :  { %2731 = vmatprep.subr.mxu0 %v8018_v28  ;;  %9934 = vst [vmem:[#allocation83_spill] sm:$0xff] %v8033_v55  ;;  %v8036_v28 = vld [vmem:[#allocation4 + $0x260] sm:$0xff] }
 0xc5f   :  { %2732 = vmatpush2.msra.mxu0 %v8021_v4  ;;  %9935 = vst [vmem:[#allocation85_spill] sm:$0xff] %v8036_v28  ;;  %v8039_v4 = vld [vmem:[#allocation4 + $0x258] sm:$0xff] }
 0xc60   :  { %2733 = vmatprep.subr.mxu0 %v8024_v33  ;;  %9936 = vst [vmem:[#allocation87_spill] sm:$0xff] %v8039_v4  ;;  %v8042_v33 = vld [vmem:[#allocation4 + $0x248] sm:$0xff] }
 0xc61   :  { %2734 = vmatpush2.msra.mxu0 %v8027_v13  ;;  %9937 = vst [vmem:[#allocation89_spill] sm:$0xff] %v8042_v33  ;;  %v8045_v13 = vld [vmem:[#allocation4 + $0x240] sm:$0xff] }
 0xc62   :  { %2735 = vmatprep.subr.mxu0 %v8030_v20  ;;  %9938 = vst [vmem:[#allocation91_spill] sm:$0xff] %v8045_v13  ;;  %v8048_v20 = vld [vmem:[#allocation4 + $0x230] sm:$0xff] }
 0xc63   :  { %2736 = vmatpush2.msra.mxu0 %v8033_v55  ;;  %9939 = vst [vmem:[#allocation93_spill] sm:$0xff] %v8048_v20  ;;  %v8051_v55 = vld [vmem:[#allocation4 + $0x228] sm:$0xff] }
 0xc64   :  { %2737 = vmatprep.subr.mxu0 %v8036_v28  ;;  %9940 = vst [vmem:[#allocation95_spill] sm:$0xff] %v8051_v55  ;;  %v8054_v28 = vld [vmem:[#allocation4 + $0x218] sm:$0xff] }
 0xc65   :  { %2738 = vmatpush2.msra.mxu0 %v8039_v4  ;;  %9941 = vst [vmem:[#allocation97_spill] sm:$0xff] %v8054_v28  ;;  %v8057_v4 = vld [vmem:[#allocation4 + $0x210] sm:$0xff] }
 0xc66   :  { %2739 = vmatprep.subr.mxu0 %v8042_v33  ;;  %9942 = vst [vmem:[#allocation99_spill] sm:$0xff] %v8057_v4  ;;  %v8060_v33 = vld [vmem:[#allocation4 + $0x200] sm:$0xff] }
 0xc67   :  { %2740 = vmatpush2.msra.mxu0 %v8045_v13  ;;  %9943 = vst [vmem:[#allocation101_spill] sm:$0xff] %v8060_v33  ;;  %v8063_v13 = vld [vmem:[#allocation4 + $0x1f8] sm:$0xff] }
 0xc68   :  { %2741 = vmatprep.subr.mxu0 %v8048_v20  ;;  %9944 = vst [vmem:[#allocation103_spill] sm:$0xff] %v8063_v13  ;;  %v8066_v20 = vld [vmem:[#allocation4 + $0x1e8] sm:$0xff] }
 0xc69   :  { %2742 = vmatpush2.msra.mxu0 %v8051_v55  ;;  %9945 = vst [vmem:[#allocation105_spill] sm:$0xff] %v8066_v20  ;;  %v8069_v55 = vld [vmem:[#allocation4 + $0x1e0] sm:$0xff] }
 0xc6a   :  { %2743 = vmatprep.subr.mxu0 %v8054_v28  ;;  %9946 = vst [vmem:[#allocation107_spill] sm:$0xff] %v8069_v55  ;;  %v8072_v28 = vld [vmem:[#allocation4 + $0x1d0] sm:$0xff] }
 0xc6b   :  { %2744 = vmatpush2.msra.mxu0 %v8057_v4  ;;  %9947 = vst [vmem:[#allocation109_spill] sm:$0xff] %v8072_v28  ;;  %v8075_v4 = vld [vmem:[#allocation4 + $0x1c8] sm:$0xff] }
 0xc6c   :  { %2745 = vmatprep.subr.mxu0 %v8060_v33  ;;  %9948 = vst [vmem:[#allocation111_spill] sm:$0xff] %v8075_v4  ;;  %v8078_v33 = vld [vmem:[#allocation4 + $0x1b8] sm:$0xff] }
 0xc6d   :  { %2746 = vmatpush2.msra.mxu0 %v8063_v13  ;;  %9949 = vst [vmem:[#allocation113_spill] sm:$0xff] %v8078_v33  ;;  %v8081_v13 = vld [vmem:[#allocation4 + $0x1b0] sm:$0xff] }
 0xc6e   :  { %2747 = vmatprep.subr.mxu0 %v8066_v20  ;;  %9950 = vst [vmem:[#allocation115_spill] sm:$0xff] %v8081_v13  ;;  %v8084_v20 = vld [vmem:[#allocation4 + $0x1a0] sm:$0xff] }
 0xc6f   :  { %2748 = vmatpush2.msra.mxu0 %v8069_v55  ;;  %9951 = vst [vmem:[#allocation117_spill] sm:$0xff] %v8084_v20  ;;  %v8087_v55 = vld [vmem:[#allocation4 + $0x198] sm:$0xff] }
 0xc70   :  { %2749 = vmatprep.subr.mxu0 %v8072_v28  ;;  %9952 = vst [vmem:[#allocation119_spill] sm:$0xff] %v8087_v55  ;;  %v8090_v28 = vld [vmem:[#allocation4 + $0x188] sm:$0xff] }
 0xc71   :  { %2750 = vmatpush2.msra.mxu0 %v8075_v4  ;;  %9953 = vst [vmem:[#allocation121_spill] sm:$0xff] %v8090_v28  ;;  %v8093_v4 = vld [vmem:[#allocation4 + $0x180] sm:$0xff] }
 0xc72   :  { %2751 = vmatprep.subr.mxu0 %v8078_v33  ;;  %9954 = vst [vmem:[#allocation123_spill] sm:$0xff] %v8093_v4  ;;  %v9955_v33 = vld [vmem:[#allocation168_spill] sm:$0xff] }
 0xc73   :  { %2752 = vmatpush2.msra.mxu0 %v8081_v13 }
 0xc74   :  { %2753 = vmatprep.subr.mxu0 %v8084_v20 }
 0xc75   :  { %2754 = vmatpush2.msra.mxu0 %v8087_v55 }
 0xc76   :  { %2755 = vmatprep.subr.mxu0 %v8090_v28 }
 0xc77   :  { %2756 = vmatpush2.msra.mxu0 %v8093_v4 }
 0xc78   :  { %2924 = vmatprep.subr.mxu0 %v9955_v33 }
 0xcf7   :  { %v2597_v42 = vpop.f32.mrf.mxu0  ;;  %v2668_v4 = vpop.f32.mrf.mxu1 }
 0xcf8   :  { %v2598_v13 = vadd.f32 %v2597_v42, %v5194_v26  ;;  %v2669_v33 = vadd.f32 %v2668_v4, %v5221_v3  ;;  %v9958_v42 = vld [vmem:[#allocation161_spill] sm:$0xff]  ;;  %v4381_v4 = vld [vmem:[#allocation2 + $0x1f0] sm:$0xff] }
 0xcf9   :  { %v2599_v0 = vpop.f32.mrf.mxu0 }
 0xcfa   :  { %v2673_v60 = vadd.f32 %v2598_v13, %v9956_v47  ;;  %v2600_v55 = vadd.f32 %v2599_v0, %v9206_v59  ;;  %v328_v47 = vadd.f32 %v9958_v42, %v5224_v43  ;;  %v4387_v42 = vld [vmem:[#allocation2 + $0x1b8] sm:$0xff] }
 0xcfc   :  { %v3229_v20 = vmul.f32 -1.442695, %v2673_v60  ;;  %v2680_v24 = vadd.f32 %v2600_v55, %v9957_v40 }
 0xcfe   :  { %3668 = vpow2.f32 %v3229_v20  ;;  %v3230_v19 = vmul.f32 -1.442695, %v2680_v24 }
 0xd00   :  { %3670 = vpow2.f32 %v3230_v19 }
 0xd0b   :  { %v3669_v28 = vpop.eup %3668 }
 0xd0c   :  { %v2677_v62 = vadd.f32 1.0, %v3669_v28  ;;  %v4384_v28 = vld [vmem:[#allocation2 + $0x1c0] sm:$0xff] }
 0xd0d   :  { %v3671_v17 = vpop.eup %3670 }
 0xd0e   :  { %3672 = vrcp.f32 %v2677_v62  ;;  %v2684_v20 = vadd.f32 1.0, %v3671_v17  ;;  %v4380_v62 = vld [vmem:[#allocation2 + $0x1e0] sm:$0xff]  ;;  %v4383_v17 = vld [vmem:[#allocation2 + $0x1d8] sm:$0xff] }
 0xd1b   :  { %v3673_v7 = vpop.eup %3672 }
 0xd1c   :  { %v2687_v60 = vmul.f32 %v3673_v7, %v2669_v33  ;;  %v4382_v7 = vld [vmem:[#allocation2 + $0x1c8] sm:$0xff]  ;;  %v4385_v33 = vld [vmem:[#allocation2 + $0x1d0] sm:$0xff] }
 0xd1e   :  { %v2688_v13 = vadd.f32 %v2687_v60, %v328_v47  ;;  %v4388_v47 = vld [vmem:[#allocation2 + $0x1a0] sm:$0xff]  ;;  %v4389_v60 = vld [vmem:[#allocation2 + $0x1b0] sm:$0xff] }
 0xd20   :  { %3674 = vtanh.f32 %v2688_v13  ;;  %v4390_v13 = vld [vmem:[#allocation2 + $0x188] sm:$0xff] }
 0xd21   :  { %3676 = vrcp.f32 %v2684_v20  ;;  %v4391_v20 = vld [vmem:[#allocation2 + $0x198] sm:$0xff] }
 0xd2d   :  { %v3675_v0 = vpop.eup %3674 }
 0xd2e   :  { %v2690_v24 = vsub.f32 %v7506_v35, %v3675_v0  ;;  %v3677_v40 = vpop.eup %3676  ;;  %v4386_v35 = vld [vmem:[#allocation2 + $0x1a8] sm:$0xff] }
 0xd30   :  { %v2691_v55 = vmul.f32 %v3677_v40, %v2690_v24  ;;  %v4393_v24 = vld [vmem:[#allocation2 + $0x190] sm:$0xff]  ;;  %v4394_v40 = vld [vmem:[#allocation2 + $0x168] sm:$0xff] }
 0xd32   :  { %v8105_v19 = vadd.f32 %v3675_v0, %v2691_v55  ;;  %v4392_v0 = vld [vmem:[#allocation2 + $0x180] sm:$0xff]  ;;  %v4395_v55 = vld [vmem:[#allocation2 + $0x178] sm:$0xff] }
 0xd34   :  { %2758 = vmatmul.mubr.f32.vlgmr.msra.gmra.mxu0 %v8105_v19  ;;  %2829 = vmatmul.mubr.f32.vlgmr.msra.gmra.mxu1 %v8105_v19 }
 0xd35   :  { %2854 = vmatpush1.msra.mxu1 %v4380_v62  ;;  %2925 = vmatpush1.msra.mxu0 %v4381_v4  ;;  %v4396_v62 = vld [vmem:[#allocation2 + $0x160] sm:$0xff]  ;;  %v4397_v4 = vld [vmem:[#allocation2 + $0x170] sm:$0xff] }
 0xd36   :  { %2855 = vmatprep.subr.mxu1 %v4382_v7  ;;  %2926 = vmatprep.subr.mxu0 %v4383_v17  ;;  %v4398_v7 = vld [vmem:[#allocation2 + $0x148] sm:$0xff]  ;;  %v4399_v17 = vld [vmem:[#allocation2 + $0x158] sm:$0xff] }
 0xd37   :  { %2856 = vmatpush1.msra.mxu1 %v4384_v28  ;;  %2927 = vmatpush1.msra.mxu0 %v4385_v33  ;;  %v4400_v28 = vld [vmem:[#allocation2 + $0x140] sm:$0xff]  ;;  %v4401_v33 = vld [vmem:[#allocation2 + $0x128] sm:$0xff] }
 0xd38   :  { %2857 = vmatprep.subr.mxu1 %v4386_v35  ;;  %2928 = vmatprep.subr.mxu0 %v4387_v42  ;;  %v4402_v35 = vld [vmem:[#allocation2 + $0x120] sm:$0xff]  ;;  %v4403_v42 = vld [vmem:[#allocation2 + $0x108] sm:$0xff] }
 0xd39   :  { %2858 = vmatpush1.msra.mxu1 %v4388_v47  ;;  %2929 = vmatpush1.msra.mxu0 %v4389_v60  ;;  %v4404_v47 = vld [vmem:[#allocation2 + $0x100] sm:$0xff]  ;;  %v4405_v60 = vld [vmem:[#allocation2 + $0xe8] sm:$0xff] }
 0xd3a   :  { %2859 = vmatprep.subr.mxu1 %v4390_v13  ;;  %2930 = vmatprep.subr.mxu0 %v4391_v20  ;;  %v9975_v13 = vld [vmem:[#allocation11_spill] sm:$0xff]  ;;  %v9976_v20 = vld [vmem:[#allocation29_spill] sm:$0xff] }
 0xd3b   :  { %2860 = vmatpush1.msra.mxu1 %v4392_v0  ;;  %2931 = vmatpush1.msra.mxu0 %v4393_v24  ;;  %v9977_v0 = vld [vmem:[#allocation12_spill] sm:$0xff]  ;;  %v9978_v24 = vld [vmem:[#allocation30_spill] sm:$0xff] }
 0xd3c   :  { %2861 = vmatprep.subr.mxu1 %v4394_v40  ;;  %2932 = vmatprep.subr.mxu0 %v4395_v55  ;;  %v9979_v40 = vld [vmem:[#allocation13_spill] sm:$0xff]  ;;  %v9980_v55 = vld [vmem:[#allocation31_spill] sm:$0xff] }
 0xd3d   :  { %2862 = vmatpush1.msra.mxu1 %v4396_v62  ;;  %2933 = vmatpush1.msra.mxu0 %v4397_v4  ;;  %v9981_v62 = vld [vmem:[#allocation14_spill] sm:$0xff]  ;;  %v9982_v4 = vld [vmem:[#allocation32_spill] sm:$0xff] }
 0xd3e   :  { %2863 = vmatprep.subr.mxu1 %v4398_v7  ;;  %2934 = vmatprep.subr.mxu0 %v4399_v17  ;;  %v9983_v7 = vld [vmem:[#allocation15_spill] sm:$0xff]  ;;  %v9984_v17 = vld [vmem:[#allocation33_spill] sm:$0xff] }
 0xd3f   :  { %2864 = vmatpush1.msra.mxu1 %v4400_v28  ;;  %2935 = vmatpush1.msra.mxu0 %v7531_v10  ;;  %v4406_v10 = vld [vmem:[#allocation2 + $0xe0] sm:$0xff] }
 0xd40   :  { %2865 = vmatprep.subr.mxu1 %v4401_v33  ;;  %2936 = vmatprep.subr.mxu0 %v7535_v48  ;;  %v4407_v48 = vld [vmem:[#allocation2 + $0xc8] sm:$0xff]  ;;  %v9985_v28 = vld [vmem:[#allocation16_spill] sm:$0xff]  ;;  %v9986_v33 = vld [vmem:[#allocation34_spill] sm:$0xff] }
 0xd41   :  { %2866 = vmatpush1.msra.mxu1 %v4402_v35  ;;  %2937 = vmatpush1.msra.mxu0 %v7539_v39  ;;  %v4408_v39 = vld [vmem:[#allocation2 + $0xc0] sm:$0xff]  ;;  %v9987_v35 = vld [vmem:[#allocation17_spill] sm:$0xff] }
 0xd42   :  { %2867 = vmatprep.subr.mxu1 %v4403_v42  ;;  %2938 = vmatprep.subr.mxu0 %v7543_v46  ;;  %v4409_v46 = vld [vmem:[#allocation2 + $0xa8] sm:$0xff]  ;;  %v9988_v42 = vld [vmem:[#allocation35_spill] sm:$0xff] }
 0xd43   :  { %2868 = vmatpush1.msra.mxu1 %v4404_v47  ;;  %2939 = vmatpush1.msra.mxu0 %v7547_v5  ;;  %v4410_v5 = vld [vmem:[#allocation2 + $0xa0] sm:$0xff]  ;;  %v9989_v47 = vld [vmem:[#allocation18_spill] sm:$0xff] }
 0xd44   :  { %2869 = vmatprep.subr.mxu1 %v4405_v60  ;;  %2940 = vmatprep.subr.mxu0 %v7551_v57  ;;  %v4411_v57 = vld [vmem:[#allocation2 + $0x88] sm:$0xff]  ;;  %v9990_v60 = vld [vmem:[#allocation36_spill] sm:$0xff] }
 0xd45   :  { %2870 = vmatpush1.msra.mxu1 %v4406_v10  ;;  %2941 = vmatpush1.msra.mxu0 %v7555_v11  ;;  %v4412_v11 = vld [vmem:[#allocation2 + $0x80] sm:$0xff]  ;;  %v9991_v10 = vld [vmem:[#allocation19_spill] sm:$0xff] }
 0xd46   :  { %2871 = vmatprep.subr.mxu1 %v4407_v48  ;;  %2942 = vmatprep.subr.mxu0 %v7559_v32  ;;  %v4413_v32 = vld [vmem:[#allocation2 + $0x68] sm:$0xff] }
 0xd47   :  { %2872 = vmatpush1.msra.mxu1 %v4408_v39  ;;  %2943 = vmatpush1.msra.mxu0 %v7563_v1  ;;  %v4414_v1 = vld [vmem:[#allocation2 + $0x60] sm:$0xff]  ;;  %v9992_v48 = vld [vmem:[#allocation37_spill] sm:$0xff] }
 0xd48   :  { %2873 = vmatprep.subr.mxu1 %v4409_v46  ;;  %2944 = vmatprep.subr.mxu0 %v7567_v27  ;;  %v4415_v27 = vld [vmem:[#allocation2 + $0x48] sm:$0xff]  ;;  %v9993_v39 = vld [vmem:[#allocation20_spill] sm:$0xff]  ;;  %v9994_v46 = vld [vmem:[#allocation38_spill] sm:$0xff] }
 0xd49   :  { %2874 = vmatpush1.msra.mxu1 %v4410_v5  ;;  %2945 = vmatpush1.msra.mxu0 %v7571_v2  ;;  %v4416_v2 = vld [vmem:[#allocation2 + $0x40] sm:$0xff]  ;;  %v9995_v5 = vld [vmem:[#allocation21_spill] sm:$0xff] }
 0xd4a   :  { %2875 = vmatprep.subr.mxu1 %v4411_v57  ;;  %2946 = vmatprep.subr.mxu0 %v7575_v41  ;;  %v4417_v41 = vld [vmem:[#allocation2 + $0x28] sm:$0xff]  ;;  %v9996_v57 = vld [vmem:[#allocation39_spill] sm:$0xff] }
 0xd4b   :  { %2876 = vmatpush1.msra.mxu1 %v4412_v11  ;;  %2947 = vmatpush1.msra.mxu0 %v7579_v6  ;;  %v4418_v6 = vld [vmem:[#allocation2 + $0x20] sm:$0xff]  ;;  %v9997_v11 = vld [vmem:[#allocation22_spill] sm:$0xff] }
 0xd4c   :  { %2877 = vmatprep.subr.mxu1 %v4413_v32  ;;  %2948 = vmatprep.subr.mxu0 %v7583_v30  ;;  %v4419_v30 = vld [vmem:[#allocation2 + $0x8] sm:$0xff]  ;;  %v9998_v32 = vld [vmem:[#allocation40_spill] sm:$0xff] }
 0xd4d   :  { %2878 = vmatpush1.msra.mxu1 %v4414_v1  ;;  %2949 = vmatpush1.msra.mxu0 %v7587_v21  ;;  %v4420_v21 = vld [vmem:[#allocation2] sm:$0xff] }
 0xd4e   :  { %2879 = vmatprep.subr.mxu1 %v4415_v27  ;;  %2950 = vmatprep.subr.mxu0 %v7591_v51  ;;  %v4421_v51 = vld [vmem:[#allocation2 + $0x3e8] sm:$0xff] }
 0xd4f   :  { %2880 = vmatpush1.msra.mxu1 %v4416_v2  ;;  %2951 = vmatpush1.msra.mxu0 %v7595_v44  ;;  %v4422_v44 = vld [vmem:[#allocation2 + $0x3e0] sm:$0xff]  ;;  %v9999_v27 = vld [vmem:[#allocation25_spill] sm:$0xff] }
 0xd50   :  { %2881 = vmatprep.subr.mxu1 %v4417_v41  ;;  %2952 = vmatprep.subr.mxu0 %v7599_v37  ;;  %v4423_v37 = vld [vmem:[#allocation2 + $0x3c8] sm:$0xff] }
 0xd51   :  { %2882 = vmatpush1.msra.mxu1 %v4418_v6  ;;  %2953 = vmatpush1.msra.mxu0 %v7603_v15  ;;  %v4424_v15 = vld [vmem:[#allocation2 + $0x3c0] sm:$0xff] }
 0xd52   :  { %2883 = vmatprep.subr.mxu1 %v4419_v30  ;;  %2954 = vmatprep.subr.mxu0 %v7607_v49  ;;  %v4425_v49 = vld [vmem:[#allocation2 + $0x3a8] sm:$0xff] }
 0xd53   :  { %2884 = vmatpush1.msra.mxu1 %v4420_v21  ;;  %2955 = vmatpush1.msra.mxu0 %v7611_v36  ;;  %v4426_v36 = vld [vmem:[#allocation2 + $0x3a0] sm:$0xff] }
 0xd54   :  { %2885 = vmatprep.subr.mxu1 %v4421_v51  ;;  %2956 = vmatprep.subr.mxu0 %v7615_v25  ;;  %v4427_v25 = vld [vmem:[#allocation2 + $0x388] sm:$0xff] }
 0xd55   :  { %2886 = vmatpush2.msra.mxu1 %v4422_v44  ;;  %2957 = vmatpush2.msra.mxu0 %v7619_v18  ;;  %v4428_v18 = vld [vmem:[#allocation2 + $0x380] sm:$0xff] }
 0xd56   :  { %2887 = vmatprep.subr.mxu1 %v4423_v37  ;;  %2958 = vmatprep.subr.mxu0 %v7623_v16  ;;  %v9959_v16 = vld [vmem:[#allocation169_spill] sm:$0xff]  ;;  %v2670_v37 = vpop.f32.mrf.mxu1 }
 0xd57   :  { %2888 = vmatpush2.msra.mxu1 %v4424_v15  ;;  %2959 = vmatpush2.msra.mxu0 %v7627_v31  ;;  %v9960_v31 = vld [vmem:[#allocation170_spill] sm:$0xff] }
 0xd58   :  { %2889 = vmatprep.subr.mxu1 %v4425_v49  ;;  %2960 = vmatprep.subr.mxu0 %v7631_v29  ;;  %v9961_v29 = vld [vmem:[#allocation171_spill] sm:$0xff] }
 0xd59   :  { %2890 = vmatpush2.msra.mxu1 %v4426_v36  ;;  %2961 = vmatpush2.msra.mxu0 %v7635_v54  ;;  %v9962_v54 = vld [vmem:[#allocation172_spill] sm:$0xff] }
 0xd5a   :  { %2891 = vmatprep.subr.mxu1 %v4427_v25  ;;  %2962 = vmatprep.subr.mxu0 %v7639_v45  ;;  %v9963_v45 = vld [vmem:[#allocation8_spill] sm:$0xff] }
 0xd5b   :  { %2892 = vmatpush2.msra.mxu1 %v4428_v18  ;;  %2963 = vmatpush2.msra.mxu0 %v7643_v58  ;;  %v9964_v58 = vld [vmem:[#allocation26_spill] sm:$0xff]  ;;  %v2671_v18 = vadd.f32 %v2670_v37, %v5471_v8  ;;  %v10039_v37 = vld [vmem:[#allocation60_spill] sm:$0xff] }
 0xd5c   :  { %2893 = vmatprep.subr.mxu1 %v7646_v50  ;;  %2964 = vmatprep.subr.mxu0 %v7649_v52  ;;  %v9965_v50 = vld [vmem:[#allocation146_spill] sm:$0xff]  ;;  %v9966_v52 = vld [vmem:[#allocation147_spill] sm:$0xff] }
 0xd5d   :  { %2894 = vmatpush2.msra.mxu1 %v7652_v38  ;;  %2965 = vmatpush2.msra.mxu0 %v7655_v56  ;;  %v9967_v38 = vld [vmem:[#allocation159_spill] sm:$0xff]  ;;  %v9968_v56 = vld [vmem:[#allocation142_spill] sm:$0xff] }
 0xd5e   :  { %2895 = vmatprep.subr.mxu1 %v7658_v61  ;;  %2966 = vmatprep.subr.mxu0 %v7661_v63  ;;  %v9969_v61 = vld [vmem:[#allocation143_spill] sm:$0xff]  ;;  %v9970_v63 = vld [vmem:[#allocation157_spill] sm:$0xff] }
 0xd5f   :  { %2896 = vmatpush2.msra.mxu1 %v7664_v23  ;;  %2967 = vmatpush2.msra.mxu0 %v7667_v14  ;;  %v9971_v23 = vld [vmem:[#allocation9_spill] sm:$0xff]  ;;  %v9972_v14 = vld [vmem:[#allocation27_spill] sm:$0xff] }
 0xd60   :  { %2897 = vmatprep.subr.mxu1 %v7670_v22  ;;  %2968 = vmatprep.subr.mxu0 %v7673_v12  ;;  %v9973_v22 = vld [vmem:[#allocation10_spill] sm:$0xff]  ;;  %v9974_v12 = vld [vmem:[#allocation28_spill] sm:$0xff] }
 0xd61   :  { %2898 = vmatpush2.msra.mxu1 %v9959_v16  ;;  %2969 = vmatpush2.msra.mxu0 %v9960_v31 }
 0xd62   :  { %2899 = vmatprep.subr.mxu1 %v9961_v29  ;;  %2970 = vmatprep.subr.mxu0 %v9962_v54 }
 0xd63   :  { %2900 = vmatpush2.msra.mxu1 %v9963_v45  ;;  %2971 = vmatpush2.msra.mxu0 %v9964_v58 }
 0xd64   :  { %2901 = vmatprep.subr.mxu1 %v9965_v50  ;;  %2972 = vmatprep.subr.mxu0 %v9966_v52 }
 0xd65   :  { %2902 = vmatpush2.msra.mxu1 %v9967_v38  ;;  %2973 = vmatpush2.msra.mxu0 %v9968_v56 }
 0xd66   :  { %2903 = vmatprep.subr.mxu1 %v9969_v61  ;;  %2974 = vmatprep.subr.mxu0 %v9970_v63  ;;  %v10001_v61 = vld [vmem:[#allocation41_spill] sm:$0xff]  ;;  %v10002_v63 = vld [vmem:[#allocation24_spill] sm:$0xff] }
 0xd67   :  { %2904 = vmatpush2.msra.mxu1 %v9971_v23  ;;  %2975 = vmatpush2.msra.mxu0 %v9972_v14  ;;  %v10003_v23 = vld [vmem:[#allocation42_spill] sm:$0xff]  ;;  %v10004_v14 = vld [vmem:[#allocation43_spill] sm:$0xff] }
 0xd68   :  { %2905 = vmatprep.subr.mxu1 %v9973_v22  ;;  %2976 = vmatprep.subr.mxu0 %v9974_v12  ;;  %v10005_v22 = vld [vmem:[#allocation76_spill] sm:$0xff]  ;;  %v10006_v12 = vld [vmem:[#allocation139_spill] sm:$0xff] }
 0xd69   :  { %2906 = vmatpush2.msra.mxu1 %v9975_v13  ;;  %2977 = vmatpush2.msra.mxu0 %v9976_v20  ;;  %v10007_v13 = vld [vmem:[#allocation44_spill] sm:$0xff]  ;;  %v10008_v20 = vld [vmem:[#allocation78_spill] sm:$0xff] }
 0xd6a   :  { %2907 = vmatprep.subr.mxu1 %v9977_v0  ;;  %2978 = vmatprep.subr.mxu0 %v9978_v24  ;;  %v10009_v0 = vld [vmem:[#allocation45_spill] sm:$0xff]  ;;  %v10010_v24 = vld [vmem:[#allocation79_spill] sm:$0xff] }
 0xd6b   :  { %2908 = vmatpush2.msra.mxu1 %v9979_v40  ;;  %2979 = vmatpush2.msra.mxu0 %v9980_v55  ;;  %v10011_v40 = vld [vmem:[#allocation46_spill] sm:$0xff] }
 0xd6c   :  { %2909 = vmatprep.subr.mxu1 %v9981_v62  ;;  %2980 = vmatprep.subr.mxu0 %v9982_v4  ;;  %v10012_v55 = vld [vmem:[#allocation82_spill] sm:$0xff]  ;;  %v10013_v62 = vld [vmem:[#allocation47_spill] sm:$0xff]  ;;  %v10014_v4 = vld [vmem:[#allocation84_spill] sm:$0xff] }
 0xd6d   :  { %2910 = vmatpush2.msra.mxu1 %v9983_v7  ;;  %2981 = vmatpush2.msra.mxu0 %v9984_v17  ;;  %v10015_v7 = vld [vmem:[#allocation48_spill] sm:$0xff]  ;;  %v10016_v17 = vld [vmem:[#allocation86_spill] sm:$0xff] }
 0xd6e   :  { %2911 = vmatprep.subr.mxu1 %v9985_v28  ;;  %2982 = vmatprep.subr.mxu0 %v9986_v33  ;;  %v10017_v28 = vld [vmem:[#allocation49_spill] sm:$0xff]  ;;  %v10018_v33 = vld [vmem:[#allocation88_spill] sm:$0xff] }
 0xd6f   :  { %2912 = vmatpush2.msra.mxu1 %v9987_v35  ;;  %2983 = vmatpush2.msra.mxu0 %v9988_v42  ;;  %v10019_v35 = vld [vmem:[#allocation50_spill] sm:$0xff] }
 0xd70   :  { %2913 = vmatprep.subr.mxu1 %v9989_v47  ;;  %2984 = vmatprep.subr.mxu0 %v9990_v60  ;;  %v10020_v42 = vld [vmem:[#allocation90_spill] sm:$0xff]  ;;  %v10021_v47 = vld [vmem:[#allocation51_spill] sm:$0xff]  ;;  %v10022_v60 = vld [vmem:[#allocation92_spill] sm:$0xff] }
 0xd71   :  { %2914 = vmatpush2.msra.mxu1 %v9991_v10  ;;  %2985 = vmatpush2.msra.mxu0 %v9992_v48  ;;  %v10023_v10 = vld [vmem:[#allocation52_spill] sm:$0xff]  ;;  %v10024_v48 = vld [vmem:[#allocation94_spill] sm:$0xff] }
 0xd72   :  { %2915 = vmatprep.subr.mxu1 %v9993_v39  ;;  %2986 = vmatprep.subr.mxu0 %v9994_v46  ;;  %v10025_v39 = vld [vmem:[#allocation53_spill] sm:$0xff]  ;;  %v10026_v46 = vld [vmem:[#allocation96_spill] sm:$0xff] }
 0xd73   :  { %2916 = vmatpush2.msra.mxu1 %v9995_v5  ;;  %2987 = vmatpush2.msra.mxu0 %v9996_v57  ;;  %v10027_v5 = vld [vmem:[#allocation54_spill] sm:$0xff] }
 0xd74   :  { %3015 = vmatprep.subr.mxu1 %v9997_v11  ;;  %3491 = vmatprep.subr.mxu0 %v9998_v32  ;;  %v10028_v57 = vld [vmem:[#allocation98_spill] sm:$0xff]  ;;  %v10029_v11 = vld [vmem:[#allocation55_spill] sm:$0xff]  ;;  %v10030_v32 = vld [vmem:[#allocation100_spill] sm:$0xff] }
 0xdf4   :  { %v2759_v1 = vpop.f32.mrf.mxu0  ;;  %v3488_v15 = vpop.f32.mrf.mxu1 }
 0xdf5   :  { %v2760_v2 = vadd.f32 %v2759_v1, %v9999_v27  ;;  %v10031_v1 = vld [vmem:[#allocation56_spill] sm:$0xff] }
 0xdf6   :  { %v2761_v6 = vpop.f32.mrf.mxu0  ;;  %v3489_v49 = vpop.f32.mrf.mxu1 }
 0xdf7   :  { %v3231_v41 = vmul.f32 -1.442695, %v2760_v2  ;;  %v2762_v30 = vadd.f32 %v2761_v6, %v5466_v53  ;;  %v3490_v36 = vadd.f32 %v3489_v49, %v3488_v15  ;;  %v10032_v2 = vld [vmem:[#allocation102_spill] sm:$0xff]  ;;  %v10034_v6 = vld [vmem:[#allocation104_spill] sm:$0xff]  ;;  %v10041_v49 = vld [vmem:[#allocation61_spill] sm:$0xff] }
 0xdf8   :  { %v10040_v15 = vld [vmem:[#allocation110_spill] sm:$0xff] }
 0xdf9   :  { %3678 = vpow2.f32 %v3231_v41  ;;  %v3232_v21 = vmul.f32 -1.442695, %v2762_v30  ;;  %v2831_v31 = vadd.f32 %v3490_v36, %v5474_v9  ;;  %v10033_v41 = vld [vmem:[#allocation57_spill] sm:$0xff]  ;;  %v10035_v30 = vld [vmem:[#allocation58_spill] sm:$0xff]  ;;  %v10042_v36 = vld [vmem:[#allocation112_spill] sm:$0xff] }
 0xdfb   :  { %3680 = vpow2.f32 %v3232_v21  ;;  %v10036_v21 = vld [vmem:[#allocation106_spill] sm:$0xff] }
 0xe06   :  { %v3679_v51 = vpop.eup %3678 }
 0xe07   :  { %v2837_v44 = vadd.f32 1.0, %v3679_v51  ;;  %v10037_v51 = vld [vmem:[#allocation59_spill] sm:$0xff] }
 0xe08   :  { %v3681_v25 = vpop.eup %3680 }
 0xe09   :  { %3682 = vrcp.f32 %v2837_v44  ;;  %v2843_v54 = vadd.f32 1.0, %v3681_v25  ;;  %v10038_v44 = vld [vmem:[#allocation108_spill] sm:$0xff]  ;;  %v10043_v25 = vld [vmem:[#allocation62_spill] sm:$0xff] }
 0xe16   :  { %v3683_v16 = vpop.eup %3682 }
 0xe17   :  { %v2846_v29 = vmul.f32 %v3683_v16, %v2671_v18  ;;  %v10044_v18 = vld [vmem:[#allocation114_spill] sm:$0xff]  ;;  %v10045_v16 = vld [vmem:[#allocation63_spill] sm:$0xff] }
 0xe19   :  { %v2847_v45 = vadd.f32 %v2846_v29, %v2831_v31  ;;  %v10046_v31 = vld [vmem:[#allocation116_spill] sm:$0xff] }
 0xe1a   :  { %v10047_v29 = vld [vmem:[#allocation64_spill] sm:$0xff] }
 0xe1b   :  { %3684 = vtanh.f32 %v2847_v45  ;;  %v10049_v45 = vld [vmem:[#allocation65_spill] sm:$0xff] }
 0xe1c   :  { %3686 = vrcp.f32 %v2843_v54  ;;  %v10048_v54 = vld [vmem:[#allocation118_spill] sm:$0xff] }
 0xe28   :  { %v3685_v58 = vpop.eup %3684 }
 0xe29   :  { %v2849_v50 = vsub.f32 %v7801_v34, %v3685_v58  ;;  %v3687_v52 = vpop.eup %3686  ;;  %v10000_v34 = vld [vmem:[#allocation23_spill] sm:$0xff] }
 0xe2b   :  { %v2850_v38 = vmul.f32 %v3687_v52, %v2849_v50  ;;  %v10051_v50 = vld [vmem:[#allocation66_spill] sm:$0xff] }
 0xe2c   :  { %v10052_v52 = vld [vmem:[#allocation122_spill] sm:$0xff] }
 0xe2d   :  { %v8193_v56 = vadd.f32 %v3685_v58, %v2850_v38  ;;  %v10050_v58 = vld [vmem:[#allocation120_spill] sm:$0xff]  ;;  %v10053_v38 = vld [vmem:[#allocation67_spill] sm:$0xff] }
 0xe2f   :  { %2852 = vst [vmem:[%s8325_s7 + $0x30] sm:$0xff] %v8193_v56  ;;  %2917 = vmatprep.mubr.f32.mxu1 %v8193_v56  ;;  %2988 = vmatprep.mubr.f32.mxu0 %v8193_v56 }
 0xe30   :  { %2918 = vmatmul.mubr.f32.vlgmr.msra.gmra.mxu1 %v8105_v19  ;;  %2989 = vmatmul.mubr.f32.vlgmr.msra.gmra.mxu0 %v8105_v19 }
 0xe31   :  { %3079 = vmatprep.mubr.f32.mxu1 %v8193_v56  ;;  %3150 = vmatprep.mubr.f32.mxu0 %v8193_v56 }
 0xe32   :  { %3016 = vmatpush1.msra.mxu1 %v10000_v34  ;;  %3492 = vmatpush3.msra.mxu0 %v10001_v61  ;;  %v10054_v34 = vld [vmem:[#allocation124_spill] sm:$0xff] }
 0xe33   :  { %3017 = vmatprep.subr.mxu1 %v10002_v63  ;;  %3493 = vmatprep.subr.mxu0 %v10003_v23  ;;  %v10055_v61 = vld [vmem:[#allocation68_spill] sm:$0xff]  ;;  %v10056_v63 = vld [vmem:[#allocation126_spill] sm:$0xff]  ;;  %v10057_v23 = vld [vmem:[#allocation69_spill] sm:$0xff] }
 0xe34   :  { %3018 = vmatpush1.msra.mxu1 %v10004_v14  ;;  %3494 = vmatpush3.msra.mxu0 %v10005_v22  ;;  %v10058_v14 = vld [vmem:[#allocation128_spill] sm:$0xff]  ;;  %v10059_v22 = vld [vmem:[#allocation70_spill] sm:$0xff] }
 0xe35   :  { %3019 = vmatprep.subr.mxu1 %v10006_v12  ;;  %3495 = vmatprep.subr.mxu0 %v10007_v13  ;;  %v10060_v12 = vld [vmem:[#allocation130_spill] sm:$0xff]  ;;  %v10061_v13 = vld [vmem:[#allocation71_spill] sm:$0xff] }
 0xe36   :  { %3020 = vmatpush1.msra.mxu1 %v10008_v20  ;;  %3496 = vmatpush3.msra.mxu0 %v10009_v0  ;;  %v10062_v20 = vld [vmem:[#allocation132_spill] sm:$0xff] }
 0xe37   :  { %3021 = vmatprep.subr.mxu1 %v10010_v24  ;;  %3497 = vmatprep.subr.mxu0 %v10011_v40  ;;  %v10063_v0 = vld [vmem:[#allocation72_spill] sm:$0xff]  ;;  %v10064_v24 = vld [vmem:[#allocation134_spill] sm:$0xff]  ;;  %v10065_v40 = vld [vmem:[#allocation73_spill] sm:$0xff] }
 0xe38   :  { %3022 = vmatpush1.msra.mxu1 %v10012_v55  ;;  %3498 = vmatpush3.msra.mxu0 %v10013_v62  ;;  %v10066_v55 = vld [vmem:[#allocation136_spill] sm:$0xff]  ;;  %v10067_v62 = vld [vmem:[#allocation74_spill] sm:$0xff] }
 0xe39   :  { %3023 = vmatprep.subr.mxu1 %v10014_v4  ;;  %3499 = vmatprep.subr.mxu0 %v10015_v7  ;;  %v10068_v4 = vld [vmem:[#allocation138_spill] sm:$0xff]  ;;  %v10069_v7 = vld [vmem:[#allocation75_spill] sm:$0xff] }
 0xe3a   :  { %3024 = vmatpush1.msra.mxu1 %v10016_v17  ;;  %3500 = vmatpush3.msra.mxu0 %v10017_v28  ;;  %v10070_v17 = vld [vmem:[#allocation77_spill] sm:$0xff]  ;;  %v10071_v28 = vld [vmem:[#allocation80_spill] sm:$0xff] }
 0xe3b   :  { %3025 = vmatprep.subr.mxu1 %v10018_v33  ;;  %3501 = vmatprep.subr.mxu0 %v10019_v35  ;;  %v10072_v33 = vld [vmem:[#allocation81_spill] sm:$0xff]  ;;  %v10073_v35 = vld [vmem:[#allocation83_spill] sm:$0xff] }
 0xe3c   :  { %3026 = vmatpush1.msra.mxu1 %v10020_v42  ;;  %3502 = vmatpush3.msra.mxu0 %v10021_v47  ;;  %v10074_v42 = vld [vmem:[#allocation85_spill] sm:$0xff]  ;;  %v10075_v47 = vld [vmem:[#allocation87_spill] sm:$0xff] }
 0xe3d   :  { %3027 = vmatprep.subr.mxu1 %v10022_v60  ;;  %3503 = vmatprep.subr.mxu0 %v10023_v10  ;;  %v10076_v60 = vld [vmem:[#allocation89_spill] sm:$0xff]  ;;  %v10077_v10 = vld [vmem:[#allocation91_spill] sm:$0xff] }
 0xe3e   :  { %3028 = vmatpush1.msra.mxu1 %v10024_v48  ;;  %3504 = vmatpush3.msra.mxu0 %v10025_v39  ;;  %v10078_v48 = vld [vmem:[#allocation93_spill] sm:$0xff]  ;;  %v10079_v39 = vld [vmem:[#allocation95_spill] sm:$0xff] }
 0xe3f   :  { %3029 = vmatprep.subr.mxu1 %v10026_v46  ;;  %3505 = vmatprep.subr.mxu0 %v10027_v5  ;;  %v10080_v46 = vld [vmem:[#allocation97_spill] sm:$0xff]  ;;  %v10081_v5 = vld [vmem:[#allocation99_spill] sm:$0xff] }
 0xe40   :  { %3030 = vmatpush1.msra.mxu1 %v10028_v57  ;;  %3506 = vmatpush3.msra.mxu0 %v10029_v11  ;;  %v10082_v57 = vld [vmem:[#allocation101_spill] sm:$0xff]  ;;  %v10083_v11 = vld [vmem:[#allocation103_spill] sm:$0xff] }
 0xe41   :  { %3031 = vmatprep.subr.mxu1 %v10030_v32  ;;  %3507 = vmatprep.subr.mxu0 %v10031_v1  ;;  %v10084_v32 = vld [vmem:[#allocation105_spill] sm:$0xff]  ;;  %v10085_v1 = vld [vmem:[#allocation107_spill] sm:$0xff] }
 0xe42   :  { %3032 = vmatpush1.msra.mxu1 %v10032_v2  ;;  %3508 = vmatpush3.msra.mxu0 %v10033_v41  ;;  %v10086_v2 = vld [vmem:[#allocation109_spill] sm:$0xff]  ;;  %v10087_v41 = vld [vmem:[#allocation111_spill] sm:$0xff] }
 0xe43   :  { %3033 = vmatprep.subr.mxu1 %v10034_v6  ;;  %3509 = vmatprep.subr.mxu0 %v10035_v30  ;;  %v10088_v6 = vld [vmem:[#allocation113_spill] sm:$0xff]  ;;  %v10089_v30 = vld [vmem:[#allocation115_spill] sm:$0xff] }
 0xe44   :  { %3034 = vmatpush1.msra.mxu1 %v10036_v21  ;;  %3510 = vmatpush3.msra.mxu0 %v10037_v51  ;;  %v10090_v21 = vld [vmem:[#allocation117_spill] sm:$0xff]  ;;  %v10091_v51 = vld [vmem:[#allocation119_spill] sm:$0xff] }
 0xe45   :  { %3035 = vmatprep.subr.mxu1 %v10038_v44  ;;  %3511 = vmatprep.subr.mxu0 %v10039_v37  ;;  %v10092_v44 = vld [vmem:[#allocation121_spill] sm:$0xff]  ;;  %v10093_v37 = vld [vmem:[#allocation123_spill] sm:$0xff] }
 0xe46   :  { %3036 = vmatpush1.msra.mxu1 %v10040_v15  ;;  %3512 = vmatpush3.msra.mxu0 %v10041_v49 }
 0xe47   :  { %3037 = vmatprep.subr.mxu1 %v10042_v36  ;;  %3513 = vmatprep.subr.mxu0 %v10043_v25  ;;  %v10094_v36 = vld [vmem:[#allocation152_spill] sm:$0xff] }
 0xe48   :  { %3038 = vmatpush1.msra.mxu1 %v10044_v18  ;;  %3514 = vmatpush3.msra.mxu0 %v10045_v16 }
 0xe49   :  { %3039 = vmatprep.subr.mxu1 %v10046_v31  ;;  %3515 = vmatprep.subr.mxu0 %v10047_v29  ;;  %v10095_v29 = vld [vmem:[#allocation153_spill] sm:$0xff] }
 0xe4a   :  { %3040 = vmatpush1.msra.mxu1 %v10048_v54  ;;  %3516 = vmatpush3.msra.mxu0 %v10049_v45 }
 0xe4b   :  { %3041 = vmatprep.subr.mxu1 %v10050_v58  ;;  %3517 = vmatprep.subr.mxu0 %v10051_v50 }
 0xe4c   :  { %3042 = vmatpush1.msra.mxu1 %v10052_v52  ;;  %3518 = vmatpush3.msra.mxu0 %v10053_v38 }
 0xe4d   :  { %3043 = vmatprep.subr.mxu1 %v10054_v34  ;;  %3519 = vmatprep.subr.mxu0 %v10055_v61 }
 0xe4e   :  { %3044 = vmatpush1.msra.mxu1 %v10056_v63  ;;  %3520 = vmatpush3.msra.mxu0 %v10057_v23 }
 0xe4f   :  { %3045 = vmatprep.subr.mxu1 %v10058_v14  ;;  %3521 = vmatprep.subr.mxu0 %v10059_v22 }
 0xe50   :  { %3046 = vmatpush1.msra.mxu1 %v10060_v12  ;;  %3522 = vmatpush3.msra.mxu0 %v10061_v13 }
 0xe51   :  { %3047 = vmatprep.subr.mxu1 %v10062_v20 }
 0xe52   :  { %3048 = vmatpush2.msra.mxu1 %v10063_v0 }
 0xe53   :  { %3049 = vmatprep.subr.mxu1 %v10064_v24 }
 0xe54   :  { %3050 = vmatpush2.msra.mxu1 %v10065_v40 }
 0xe55   :  { %3051 = vmatprep.subr.mxu1 %v10066_v55 }
 0xe56   :  { %3052 = vmatpush2.msra.mxu1 %v10067_v62 }
 0xe57   :  { %3053 = vmatprep.subr.mxu1 %v10068_v4 }
 0xe58   :  { %3054 = vmatpush2.msra.mxu1 %v10069_v7 }
 0xe59   :  { %3055 = vmatprep.subr.mxu1 %v10070_v17 }
 0xe5a   :  { %3056 = vmatpush2.msra.mxu1 %v10071_v28 }
 0xe5b   :  { %3057 = vmatprep.subr.mxu1 %v10072_v33 }
 0xe5c   :  { %3058 = vmatpush2.msra.mxu1 %v10073_v35 }
 0xe5d   :  { %3059 = vmatprep.subr.mxu1 %v10074_v42 }
 0xe5e   :  { %3060 = vmatpush2.msra.mxu1 %v10075_v47 }
 0xe5f   :  { %3061 = vmatprep.subr.mxu1 %v10076_v60 }
 0xe60   :  { %3062 = vmatpush2.msra.mxu1 %v10077_v10 }
 0xe61   :  { %3063 = vmatprep.subr.mxu1 %v10078_v48 }
 0xe62   :  { %3064 = vmatpush2.msra.mxu1 %v10079_v39 }
 0xe63   :  { %3065 = vmatprep.subr.mxu1 %v10080_v46 }
 0xe64   :  { %3066 = vmatpush2.msra.mxu1 %v10081_v5 }
 0xe65   :  { %3067 = vmatprep.subr.mxu1 %v10082_v57 }
 0xe66   :  { %3068 = vmatpush2.msra.mxu1 %v10083_v11 }
 0xe67   :  { %3069 = vmatprep.subr.mxu1 %v10084_v32 }
 0xe68   :  { %3070 = vmatpush2.msra.mxu1 %v10085_v1 }
 0xe69   :  { %3071 = vmatprep.subr.mxu1 %v10086_v2 }
 0xe6a   :  { %3072 = vmatpush2.msra.mxu1 %v10087_v41 }
 0xe6b   :  { %3073 = vmatprep.subr.mxu1 %v10088_v6 }
 0xe6c   :  { %3074 = vmatpush2.msra.mxu1 %v10089_v30 }
 0xe6d   :  { %3075 = vmatprep.subr.mxu1 %v10090_v21 }
 0xe6e   :  { %3076 = vmatpush2.msra.mxu1 %v10091_v51 }
 0xe6f   :  { %3077 = vmatprep.subr.mxu1 %v10092_v44 }
 0xe70   :  { %3078 = vmatpush2.msra.mxu1 %v10093_v37 }
 0xef0   :  { %v2919_v15 = vpop.f32.mrf.mxu1  ;;  %v2990_v52 = vpop.f32.mrf.mxu0 }
 0xef1   :  { %v2920_v49 = vadd.f32 %v2919_v15, %v5194_v26  ;;  %v2991_v34 = vadd.f32 %v2990_v52, %v5221_v3  ;;  %v10096_v26 = vld [vmem:[#allocation160_spill] sm:$0xff] }
 0xef2   :  { %v2921_v16 = vpop.f32.mrf.mxu1  ;;  %v333_v63 = vadd.f32 %v10096_v26, %v5224_v43  ;;  %v2992_v17 = vpop.f32.mrf.mxu0 }
 0xef3   :  { %v2995_v25 = vadd.f32 %v2920_v49, %v10094_v36  ;;  %v2922_v31 = vadd.f32 %v2921_v16, %v9206_v59  ;;  %v2993_v42 = vadd.f32 %v2992_v17, %v5471_v8 }
 0xef5   :  { %v3233_v18 = vmul.f32 -1.442695, %v2995_v25  ;;  %v3002_v54 = vadd.f32 %v2922_v31, %v10095_v29 }
 0xef7   :  { %3688 = vpow2.f32 %v3233_v18  ;;  %v3234_v45 = vmul.f32 -1.442695, %v3002_v54 }
 0xef9   :  { %3690 = vpow2.f32 %v3234_v45 }
 0xf04   :  { %v3689_v58 = vpop.eup %3688 }
 0xf05   :  { %v2999_v50 = vadd.f32 1.0, %v3689_v58 }
 0xf06   :  { %v3691_v38 = vpop.eup %3690 }
 0xf07   :  { %3692 = vrcp.f32 %v2999_v50  ;;  %v3006_v22 = vadd.f32 1.0, %v3691_v38 }
 0xf14   :  { %v3693_v61 = vpop.eup %3692 }
 0xf15   :  { %v3009_v23 = vmul.f32 %v3693_v61, %v2991_v34 }
 0xf17   :  { %v3010_v14 = vadd.f32 %v3009_v23, %v333_v63 }
 0xf19   :  { %3694 = vtanh.f32 %v3010_v14 }
 0xf1a   :  { %3696 = vrcp.f32 %v3006_v22 }
 0xf26   :  { %v3695_v59 = vpop.eup %3694 }
 0xf27   :  { %v3012_v12 = vsub.f32 %v8105_v19, %v3695_v59  ;;  %v3697_v13 = vpop.eup %3696 }
 0xf29   :  { %v3013_v20 = vmul.f32 %v3697_v13, %v3012_v12 }
 0xf2b   :  { %v3014_v0 = vadd.f32 %v3695_v59, %v3013_v20 }
 0xf2d   :  { %3080 = vmatmul.mubr.f32.vlgmr.msra.gmra.mxu1 %v3014_v0  ;;  %3151 = vmatmul.mubr.f32.vlgmr.msra.gmra.mxu0 %v3014_v0 }
 0xfed   :  { %v3081_v24 = vpop.f32.mrf.mxu1  ;;  %v3523_v19 = vpop.f32.mrf.mxu0 }
 0xfee   :  { %v3082_v3 = vadd.f32 %v3081_v24, %v9999_v27 }
 0xfef   :  { %v3083_v55 = vpop.f32.mrf.mxu1  ;;  %v3524_v28 = vpop.f32.mrf.mxu0 }
 0xff0   :  { %v3235_v40 = vmul.f32 -1.442695, %v3082_v3  ;;  %v3084_v43 = vadd.f32 %v3083_v55, %v5466_v53  ;;  %v3525_v33 = vadd.f32 %v3524_v28, %v3523_v19 }
 0xff2   :  { %3698 = vpow2.f32 %v3235_v40  ;;  %v3236_v62 = vmul.f32 -1.442695, %v3084_v43  ;;  %v3153_v27 = vadd.f32 %v3525_v33, %v5474_v9 }
 0xff4   :  { %3700 = vpow2.f32 %v3236_v62 }
 0xfff   :  { %v3699_v4 = vpop.eup %3698 }
0x1000   :  { %v3159_v7 = vadd.f32 1.0, %v3699_v4 }
0x1001   :  { %v3701_v35 = vpop.eup %3700 }
0x1002   :  { %3702 = vrcp.f32 %v3159_v7  ;;  %v3165_v10 = vadd.f32 1.0, %v3701_v35 }
0x100f   :  { %v3703_v47 = vpop.eup %3702 }
0x1010   :  { %v3168_v60 = vmul.f32 %v3703_v47, %v2993_v42 }
0x1012   :  { %v3169_v48 = vadd.f32 %v3168_v60, %v3153_v27 }
0x1014   :  { %3704 = vtanh.f32 %v3169_v48 }
0x1015   :  { %3706 = vrcp.f32 %v3165_v10 }
0x1021   :  { %v3705_v53 = vpop.eup %3704 }
0x1022   :  { %v3171_v39 = vsub.f32 %v8193_v56, %v3705_v53  ;;  %v3707_v46 = vpop.eup %3706 }
0x1024   :  { %v3172_v5 = vmul.f32 %v3707_v46, %v3171_v39 }
0x1026   :  { %v3173_v57 = vadd.f32 %v3705_v53, %v3172_v5 }
0x1028   :  { %3174 = vst [vmem:[%s8325_s7 + $0x38] sm:$0xff] %v3173_v57  ;;  %3175 = vst [vmem:[%s8326_s8] sm:$0xff] %v3173_v57 }
0x1029   :  { %3184 = vsyncpa [#allocation3], 1 }
0x102a   :  { %3185 = vsyncpa [#allocation5], 1 }

</bundles_post_ra>
